<compile_context>
chip_gen: v5e
topology: v5e:2x2
jax: 0.10.0
libtpu: 0.0.40
codegen_flags: <defaults>
</compile_context>

<pallas_src>
import functools
import math

import jax
import jax.numpy as jnp
from jax import lax
from jax.experimental import pallas as pl
from jax.experimental.pallas import tpu as pltpu  # noqa: F401  (kept for parity)

EPS = 1e-5  # torch.nn.LayerNorm default

# ----------------------------- config (small) --------------------------------
BATCH = 8
SEQ = 8
INPUT_SIZE = 16
HIDDEN = 32
NUM_LAYERS = 2
OUTPUT_SIZE = 8
LANES = 4 * HIDDEN  # 128: row width of both parameter slabs


def _layer_norm(x, gamma, beta):
    # One-pass LN: sum(x) and sum(x*x) are independent cross-lane reductions.
    mu = jnp.mean(x, axis=-1, keepdims=True)
    ms = jnp.mean(x * x, axis=-1, keepdims=True)
    var = ms - mu * mu
    return (x - mu) * lax.rsqrt(var + EPS) * gamma + beta


def _layer_norm_ref(x, gamma, beta):
    mu = jnp.mean(x, axis=-1, keepdims=True)
    var = jnp.mean((x - mu) ** 2, axis=-1, keepdims=True)
    return (x - mu) * lax.rsqrt(var + EPS) * gamma + beta


# --------------------------- fused network kernel -----------------------------
def _fused_lstm_fc_kernel(x_ref, w_ref, v_ref, o_ref, *,
                          seq_len, batch, hidden, out_size,
                          in_sizes, w_row_offs, fc_w_row):
    """Whole network in one invocation.

    x_ref : (B*S, D0)   batch-major input slab (row = b*S + t)
    w_ref : (rows, 128) packed [w_ih_l; w_hh_l]* + fc_w (lane-padded)
    v_ref : (8*L+8,128) per-layer 8-row blocks [b_ih,b_hh,g_x,b_x,g_c,b_c,g_h,b_h]
                        (H-wide rows lane-padded), then fc_b row
    o_ref : (B, O)
    """
    S, B, H = seq_len, batch, hidden
    L = len(in_sizes)

    # ---- unpack per-layer params (hoisted; one aligned (8,128) load each) ----
    layer_p = []
    for l in range(L):
        vb = v_ref[8 * l: 8 * l + 8, :]                    # (8, 128)
        b_ih, b_hh = vb[0:1, :], vb[1:2, :]
        g_x, b_x = vb[2:3, :], vb[3:4, :]
        g_c, b_c = vb[4:5, 0:H], vb[5:6, 0:H]
        g_h, b_h = vb[6:7, 0:H], vb[7:8, 0:H]
        o_ih, o_hh = w_row_offs[l]
        w_ih = w_ref[o_ih:o_ih + in_sizes[l], :]           # (in_l, 4H)
        w_hh = w_ref[o_hh:o_hh + H, :]                     # (H, 4H), g-cols x2
        layer_p.append((w_ih, w_hh, b_ih, b_hh, g_x, b_x, g_c, b_c, g_h, b_h))

    # ---- layer-0 input projection hoisted over ALL timesteps (one matmul) ----
    w_ih0, _, b_ih0, b_hh0, g_x0, b_x0 = layer_p[0][:6]
    gx0 = jnp.dot(x_ref[...], w_ih0, preferred_element_type=jnp.float32) + b_ih0
    gx0 = _layer_norm(gx0, g_x0, b_x0) + b_hh0             # (B*S, 4H)
    gx0 = gx0.reshape(B, S, 4 * H)                         # layout-free split

    h = [jnp.zeros((B, H), jnp.float32) for _ in range(L)]  # hidden_states=None
    c = [jnp.zeros((B, H), jnp.float32) for _ in range(L)]

    # ---- wavefront: layer l's timestep t runs at super-step s = t + l --------
    # Layers are emitted in decreasing l so layer l reads h[l-1] from the
    # previous super-step (= same timestep t) before layer l-1 overwrites it.
    for s in range(S + L - 1):
        for l in range(L - 1, -1, -1):
            t = s - l
            if t < 0 or t >= S:
                continue
            (w_ih, w_hh, b_ih, b_hh, g_x, b_x, g_c, b_c, g_h, b_h) = layer_p[l]

            if l == 0:
                gx = gx0[:, t, :]                          # (B, 4H)
            else:
                gx = jnp.dot(h[l - 1], w_ih,
                             preferred_element_type=jnp.float32) + b_ih
                gx = _layer_norm(gx, g_x, b_x) + b_hh

            gates = gx + jnp.dot(h[l], w_hh,
                                 preferred_element_type=jnp.float32)  # (B, 4H)

            # One full-vreg sigmoid; tanh(g) = 2*sigmoid(2g)-1 with the x2
            # already folded into the packed parameters' g columns.
            act = jax.nn.sigmoid(gates)
            i_t = act[:, 0 * H:1 * H]
            f_t = act[:, 1 * H:2 * H]
            g_t = 2.0 * act[:, 2 * H:3 * H] - 1.0
            o_t = act[:, 3 * H:4 * H]

            c[l] = _layer_norm(f_t * c[l] + i_t * g_t, g_c, b_c)
            h[l] = _layer_norm(o_t * jnp.tanh(c[l]), g_h, b_h)
            # TODO(synk): if XLU saturates on v6e/v7x, keep gate math in the
            # full (8,128) layout via pltpu.roll instead of quarter-vreg slices.

    # ---- final fc on the top layer's last-timestep h (dropout p=0 -> id) -----
    fc_w = w_ref[fc_w_row:fc_w_row + H, :]                 # (H, 128), cols<O used
    fc_b = v_ref[8 * L:8 * L + 1, :]                       # (1, 128)
    out = jnp.dot(h[L - 1], fc_w, preferred_element_type=jnp.float32) + fc_b
    o_ref[...] = out[:, :out_size]


# ------------------------- parameter packing (one-time) -----------------------
def pack_params(params):
    """Pack per-layer params into two slabs; fold the tanh x2 pre-scale."""
    H = HIDDEN
    layers = params["layers"]

    def scale_g(v):  # multiply the g-gate columns by 2 (tanh via sigmoid)
        return v.at[..., 2 * H:3 * H].multiply(2.0)

    def pad_row(v):  # (1, n) -> (1, LANES)
        return jnp.zeros((1, LANES), jnp.float32).at[:, :v.shape[-1]].set(v)

    w_rows, v_rows, w_row_offs, in_sizes = [], [], [], []
    row = 0
    for lp in layers:
        in_sz = lp["w_ih"].shape[0]
        in_sizes.append(in_sz)
        w_row_offs.append((row, row + in_sz))
        w_rows += [lp["w_ih"], scale_g(lp["w_hh"])]
        row += in_sz + H
        v_rows += [pad_row(lp["b_ih"]), pad_row(scale_g(lp["b_hh"])),
                   pad_row(scale_g(lp["g_x"])), pad_row(scale_g(lp["b_x"])),
                   pad_row(lp["g_c"]), pad_row(lp["b_c"]),
                   pad_row(lp["g_h"]), pad_row(lp["b_h"])]
    fc_w_row = row
    w_rows.append(jnp.zeros((H, LANES), jnp.float32)
                  .at[:, :OUTPUT_SIZE].set(params["fc_w"]))
    v_rows.append(pad_row(params["fc_b"]))
    while len(v_rows) % 8:                                  # sublane-align
        v_rows.append(jnp.zeros((1, LANES), jnp.float32))

    w_slab = jnp.concatenate(w_rows, axis=0)                # (144, 128) here
    v_slab = jnp.concatenate(v_rows, axis=0)                # (24, 128) here
    meta = dict(in_sizes=tuple(in_sizes), w_row_offs=tuple(w_row_offs),
                fc_w_row=fc_w_row)
    return w_slab, v_slab, meta


# ----------------------------- full forward pass ------------------------------
@functools.partial(jax.jit, static_argnames=("in_sizes", "w_row_offs", "fc_w_row"))
def lstm_network_forward(x_bsd, w_slab, v_slab, *, in_sizes, w_row_offs, fc_w_row):
    """x_bsd: (B, S, D) like the PyTorch module; returns (B, OUTPUT_SIZE)."""
    B, S, D = x_bsd.shape
    # Batch-major slab: a pure leading-dim collapse (bitcast-level, no copy).
    x2d = x_bsd.astype(jnp.float32).reshape(B * S, D)

    kern = functools.partial(_fused_lstm_fc_kernel,
                             seq_len=S, batch=B, hidden=HIDDEN,
                             out_size=OUTPUT_SIZE, in_sizes=in_sizes,
                             w_row_offs=w_row_offs, fc_w_row=fc_w_row)
    # Single invocation (no grid); 3 operands, each a full-array VMEM block.
    return pl.pallas_call(
        kern,
        out_shape=jax.ShapeDtypeStruct((B, OUTPUT_SIZE), jnp.float32),
        cost_estimate=pl.CostEstimate(flops=1_900_000, transcendentals=22_000,
                                      bytes_accessed=91_000),
    )(x2d, w_slab, v_slab)


# --------------------------- deterministic params -----------------------------
def init_lstm_cell_params(key, in_size, H):
    k = jax.random.split(key, 4)
    ortho = jax.nn.initializers.orthogonal()
    w_ih = ortho(k[0], (in_size, 4 * H), jnp.float32)   # stored as (in, 4H) = W^T
    w_hh = ortho(k[1], (H, 4 * H), jnp.float32)
    bnd_ih = 1.0 / math.sqrt(in_size)
    bnd_hh = 1.0 / math.sqrt(H)
    b_ih = jax.random.uniform(k[2], (4 * H,), jnp.float32, -bnd_ih, bnd_ih)
    b_hh = jax.random.uniform(k[3], (4 * H,), jnp.float32, -bnd_hh, bnd_hh)
    # forget-gate bias (second chunk) initialized to 1.0, as in the module
    b_ih = b_ih.at[H:2 * H].set(1.0)
    b_hh = b_hh.at[H:2 * H].set(1.0)
    return dict(
        w_ih=w_ih, w_hh=w_hh,
        b_ih=b_ih.reshape(1, 4 * H), b_hh=b_hh.reshape(1, 4 * H),
        g_x=jnp.ones((1, 4 * H), jnp.float32), b_x=jnp.zeros((1, 4 * H), jnp.float32),
        g_c=jnp.ones((1, H), jnp.float32), b_c=jnp.zeros((1, H), jnp.float32),
        g_h=jnp.ones((1, H), jnp.float32), b_h=jnp.zeros((1, H), jnp.float32),
    )


def init_params(key):
    keys = jax.random.split(key, NUM_LAYERS + 2)
    layers = [init_lstm_cell_params(keys[i],
                                    INPUT_SIZE if i == 0 else HIDDEN, HIDDEN)
              for i in range(NUM_LAYERS)]
    bnd = 1.0 / math.sqrt(HIDDEN)
    fc_w = jax.random.uniform(keys[-2], (HIDDEN, OUTPUT_SIZE), jnp.float32, -bnd, bnd)
    fc_b = jax.random.uniform(keys[-1], (1, OUTPUT_SIZE), jnp.float32, -bnd, bnd)
    return dict(layers=layers, fc_w=fc_w, fc_b=fc_b)


# ------------------------- pure-JAX reference (check) -------------------------
def _cell_ref(x, h, c, p, H):
    hp = jax.lax.Precision.HIGHEST
    gx = jnp.dot(x, p["w_ih"], precision=hp) + p["b_ih"][0]
    gx = _layer_norm_ref(gx, p["g_x"][0], p["b_x"][0])
    gh = jnp.dot(h, p["w_hh"], precision=hp) + p["b_hh"][0]
    gates = gx + gh
    i = jax.nn.sigmoid(gates[:, :H])
    f = jax.nn.sigmoid(gates[:, H:2 * H])
    g = jnp.tanh(gates[:, 2 * H:3 * H])
    o = jax.nn.sigmoid(gates[:, 3 * H:])
    c = f * c + i * g
    c = _layer_norm_ref(c, p["g_c"][0], p["b_c"][0])
    h = o * jnp.tanh(c)
    h = _layer_norm_ref(h, p["g_h"][0], p["b_h"][0])
    return h, c


def ref_forward(x_bsd, params):
    B, S, _ = x_bsd.shape
    states = [(jnp.zeros((B, HIDDEN), jnp.float32),
               jnp.zeros((B, HIDDEN), jnp.float32)) for _ in params["layers"]]
    out_last = None
    for t in range(S):
        inp = x_bsd[:, t, :]
        for i, p in enumerate(params["layers"]):
            h, c = _cell_ref(inp, states[i][0], states[i][1], p, HIDDEN)
            states[i] = (h, c)
            inp = h
        out_last = inp
    return jnp.dot(out_last, params["fc_w"],
                   precision=jax.lax.Precision.HIGHEST) + params["fc_b"][0]


# ----------------------------------- main -------------------------------------
if __name__ == "__main__":
    key = jax.random.PRNGKey(0)
    k_x, k_p = jax.random.split(key)
    x = jax.random.normal(k_x, (BATCH, SEQ, INPUT_SIZE), jnp.float32)
    params = init_params(k_p)

    # One-time parameter packing (not per forward call).
    w_slab, v_slab, meta = pack_params(params)
    w_slab, v_slab = jax.block_until_ready((w_slab, v_slab))

    out = lstm_network_forward(x, w_slab, v_slab, **meta)
    out = jax.block_until_ready(out)
    assert out.shape == (BATCH, OUTPUT_SIZE), out.shape

    ref = jax.block_until_ready(ref_forward(x, params))
    if not jnp.allclose(out, ref, atol=1e-3, rtol=1e-3):
        raise AssertionError(
            f"mismatch vs reference: max abs err {jnp.max(jnp.abs(out - ref))}")

    print("KERNEL_OK")
</pallas_src>

<mosaic_0001>
module attributes {stable_mosaic.version = 11 : i64} {
  func.func @_fused_lstm_fc_kernel(%arg0: memref<64x16xf32, #tpu.memory_space<vmem>>, %arg1: memref<144x128xf32, #tpu.memory_space<vmem>>, %arg2: memref<24x128xf32, #tpu.memory_space<vmem>>, %arg3: memref<8x8xf32, #tpu.memory_space<vmem>>) attributes {dimension_semantics = [], scalar_prefetch = 0 : i64, scratch_operands = 0 : i64, tpu.core_type = #tpu.core_type<tc>} {
    %c0 = arith.constant 0 : index
    %c0_0 = arith.constant 0 : index
    %0 = vector.load %arg2[%c0, %c0_0] : memref<24x128xf32, #tpu.memory_space<vmem>>, vector<8x128xf32>
    %1 = vector.extract_strided_slice %0 {offsets = [0, 0], sizes = [1, 128], strides = [1, 1]} : vector<8x128xf32> to vector<1x128xf32>
    %2 = vector.extract_strided_slice %0 {offsets = [1, 0], sizes = [1, 128], strides = [1, 1]} : vector<8x128xf32> to vector<1x128xf32>
    %3 = vector.extract_strided_slice %0 {offsets = [2, 0], sizes = [1, 128], strides = [1, 1]} : vector<8x128xf32> to vector<1x128xf32>
    %4 = vector.extract_strided_slice %0 {offsets = [3, 0], sizes = [1, 128], strides = [1, 1]} : vector<8x128xf32> to vector<1x128xf32>
    %5 = vector.extract_strided_slice %0 {offsets = [4, 0], sizes = [1, 32], strides = [1, 1]} : vector<8x128xf32> to vector<1x32xf32>
    %6 = vector.extract_strided_slice %0 {offsets = [5, 0], sizes = [1, 32], strides = [1, 1]} : vector<8x128xf32> to vector<1x32xf32>
    %7 = vector.extract_strided_slice %0 {offsets = [6, 0], sizes = [1, 32], strides = [1, 1]} : vector<8x128xf32> to vector<1x32xf32>
    %8 = vector.extract_strided_slice %0 {offsets = [7, 0], sizes = [1, 32], strides = [1, 1]} : vector<8x128xf32> to vector<1x32xf32>
    %c0_1 = arith.constant 0 : index
    %c0_2 = arith.constant 0 : index
    %9 = vector.load %arg1[%c0_1, %c0_2] : memref<144x128xf32, #tpu.memory_space<vmem>>, vector<16x128xf32>
    %c16 = arith.constant 16 : index
    %c0_3 = arith.constant 0 : index
    %10 = vector.load %arg1[%c16, %c0_3] : memref<144x128xf32, #tpu.memory_space<vmem>>, vector<32x128xf32>
    %c8 = arith.constant 8 : index
    %c0_4 = arith.constant 0 : index
    %11 = vector.load %arg2[%c8, %c0_4] : memref<24x128xf32, #tpu.memory_space<vmem>>, vector<8x128xf32>
    %12 = vector.extract_strided_slice %11 {offsets = [0, 0], sizes = [1, 128], strides = [1, 1]} : vector<8x128xf32> to vector<1x128xf32>
    %13 = vector.extract_strided_slice %11 {offsets = [1, 0], sizes = [1, 128], strides = [1, 1]} : vector<8x128xf32> to vector<1x128xf32>
    %14 = vector.extract_strided_slice %11 {offsets = [2, 0], sizes = [1, 128], strides = [1, 1]} : vector<8x128xf32> to vector<1x128xf32>
    %15 = vector.extract_strided_slice %11 {offsets = [3, 0], sizes = [1, 128], strides = [1, 1]} : vector<8x128xf32> to vector<1x128xf32>
    %16 = vector.extract_strided_slice %11 {offsets = [4, 0], sizes = [1, 32], strides = [1, 1]} : vector<8x128xf32> to vector<1x32xf32>
    %17 = vector.extract_strided_slice %11 {offsets = [5, 0], sizes = [1, 32], strides = [1, 1]} : vector<8x128xf32> to vector<1x32xf32>
    %18 = vector.extract_strided_slice %11 {offsets = [6, 0], sizes = [1, 32], strides = [1, 1]} : vector<8x128xf32> to vector<1x32xf32>
    %19 = vector.extract_strided_slice %11 {offsets = [7, 0], sizes = [1, 32], strides = [1, 1]} : vector<8x128xf32> to vector<1x32xf32>
    %c48 = arith.constant 48 : index
    %c0_5 = arith.constant 0 : index
    %20 = vector.load %arg1[%c48, %c0_5] : memref<144x128xf32, #tpu.memory_space<vmem>>, vector<32x128xf32>
    %c80 = arith.constant 80 : index
    %c0_6 = arith.constant 0 : index
    %21 = vector.load %arg1[%c80, %c0_6] : memref<144x128xf32, #tpu.memory_space<vmem>>, vector<32x128xf32>
    %c0_7 = arith.constant 0 : index
    %c0_8 = arith.constant 0 : index
    %22 = vector.load %arg0[%c0_7, %c0_8] : memref<64x16xf32, #tpu.memory_space<vmem>>, vector<64x16xf32>
    %cst = arith.constant dense<0.000000e+00> : vector<64x128xf32>
    %23 = tpu.matmul %22, %9, %cst {dimension_numbers = #tpu.dot_dimension_numbers<[1], [0], [0], [1], [0, 0, 1, 1], [], []>} : vector<64x16xf32>, vector<16x128xf32>, vector<64x128xf32> -> vector<64x128xf32>
    %24 = vector.broadcast %1 : vector<1x128xf32> to vector<64x128xf32>
    %25 = arith.addf %23, %24 : vector<64x128xf32>
    %cst_9 = arith.constant dense<0.000000e+00> : vector<64xf32>
    %26 = vector.multi_reduction <add>, %25, %cst_9 [1] : vector<64x128xf32> to vector<64xf32>
    %27 = vector.shape_cast %26 : vector<64xf32> to vector<64x1xf32>
    %cst_10 = arith.constant 1.280000e+02 : f32
    %28 = vector.broadcast %cst_10 : f32 to vector<64x1xf32>
    %29 = arith.divf %27, %28 : vector<64x1xf32>
    %30 = arith.mulf %25, %25 : vector<64x128xf32>
    %cst_11 = arith.constant dense<0.000000e+00> : vector<64xf32>
    %31 = vector.multi_reduction <add>, %30, %cst_11 [1] : vector<64x128xf32> to vector<64xf32>
    %32 = vector.shape_cast %31 : vector<64xf32> to vector<64x1xf32>
    %cst_12 = arith.constant 1.280000e+02 : f32
    %33 = vector.broadcast %cst_12 : f32 to vector<64x1xf32>
    %34 = arith.divf %32, %33 : vector<64x1xf32>
    %35 = arith.mulf %29, %29 : vector<64x1xf32>
    %36 = arith.subf %34, %35 : vector<64x1xf32>
    %37 = vector.broadcast %29 : vector<64x1xf32> to vector<64x128xf32>
    %38 = arith.subf %25, %37 : vector<64x128xf32>
    %cst_13 = arith.constant 9.99999974E-6 : f32
    %39 = vector.broadcast %cst_13 : f32 to vector<64x1xf32>
    %40 = arith.addf %36, %39 : vector<64x1xf32>
    %41 = math.rsqrt %40 : vector<64x1xf32>
    %42 = vector.broadcast %41 : vector<64x1xf32> to vector<64x128xf32>
    %43 = arith.mulf %38, %42 : vector<64x128xf32>
    %44 = vector.broadcast %3 : vector<1x128xf32> to vector<64x128xf32>
    %45 = arith.mulf %43, %44 : vector<64x128xf32>
    %46 = vector.broadcast %4 : vector<1x128xf32> to vector<64x128xf32>
    %47 = arith.addf %45, %46 : vector<64x128xf32>
    %48 = vector.broadcast %2 : vector<1x128xf32> to vector<64x128xf32>
    %49 = arith.addf %47, %48 : vector<64x128xf32>
    %50 = vector.shape_cast %49 : vector<64x128xf32> to vector<8x8x128xf32>
    %cst_14 = arith.constant 0.000000e+00 : f32
    %51 = vector.broadcast %cst_14 : f32 to vector<8x32xf32>
    %cst_15 = arith.constant 0.000000e+00 : f32
    %52 = vector.broadcast %cst_15 : f32 to vector<8x32xf32>
    %cst_16 = arith.constant 0.000000e+00 : f32
    %53 = vector.broadcast %cst_16 : f32 to vector<8x32xf32>
    %cst_17 = arith.constant 0.000000e+00 : f32
    %54 = vector.broadcast %cst_17 : f32 to vector<8x32xf32>
    %55 = vector.extract_strided_slice %50 {offsets = [0, 0, 0], sizes = [8, 1, 128], strides = [1, 1, 1]} : vector<8x8x128xf32> to vector<8x1x128xf32>
    %56 = vector.shape_cast %55 : vector<8x1x128xf32> to vector<8x128xf32>
    %cst_18 = arith.constant dense<0.000000e+00> : vector<8x128xf32>
    %57 = tpu.matmul %51, %10, %cst_18 {dimension_numbers = #tpu.dot_dimension_numbers<[1], [0], [0], [1], [0, 0, 1, 1], [], []>} : vector<8x32xf32>, vector<32x128xf32>, vector<8x128xf32> -> vector<8x128xf32>
    %58 = arith.addf %56, %57 : vector<8x128xf32>
    %59 = arith.negf %58 : vector<8x128xf32>
    %60 = math.exp %59 : vector<8x128xf32>
    %cst_19 = arith.constant 1.000000e+00 : f32
    %61 = vector.broadcast %cst_19 : f32 to vector<8x128xf32>
    %62 = arith.addf %61, %60 : vector<8x128xf32>
    %63 = arith.divf %61, %62 : vector<8x128xf32>
    %64 = vector.extract_strided_slice %63 {offsets = [0, 0], sizes = [8, 32], strides = [1, 1]} : vector<8x128xf32> to vector<8x32xf32>
    %65 = vector.extract_strided_slice %63 {offsets = [0, 32], sizes = [8, 32], strides = [1, 1]} : vector<8x128xf32> to vector<8x32xf32>
    %66 = vector.extract_strided_slice %63 {offsets = [0, 64], sizes = [8, 32], strides = [1, 1]} : vector<8x128xf32> to vector<8x32xf32>
    %cst_20 = arith.constant 2.000000e+00 : f32
    %67 = vector.broadcast %cst_20 : f32 to vector<8x32xf32>
    %68 = arith.mulf %67, %66 : vector<8x32xf32>
    %cst_21 = arith.constant 1.000000e+00 : f32
    %69 = vector.broadcast %cst_21 : f32 to vector<8x32xf32>
    %70 = arith.subf %68, %69 : vector<8x32xf32>
    %71 = vector.extract_strided_slice %63 {offsets = [0, 96], sizes = [8, 32], strides = [1, 1]} : vector<8x128xf32> to vector<8x32xf32>
    %72 = arith.mulf %65, %53 : vector<8x32xf32>
    %73 = arith.mulf %64, %70 : vector<8x32xf32>
    %74 = arith.addf %72, %73 : vector<8x32xf32>
    %cst_22 = arith.constant dense<0.000000e+00> : vector<8xf32>
    %75 = vector.multi_reduction <add>, %74, %cst_22 [1] : vector<8x32xf32> to vector<8xf32>
    %76 = vector.shape_cast %75 : vector<8xf32> to vector<8x1xf32>
    %cst_23 = arith.constant 3.200000e+01 : f32
    %77 = vector.broadcast %cst_23 : f32 to vector<8x1xf32>
    %78 = arith.divf %76, %77 : vector<8x1xf32>
    %79 = arith.mulf %74, %74 : vector<8x32xf32>
    %cst_24 = arith.constant dense<0.000000e+00> : vector<8xf32>
    %80 = vector.multi_reduction <add>, %79, %cst_24 [1] : vector<8x32xf32> to vector<8xf32>
    %81 = vector.shape_cast %80 : vector<8xf32> to vector<8x1xf32>
    %cst_25 = arith.constant 3.200000e+01 : f32
    %82 = vector.broadcast %cst_25 : f32 to vector<8x1xf32>
    %83 = arith.divf %81, %82 : vector<8x1xf32>
    %84 = arith.mulf %78, %78 : vector<8x1xf32>
    %85 = arith.subf %83, %84 : vector<8x1xf32>
    %86 = vector.broadcast %78 : vector<8x1xf32> to vector<8x32xf32>
    %87 = arith.subf %74, %86 : vector<8x32xf32>
    %cst_26 = arith.constant 9.99999974E-6 : f32
    %88 = vector.broadcast %cst_26 : f32 to vector<8x1xf32>
    %89 = arith.addf %85, %88 : vector<8x1xf32>
    %90 = math.rsqrt %89 : vector<8x1xf32>
    %91 = vector.broadcast %90 : vector<8x1xf32> to vector<8x32xf32>
    %92 = arith.mulf %87, %91 : vector<8x32xf32>
    %93 = vector.broadcast %5 : vector<1x32xf32> to vector<8x32xf32>
    %94 = arith.mulf %92, %93 : vector<8x32xf32>
    %95 = vector.broadcast %6 : vector<1x32xf32> to vector<8x32xf32>
    %96 = arith.addf %94, %95 : vector<8x32xf32>
    %97 = math.tanh %96 : vector<8x32xf32>
    %98 = arith.mulf %71, %97 : vector<8x32xf32>
    %cst_27 = arith.constant dense<0.000000e+00> : vector<8xf32>
    %99 = vector.multi_reduction <add>, %98, %cst_27 [1] : vector<8x32xf32> to vector<8xf32>
    %100 = vector.shape_cast %99 : vector<8xf32> to vector<8x1xf32>
    %cst_28 = arith.constant 3.200000e+01 : f32
    %101 = vector.broadcast %cst_28 : f32 to vector<8x1xf32>
    %102 = arith.divf %100, %101 : vector<8x1xf32>
    %103 = arith.mulf %98, %98 : vector<8x32xf32>
    %cst_29 = arith.constant dense<0.000000e+00> : vector<8xf32>
    %104 = vector.multi_reduction <add>, %103, %cst_29 [1] : vector<8x32xf32> to vector<8xf32>
    %105 = vector.shape_cast %104 : vector<8xf32> to vector<8x1xf32>
    %cst_30 = arith.constant 3.200000e+01 : f32
    %106 = vector.broadcast %cst_30 : f32 to vector<8x1xf32>
    %107 = arith.divf %105, %106 : vector<8x1xf32>
    %108 = arith.mulf %102, %102 : vector<8x1xf32>
    %109 = arith.subf %107, %108 : vector<8x1xf32>
    %110 = vector.broadcast %102 : vector<8x1xf32> to vector<8x32xf32>
    %111 = arith.subf %98, %110 : vector<8x32xf32>
    %cst_31 = arith.constant 9.99999974E-6 : f32
    %112 = vector.broadcast %cst_31 : f32 to vector<8x1xf32>
    %113 = arith.addf %109, %112 : vector<8x1xf32>
    %114 = math.rsqrt %113 : vector<8x1xf32>
    %115 = vector.broadcast %114 : vector<8x1xf32> to vector<8x32xf32>
    %116 = arith.mulf %111, %115 : vector<8x32xf32>
    %117 = vector.broadcast %7 : vector<1x32xf32> to vector<8x32xf32>
    %118 = arith.mulf %116, %117 : vector<8x32xf32>
    %119 = vector.broadcast %8 : vector<1x32xf32> to vector<8x32xf32>
    %120 = arith.addf %118, %119 : vector<8x32xf32>
    %cst_32 = arith.constant dense<0.000000e+00> : vector<8x128xf32>
    %121 = tpu.matmul %120, %20, %cst_32 {dimension_numbers = #tpu.dot_dimension_numbers<[1], [0], [0], [1], [0, 0, 1, 1], [], []>} : vector<8x32xf32>, vector<32x128xf32>, vector<8x128xf32> -> vector<8x128xf32>
    %122 = vector.broadcast %12 : vector<1x128xf32> to vector<8x128xf32>
    %123 = arith.addf %121, %122 : vector<8x128xf32>
    %cst_33 = arith.constant dense<0.000000e+00> : vector<8xf32>
    %124 = vector.multi_reduction <add>, %123, %cst_33 [1] : vector<8x128xf32> to vector<8xf32>
    %125 = vector.shape_cast %124 : vector<8xf32> to vector<8x1xf32>
    %cst_34 = arith.constant 1.280000e+02 : f32
    %126 = vector.broadcast %cst_34 : f32 to vector<8x1xf32>
    %127 = arith.divf %125, %126 : vector<8x1xf32>
    %128 = arith.mulf %123, %123 : vector<8x128xf32>
    %cst_35 = arith.constant dense<0.000000e+00> : vector<8xf32>
    %129 = vector.multi_reduction <add>, %128, %cst_35 [1] : vector<8x128xf32> to vector<8xf32>
    %130 = vector.shape_cast %129 : vector<8xf32> to vector<8x1xf32>
    %cst_36 = arith.constant 1.280000e+02 : f32
    %131 = vector.broadcast %cst_36 : f32 to vector<8x1xf32>
    %132 = arith.divf %130, %131 : vector<8x1xf32>
    %133 = arith.mulf %127, %127 : vector<8x1xf32>
    %134 = arith.subf %132, %133 : vector<8x1xf32>
    %135 = vector.broadcast %127 : vector<8x1xf32> to vector<8x128xf32>
    %136 = arith.subf %123, %135 : vector<8x128xf32>
    %cst_37 = arith.constant 9.99999974E-6 : f32
    %137 = vector.broadcast %cst_37 : f32 to vector<8x1xf32>
    %138 = arith.addf %134, %137 : vector<8x1xf32>
    %139 = math.rsqrt %138 : vector<8x1xf32>
    %140 = vector.broadcast %139 : vector<8x1xf32> to vector<8x128xf32>
    %141 = arith.mulf %136, %140 : vector<8x128xf32>
    %142 = vector.broadcast %14 : vector<1x128xf32> to vector<8x128xf32>
    %143 = arith.mulf %141, %142 : vector<8x128xf32>
    %144 = vector.broadcast %15 : vector<1x128xf32> to vector<8x128xf32>
    %145 = arith.addf %143, %144 : vector<8x128xf32>
    %146 = vector.broadcast %13 : vector<1x128xf32> to vector<8x128xf32>
    %147 = arith.addf %145, %146 : vector<8x128xf32>
    %cst_38 = arith.constant dense<0.000000e+00> : vector<8x128xf32>
    %148 = tpu.matmul %52, %21, %cst_38 {dimension_numbers = #tpu.dot_dimension_numbers<[1], [0], [0], [1], [0, 0, 1, 1], [], []>} : vector<8x32xf32>, vector<32x128xf32>, vector<8x128xf32> -> vector<8x128xf32>
    %149 = arith.addf %147, %148 : vector<8x128xf32>
    %150 = arith.negf %149 : vector<8x128xf32>
    %151 = math.exp %150 : vector<8x128xf32>
    %cst_39 = arith.constant 1.000000e+00 : f32
    %152 = vector.broadcast %cst_39 : f32 to vector<8x128xf32>
    %153 = arith.addf %152, %151 : vector<8x128xf32>
    %154 = arith.divf %152, %153 : vector<8x128xf32>
    %155 = vector.extract_strided_slice %154 {offsets = [0, 0], sizes = [8, 32], strides = [1, 1]} : vector<8x128xf32> to vector<8x32xf32>
    %156 = vector.extract_strided_slice %154 {offsets = [0, 32], sizes = [8, 32], strides = [1, 1]} : vector<8x128xf32> to vector<8x32xf32>
    %157 = vector.extract_strided_slice %154 {offsets = [0, 64], sizes = [8, 32], strides = [1, 1]} : vector<8x128xf32> to vector<8x32xf32>
    %cst_40 = arith.constant 2.000000e+00 : f32
    %158 = vector.broadcast %cst_40 : f32 to vector<8x32xf32>
    %159 = arith.mulf %158, %157 : vector<8x32xf32>
    %cst_41 = arith.constant 1.000000e+00 : f32
    %160 = vector.broadcast %cst_41 : f32 to vector<8x32xf32>
    %161 = arith.subf %159, %160 : vector<8x32xf32>
    %162 = vector.extract_strided_slice %154 {offsets = [0, 96], sizes = [8, 32], strides = [1, 1]} : vector<8x128xf32> to vector<8x32xf32>
    %163 = arith.mulf %156, %54 : vector<8x32xf32>
    %164 = arith.mulf %155, %161 : vector<8x32xf32>
    %165 = arith.addf %163, %164 : vector<8x32xf32>
    %cst_42 = arith.constant dense<0.000000e+00> : vector<8xf32>
    %166 = vector.multi_reduction <add>, %165, %cst_42 [1] : vector<8x32xf32> to vector<8xf32>
    %167 = vector.shape_cast %166 : vector<8xf32> to vector<8x1xf32>
    %cst_43 = arith.constant 3.200000e+01 : f32
    %168 = vector.broadcast %cst_43 : f32 to vector<8x1xf32>
    %169 = arith.divf %167, %168 : vector<8x1xf32>
    %170 = arith.mulf %165, %165 : vector<8x32xf32>
    %cst_44 = arith.constant dense<0.000000e+00> : vector<8xf32>
    %171 = vector.multi_reduction <add>, %170, %cst_44 [1] : vector<8x32xf32> to vector<8xf32>
    %172 = vector.shape_cast %171 : vector<8xf32> to vector<8x1xf32>
    %cst_45 = arith.constant 3.200000e+01 : f32
    %173 = vector.broadcast %cst_45 : f32 to vector<8x1xf32>
    %174 = arith.divf %172, %173 : vector<8x1xf32>
    %175 = arith.mulf %169, %169 : vector<8x1xf32>
    %176 = arith.subf %174, %175 : vector<8x1xf32>
    %177 = vector.broadcast %169 : vector<8x1xf32> to vector<8x32xf32>
    %178 = arith.subf %165, %177 : vector<8x32xf32>
    %cst_46 = arith.constant 9.99999974E-6 : f32
    %179 = vector.broadcast %cst_46 : f32 to vector<8x1xf32>
    %180 = arith.addf %176, %179 : vector<8x1xf32>
    %181 = math.rsqrt %180 : vector<8x1xf32>
    %182 = vector.broadcast %181 : vector<8x1xf32> to vector<8x32xf32>
    %183 = arith.mulf %178, %182 : vector<8x32xf32>
    %184 = vector.broadcast %16 : vector<1x32xf32> to vector<8x32xf32>
    %185 = arith.mulf %183, %184 : vector<8x32xf32>
    %186 = vector.broadcast %17 : vector<1x32xf32> to vector<8x32xf32>
    %187 = arith.addf %185, %186 : vector<8x32xf32>
    %188 = math.tanh %187 : vector<8x32xf32>
    %189 = arith.mulf %162, %188 : vector<8x32xf32>
    %cst_47 = arith.constant dense<0.000000e+00> : vector<8xf32>
    %190 = vector.multi_reduction <add>, %189, %cst_47 [1] : vector<8x32xf32> to vector<8xf32>
    %191 = vector.shape_cast %190 : vector<8xf32> to vector<8x1xf32>
    %cst_48 = arith.constant 3.200000e+01 : f32
    %192 = vector.broadcast %cst_48 : f32 to vector<8x1xf32>
    %193 = arith.divf %191, %192 : vector<8x1xf32>
    %194 = arith.mulf %189, %189 : vector<8x32xf32>
    %cst_49 = arith.constant dense<0.000000e+00> : vector<8xf32>
    %195 = vector.multi_reduction <add>, %194, %cst_49 [1] : vector<8x32xf32> to vector<8xf32>
    %196 = vector.shape_cast %195 : vector<8xf32> to vector<8x1xf32>
    %cst_50 = arith.constant 3.200000e+01 : f32
    %197 = vector.broadcast %cst_50 : f32 to vector<8x1xf32>
    %198 = arith.divf %196, %197 : vector<8x1xf32>
    %199 = arith.mulf %193, %193 : vector<8x1xf32>
    %200 = arith.subf %198, %199 : vector<8x1xf32>
    %201 = vector.broadcast %193 : vector<8x1xf32> to vector<8x32xf32>
    %202 = arith.subf %189, %201 : vector<8x32xf32>
    %cst_51 = arith.constant 9.99999974E-6 : f32
    %203 = vector.broadcast %cst_51 : f32 to vector<8x1xf32>
    %204 = arith.addf %200, %203 : vector<8x1xf32>
    %205 = math.rsqrt %204 : vector<8x1xf32>
    %206 = vector.broadcast %205 : vector<8x1xf32> to vector<8x32xf32>
    %207 = arith.mulf %202, %206 : vector<8x32xf32>
    %208 = vector.broadcast %18 : vector<1x32xf32> to vector<8x32xf32>
    %209 = arith.mulf %207, %208 : vector<8x32xf32>
    %210 = vector.broadcast %19 : vector<1x32xf32> to vector<8x32xf32>
    %211 = arith.addf %209, %210 : vector<8x32xf32>
    %212 = vector.extract_strided_slice %50 {offsets = [0, 1, 0], sizes = [8, 1, 128], strides = [1, 1, 1]} : vector<8x8x128xf32> to vector<8x1x128xf32>
    %213 = vector.shape_cast %212 : vector<8x1x128xf32> to vector<8x128xf32>
    %cst_52 = arith.constant dense<0.000000e+00> : vector<8x128xf32>
    %214 = tpu.matmul %120, %10, %cst_52 {dimension_numbers = #tpu.dot_dimension_numbers<[1], [0], [0], [1], [0, 0, 1, 1], [], []>} : vector<8x32xf32>, vector<32x128xf32>, vector<8x128xf32> -> vector<8x128xf32>
    %215 = arith.addf %213, %214 : vector<8x128xf32>
    %216 = arith.negf %215 : vector<8x128xf32>
    %217 = math.exp %216 : vector<8x128xf32>
    %cst_53 = arith.constant 1.000000e+00 : f32
    %218 = vector.broadcast %cst_53 : f32 to vector<8x128xf32>
    %219 = arith.addf %218, %217 : vector<8x128xf32>
    %220 = arith.divf %218, %219 : vector<8x128xf32>
    %221 = vector.extract_strided_slice %220 {offsets = [0, 0], sizes = [8, 32], strides = [1, 1]} : vector<8x128xf32> to vector<8x32xf32>
    %222 = vector.extract_strided_slice %220 {offsets = [0, 32], sizes = [8, 32], strides = [1, 1]} : vector<8x128xf32> to vector<8x32xf32>
    %223 = vector.extract_strided_slice %220 {offsets = [0, 64], sizes = [8, 32], strides = [1, 1]} : vector<8x128xf32> to vector<8x32xf32>
    %cst_54 = arith.constant 2.000000e+00 : f32
    %224 = vector.broadcast %cst_54 : f32 to vector<8x32xf32>
    %225 = arith.mulf %224, %223 : vector<8x32xf32>
    %cst_55 = arith.constant 1.000000e+00 : f32
    %226 = vector.broadcast %cst_55 : f32 to vector<8x32xf32>
    %227 = arith.subf %225, %226 : vector<8x32xf32>
    %228 = vector.extract_strided_slice %220 {offsets = [0, 96], sizes = [8, 32], strides = [1, 1]} : vector<8x128xf32> to vector<8x32xf32>
    %229 = arith.mulf %222, %96 : vector<8x32xf32>
    %230 = arith.mulf %221, %227 : vector<8x32xf32>
    %231 = arith.addf %229, %230 : vector<8x32xf32>
    %cst_56 = arith.constant dense<0.000000e+00> : vector<8xf32>
    %232 = vector.multi_reduction <add>, %231, %cst_56 [1] : vector<8x32xf32> to vector<8xf32>
    %233 = vector.shape_cast %232 : vector<8xf32> to vector<8x1xf32>
    %cst_57 = arith.constant 3.200000e+01 : f32
    %234 = vector.broadcast %cst_57 : f32 to vector<8x1xf32>
    %235 = arith.divf %233, %234 : vector<8x1xf32>
    %236 = arith.mulf %231, %231 : vector<8x32xf32>
    %cst_58 = arith.constant dense<0.000000e+00> : vector<8xf32>
    %237 = vector.multi_reduction <add>, %236, %cst_58 [1] : vector<8x32xf32> to vector<8xf32>
    %238 = vector.shape_cast %237 : vector<8xf32> to vector<8x1xf32>
    %cst_59 = arith.constant 3.200000e+01 : f32
    %239 = vector.broadcast %cst_59 : f32 to vector<8x1xf32>
    %240 = arith.divf %238, %239 : vector<8x1xf32>
    %241 = arith.mulf %235, %235 : vector<8x1xf32>
    %242 = arith.subf %240, %241 : vector<8x1xf32>
    %243 = vector.broadcast %235 : vector<8x1xf32> to vector<8x32xf32>
    %244 = arith.subf %231, %243 : vector<8x32xf32>
    %cst_60 = arith.constant 9.99999974E-6 : f32
    %245 = vector.broadcast %cst_60 : f32 to vector<8x1xf32>
    %246 = arith.addf %242, %245 : vector<8x1xf32>
    %247 = math.rsqrt %246 : vector<8x1xf32>
    %248 = vector.broadcast %247 : vector<8x1xf32> to vector<8x32xf32>
    %249 = arith.mulf %244, %248 : vector<8x32xf32>
    %250 = vector.broadcast %5 : vector<1x32xf32> to vector<8x32xf32>
    %251 = arith.mulf %249, %250 : vector<8x32xf32>
    %252 = vector.broadcast %6 : vector<1x32xf32> to vector<8x32xf32>
    %253 = arith.addf %251, %252 : vector<8x32xf32>
    %254 = math.tanh %253 : vector<8x32xf32>
    %255 = arith.mulf %228, %254 : vector<8x32xf32>
    %cst_61 = arith.constant dense<0.000000e+00> : vector<8xf32>
    %256 = vector.multi_reduction <add>, %255, %cst_61 [1] : vector<8x32xf32> to vector<8xf32>
    %257 = vector.shape_cast %256 : vector<8xf32> to vector<8x1xf32>
    %cst_62 = arith.constant 3.200000e+01 : f32
    %258 = vector.broadcast %cst_62 : f32 to vector<8x1xf32>
    %259 = arith.divf %257, %258 : vector<8x1xf32>
    %260 = arith.mulf %255, %255 : vector<8x32xf32>
    %cst_63 = arith.constant dense<0.000000e+00> : vector<8xf32>
    %261 = vector.multi_reduction <add>, %260, %cst_63 [1] : vector<8x32xf32> to vector<8xf32>
    %262 = vector.shape_cast %261 : vector<8xf32> to vector<8x1xf32>
    %cst_64 = arith.constant 3.200000e+01 : f32
    %263 = vector.broadcast %cst_64 : f32 to vector<8x1xf32>
    %264 = arith.divf %262, %263 : vector<8x1xf32>
    %265 = arith.mulf %259, %259 : vector<8x1xf32>
    %266 = arith.subf %264, %265 : vector<8x1xf32>
    %267 = vector.broadcast %259 : vector<8x1xf32> to vector<8x32xf32>
    %268 = arith.subf %255, %267 : vector<8x32xf32>
    %cst_65 = arith.constant 9.99999974E-6 : f32
    %269 = vector.broadcast %cst_65 : f32 to vector<8x1xf32>
    %270 = arith.addf %266, %269 : vector<8x1xf32>
    %271 = math.rsqrt %270 : vector<8x1xf32>
    %272 = vector.broadcast %271 : vector<8x1xf32> to vector<8x32xf32>
    %273 = arith.mulf %268, %272 : vector<8x32xf32>
    %274 = vector.broadcast %7 : vector<1x32xf32> to vector<8x32xf32>
    %275 = arith.mulf %273, %274 : vector<8x32xf32>
    %276 = vector.broadcast %8 : vector<1x32xf32> to vector<8x32xf32>
    %277 = arith.addf %275, %276 : vector<8x32xf32>
    %cst_66 = arith.constant dense<0.000000e+00> : vector<8x128xf32>
    %278 = tpu.matmul %277, %20, %cst_66 {dimension_numbers = #tpu.dot_dimension_numbers<[1], [0], [0], [1], [0, 0, 1, 1], [], []>} : vector<8x32xf32>, vector<32x128xf32>, vector<8x128xf32> -> vector<8x128xf32>
    %279 = vector.broadcast %12 : vector<1x128xf32> to vector<8x128xf32>
    %280 = arith.addf %278, %279 : vector<8x128xf32>
    %cst_67 = arith.constant dense<0.000000e+00> : vector<8xf32>
    %281 = vector.multi_reduction <add>, %280, %cst_67 [1] : vector<8x128xf32> to vector<8xf32>
    %282 = vector.shape_cast %281 : vector<8xf32> to vector<8x1xf32>
    %cst_68 = arith.constant 1.280000e+02 : f32
    %283 = vector.broadcast %cst_68 : f32 to vector<8x1xf32>
    %284 = arith.divf %282, %283 : vector<8x1xf32>
    %285 = arith.mulf %280, %280 : vector<8x128xf32>
    %cst_69 = arith.constant dense<0.000000e+00> : vector<8xf32>
    %286 = vector.multi_reduction <add>, %285, %cst_69 [1] : vector<8x128xf32> to vector<8xf32>
    %287 = vector.shape_cast %286 : vector<8xf32> to vector<8x1xf32>
    %cst_70 = arith.constant 1.280000e+02 : f32
    %288 = vector.broadcast %cst_70 : f32 to vector<8x1xf32>
    %289 = arith.divf %287, %288 : vector<8x1xf32>
    %290 = arith.mulf %284, %284 : vector<8x1xf32>
    %291 = arith.subf %289, %290 : vector<8x1xf32>
    %292 = vector.broadcast %284 : vector<8x1xf32> to vector<8x128xf32>
    %293 = arith.subf %280, %292 : vector<8x128xf32>
    %cst_71 = arith.constant 9.99999974E-6 : f32
    %294 = vector.broadcast %cst_71 : f32 to vector<8x1xf32>
    %295 = arith.addf %291, %294 : vector<8x1xf32>
    %296 = math.rsqrt %295 : vector<8x1xf32>
    %297 = vector.broadcast %296 : vector<8x1xf32> to vector<8x128xf32>
    %298 = arith.mulf %293, %297 : vector<8x128xf32>
    %299 = vector.broadcast %14 : vector<1x128xf32> to vector<8x128xf32>
    %300 = arith.mulf %298, %299 : vector<8x128xf32>
    %301 = vector.broadcast %15 : vector<1x128xf32> to vector<8x128xf32>
    %302 = arith.addf %300, %301 : vector<8x128xf32>
    %303 = vector.broadcast %13 : vector<1x128xf32> to vector<8x128xf32>
    %304 = arith.addf %302, %303 : vector<8x128xf32>
    %cst_72 = arith.constant dense<0.000000e+00> : vector<8x128xf32>
    %305 = tpu.matmul %211, %21, %cst_72 {dimension_numbers = #tpu.dot_dimension_numbers<[1], [0], [0], [1], [0, 0, 1, 1], [], []>} : vector<8x32xf32>, vector<32x128xf32>, vector<8x128xf32> -> vector<8x128xf32>
    %306 = arith.addf %304, %305 : vector<8x128xf32>
    %307 = arith.negf %306 : vector<8x128xf32>
    %308 = math.exp %307 : vector<8x128xf32>
    %cst_73 = arith.constant 1.000000e+00 : f32
    %309 = vector.broadcast %cst_73 : f32 to vector<8x128xf32>
    %310 = arith.addf %309, %308 : vector<8x128xf32>
    %311 = arith.divf %309, %310 : vector<8x128xf32>
    %312 = vector.extract_strided_slice %311 {offsets = [0, 0], sizes = [8, 32], strides = [1, 1]} : vector<8x128xf32> to vector<8x32xf32>
    %313 = vector.extract_strided_slice %311 {offsets = [0, 32], sizes = [8, 32], strides = [1, 1]} : vector<8x128xf32> to vector<8x32xf32>
    %314 = vector.extract_strided_slice %311 {offsets = [0, 64], sizes = [8, 32], strides = [1, 1]} : vector<8x128xf32> to vector<8x32xf32>
    %cst_74 = arith.constant 2.000000e+00 : f32
    %315 = vector.broadcast %cst_74 : f32 to vector<8x32xf32>
    %316 = arith.mulf %315, %314 : vector<8x32xf32>
    %cst_75 = arith.constant 1.000000e+00 : f32
    %317 = vector.broadcast %cst_75 : f32 to vector<8x32xf32>
    %318 = arith.subf %316, %317 : vector<8x32xf32>
    %319 = vector.extract_strided_slice %311 {offsets = [0, 96], sizes = [8, 32], strides = [1, 1]} : vector<8x128xf32> to vector<8x32xf32>
    %320 = arith.mulf %313, %187 : vector<8x32xf32>
    %321 = arith.mulf %312, %318 : vector<8x32xf32>
    %322 = arith.addf %320, %321 : vector<8x32xf32>
    %cst_76 = arith.constant dense<0.000000e+00> : vector<8xf32>
    %323 = vector.multi_reduction <add>, %322, %cst_76 [1] : vector<8x32xf32> to vector<8xf32>
    %324 = vector.shape_cast %323 : vector<8xf32> to vector<8x1xf32>
    %cst_77 = arith.constant 3.200000e+01 : f32
    %325 = vector.broadcast %cst_77 : f32 to vector<8x1xf32>
    %326 = arith.divf %324, %325 : vector<8x1xf32>
    %327 = arith.mulf %322, %322 : vector<8x32xf32>
    %cst_78 = arith.constant dense<0.000000e+00> : vector<8xf32>
    %328 = vector.multi_reduction <add>, %327, %cst_78 [1] : vector<8x32xf32> to vector<8xf32>
    %329 = vector.shape_cast %328 : vector<8xf32> to vector<8x1xf32>
    %cst_79 = arith.constant 3.200000e+01 : f32
    %330 = vector.broadcast %cst_79 : f32 to vector<8x1xf32>
    %331 = arith.divf %329, %330 : vector<8x1xf32>
    %332 = arith.mulf %326, %326 : vector<8x1xf32>
    %333 = arith.subf %331, %332 : vector<8x1xf32>
    %334 = vector.broadcast %326 : vector<8x1xf32> to vector<8x32xf32>
    %335 = arith.subf %322, %334 : vector<8x32xf32>
    %cst_80 = arith.constant 9.99999974E-6 : f32
    %336 = vector.broadcast %cst_80 : f32 to vector<8x1xf32>
    %337 = arith.addf %333, %336 : vector<8x1xf32>
    %338 = math.rsqrt %337 : vector<8x1xf32>
    %339 = vector.broadcast %338 : vector<8x1xf32> to vector<8x32xf32>
    %340 = arith.mulf %335, %339 : vector<8x32xf32>
    %341 = vector.broadcast %16 : vector<1x32xf32> to vector<8x32xf32>
    %342 = arith.mulf %340, %341 : vector<8x32xf32>
    %343 = vector.broadcast %17 : vector<1x32xf32> to vector<8x32xf32>
    %344 = arith.addf %342, %343 : vector<8x32xf32>
    %345 = math.tanh %344 : vector<8x32xf32>
    %346 = arith.mulf %319, %345 : vector<8x32xf32>
    %cst_81 = arith.constant dense<0.000000e+00> : vector<8xf32>
    %347 = vector.multi_reduction <add>, %346, %cst_81 [1] : vector<8x32xf32> to vector<8xf32>
    %348 = vector.shape_cast %347 : vector<8xf32> to vector<8x1xf32>
    %cst_82 = arith.constant 3.200000e+01 : f32
    %349 = vector.broadcast %cst_82 : f32 to vector<8x1xf32>
    %350 = arith.divf %348, %349 : vector<8x1xf32>
    %351 = arith.mulf %346, %346 : vector<8x32xf32>
    %cst_83 = arith.constant dense<0.000000e+00> : vector<8xf32>
    %352 = vector.multi_reduction <add>, %351, %cst_83 [1] : vector<8x32xf32> to vector<8xf32>
    %353 = vector.shape_cast %352 : vector<8xf32> to vector<8x1xf32>
    %cst_84 = arith.constant 3.200000e+01 : f32
    %354 = vector.broadcast %cst_84 : f32 to vector<8x1xf32>
    %355 = arith.divf %353, %354 : vector<8x1xf32>
    %356 = arith.mulf %350, %350 : vector<8x1xf32>
    %357 = arith.subf %355, %356 : vector<8x1xf32>
    %358 = vector.broadcast %350 : vector<8x1xf32> to vector<8x32xf32>
    %359 = arith.subf %346, %358 : vector<8x32xf32>
    %cst_85 = arith.constant 9.99999974E-6 : f32
    %360 = vector.broadcast %cst_85 : f32 to vector<8x1xf32>
    %361 = arith.addf %357, %360 : vector<8x1xf32>
    %362 = math.rsqrt %361 : vector<8x1xf32>
    %363 = vector.broadcast %362 : vector<8x1xf32> to vector<8x32xf32>
    %364 = arith.mulf %359, %363 : vector<8x32xf32>
    %365 = vector.broadcast %18 : vector<1x32xf32> to vector<8x32xf32>
    %366 = arith.mulf %364, %365 : vector<8x32xf32>
    %367 = vector.broadcast %19 : vector<1x32xf32> to vector<8x32xf32>
    %368 = arith.addf %366, %367 : vector<8x32xf32>
    %369 = vector.extract_strided_slice %50 {offsets = [0, 2, 0], sizes = [8, 1, 128], strides = [1, 1, 1]} : vector<8x8x128xf32> to vector<8x1x128xf32>
    %370 = vector.shape_cast %369 : vector<8x1x128xf32> to vector<8x128xf32>
    %cst_86 = arith.constant dense<0.000000e+00> : vector<8x128xf32>
    %371 = tpu.matmul %277, %10, %cst_86 {dimension_numbers = #tpu.dot_dimension_numbers<[1], [0], [0], [1], [0, 0, 1, 1], [], []>} : vector<8x32xf32>, vector<32x128xf32>, vector<8x128xf32> -> vector<8x128xf32>
    %372 = arith.addf %370, %371 : vector<8x128xf32>
    %373 = arith.negf %372 : vector<8x128xf32>
    %374 = math.exp %373 : vector<8x128xf32>
    %cst_87 = arith.constant 1.000000e+00 : f32
    %375 = vector.broadcast %cst_87 : f32 to vector<8x128xf32>
    %376 = arith.addf %375, %374 : vector<8x128xf32>
    %377 = arith.divf %375, %376 : vector<8x128xf32>
    %378 = vector.extract_strided_slice %377 {offsets = [0, 0], sizes = [8, 32], strides = [1, 1]} : vector<8x128xf32> to vector<8x32xf32>
    %379 = vector.extract_strided_slice %377 {offsets = [0, 32], sizes = [8, 32], strides = [1, 1]} : vector<8x128xf32> to vector<8x32xf32>
    %380 = vector.extract_strided_slice %377 {offsets = [0, 64], sizes = [8, 32], strides = [1, 1]} : vector<8x128xf32> to vector<8x32xf32>
    %cst_88 = arith.constant 2.000000e+00 : f32
    %381 = vector.broadcast %cst_88 : f32 to vector<8x32xf32>
    %382 = arith.mulf %381, %380 : vector<8x32xf32>
    %cst_89 = arith.constant 1.000000e+00 : f32
    %383 = vector.broadcast %cst_89 : f32 to vector<8x32xf32>
    %384 = arith.subf %382, %383 : vector<8x32xf32>
    %385 = vector.extract_strided_slice %377 {offsets = [0, 96], sizes = [8, 32], strides = [1, 1]} : vector<8x128xf32> to vector<8x32xf32>
    %386 = arith.mulf %379, %253 : vector<8x32xf32>
    %387 = arith.mulf %378, %384 : vector<8x32xf32>
    %388 = arith.addf %386, %387 : vector<8x32xf32>
    %cst_90 = arith.constant dense<0.000000e+00> : vector<8xf32>
    %389 = vector.multi_reduction <add>, %388, %cst_90 [1] : vector<8x32xf32> to vector<8xf32>
    %390 = vector.shape_cast %389 : vector<8xf32> to vector<8x1xf32>
    %cst_91 = arith.constant 3.200000e+01 : f32
    %391 = vector.broadcast %cst_91 : f32 to vector<8x1xf32>
    %392 = arith.divf %390, %391 : vector<8x1xf32>
    %393 = arith.mulf %388, %388 : vector<8x32xf32>
    %cst_92 = arith.constant dense<0.000000e+00> : vector<8xf32>
    %394 = vector.multi_reduction <add>, %393, %cst_92 [1] : vector<8x32xf32> to vector<8xf32>
    %395 = vector.shape_cast %394 : vector<8xf32> to vector<8x1xf32>
    %cst_93 = arith.constant 3.200000e+01 : f32
    %396 = vector.broadcast %cst_93 : f32 to vector<8x1xf32>
    %397 = arith.divf %395, %396 : vector<8x1xf32>
    %398 = arith.mulf %392, %392 : vector<8x1xf32>
    %399 = arith.subf %397, %398 : vector<8x1xf32>
    %400 = vector.broadcast %392 : vector<8x1xf32> to vector<8x32xf32>
    %401 = arith.subf %388, %400 : vector<8x32xf32>
    %cst_94 = arith.constant 9.99999974E-6 : f32
    %402 = vector.broadcast %cst_94 : f32 to vector<8x1xf32>
    %403 = arith.addf %399, %402 : vector<8x1xf32>
    %404 = math.rsqrt %403 : vector<8x1xf32>
    %405 = vector.broadcast %404 : vector<8x1xf32> to vector<8x32xf32>
    %406 = arith.mulf %401, %405 : vector<8x32xf32>
    %407 = vector.broadcast %5 : vector<1x32xf32> to vector<8x32xf32>
    %408 = arith.mulf %406, %407 : vector<8x32xf32>
    %409 = vector.broadcast %6 : vector<1x32xf32> to vector<8x32xf32>
    %410 = arith.addf %408, %409 : vector<8x32xf32>
    %411 = math.tanh %410 : vector<8x32xf32>
    %412 = arith.mulf %385, %411 : vector<8x32xf32>
    %cst_95 = arith.constant dense<0.000000e+00> : vector<8xf32>
    %413 = vector.multi_reduction <add>, %412, %cst_95 [1] : vector<8x32xf32> to vector<8xf32>
    %414 = vector.shape_cast %413 : vector<8xf32> to vector<8x1xf32>
    %cst_96 = arith.constant 3.200000e+01 : f32
    %415 = vector.broadcast %cst_96 : f32 to vector<8x1xf32>
    %416 = arith.divf %414, %415 : vector<8x1xf32>
    %417 = arith.mulf %412, %412 : vector<8x32xf32>
    %cst_97 = arith.constant dense<0.000000e+00> : vector<8xf32>
    %418 = vector.multi_reduction <add>, %417, %cst_97 [1] : vector<8x32xf32> to vector<8xf32>
    %419 = vector.shape_cast %418 : vector<8xf32> to vector<8x1xf32>
    %cst_98 = arith.constant 3.200000e+01 : f32
    %420 = vector.broadcast %cst_98 : f32 to vector<8x1xf32>
    %421 = arith.divf %419, %420 : vector<8x1xf32>
    %422 = arith.mulf %416, %416 : vector<8x1xf32>
    %423 = arith.subf %421, %422 : vector<8x1xf32>
    %424 = vector.broadcast %416 : vector<8x1xf32> to vector<8x32xf32>
    %425 = arith.subf %412, %424 : vector<8x32xf32>
    %cst_99 = arith.constant 9.99999974E-6 : f32
    %426 = vector.broadcast %cst_99 : f32 to vector<8x1xf32>
    %427 = arith.addf %423, %426 : vector<8x1xf32>
    %428 = math.rsqrt %427 : vector<8x1xf32>
    %429 = vector.broadcast %428 : vector<8x1xf32> to vector<8x32xf32>
    %430 = arith.mulf %425, %429 : vector<8x32xf32>
    %431 = vector.broadcast %7 : vector<1x32xf32> to vector<8x32xf32>
    %432 = arith.mulf %430, %431 : vector<8x32xf32>
    %433 = vector.broadcast %8 : vector<1x32xf32> to vector<8x32xf32>
    %434 = arith.addf %432, %433 : vector<8x32xf32>
    %cst_100 = arith.constant dense<0.000000e+00> : vector<8x128xf32>
    %435 = tpu.matmul %434, %20, %cst_100 {dimension_numbers = #tpu.dot_dimension_numbers<[1], [0], [0], [1], [0, 0, 1, 1], [], []>} : vector<8x32xf32>, vector<32x128xf32>, vector<8x128xf32> -> vector<8x128xf32>
    %436 = vector.broadcast %12 : vector<1x128xf32> to vector<8x128xf32>
    %437 = arith.addf %435, %436 : vector<8x128xf32>
    %cst_101 = arith.constant dense<0.000000e+00> : vector<8xf32>
    %438 = vector.multi_reduction <add>, %437, %cst_101 [1] : vector<8x128xf32> to vector<8xf32>
    %439 = vector.shape_cast %438 : vector<8xf32> to vector<8x1xf32>
    %cst_102 = arith.constant 1.280000e+02 : f32
    %440 = vector.broadcast %cst_102 : f32 to vector<8x1xf32>
    %441 = arith.divf %439, %440 : vector<8x1xf32>
    %442 = arith.mulf %437, %437 : vector<8x128xf32>
    %cst_103 = arith.constant dense<0.000000e+00> : vector<8xf32>
    %443 = vector.multi_reduction <add>, %442, %cst_103 [1] : vector<8x128xf32> to vector<8xf32>
    %444 = vector.shape_cast %443 : vector<8xf32> to vector<8x1xf32>
    %cst_104 = arith.constant 1.280000e+02 : f32
    %445 = vector.broadcast %cst_104 : f32 to vector<8x1xf32>
    %446 = arith.divf %444, %445 : vector<8x1xf32>
    %447 = arith.mulf %441, %441 : vector<8x1xf32>
    %448 = arith.subf %446, %447 : vector<8x1xf32>
    %449 = vector.broadcast %441 : vector<8x1xf32> to vector<8x128xf32>
    %450 = arith.subf %437, %449 : vector<8x128xf32>
    %cst_105 = arith.constant 9.99999974E-6 : f32
    %451 = vector.broadcast %cst_105 : f32 to vector<8x1xf32>
    %452 = arith.addf %448, %451 : vector<8x1xf32>
    %453 = math.rsqrt %452 : vector<8x1xf32>
    %454 = vector.broadcast %453 : vector<8x1xf32> to vector<8x128xf32>
    %455 = arith.mulf %450, %454 : vector<8x128xf32>
    %456 = vector.broadcast %14 : vector<1x128xf32> to vector<8x128xf32>
    %457 = arith.mulf %455, %456 : vector<8x128xf32>
    %458 = vector.broadcast %15 : vector<1x128xf32> to vector<8x128xf32>
    %459 = arith.addf %457, %458 : vector<8x128xf32>
    %460 = vector.broadcast %13 : vector<1x128xf32> to vector<8x128xf32>
    %461 = arith.addf %459, %460 : vector<8x128xf32>
    %cst_106 = arith.constant dense<0.000000e+00> : vector<8x128xf32>
    %462 = tpu.matmul %368, %21, %cst_106 {dimension_numbers = #tpu.dot_dimension_numbers<[1], [0], [0], [1], [0, 0, 1, 1], [], []>} : vector<8x32xf32>, vector<32x128xf32>, vector<8x128xf32> -> vector<8x128xf32>
    %463 = arith.addf %461, %462 : vector<8x128xf32>
    %464 = arith.negf %463 : vector<8x128xf32>
    %465 = math.exp %464 : vector<8x128xf32>
    %cst_107 = arith.constant 1.000000e+00 : f32
    %466 = vector.broadcast %cst_107 : f32 to vector<8x128xf32>
    %467 = arith.addf %466, %465 : vector<8x128xf32>
    %468 = arith.divf %466, %467 : vector<8x128xf32>
    %469 = vector.extract_strided_slice %468 {offsets = [0, 0], sizes = [8, 32], strides = [1, 1]} : vector<8x128xf32> to vector<8x32xf32>
    %470 = vector.extract_strided_slice %468 {offsets = [0, 32], sizes = [8, 32], strides = [1, 1]} : vector<8x128xf32> to vector<8x32xf32>
    %471 = vector.extract_strided_slice %468 {offsets = [0, 64], sizes = [8, 32], strides = [1, 1]} : vector<8x128xf32> to vector<8x32xf32>
    %cst_108 = arith.constant 2.000000e+00 : f32
    %472 = vector.broadcast %cst_108 : f32 to vector<8x32xf32>
    %473 = arith.mulf %472, %471 : vector<8x32xf32>
    %cst_109 = arith.constant 1.000000e+00 : f32
    %474 = vector.broadcast %cst_109 : f32 to vector<8x32xf32>
    %475 = arith.subf %473, %474 : vector<8x32xf32>
    %476 = vector.extract_strided_slice %468 {offsets = [0, 96], sizes = [8, 32], strides = [1, 1]} : vector<8x128xf32> to vector<8x32xf32>
    %477 = arith.mulf %470, %344 : vector<8x32xf32>
    %478 = arith.mulf %469, %475 : vector<8x32xf32>
    %479 = arith.addf %477, %478 : vector<8x32xf32>
    %cst_110 = arith.constant dense<0.000000e+00> : vector<8xf32>
    %480 = vector.multi_reduction <add>, %479, %cst_110 [1] : vector<8x32xf32> to vector<8xf32>
    %481 = vector.shape_cast %480 : vector<8xf32> to vector<8x1xf32>
    %cst_111 = arith.constant 3.200000e+01 : f32
    %482 = vector.broadcast %cst_111 : f32 to vector<8x1xf32>
    %483 = arith.divf %481, %482 : vector<8x1xf32>
    %484 = arith.mulf %479, %479 : vector<8x32xf32>
    %cst_112 = arith.constant dense<0.000000e+00> : vector<8xf32>
    %485 = vector.multi_reduction <add>, %484, %cst_112 [1] : vector<8x32xf32> to vector<8xf32>
    %486 = vector.shape_cast %485 : vector<8xf32> to vector<8x1xf32>
    %cst_113 = arith.constant 3.200000e+01 : f32
    %487 = vector.broadcast %cst_113 : f32 to vector<8x1xf32>
    %488 = arith.divf %486, %487 : vector<8x1xf32>
    %489 = arith.mulf %483, %483 : vector<8x1xf32>
    %490 = arith.subf %488, %489 : vector<8x1xf32>
    %491 = vector.broadcast %483 : vector<8x1xf32> to vector<8x32xf32>
    %492 = arith.subf %479, %491 : vector<8x32xf32>
    %cst_114 = arith.constant 9.99999974E-6 : f32
    %493 = vector.broadcast %cst_114 : f32 to vector<8x1xf32>
    %494 = arith.addf %490, %493 : vector<8x1xf32>
    %495 = math.rsqrt %494 : vector<8x1xf32>
    %496 = vector.broadcast %495 : vector<8x1xf32> to vector<8x32xf32>
    %497 = arith.mulf %492, %496 : vector<8x32xf32>
    %498 = vector.broadcast %16 : vector<1x32xf32> to vector<8x32xf32>
    %499 = arith.mulf %497, %498 : vector<8x32xf32>
    %500 = vector.broadcast %17 : vector<1x32xf32> to vector<8x32xf32>
    %501 = arith.addf %499, %500 : vector<8x32xf32>
    %502 = math.tanh %501 : vector<8x32xf32>
    %503 = arith.mulf %476, %502 : vector<8x32xf32>
    %cst_115 = arith.constant dense<0.000000e+00> : vector<8xf32>
    %504 = vector.multi_reduction <add>, %503, %cst_115 [1] : vector<8x32xf32> to vector<8xf32>
    %505 = vector.shape_cast %504 : vector<8xf32> to vector<8x1xf32>
    %cst_116 = arith.constant 3.200000e+01 : f32
    %506 = vector.broadcast %cst_116 : f32 to vector<8x1xf32>
    %507 = arith.divf %505, %506 : vector<8x1xf32>
    %508 = arith.mulf %503, %503 : vector<8x32xf32>
    %cst_117 = arith.constant dense<0.000000e+00> : vector<8xf32>
    %509 = vector.multi_reduction <add>, %508, %cst_117 [1] : vector<8x32xf32> to vector<8xf32>
    %510 = vector.shape_cast %509 : vector<8xf32> to vector<8x1xf32>
    %cst_118 = arith.constant 3.200000e+01 : f32
    %511 = vector.broadcast %cst_118 : f32 to vector<8x1xf32>
    %512 = arith.divf %510, %511 : vector<8x1xf32>
    %513 = arith.mulf %507, %507 : vector<8x1xf32>
    %514 = arith.subf %512, %513 : vector<8x1xf32>
    %515 = vector.broadcast %507 : vector<8x1xf32> to vector<8x32xf32>
    %516 = arith.subf %503, %515 : vector<8x32xf32>
    %cst_119 = arith.constant 9.99999974E-6 : f32
    %517 = vector.broadcast %cst_119 : f32 to vector<8x1xf32>
    %518 = arith.addf %514, %517 : vector<8x1xf32>
    %519 = math.rsqrt %518 : vector<8x1xf32>
    %520 = vector.broadcast %519 : vector<8x1xf32> to vector<8x32xf32>
    %521 = arith.mulf %516, %520 : vector<8x32xf32>
    %522 = vector.broadcast %18 : vector<1x32xf32> to vector<8x32xf32>
    %523 = arith.mulf %521, %522 : vector<8x32xf32>
    %524 = vector.broadcast %19 : vector<1x32xf32> to vector<8x32xf32>
    %525 = arith.addf %523, %524 : vector<8x32xf32>
    %526 = vector.extract_strided_slice %50 {offsets = [0, 3, 0], sizes = [8, 1, 128], strides = [1, 1, 1]} : vector<8x8x128xf32> to vector<8x1x128xf32>
    %527 = vector.shape_cast %526 : vector<8x1x128xf32> to vector<8x128xf32>
    %cst_120 = arith.constant dense<0.000000e+00> : vector<8x128xf32>
    %528 = tpu.matmul %434, %10, %cst_120 {dimension_numbers = #tpu.dot_dimension_numbers<[1], [0], [0], [1], [0, 0, 1, 1], [], []>} : vector<8x32xf32>, vector<32x128xf32>, vector<8x128xf32> -> vector<8x128xf32>
    %529 = arith.addf %527, %528 : vector<8x128xf32>
    %530 = arith.negf %529 : vector<8x128xf32>
    %531 = math.exp %530 : vector<8x128xf32>
    %cst_121 = arith.constant 1.000000e+00 : f32
    %532 = vector.broadcast %cst_121 : f32 to vector<8x128xf32>
    %533 = arith.addf %532, %531 : vector<8x128xf32>
    %534 = arith.divf %532, %533 : vector<8x128xf32>
    %535 = vector.extract_strided_slice %534 {offsets = [0, 0], sizes = [8, 32], strides = [1, 1]} : vector<8x128xf32> to vector<8x32xf32>
    %536 = vector.extract_strided_slice %534 {offsets = [0, 32], sizes = [8, 32], strides = [1, 1]} : vector<8x128xf32> to vector<8x32xf32>
    %537 = vector.extract_strided_slice %534 {offsets = [0, 64], sizes = [8, 32], strides = [1, 1]} : vector<8x128xf32> to vector<8x32xf32>
    %cst_122 = arith.constant 2.000000e+00 : f32
    %538 = vector.broadcast %cst_122 : f32 to vector<8x32xf32>
    %539 = arith.mulf %538, %537 : vector<8x32xf32>
    %cst_123 = arith.constant 1.000000e+00 : f32
    %540 = vector.broadcast %cst_123 : f32 to vector<8x32xf32>
    %541 = arith.subf %539, %540 : vector<8x32xf32>
    %542 = vector.extract_strided_slice %534 {offsets = [0, 96], sizes = [8, 32], strides = [1, 1]} : vector<8x128xf32> to vector<8x32xf32>
    %543 = arith.mulf %536, %410 : vector<8x32xf32>
    %544 = arith.mulf %535, %541 : vector<8x32xf32>
    %545 = arith.addf %543, %544 : vector<8x32xf32>
    %cst_124 = arith.constant dense<0.000000e+00> : vector<8xf32>
    %546 = vector.multi_reduction <add>, %545, %cst_124 [1] : vector<8x32xf32> to vector<8xf32>
    %547 = vector.shape_cast %546 : vector<8xf32> to vector<8x1xf32>
    %cst_125 = arith.constant 3.200000e+01 : f32
    %548 = vector.broadcast %cst_125 : f32 to vector<8x1xf32>
    %549 = arith.divf %547, %548 : vector<8x1xf32>
    %550 = arith.mulf %545, %545 : vector<8x32xf32>
    %cst_126 = arith.constant dense<0.000000e+00> : vector<8xf32>
    %551 = vector.multi_reduction <add>, %550, %cst_126 [1] : vector<8x32xf32> to vector<8xf32>
    %552 = vector.shape_cast %551 : vector<8xf32> to vector<8x1xf32>
    %cst_127 = arith.constant 3.200000e+01 : f32
    %553 = vector.broadcast %cst_127 : f32 to vector<8x1xf32>
    %554 = arith.divf %552, %553 : vector<8x1xf32>
    %555 = arith.mulf %549, %549 : vector<8x1xf32>
    %556 = arith.subf %554, %555 : vector<8x1xf32>
    %557 = vector.broadcast %549 : vector<8x1xf32> to vector<8x32xf32>
    %558 = arith.subf %545, %557 : vector<8x32xf32>
    %cst_128 = arith.constant 9.99999974E-6 : f32
    %559 = vector.broadcast %cst_128 : f32 to vector<8x1xf32>
    %560 = arith.addf %556, %559 : vector<8x1xf32>
    %561 = math.rsqrt %560 : vector<8x1xf32>
    %562 = vector.broadcast %561 : vector<8x1xf32> to vector<8x32xf32>
    %563 = arith.mulf %558, %562 : vector<8x32xf32>
    %564 = vector.broadcast %5 : vector<1x32xf32> to vector<8x32xf32>
    %565 = arith.mulf %563, %564 : vector<8x32xf32>
    %566 = vector.broadcast %6 : vector<1x32xf32> to vector<8x32xf32>
    %567 = arith.addf %565, %566 : vector<8x32xf32>
    %568 = math.tanh %567 : vector<8x32xf32>
    %569 = arith.mulf %542, %568 : vector<8x32xf32>
    %cst_129 = arith.constant dense<0.000000e+00> : vector<8xf32>
    %570 = vector.multi_reduction <add>, %569, %cst_129 [1] : vector<8x32xf32> to vector<8xf32>
    %571 = vector.shape_cast %570 : vector<8xf32> to vector<8x1xf32>
    %cst_130 = arith.constant 3.200000e+01 : f32
    %572 = vector.broadcast %cst_130 : f32 to vector<8x1xf32>
    %573 = arith.divf %571, %572 : vector<8x1xf32>
    %574 = arith.mulf %569, %569 : vector<8x32xf32>
    %cst_131 = arith.constant dense<0.000000e+00> : vector<8xf32>
    %575 = vector.multi_reduction <add>, %574, %cst_131 [1] : vector<8x32xf32> to vector<8xf32>
    %576 = vector.shape_cast %575 : vector<8xf32> to vector<8x1xf32>
    %cst_132 = arith.constant 3.200000e+01 : f32
    %577 = vector.broadcast %cst_132 : f32 to vector<8x1xf32>
    %578 = arith.divf %576, %577 : vector<8x1xf32>
    %579 = arith.mulf %573, %573 : vector<8x1xf32>
    %580 = arith.subf %578, %579 : vector<8x1xf32>
    %581 = vector.broadcast %573 : vector<8x1xf32> to vector<8x32xf32>
    %582 = arith.subf %569, %581 : vector<8x32xf32>
    %cst_133 = arith.constant 9.99999974E-6 : f32
    %583 = vector.broadcast %cst_133 : f32 to vector<8x1xf32>
    %584 = arith.addf %580, %583 : vector<8x1xf32>
    %585 = math.rsqrt %584 : vector<8x1xf32>
    %586 = vector.broadcast %585 : vector<8x1xf32> to vector<8x32xf32>
    %587 = arith.mulf %582, %586 : vector<8x32xf32>
    %588 = vector.broadcast %7 : vector<1x32xf32> to vector<8x32xf32>
    %589 = arith.mulf %587, %588 : vector<8x32xf32>
    %590 = vector.broadcast %8 : vector<1x32xf32> to vector<8x32xf32>
    %591 = arith.addf %589, %590 : vector<8x32xf32>
    %cst_134 = arith.constant dense<0.000000e+00> : vector<8x128xf32>
    %592 = tpu.matmul %591, %20, %cst_134 {dimension_numbers = #tpu.dot_dimension_numbers<[1], [0], [0], [1], [0, 0, 1, 1], [], []>} : vector<8x32xf32>, vector<32x128xf32>, vector<8x128xf32> -> vector<8x128xf32>
    %593 = vector.broadcast %12 : vector<1x128xf32> to vector<8x128xf32>
    %594 = arith.addf %592, %593 : vector<8x128xf32>
    %cst_135 = arith.constant dense<0.000000e+00> : vector<8xf32>
    %595 = vector.multi_reduction <add>, %594, %cst_135 [1] : vector<8x128xf32> to vector<8xf32>
    %596 = vector.shape_cast %595 : vector<8xf32> to vector<8x1xf32>
    %cst_136 = arith.constant 1.280000e+02 : f32
    %597 = vector.broadcast %cst_136 : f32 to vector<8x1xf32>
    %598 = arith.divf %596, %597 : vector<8x1xf32>
    %599 = arith.mulf %594, %594 : vector<8x128xf32>
    %cst_137 = arith.constant dense<0.000000e+00> : vector<8xf32>
    %600 = vector.multi_reduction <add>, %599, %cst_137 [1] : vector<8x128xf32> to vector<8xf32>
    %601 = vector.shape_cast %600 : vector<8xf32> to vector<8x1xf32>
    %cst_138 = arith.constant 1.280000e+02 : f32
    %602 = vector.broadcast %cst_138 : f32 to vector<8x1xf32>
    %603 = arith.divf %601, %602 : vector<8x1xf32>
    %604 = arith.mulf %598, %598 : vector<8x1xf32>
    %605 = arith.subf %603, %604 : vector<8x1xf32>
    %606 = vector.broadcast %598 : vector<8x1xf32> to vector<8x128xf32>
    %607 = arith.subf %594, %606 : vector<8x128xf32>
    %cst_139 = arith.constant 9.99999974E-6 : f32
    %608 = vector.broadcast %cst_139 : f32 to vector<8x1xf32>
    %609 = arith.addf %605, %608 : vector<8x1xf32>
    %610 = math.rsqrt %609 : vector<8x1xf32>
    %611 = vector.broadcast %610 : vector<8x1xf32> to vector<8x128xf32>
    %612 = arith.mulf %607, %611 : vector<8x128xf32>
    %613 = vector.broadcast %14 : vector<1x128xf32> to vector<8x128xf32>
    %614 = arith.mulf %612, %613 : vector<8x128xf32>
    %615 = vector.broadcast %15 : vector<1x128xf32> to vector<8x128xf32>
    %616 = arith.addf %614, %615 : vector<8x128xf32>
    %617 = vector.broadcast %13 : vector<1x128xf32> to vector<8x128xf32>
    %618 = arith.addf %616, %617 : vector<8x128xf32>
    %cst_140 = arith.constant dense<0.000000e+00> : vector<8x128xf32>
    %619 = tpu.matmul %525, %21, %cst_140 {dimension_numbers = #tpu.dot_dimension_numbers<[1], [0], [0], [1], [0, 0, 1, 1], [], []>} : vector<8x32xf32>, vector<32x128xf32>, vector<8x128xf32> -> vector<8x128xf32>
    %620 = arith.addf %618, %619 : vector<8x128xf32>
    %621 = arith.negf %620 : vector<8x128xf32>
    %622 = math.exp %621 : vector<8x128xf32>
    %cst_141 = arith.constant 1.000000e+00 : f32
    %623 = vector.broadcast %cst_141 : f32 to vector<8x128xf32>
    %624 = arith.addf %623, %622 : vector<8x128xf32>
    %625 = arith.divf %623, %624 : vector<8x128xf32>
    %626 = vector.extract_strided_slice %625 {offsets = [0, 0], sizes = [8, 32], strides = [1, 1]} : vector<8x128xf32> to vector<8x32xf32>
    %627 = vector.extract_strided_slice %625 {offsets = [0, 32], sizes = [8, 32], strides = [1, 1]} : vector<8x128xf32> to vector<8x32xf32>
    %628 = vector.extract_strided_slice %625 {offsets = [0, 64], sizes = [8, 32], strides = [1, 1]} : vector<8x128xf32> to vector<8x32xf32>
    %cst_142 = arith.constant 2.000000e+00 : f32
    %629 = vector.broadcast %cst_142 : f32 to vector<8x32xf32>
    %630 = arith.mulf %629, %628 : vector<8x32xf32>
    %cst_143 = arith.constant 1.000000e+00 : f32
    %631 = vector.broadcast %cst_143 : f32 to vector<8x32xf32>
    %632 = arith.subf %630, %631 : vector<8x32xf32>
    %633 = vector.extract_strided_slice %625 {offsets = [0, 96], sizes = [8, 32], strides = [1, 1]} : vector<8x128xf32> to vector<8x32xf32>
    %634 = arith.mulf %627, %501 : vector<8x32xf32>
    %635 = arith.mulf %626, %632 : vector<8x32xf32>
    %636 = arith.addf %634, %635 : vector<8x32xf32>
    %cst_144 = arith.constant dense<0.000000e+00> : vector<8xf32>
    %637 = vector.multi_reduction <add>, %636, %cst_144 [1] : vector<8x32xf32> to vector<8xf32>
    %638 = vector.shape_cast %637 : vector<8xf32> to vector<8x1xf32>
    %cst_145 = arith.constant 3.200000e+01 : f32
    %639 = vector.broadcast %cst_145 : f32 to vector<8x1xf32>
    %640 = arith.divf %638, %639 : vector<8x1xf32>
    %641 = arith.mulf %636, %636 : vector<8x32xf32>
    %cst_146 = arith.constant dense<0.000000e+00> : vector<8xf32>
    %642 = vector.multi_reduction <add>, %641, %cst_146 [1] : vector<8x32xf32> to vector<8xf32>
    %643 = vector.shape_cast %642 : vector<8xf32> to vector<8x1xf32>
    %cst_147 = arith.constant 3.200000e+01 : f32
    %644 = vector.broadcast %cst_147 : f32 to vector<8x1xf32>
    %645 = arith.divf %643, %644 : vector<8x1xf32>
    %646 = arith.mulf %640, %640 : vector<8x1xf32>
    %647 = arith.subf %645, %646 : vector<8x1xf32>
    %648 = vector.broadcast %640 : vector<8x1xf32> to vector<8x32xf32>
    %649 = arith.subf %636, %648 : vector<8x32xf32>
    %cst_148 = arith.constant 9.99999974E-6 : f32
    %650 = vector.broadcast %cst_148 : f32 to vector<8x1xf32>
    %651 = arith.addf %647, %650 : vector<8x1xf32>
    %652 = math.rsqrt %651 : vector<8x1xf32>
    %653 = vector.broadcast %652 : vector<8x1xf32> to vector<8x32xf32>
    %654 = arith.mulf %649, %653 : vector<8x32xf32>
    %655 = vector.broadcast %16 : vector<1x32xf32> to vector<8x32xf32>
    %656 = arith.mulf %654, %655 : vector<8x32xf32>
    %657 = vector.broadcast %17 : vector<1x32xf32> to vector<8x32xf32>
    %658 = arith.addf %656, %657 : vector<8x32xf32>
    %659 = math.tanh %658 : vector<8x32xf32>
    %660 = arith.mulf %633, %659 : vector<8x32xf32>
    %cst_149 = arith.constant dense<0.000000e+00> : vector<8xf32>
    %661 = vector.multi_reduction <add>, %660, %cst_149 [1] : vector<8x32xf32> to vector<8xf32>
    %662 = vector.shape_cast %661 : vector<8xf32> to vector<8x1xf32>
    %cst_150 = arith.constant 3.200000e+01 : f32
    %663 = vector.broadcast %cst_150 : f32 to vector<8x1xf32>
    %664 = arith.divf %662, %663 : vector<8x1xf32>
    %665 = arith.mulf %660, %660 : vector<8x32xf32>
    %cst_151 = arith.constant dense<0.000000e+00> : vector<8xf32>
    %666 = vector.multi_reduction <add>, %665, %cst_151 [1] : vector<8x32xf32> to vector<8xf32>
    %667 = vector.shape_cast %666 : vector<8xf32> to vector<8x1xf32>
    %cst_152 = arith.constant 3.200000e+01 : f32
    %668 = vector.broadcast %cst_152 : f32 to vector<8x1xf32>
    %669 = arith.divf %667, %668 : vector<8x1xf32>
    %670 = arith.mulf %664, %664 : vector<8x1xf32>
    %671 = arith.subf %669, %670 : vector<8x1xf32>
    %672 = vector.broadcast %664 : vector<8x1xf32> to vector<8x32xf32>
    %673 = arith.subf %660, %672 : vector<8x32xf32>
    %cst_153 = arith.constant 9.99999974E-6 : f32
    %674 = vector.broadcast %cst_153 : f32 to vector<8x1xf32>
    %675 = arith.addf %671, %674 : vector<8x1xf32>
    %676 = math.rsqrt %675 : vector<8x1xf32>
    %677 = vector.broadcast %676 : vector<8x1xf32> to vector<8x32xf32>
    %678 = arith.mulf %673, %677 : vector<8x32xf32>
    %679 = vector.broadcast %18 : vector<1x32xf32> to vector<8x32xf32>
    %680 = arith.mulf %678, %679 : vector<8x32xf32>
    %681 = vector.broadcast %19 : vector<1x32xf32> to vector<8x32xf32>
    %682 = arith.addf %680, %681 : vector<8x32xf32>
    %683 = vector.extract_strided_slice %50 {offsets = [0, 4, 0], sizes = [8, 1, 128], strides = [1, 1, 1]} : vector<8x8x128xf32> to vector<8x1x128xf32>
    %684 = vector.shape_cast %683 : vector<8x1x128xf32> to vector<8x128xf32>
    %cst_154 = arith.constant dense<0.000000e+00> : vector<8x128xf32>
    %685 = tpu.matmul %591, %10, %cst_154 {dimension_numbers = #tpu.dot_dimension_numbers<[1], [0], [0], [1], [0, 0, 1, 1], [], []>} : vector<8x32xf32>, vector<32x128xf32>, vector<8x128xf32> -> vector<8x128xf32>
    %686 = arith.addf %684, %685 : vector<8x128xf32>
    %687 = arith.negf %686 : vector<8x128xf32>
    %688 = math.exp %687 : vector<8x128xf32>
    %cst_155 = arith.constant 1.000000e+00 : f32
    %689 = vector.broadcast %cst_155 : f32 to vector<8x128xf32>
    %690 = arith.addf %689, %688 : vector<8x128xf32>
    %691 = arith.divf %689, %690 : vector<8x128xf32>
    %692 = vector.extract_strided_slice %691 {offsets = [0, 0], sizes = [8, 32], strides = [1, 1]} : vector<8x128xf32> to vector<8x32xf32>
    %693 = vector.extract_strided_slice %691 {offsets = [0, 32], sizes = [8, 32], strides = [1, 1]} : vector<8x128xf32> to vector<8x32xf32>
    %694 = vector.extract_strided_slice %691 {offsets = [0, 64], sizes = [8, 32], strides = [1, 1]} : vector<8x128xf32> to vector<8x32xf32>
    %cst_156 = arith.constant 2.000000e+00 : f32
    %695 = vector.broadcast %cst_156 : f32 to vector<8x32xf32>
    %696 = arith.mulf %695, %694 : vector<8x32xf32>
    %cst_157 = arith.constant 1.000000e+00 : f32
    %697 = vector.broadcast %cst_157 : f32 to vector<8x32xf32>
    %698 = arith.subf %696, %697 : vector<8x32xf32>
    %699 = vector.extract_strided_slice %691 {offsets = [0, 96], sizes = [8, 32], strides = [1, 1]} : vector<8x128xf32> to vector<8x32xf32>
    %700 = arith.mulf %693, %567 : vector<8x32xf32>
    %701 = arith.mulf %692, %698 : vector<8x32xf32>
    %702 = arith.addf %700, %701 : vector<8x32xf32>
    %cst_158 = arith.constant dense<0.000000e+00> : vector<8xf32>
    %703 = vector.multi_reduction <add>, %702, %cst_158 [1] : vector<8x32xf32> to vector<8xf32>
    %704 = vector.shape_cast %703 : vector<8xf32> to vector<8x1xf32>
    %cst_159 = arith.constant 3.200000e+01 : f32
    %705 = vector.broadcast %cst_159 : f32 to vector<8x1xf32>
    %706 = arith.divf %704, %705 : vector<8x1xf32>
    %707 = arith.mulf %702, %702 : vector<8x32xf32>
    %cst_160 = arith.constant dense<0.000000e+00> : vector<8xf32>
    %708 = vector.multi_reduction <add>, %707, %cst_160 [1] : vector<8x32xf32> to vector<8xf32>
    %709 = vector.shape_cast %708 : vector<8xf32> to vector<8x1xf32>
    %cst_161 = arith.constant 3.200000e+01 : f32
    %710 = vector.broadcast %cst_161 : f32 to vector<8x1xf32>
    %711 = arith.divf %709, %710 : vector<8x1xf32>
    %712 = arith.mulf %706, %706 : vector<8x1xf32>
    %713 = arith.subf %711, %712 : vector<8x1xf32>
    %714 = vector.broadcast %706 : vector<8x1xf32> to vector<8x32xf32>
    %715 = arith.subf %702, %714 : vector<8x32xf32>
    %cst_162 = arith.constant 9.99999974E-6 : f32
    %716 = vector.broadcast %cst_162 : f32 to vector<8x1xf32>
    %717 = arith.addf %713, %716 : vector<8x1xf32>
    %718 = math.rsqrt %717 : vector<8x1xf32>
    %719 = vector.broadcast %718 : vector<8x1xf32> to vector<8x32xf32>
    %720 = arith.mulf %715, %719 : vector<8x32xf32>
    %721 = vector.broadcast %5 : vector<1x32xf32> to vector<8x32xf32>
    %722 = arith.mulf %720, %721 : vector<8x32xf32>
    %723 = vector.broadcast %6 : vector<1x32xf32> to vector<8x32xf32>
    %724 = arith.addf %722, %723 : vector<8x32xf32>
    %725 = math.tanh %724 : vector<8x32xf32>
    %726 = arith.mulf %699, %725 : vector<8x32xf32>
    %cst_163 = arith.constant dense<0.000000e+00> : vector<8xf32>
    %727 = vector.multi_reduction <add>, %726, %cst_163 [1] : vector<8x32xf32> to vector<8xf32>
    %728 = vector.shape_cast %727 : vector<8xf32> to vector<8x1xf32>
    %cst_164 = arith.constant 3.200000e+01 : f32
    %729 = vector.broadcast %cst_164 : f32 to vector<8x1xf32>
    %730 = arith.divf %728, %729 : vector<8x1xf32>
    %731 = arith.mulf %726, %726 : vector<8x32xf32>
    %cst_165 = arith.constant dense<0.000000e+00> : vector<8xf32>
    %732 = vector.multi_reduction <add>, %731, %cst_165 [1] : vector<8x32xf32> to vector<8xf32>
    %733 = vector.shape_cast %732 : vector<8xf32> to vector<8x1xf32>
    %cst_166 = arith.constant 3.200000e+01 : f32
    %734 = vector.broadcast %cst_166 : f32 to vector<8x1xf32>
    %735 = arith.divf %733, %734 : vector<8x1xf32>
    %736 = arith.mulf %730, %730 : vector<8x1xf32>
    %737 = arith.subf %735, %736 : vector<8x1xf32>
    %738 = vector.broadcast %730 : vector<8x1xf32> to vector<8x32xf32>
    %739 = arith.subf %726, %738 : vector<8x32xf32>
    %cst_167 = arith.constant 9.99999974E-6 : f32
    %740 = vector.broadcast %cst_167 : f32 to vector<8x1xf32>
    %741 = arith.addf %737, %740 : vector<8x1xf32>
    %742 = math.rsqrt %741 : vector<8x1xf32>
    %743 = vector.broadcast %742 : vector<8x1xf32> to vector<8x32xf32>
    %744 = arith.mulf %739, %743 : vector<8x32xf32>
    %745 = vector.broadcast %7 : vector<1x32xf32> to vector<8x32xf32>
    %746 = arith.mulf %744, %745 : vector<8x32xf32>
    %747 = vector.broadcast %8 : vector<1x32xf32> to vector<8x32xf32>
    %748 = arith.addf %746, %747 : vector<8x32xf32>
    %cst_168 = arith.constant dense<0.000000e+00> : vector<8x128xf32>
    %749 = tpu.matmul %748, %20, %cst_168 {dimension_numbers = #tpu.dot_dimension_numbers<[1], [0], [0], [1], [0, 0, 1, 1], [], []>} : vector<8x32xf32>, vector<32x128xf32>, vector<8x128xf32> -> vector<8x128xf32>
    %750 = vector.broadcast %12 : vector<1x128xf32> to vector<8x128xf32>
    %751 = arith.addf %749, %750 : vector<8x128xf32>
    %cst_169 = arith.constant dense<0.000000e+00> : vector<8xf32>
    %752 = vector.multi_reduction <add>, %751, %cst_169 [1] : vector<8x128xf32> to vector<8xf32>
    %753 = vector.shape_cast %752 : vector<8xf32> to vector<8x1xf32>
    %cst_170 = arith.constant 1.280000e+02 : f32
    %754 = vector.broadcast %cst_170 : f32 to vector<8x1xf32>
    %755 = arith.divf %753, %754 : vector<8x1xf32>
    %756 = arith.mulf %751, %751 : vector<8x128xf32>
    %cst_171 = arith.constant dense<0.000000e+00> : vector<8xf32>
    %757 = vector.multi_reduction <add>, %756, %cst_171 [1] : vector<8x128xf32> to vector<8xf32>
    %758 = vector.shape_cast %757 : vector<8xf32> to vector<8x1xf32>
    %cst_172 = arith.constant 1.280000e+02 : f32
    %759 = vector.broadcast %cst_172 : f32 to vector<8x1xf32>
    %760 = arith.divf %758, %759 : vector<8x1xf32>
    %761 = arith.mulf %755, %755 : vector<8x1xf32>
    %762 = arith.subf %760, %761 : vector<8x1xf32>
    %763 = vector.broadcast %755 : vector<8x1xf32> to vector<8x128xf32>
    %764 = arith.subf %751, %763 : vector<8x128xf32>
    %cst_173 = arith.constant 9.99999974E-6 : f32
    %765 = vector.broadcast %cst_173 : f32 to vector<8x1xf32>
    %766 = arith.addf %762, %765 : vector<8x1xf32>
    %767 = math.rsqrt %766 : vector<8x1xf32>
    %768 = vector.broadcast %767 : vector<8x1xf32> to vector<8x128xf32>
    %769 = arith.mulf %764, %768 : vector<8x128xf32>
    %770 = vector.broadcast %14 : vector<1x128xf32> to vector<8x128xf32>
    %771 = arith.mulf %769, %770 : vector<8x128xf32>
    %772 = vector.broadcast %15 : vector<1x128xf32> to vector<8x128xf32>
    %773 = arith.addf %771, %772 : vector<8x128xf32>
    %774 = vector.broadcast %13 : vector<1x128xf32> to vector<8x128xf32>
    %775 = arith.addf %773, %774 : vector<8x128xf32>
    %cst_174 = arith.constant dense<0.000000e+00> : vector<8x128xf32>
    %776 = tpu.matmul %682, %21, %cst_174 {dimension_numbers = #tpu.dot_dimension_numbers<[1], [0], [0], [1], [0, 0, 1, 1], [], []>} : vector<8x32xf32>, vector<32x128xf32>, vector<8x128xf32> -> vector<8x128xf32>
    %777 = arith.addf %775, %776 : vector<8x128xf32>
    %778 = arith.negf %777 : vector<8x128xf32>
    %779 = math.exp %778 : vector<8x128xf32>
    %cst_175 = arith.constant 1.000000e+00 : f32
    %780 = vector.broadcast %cst_175 : f32 to vector<8x128xf32>
    %781 = arith.addf %780, %779 : vector<8x128xf32>
    %782 = arith.divf %780, %781 : vector<8x128xf32>
    %783 = vector.extract_strided_slice %782 {offsets = [0, 0], sizes = [8, 32], strides = [1, 1]} : vector<8x128xf32> to vector<8x32xf32>
    %784 = vector.extract_strided_slice %782 {offsets = [0, 32], sizes = [8, 32], strides = [1, 1]} : vector<8x128xf32> to vector<8x32xf32>
    %785 = vector.extract_strided_slice %782 {offsets = [0, 64], sizes = [8, 32], strides = [1, 1]} : vector<8x128xf32> to vector<8x32xf32>
    %cst_176 = arith.constant 2.000000e+00 : f32
    %786 = vector.broadcast %cst_176 : f32 to vector<8x32xf32>
    %787 = arith.mulf %786, %785 : vector<8x32xf32>
    %cst_177 = arith.constant 1.000000e+00 : f32
    %788 = vector.broadcast %cst_177 : f32 to vector<8x32xf32>
    %789 = arith.subf %787, %788 : vector<8x32xf32>
    %790 = vector.extract_strided_slice %782 {offsets = [0, 96], sizes = [8, 32], strides = [1, 1]} : vector<8x128xf32> to vector<8x32xf32>
    %791 = arith.mulf %784, %658 : vector<8x32xf32>
    %792 = arith.mulf %783, %789 : vector<8x32xf32>
    %793 = arith.addf %791, %792 : vector<8x32xf32>
    %cst_178 = arith.constant dense<0.000000e+00> : vector<8xf32>
    %794 = vector.multi_reduction <add>, %793, %cst_178 [1] : vector<8x32xf32> to vector<8xf32>
    %795 = vector.shape_cast %794 : vector<8xf32> to vector<8x1xf32>
    %cst_179 = arith.constant 3.200000e+01 : f32
    %796 = vector.broadcast %cst_179 : f32 to vector<8x1xf32>
    %797 = arith.divf %795, %796 : vector<8x1xf32>
    %798 = arith.mulf %793, %793 : vector<8x32xf32>
    %cst_180 = arith.constant dense<0.000000e+00> : vector<8xf32>
    %799 = vector.multi_reduction <add>, %798, %cst_180 [1] : vector<8x32xf32> to vector<8xf32>
    %800 = vector.shape_cast %799 : vector<8xf32> to vector<8x1xf32>
    %cst_181 = arith.constant 3.200000e+01 : f32
    %801 = vector.broadcast %cst_181 : f32 to vector<8x1xf32>
    %802 = arith.divf %800, %801 : vector<8x1xf32>
    %803 = arith.mulf %797, %797 : vector<8x1xf32>
    %804 = arith.subf %802, %803 : vector<8x1xf32>
    %805 = vector.broadcast %797 : vector<8x1xf32> to vector<8x32xf32>
    %806 = arith.subf %793, %805 : vector<8x32xf32>
    %cst_182 = arith.constant 9.99999974E-6 : f32
    %807 = vector.broadcast %cst_182 : f32 to vector<8x1xf32>
    %808 = arith.addf %804, %807 : vector<8x1xf32>
    %809 = math.rsqrt %808 : vector<8x1xf32>
    %810 = vector.broadcast %809 : vector<8x1xf32> to vector<8x32xf32>
    %811 = arith.mulf %806, %810 : vector<8x32xf32>
    %812 = vector.broadcast %16 : vector<1x32xf32> to vector<8x32xf32>
    %813 = arith.mulf %811, %812 : vector<8x32xf32>
    %814 = vector.broadcast %17 : vector<1x32xf32> to vector<8x32xf32>
    %815 = arith.addf %813, %814 : vector<8x32xf32>
    %816 = math.tanh %815 : vector<8x32xf32>
    %817 = arith.mulf %790, %816 : vector<8x32xf32>
    %cst_183 = arith.constant dense<0.000000e+00> : vector<8xf32>
    %818 = vector.multi_reduction <add>, %817, %cst_183 [1] : vector<8x32xf32> to vector<8xf32>
    %819 = vector.shape_cast %818 : vector<8xf32> to vector<8x1xf32>
    %cst_184 = arith.constant 3.200000e+01 : f32
    %820 = vector.broadcast %cst_184 : f32 to vector<8x1xf32>
    %821 = arith.divf %819, %820 : vector<8x1xf32>
    %822 = arith.mulf %817, %817 : vector<8x32xf32>
    %cst_185 = arith.constant dense<0.000000e+00> : vector<8xf32>
    %823 = vector.multi_reduction <add>, %822, %cst_185 [1] : vector<8x32xf32> to vector<8xf32>
    %824 = vector.shape_cast %823 : vector<8xf32> to vector<8x1xf32>
    %cst_186 = arith.constant 3.200000e+01 : f32
    %825 = vector.broadcast %cst_186 : f32 to vector<8x1xf32>
    %826 = arith.divf %824, %825 : vector<8x1xf32>
    %827 = arith.mulf %821, %821 : vector<8x1xf32>
    %828 = arith.subf %826, %827 : vector<8x1xf32>
    %829 = vector.broadcast %821 : vector<8x1xf32> to vector<8x32xf32>
    %830 = arith.subf %817, %829 : vector<8x32xf32>
    %cst_187 = arith.constant 9.99999974E-6 : f32
    %831 = vector.broadcast %cst_187 : f32 to vector<8x1xf32>
    %832 = arith.addf %828, %831 : vector<8x1xf32>
    %833 = math.rsqrt %832 : vector<8x1xf32>
    %834 = vector.broadcast %833 : vector<8x1xf32> to vector<8x32xf32>
    %835 = arith.mulf %830, %834 : vector<8x32xf32>
    %836 = vector.broadcast %18 : vector<1x32xf32> to vector<8x32xf32>
    %837 = arith.mulf %835, %836 : vector<8x32xf32>
    %838 = vector.broadcast %19 : vector<1x32xf32> to vector<8x32xf32>
    %839 = arith.addf %837, %838 : vector<8x32xf32>
    %840 = vector.extract_strided_slice %50 {offsets = [0, 5, 0], sizes = [8, 1, 128], strides = [1, 1, 1]} : vector<8x8x128xf32> to vector<8x1x128xf32>
    %841 = vector.shape_cast %840 : vector<8x1x128xf32> to vector<8x128xf32>
    %cst_188 = arith.constant dense<0.000000e+00> : vector<8x128xf32>
    %842 = tpu.matmul %748, %10, %cst_188 {dimension_numbers = #tpu.dot_dimension_numbers<[1], [0], [0], [1], [0, 0, 1, 1], [], []>} : vector<8x32xf32>, vector<32x128xf32>, vector<8x128xf32> -> vector<8x128xf32>
    %843 = arith.addf %841, %842 : vector<8x128xf32>
    %844 = arith.negf %843 : vector<8x128xf32>
    %845 = math.exp %844 : vector<8x128xf32>
    %cst_189 = arith.constant 1.000000e+00 : f32
    %846 = vector.broadcast %cst_189 : f32 to vector<8x128xf32>
    %847 = arith.addf %846, %845 : vector<8x128xf32>
    %848 = arith.divf %846, %847 : vector<8x128xf32>
    %849 = vector.extract_strided_slice %848 {offsets = [0, 0], sizes = [8, 32], strides = [1, 1]} : vector<8x128xf32> to vector<8x32xf32>
    %850 = vector.extract_strided_slice %848 {offsets = [0, 32], sizes = [8, 32], strides = [1, 1]} : vector<8x128xf32> to vector<8x32xf32>
    %851 = vector.extract_strided_slice %848 {offsets = [0, 64], sizes = [8, 32], strides = [1, 1]} : vector<8x128xf32> to vector<8x32xf32>
    %cst_190 = arith.constant 2.000000e+00 : f32
    %852 = vector.broadcast %cst_190 : f32 to vector<8x32xf32>
    %853 = arith.mulf %852, %851 : vector<8x32xf32>
    %cst_191 = arith.constant 1.000000e+00 : f32
    %854 = vector.broadcast %cst_191 : f32 to vector<8x32xf32>
    %855 = arith.subf %853, %854 : vector<8x32xf32>
    %856 = vector.extract_strided_slice %848 {offsets = [0, 96], sizes = [8, 32], strides = [1, 1]} : vector<8x128xf32> to vector<8x32xf32>
    %857 = arith.mulf %850, %724 : vector<8x32xf32>
    %858 = arith.mulf %849, %855 : vector<8x32xf32>
    %859 = arith.addf %857, %858 : vector<8x32xf32>
    %cst_192 = arith.constant dense<0.000000e+00> : vector<8xf32>
    %860 = vector.multi_reduction <add>, %859, %cst_192 [1] : vector<8x32xf32> to vector<8xf32>
    %861 = vector.shape_cast %860 : vector<8xf32> to vector<8x1xf32>
    %cst_193 = arith.constant 3.200000e+01 : f32
    %862 = vector.broadcast %cst_193 : f32 to vector<8x1xf32>
    %863 = arith.divf %861, %862 : vector<8x1xf32>
    %864 = arith.mulf %859, %859 : vector<8x32xf32>
    %cst_194 = arith.constant dense<0.000000e+00> : vector<8xf32>
    %865 = vector.multi_reduction <add>, %864, %cst_194 [1] : vector<8x32xf32> to vector<8xf32>
    %866 = vector.shape_cast %865 : vector<8xf32> to vector<8x1xf32>
    %cst_195 = arith.constant 3.200000e+01 : f32
    %867 = vector.broadcast %cst_195 : f32 to vector<8x1xf32>
    %868 = arith.divf %866, %867 : vector<8x1xf32>
    %869 = arith.mulf %863, %863 : vector<8x1xf32>
    %870 = arith.subf %868, %869 : vector<8x1xf32>
    %871 = vector.broadcast %863 : vector<8x1xf32> to vector<8x32xf32>
    %872 = arith.subf %859, %871 : vector<8x32xf32>
    %cst_196 = arith.constant 9.99999974E-6 : f32
    %873 = vector.broadcast %cst_196 : f32 to vector<8x1xf32>
    %874 = arith.addf %870, %873 : vector<8x1xf32>
    %875 = math.rsqrt %874 : vector<8x1xf32>
    %876 = vector.broadcast %875 : vector<8x1xf32> to vector<8x32xf32>
    %877 = arith.mulf %872, %876 : vector<8x32xf32>
    %878 = vector.broadcast %5 : vector<1x32xf32> to vector<8x32xf32>
    %879 = arith.mulf %877, %878 : vector<8x32xf32>
    %880 = vector.broadcast %6 : vector<1x32xf32> to vector<8x32xf32>
    %881 = arith.addf %879, %880 : vector<8x32xf32>
    %882 = math.tanh %881 : vector<8x32xf32>
    %883 = arith.mulf %856, %882 : vector<8x32xf32>
    %cst_197 = arith.constant dense<0.000000e+00> : vector<8xf32>
    %884 = vector.multi_reduction <add>, %883, %cst_197 [1] : vector<8x32xf32> to vector<8xf32>
    %885 = vector.shape_cast %884 : vector<8xf32> to vector<8x1xf32>
    %cst_198 = arith.constant 3.200000e+01 : f32
    %886 = vector.broadcast %cst_198 : f32 to vector<8x1xf32>
    %887 = arith.divf %885, %886 : vector<8x1xf32>
    %888 = arith.mulf %883, %883 : vector<8x32xf32>
    %cst_199 = arith.constant dense<0.000000e+00> : vector<8xf32>
    %889 = vector.multi_reduction <add>, %888, %cst_199 [1] : vector<8x32xf32> to vector<8xf32>
    %890 = vector.shape_cast %889 : vector<8xf32> to vector<8x1xf32>
    %cst_200 = arith.constant 3.200000e+01 : f32
    %891 = vector.broadcast %cst_200 : f32 to vector<8x1xf32>
    %892 = arith.divf %890, %891 : vector<8x1xf32>
    %893 = arith.mulf %887, %887 : vector<8x1xf32>
    %894 = arith.subf %892, %893 : vector<8x1xf32>
    %895 = vector.broadcast %887 : vector<8x1xf32> to vector<8x32xf32>
    %896 = arith.subf %883, %895 : vector<8x32xf32>
    %cst_201 = arith.constant 9.99999974E-6 : f32
    %897 = vector.broadcast %cst_201 : f32 to vector<8x1xf32>
    %898 = arith.addf %894, %897 : vector<8x1xf32>
    %899 = math.rsqrt %898 : vector<8x1xf32>
    %900 = vector.broadcast %899 : vector<8x1xf32> to vector<8x32xf32>
    %901 = arith.mulf %896, %900 : vector<8x32xf32>
    %902 = vector.broadcast %7 : vector<1x32xf32> to vector<8x32xf32>
    %903 = arith.mulf %901, %902 : vector<8x32xf32>
    %904 = vector.broadcast %8 : vector<1x32xf32> to vector<8x32xf32>
    %905 = arith.addf %903, %904 : vector<8x32xf32>
    %cst_202 = arith.constant dense<0.000000e+00> : vector<8x128xf32>
    %906 = tpu.matmul %905, %20, %cst_202 {dimension_numbers = #tpu.dot_dimension_numbers<[1], [0], [0], [1], [0, 0, 1, 1], [], []>} : vector<8x32xf32>, vector<32x128xf32>, vector<8x128xf32> -> vector<8x128xf32>
    %907 = vector.broadcast %12 : vector<1x128xf32> to vector<8x128xf32>
    %908 = arith.addf %906, %907 : vector<8x128xf32>
    %cst_203 = arith.constant dense<0.000000e+00> : vector<8xf32>
    %909 = vector.multi_reduction <add>, %908, %cst_203 [1] : vector<8x128xf32> to vector<8xf32>
    %910 = vector.shape_cast %909 : vector<8xf32> to vector<8x1xf32>
    %cst_204 = arith.constant 1.280000e+02 : f32
    %911 = vector.broadcast %cst_204 : f32 to vector<8x1xf32>
    %912 = arith.divf %910, %911 : vector<8x1xf32>
    %913 = arith.mulf %908, %908 : vector<8x128xf32>
    %cst_205 = arith.constant dense<0.000000e+00> : vector<8xf32>
    %914 = vector.multi_reduction <add>, %913, %cst_205 [1] : vector<8x128xf32> to vector<8xf32>
    %915 = vector.shape_cast %914 : vector<8xf32> to vector<8x1xf32>
    %cst_206 = arith.constant 1.280000e+02 : f32
    %916 = vector.broadcast %cst_206 : f32 to vector<8x1xf32>
    %917 = arith.divf %915, %916 : vector<8x1xf32>
    %918 = arith.mulf %912, %912 : vector<8x1xf32>
    %919 = arith.subf %917, %918 : vector<8x1xf32>
    %920 = vector.broadcast %912 : vector<8x1xf32> to vector<8x128xf32>
    %921 = arith.subf %908, %920 : vector<8x128xf32>
    %cst_207 = arith.constant 9.99999974E-6 : f32
    %922 = vector.broadcast %cst_207 : f32 to vector<8x1xf32>
    %923 = arith.addf %919, %922 : vector<8x1xf32>
    %924 = math.rsqrt %923 : vector<8x1xf32>
    %925 = vector.broadcast %924 : vector<8x1xf32> to vector<8x128xf32>
    %926 = arith.mulf %921, %925 : vector<8x128xf32>
    %927 = vector.broadcast %14 : vector<1x128xf32> to vector<8x128xf32>
    %928 = arith.mulf %926, %927 : vector<8x128xf32>
    %929 = vector.broadcast %15 : vector<1x128xf32> to vector<8x128xf32>
    %930 = arith.addf %928, %929 : vector<8x128xf32>
    %931 = vector.broadcast %13 : vector<1x128xf32> to vector<8x128xf32>
    %932 = arith.addf %930, %931 : vector<8x128xf32>
    %cst_208 = arith.constant dense<0.000000e+00> : vector<8x128xf32>
    %933 = tpu.matmul %839, %21, %cst_208 {dimension_numbers = #tpu.dot_dimension_numbers<[1], [0], [0], [1], [0, 0, 1, 1], [], []>} : vector<8x32xf32>, vector<32x128xf32>, vector<8x128xf32> -> vector<8x128xf32>
    %934 = arith.addf %932, %933 : vector<8x128xf32>
    %935 = arith.negf %934 : vector<8x128xf32>
    %936 = math.exp %935 : vector<8x128xf32>
    %cst_209 = arith.constant 1.000000e+00 : f32
    %937 = vector.broadcast %cst_209 : f32 to vector<8x128xf32>
    %938 = arith.addf %937, %936 : vector<8x128xf32>
    %939 = arith.divf %937, %938 : vector<8x128xf32>
    %940 = vector.extract_strided_slice %939 {offsets = [0, 0], sizes = [8, 32], strides = [1, 1]} : vector<8x128xf32> to vector<8x32xf32>
    %941 = vector.extract_strided_slice %939 {offsets = [0, 32], sizes = [8, 32], strides = [1, 1]} : vector<8x128xf32> to vector<8x32xf32>
    %942 = vector.extract_strided_slice %939 {offsets = [0, 64], sizes = [8, 32], strides = [1, 1]} : vector<8x128xf32> to vector<8x32xf32>
    %cst_210 = arith.constant 2.000000e+00 : f32
    %943 = vector.broadcast %cst_210 : f32 to vector<8x32xf32>
    %944 = arith.mulf %943, %942 : vector<8x32xf32>
    %cst_211 = arith.constant 1.000000e+00 : f32
    %945 = vector.broadcast %cst_211 : f32 to vector<8x32xf32>
    %946 = arith.subf %944, %945 : vector<8x32xf32>
    %947 = vector.extract_strided_slice %939 {offsets = [0, 96], sizes = [8, 32], strides = [1, 1]} : vector<8x128xf32> to vector<8x32xf32>
    %948 = arith.mulf %941, %815 : vector<8x32xf32>
    %949 = arith.mulf %940, %946 : vector<8x32xf32>
    %950 = arith.addf %948, %949 : vector<8x32xf32>
    %cst_212 = arith.constant dense<0.000000e+00> : vector<8xf32>
    %951 = vector.multi_reduction <add>, %950, %cst_212 [1] : vector<8x32xf32> to vector<8xf32>
    %952 = vector.shape_cast %951 : vector<8xf32> to vector<8x1xf32>
    %cst_213 = arith.constant 3.200000e+01 : f32
    %953 = vector.broadcast %cst_213 : f32 to vector<8x1xf32>
    %954 = arith.divf %952, %953 : vector<8x1xf32>
    %955 = arith.mulf %950, %950 : vector<8x32xf32>
    %cst_214 = arith.constant dense<0.000000e+00> : vector<8xf32>
    %956 = vector.multi_reduction <add>, %955, %cst_214 [1] : vector<8x32xf32> to vector<8xf32>
    %957 = vector.shape_cast %956 : vector<8xf32> to vector<8x1xf32>
    %cst_215 = arith.constant 3.200000e+01 : f32
    %958 = vector.broadcast %cst_215 : f32 to vector<8x1xf32>
    %959 = arith.divf %957, %958 : vector<8x1xf32>
    %960 = arith.mulf %954, %954 : vector<8x1xf32>
    %961 = arith.subf %959, %960 : vector<8x1xf32>
    %962 = vector.broadcast %954 : vector<8x1xf32> to vector<8x32xf32>
    %963 = arith.subf %950, %962 : vector<8x32xf32>
    %cst_216 = arith.constant 9.99999974E-6 : f32
    %964 = vector.broadcast %cst_216 : f32 to vector<8x1xf32>
    %965 = arith.addf %961, %964 : vector<8x1xf32>
    %966 = math.rsqrt %965 : vector<8x1xf32>
    %967 = vector.broadcast %966 : vector<8x1xf32> to vector<8x32xf32>
    %968 = arith.mulf %963, %967 : vector<8x32xf32>
    %969 = vector.broadcast %16 : vector<1x32xf32> to vector<8x32xf32>
    %970 = arith.mulf %968, %969 : vector<8x32xf32>
    %971 = vector.broadcast %17 : vector<1x32xf32> to vector<8x32xf32>
    %972 = arith.addf %970, %971 : vector<8x32xf32>
    %973 = math.tanh %972 : vector<8x32xf32>
    %974 = arith.mulf %947, %973 : vector<8x32xf32>
    %cst_217 = arith.constant dense<0.000000e+00> : vector<8xf32>
    %975 = vector.multi_reduction <add>, %974, %cst_217 [1] : vector<8x32xf32> to vector<8xf32>
    %976 = vector.shape_cast %975 : vector<8xf32> to vector<8x1xf32>
    %cst_218 = arith.constant 3.200000e+01 : f32
    %977 = vector.broadcast %cst_218 : f32 to vector<8x1xf32>
    %978 = arith.divf %976, %977 : vector<8x1xf32>
    %979 = arith.mulf %974, %974 : vector<8x32xf32>
    %cst_219 = arith.constant dense<0.000000e+00> : vector<8xf32>
    %980 = vector.multi_reduction <add>, %979, %cst_219 [1] : vector<8x32xf32> to vector<8xf32>
    %981 = vector.shape_cast %980 : vector<8xf32> to vector<8x1xf32>
    %cst_220 = arith.constant 3.200000e+01 : f32
    %982 = vector.broadcast %cst_220 : f32 to vector<8x1xf32>
    %983 = arith.divf %981, %982 : vector<8x1xf32>
    %984 = arith.mulf %978, %978 : vector<8x1xf32>
    %985 = arith.subf %983, %984 : vector<8x1xf32>
    %986 = vector.broadcast %978 : vector<8x1xf32> to vector<8x32xf32>
    %987 = arith.subf %974, %986 : vector<8x32xf32>
    %cst_221 = arith.constant 9.99999974E-6 : f32
    %988 = vector.broadcast %cst_221 : f32 to vector<8x1xf32>
    %989 = arith.addf %985, %988 : vector<8x1xf32>
    %990 = math.rsqrt %989 : vector<8x1xf32>
    %991 = vector.broadcast %990 : vector<8x1xf32> to vector<8x32xf32>
    %992 = arith.mulf %987, %991 : vector<8x32xf32>
    %993 = vector.broadcast %18 : vector<1x32xf32> to vector<8x32xf32>
    %994 = arith.mulf %992, %993 : vector<8x32xf32>
    %995 = vector.broadcast %19 : vector<1x32xf32> to vector<8x32xf32>
    %996 = arith.addf %994, %995 : vector<8x32xf32>
    %997 = vector.extract_strided_slice %50 {offsets = [0, 6, 0], sizes = [8, 1, 128], strides = [1, 1, 1]} : vector<8x8x128xf32> to vector<8x1x128xf32>
    %998 = vector.shape_cast %997 : vector<8x1x128xf32> to vector<8x128xf32>
    %cst_222 = arith.constant dense<0.000000e+00> : vector<8x128xf32>
    %999 = tpu.matmul %905, %10, %cst_222 {dimension_numbers = #tpu.dot_dimension_numbers<[1], [0], [0], [1], [0, 0, 1, 1], [], []>} : vector<8x32xf32>, vector<32x128xf32>, vector<8x128xf32> -> vector<8x128xf32>
    %1000 = arith.addf %998, %999 : vector<8x128xf32>
    %1001 = arith.negf %1000 : vector<8x128xf32>
    %1002 = math.exp %1001 : vector<8x128xf32>
    %cst_223 = arith.constant 1.000000e+00 : f32
    %1003 = vector.broadcast %cst_223 : f32 to vector<8x128xf32>
    %1004 = arith.addf %1003, %1002 : vector<8x128xf32>
    %1005 = arith.divf %1003, %1004 : vector<8x128xf32>
    %1006 = vector.extract_strided_slice %1005 {offsets = [0, 0], sizes = [8, 32], strides = [1, 1]} : vector<8x128xf32> to vector<8x32xf32>
    %1007 = vector.extract_strided_slice %1005 {offsets = [0, 32], sizes = [8, 32], strides = [1, 1]} : vector<8x128xf32> to vector<8x32xf32>
    %1008 = vector.extract_strided_slice %1005 {offsets = [0, 64], sizes = [8, 32], strides = [1, 1]} : vector<8x128xf32> to vector<8x32xf32>
    %cst_224 = arith.constant 2.000000e+00 : f32
    %1009 = vector.broadcast %cst_224 : f32 to vector<8x32xf32>
    %1010 = arith.mulf %1009, %1008 : vector<8x32xf32>
    %cst_225 = arith.constant 1.000000e+00 : f32
    %1011 = vector.broadcast %cst_225 : f32 to vector<8x32xf32>
    %1012 = arith.subf %1010, %1011 : vector<8x32xf32>
    %1013 = vector.extract_strided_slice %1005 {offsets = [0, 96], sizes = [8, 32], strides = [1, 1]} : vector<8x128xf32> to vector<8x32xf32>
    %1014 = arith.mulf %1007, %881 : vector<8x32xf32>
    %1015 = arith.mulf %1006, %1012 : vector<8x32xf32>
    %1016 = arith.addf %1014, %1015 : vector<8x32xf32>
    %cst_226 = arith.constant dense<0.000000e+00> : vector<8xf32>
    %1017 = vector.multi_reduction <add>, %1016, %cst_226 [1] : vector<8x32xf32> to vector<8xf32>
    %1018 = vector.shape_cast %1017 : vector<8xf32> to vector<8x1xf32>
    %cst_227 = arith.constant 3.200000e+01 : f32
    %1019 = vector.broadcast %cst_227 : f32 to vector<8x1xf32>
    %1020 = arith.divf %1018, %1019 : vector<8x1xf32>
    %1021 = arith.mulf %1016, %1016 : vector<8x32xf32>
    %cst_228 = arith.constant dense<0.000000e+00> : vector<8xf32>
    %1022 = vector.multi_reduction <add>, %1021, %cst_228 [1] : vector<8x32xf32> to vector<8xf32>
    %1023 = vector.shape_cast %1022 : vector<8xf32> to vector<8x1xf32>
    %cst_229 = arith.constant 3.200000e+01 : f32
    %1024 = vector.broadcast %cst_229 : f32 to vector<8x1xf32>
    %1025 = arith.divf %1023, %1024 : vector<8x1xf32>
    %1026 = arith.mulf %1020, %1020 : vector<8x1xf32>
    %1027 = arith.subf %1025, %1026 : vector<8x1xf32>
    %1028 = vector.broadcast %1020 : vector<8x1xf32> to vector<8x32xf32>
    %1029 = arith.subf %1016, %1028 : vector<8x32xf32>
    %cst_230 = arith.constant 9.99999974E-6 : f32
    %1030 = vector.broadcast %cst_230 : f32 to vector<8x1xf32>
    %1031 = arith.addf %1027, %1030 : vector<8x1xf32>
    %1032 = math.rsqrt %1031 : vector<8x1xf32>
    %1033 = vector.broadcast %1032 : vector<8x1xf32> to vector<8x32xf32>
    %1034 = arith.mulf %1029, %1033 : vector<8x32xf32>
    %1035 = vector.broadcast %5 : vector<1x32xf32> to vector<8x32xf32>
    %1036 = arith.mulf %1034, %1035 : vector<8x32xf32>
    %1037 = vector.broadcast %6 : vector<1x32xf32> to vector<8x32xf32>
    %1038 = arith.addf %1036, %1037 : vector<8x32xf32>
    %1039 = math.tanh %1038 : vector<8x32xf32>
    %1040 = arith.mulf %1013, %1039 : vector<8x32xf32>
    %cst_231 = arith.constant dense<0.000000e+00> : vector<8xf32>
    %1041 = vector.multi_reduction <add>, %1040, %cst_231 [1] : vector<8x32xf32> to vector<8xf32>
    %1042 = vector.shape_cast %1041 : vector<8xf32> to vector<8x1xf32>
    %cst_232 = arith.constant 3.200000e+01 : f32
    %1043 = vector.broadcast %cst_232 : f32 to vector<8x1xf32>
    %1044 = arith.divf %1042, %1043 : vector<8x1xf32>
    %1045 = arith.mulf %1040, %1040 : vector<8x32xf32>
    %cst_233 = arith.constant dense<0.000000e+00> : vector<8xf32>
    %1046 = vector.multi_reduction <add>, %1045, %cst_233 [1] : vector<8x32xf32> to vector<8xf32>
    %1047 = vector.shape_cast %1046 : vector<8xf32> to vector<8x1xf32>
    %cst_234 = arith.constant 3.200000e+01 : f32
    %1048 = vector.broadcast %cst_234 : f32 to vector<8x1xf32>
    %1049 = arith.divf %1047, %1048 : vector<8x1xf32>
    %1050 = arith.mulf %1044, %1044 : vector<8x1xf32>
    %1051 = arith.subf %1049, %1050 : vector<8x1xf32>
    %1052 = vector.broadcast %1044 : vector<8x1xf32> to vector<8x32xf32>
    %1053 = arith.subf %1040, %1052 : vector<8x32xf32>
    %cst_235 = arith.constant 9.99999974E-6 : f32
    %1054 = vector.broadcast %cst_235 : f32 to vector<8x1xf32>
    %1055 = arith.addf %1051, %1054 : vector<8x1xf32>
    %1056 = math.rsqrt %1055 : vector<8x1xf32>
    %1057 = vector.broadcast %1056 : vector<8x1xf32> to vector<8x32xf32>
    %1058 = arith.mulf %1053, %1057 : vector<8x32xf32>
    %1059 = vector.broadcast %7 : vector<1x32xf32> to vector<8x32xf32>
    %1060 = arith.mulf %1058, %1059 : vector<8x32xf32>
    %1061 = vector.broadcast %8 : vector<1x32xf32> to vector<8x32xf32>
    %1062 = arith.addf %1060, %1061 : vector<8x32xf32>
    %cst_236 = arith.constant dense<0.000000e+00> : vector<8x128xf32>
    %1063 = tpu.matmul %1062, %20, %cst_236 {dimension_numbers = #tpu.dot_dimension_numbers<[1], [0], [0], [1], [0, 0, 1, 1], [], []>} : vector<8x32xf32>, vector<32x128xf32>, vector<8x128xf32> -> vector<8x128xf32>
    %1064 = vector.broadcast %12 : vector<1x128xf32> to vector<8x128xf32>
    %1065 = arith.addf %1063, %1064 : vector<8x128xf32>
    %cst_237 = arith.constant dense<0.000000e+00> : vector<8xf32>
    %1066 = vector.multi_reduction <add>, %1065, %cst_237 [1] : vector<8x128xf32> to vector<8xf32>
    %1067 = vector.shape_cast %1066 : vector<8xf32> to vector<8x1xf32>
    %cst_238 = arith.constant 1.280000e+02 : f32
    %1068 = vector.broadcast %cst_238 : f32 to vector<8x1xf32>
    %1069 = arith.divf %1067, %1068 : vector<8x1xf32>
    %1070 = arith.mulf %1065, %1065 : vector<8x128xf32>
    %cst_239 = arith.constant dense<0.000000e+00> : vector<8xf32>
    %1071 = vector.multi_reduction <add>, %1070, %cst_239 [1] : vector<8x128xf32> to vector<8xf32>
    %1072 = vector.shape_cast %1071 : vector<8xf32> to vector<8x1xf32>
    %cst_240 = arith.constant 1.280000e+02 : f32
    %1073 = vector.broadcast %cst_240 : f32 to vector<8x1xf32>
    %1074 = arith.divf %1072, %1073 : vector<8x1xf32>
    %1075 = arith.mulf %1069, %1069 : vector<8x1xf32>
    %1076 = arith.subf %1074, %1075 : vector<8x1xf32>
    %1077 = vector.broadcast %1069 : vector<8x1xf32> to vector<8x128xf32>
    %1078 = arith.subf %1065, %1077 : vector<8x128xf32>
    %cst_241 = arith.constant 9.99999974E-6 : f32
    %1079 = vector.broadcast %cst_241 : f32 to vector<8x1xf32>
    %1080 = arith.addf %1076, %1079 : vector<8x1xf32>
    %1081 = math.rsqrt %1080 : vector<8x1xf32>
    %1082 = vector.broadcast %1081 : vector<8x1xf32> to vector<8x128xf32>
    %1083 = arith.mulf %1078, %1082 : vector<8x128xf32>
    %1084 = vector.broadcast %14 : vector<1x128xf32> to vector<8x128xf32>
    %1085 = arith.mulf %1083, %1084 : vector<8x128xf32>
    %1086 = vector.broadcast %15 : vector<1x128xf32> to vector<8x128xf32>
    %1087 = arith.addf %1085, %1086 : vector<8x128xf32>
    %1088 = vector.broadcast %13 : vector<1x128xf32> to vector<8x128xf32>
    %1089 = arith.addf %1087, %1088 : vector<8x128xf32>
    %cst_242 = arith.constant dense<0.000000e+00> : vector<8x128xf32>
    %1090 = tpu.matmul %996, %21, %cst_242 {dimension_numbers = #tpu.dot_dimension_numbers<[1], [0], [0], [1], [0, 0, 1, 1], [], []>} : vector<8x32xf32>, vector<32x128xf32>, vector<8x128xf32> -> vector<8x128xf32>
    %1091 = arith.addf %1089, %1090 : vector<8x128xf32>
    %1092 = arith.negf %1091 : vector<8x128xf32>
    %1093 = math.exp %1092 : vector<8x128xf32>
    %cst_243 = arith.constant 1.000000e+00 : f32
    %1094 = vector.broadcast %cst_243 : f32 to vector<8x128xf32>
    %1095 = arith.addf %1094, %1093 : vector<8x128xf32>
    %1096 = arith.divf %1094, %1095 : vector<8x128xf32>
    %1097 = vector.extract_strided_slice %1096 {offsets = [0, 0], sizes = [8, 32], strides = [1, 1]} : vector<8x128xf32> to vector<8x32xf32>
    %1098 = vector.extract_strided_slice %1096 {offsets = [0, 32], sizes = [8, 32], strides = [1, 1]} : vector<8x128xf32> to vector<8x32xf32>
    %1099 = vector.extract_strided_slice %1096 {offsets = [0, 64], sizes = [8, 32], strides = [1, 1]} : vector<8x128xf32> to vector<8x32xf32>
    %cst_244 = arith.constant 2.000000e+00 : f32
    %1100 = vector.broadcast %cst_244 : f32 to vector<8x32xf32>
    %1101 = arith.mulf %1100, %1099 : vector<8x32xf32>
    %cst_245 = arith.constant 1.000000e+00 : f32
    %1102 = vector.broadcast %cst_245 : f32 to vector<8x32xf32>
    %1103 = arith.subf %1101, %1102 : vector<8x32xf32>
    %1104 = vector.extract_strided_slice %1096 {offsets = [0, 96], sizes = [8, 32], strides = [1, 1]} : vector<8x128xf32> to vector<8x32xf32>
    %1105 = arith.mulf %1098, %972 : vector<8x32xf32>
    %1106 = arith.mulf %1097, %1103 : vector<8x32xf32>
    %1107 = arith.addf %1105, %1106 : vector<8x32xf32>
    %cst_246 = arith.constant dense<0.000000e+00> : vector<8xf32>
    %1108 = vector.multi_reduction <add>, %1107, %cst_246 [1] : vector<8x32xf32> to vector<8xf32>
    %1109 = vector.shape_cast %1108 : vector<8xf32> to vector<8x1xf32>
    %cst_247 = arith.constant 3.200000e+01 : f32
    %1110 = vector.broadcast %cst_247 : f32 to vector<8x1xf32>
    %1111 = arith.divf %1109, %1110 : vector<8x1xf32>
    %1112 = arith.mulf %1107, %1107 : vector<8x32xf32>
    %cst_248 = arith.constant dense<0.000000e+00> : vector<8xf32>
    %1113 = vector.multi_reduction <add>, %1112, %cst_248 [1] : vector<8x32xf32> to vector<8xf32>
    %1114 = vector.shape_cast %1113 : vector<8xf32> to vector<8x1xf32>
    %cst_249 = arith.constant 3.200000e+01 : f32
    %1115 = vector.broadcast %cst_249 : f32 to vector<8x1xf32>
    %1116 = arith.divf %1114, %1115 : vector<8x1xf32>
    %1117 = arith.mulf %1111, %1111 : vector<8x1xf32>
    %1118 = arith.subf %1116, %1117 : vector<8x1xf32>
    %1119 = vector.broadcast %1111 : vector<8x1xf32> to vector<8x32xf32>
    %1120 = arith.subf %1107, %1119 : vector<8x32xf32>
    %cst_250 = arith.constant 9.99999974E-6 : f32
    %1121 = vector.broadcast %cst_250 : f32 to vector<8x1xf32>
    %1122 = arith.addf %1118, %1121 : vector<8x1xf32>
    %1123 = math.rsqrt %1122 : vector<8x1xf32>
    %1124 = vector.broadcast %1123 : vector<8x1xf32> to vector<8x32xf32>
    %1125 = arith.mulf %1120, %1124 : vector<8x32xf32>
    %1126 = vector.broadcast %16 : vector<1x32xf32> to vector<8x32xf32>
    %1127 = arith.mulf %1125, %1126 : vector<8x32xf32>
    %1128 = vector.broadcast %17 : vector<1x32xf32> to vector<8x32xf32>
    %1129 = arith.addf %1127, %1128 : vector<8x32xf32>
    %1130 = math.tanh %1129 : vector<8x32xf32>
    %1131 = arith.mulf %1104, %1130 : vector<8x32xf32>
    %cst_251 = arith.constant dense<0.000000e+00> : vector<8xf32>
    %1132 = vector.multi_reduction <add>, %1131, %cst_251 [1] : vector<8x32xf32> to vector<8xf32>
    %1133 = vector.shape_cast %1132 : vector<8xf32> to vector<8x1xf32>
    %cst_252 = arith.constant 3.200000e+01 : f32
    %1134 = vector.broadcast %cst_252 : f32 to vector<8x1xf32>
    %1135 = arith.divf %1133, %1134 : vector<8x1xf32>
    %1136 = arith.mulf %1131, %1131 : vector<8x32xf32>
    %cst_253 = arith.constant dense<0.000000e+00> : vector<8xf32>
    %1137 = vector.multi_reduction <add>, %1136, %cst_253 [1] : vector<8x32xf32> to vector<8xf32>
    %1138 = vector.shape_cast %1137 : vector<8xf32> to vector<8x1xf32>
    %cst_254 = arith.constant 3.200000e+01 : f32
    %1139 = vector.broadcast %cst_254 : f32 to vector<8x1xf32>
    %1140 = arith.divf %1138, %1139 : vector<8x1xf32>
    %1141 = arith.mulf %1135, %1135 : vector<8x1xf32>
    %1142 = arith.subf %1140, %1141 : vector<8x1xf32>
    %1143 = vector.broadcast %1135 : vector<8x1xf32> to vector<8x32xf32>
    %1144 = arith.subf %1131, %1143 : vector<8x32xf32>
    %cst_255 = arith.constant 9.99999974E-6 : f32
    %1145 = vector.broadcast %cst_255 : f32 to vector<8x1xf32>
    %1146 = arith.addf %1142, %1145 : vector<8x1xf32>
    %1147 = math.rsqrt %1146 : vector<8x1xf32>
    %1148 = vector.broadcast %1147 : vector<8x1xf32> to vector<8x32xf32>
    %1149 = arith.mulf %1144, %1148 : vector<8x32xf32>
    %1150 = vector.broadcast %18 : vector<1x32xf32> to vector<8x32xf32>
    %1151 = arith.mulf %1149, %1150 : vector<8x32xf32>
    %1152 = vector.broadcast %19 : vector<1x32xf32> to vector<8x32xf32>
    %1153 = arith.addf %1151, %1152 : vector<8x32xf32>
    %1154 = vector.extract_strided_slice %50 {offsets = [0, 7, 0], sizes = [8, 1, 128], strides = [1, 1, 1]} : vector<8x8x128xf32> to vector<8x1x128xf32>
    %1155 = vector.shape_cast %1154 : vector<8x1x128xf32> to vector<8x128xf32>
    %cst_256 = arith.constant dense<0.000000e+00> : vector<8x128xf32>
    %1156 = tpu.matmul %1062, %10, %cst_256 {dimension_numbers = #tpu.dot_dimension_numbers<[1], [0], [0], [1], [0, 0, 1, 1], [], []>} : vector<8x32xf32>, vector<32x128xf32>, vector<8x128xf32> -> vector<8x128xf32>
    %1157 = arith.addf %1155, %1156 : vector<8x128xf32>
    %1158 = arith.negf %1157 : vector<8x128xf32>
    %1159 = math.exp %1158 : vector<8x128xf32>
    %cst_257 = arith.constant 1.000000e+00 : f32
    %1160 = vector.broadcast %cst_257 : f32 to vector<8x128xf32>
    %1161 = arith.addf %1160, %1159 : vector<8x128xf32>
    %1162 = arith.divf %1160, %1161 : vector<8x128xf32>
    %1163 = vector.extract_strided_slice %1162 {offsets = [0, 0], sizes = [8, 32], strides = [1, 1]} : vector<8x128xf32> to vector<8x32xf32>
    %1164 = vector.extract_strided_slice %1162 {offsets = [0, 32], sizes = [8, 32], strides = [1, 1]} : vector<8x128xf32> to vector<8x32xf32>
    %1165 = vector.extract_strided_slice %1162 {offsets = [0, 64], sizes = [8, 32], strides = [1, 1]} : vector<8x128xf32> to vector<8x32xf32>
    %cst_258 = arith.constant 2.000000e+00 : f32
    %1166 = vector.broadcast %cst_258 : f32 to vector<8x32xf32>
    %1167 = arith.mulf %1166, %1165 : vector<8x32xf32>
    %cst_259 = arith.constant 1.000000e+00 : f32
    %1168 = vector.broadcast %cst_259 : f32 to vector<8x32xf32>
    %1169 = arith.subf %1167, %1168 : vector<8x32xf32>
    %1170 = vector.extract_strided_slice %1162 {offsets = [0, 96], sizes = [8, 32], strides = [1, 1]} : vector<8x128xf32> to vector<8x32xf32>
    %1171 = arith.mulf %1164, %1038 : vector<8x32xf32>
    %1172 = arith.mulf %1163, %1169 : vector<8x32xf32>
    %1173 = arith.addf %1171, %1172 : vector<8x32xf32>
    %cst_260 = arith.constant dense<0.000000e+00> : vector<8xf32>
    %1174 = vector.multi_reduction <add>, %1173, %cst_260 [1] : vector<8x32xf32> to vector<8xf32>
    %1175 = vector.shape_cast %1174 : vector<8xf32> to vector<8x1xf32>
    %cst_261 = arith.constant 3.200000e+01 : f32
    %1176 = vector.broadcast %cst_261 : f32 to vector<8x1xf32>
    %1177 = arith.divf %1175, %1176 : vector<8x1xf32>
    %1178 = arith.mulf %1173, %1173 : vector<8x32xf32>
    %cst_262 = arith.constant dense<0.000000e+00> : vector<8xf32>
    %1179 = vector.multi_reduction <add>, %1178, %cst_262 [1] : vector<8x32xf32> to vector<8xf32>
    %1180 = vector.shape_cast %1179 : vector<8xf32> to vector<8x1xf32>
    %cst_263 = arith.constant 3.200000e+01 : f32
    %1181 = vector.broadcast %cst_263 : f32 to vector<8x1xf32>
    %1182 = arith.divf %1180, %1181 : vector<8x1xf32>
    %1183 = arith.mulf %1177, %1177 : vector<8x1xf32>
    %1184 = arith.subf %1182, %1183 : vector<8x1xf32>
    %1185 = vector.broadcast %1177 : vector<8x1xf32> to vector<8x32xf32>
    %1186 = arith.subf %1173, %1185 : vector<8x32xf32>
    %cst_264 = arith.constant 9.99999974E-6 : f32
    %1187 = vector.broadcast %cst_264 : f32 to vector<8x1xf32>
    %1188 = arith.addf %1184, %1187 : vector<8x1xf32>
    %1189 = math.rsqrt %1188 : vector<8x1xf32>
    %1190 = vector.broadcast %1189 : vector<8x1xf32> to vector<8x32xf32>
    %1191 = arith.mulf %1186, %1190 : vector<8x32xf32>
    %1192 = vector.broadcast %5 : vector<1x32xf32> to vector<8x32xf32>
    %1193 = arith.mulf %1191, %1192 : vector<8x32xf32>
    %1194 = vector.broadcast %6 : vector<1x32xf32> to vector<8x32xf32>
    %1195 = arith.addf %1193, %1194 : vector<8x32xf32>
    %1196 = math.tanh %1195 : vector<8x32xf32>
    %1197 = arith.mulf %1170, %1196 : vector<8x32xf32>
    %cst_265 = arith.constant dense<0.000000e+00> : vector<8xf32>
    %1198 = vector.multi_reduction <add>, %1197, %cst_265 [1] : vector<8x32xf32> to vector<8xf32>
    %1199 = vector.shape_cast %1198 : vector<8xf32> to vector<8x1xf32>
    %cst_266 = arith.constant 3.200000e+01 : f32
    %1200 = vector.broadcast %cst_266 : f32 to vector<8x1xf32>
    %1201 = arith.divf %1199, %1200 : vector<8x1xf32>
    %1202 = arith.mulf %1197, %1197 : vector<8x32xf32>
    %cst_267 = arith.constant dense<0.000000e+00> : vector<8xf32>
    %1203 = vector.multi_reduction <add>, %1202, %cst_267 [1] : vector<8x32xf32> to vector<8xf32>
    %1204 = vector.shape_cast %1203 : vector<8xf32> to vector<8x1xf32>
    %cst_268 = arith.constant 3.200000e+01 : f32
    %1205 = vector.broadcast %cst_268 : f32 to vector<8x1xf32>
    %1206 = arith.divf %1204, %1205 : vector<8x1xf32>
    %1207 = arith.mulf %1201, %1201 : vector<8x1xf32>
    %1208 = arith.subf %1206, %1207 : vector<8x1xf32>
    %1209 = vector.broadcast %1201 : vector<8x1xf32> to vector<8x32xf32>
    %1210 = arith.subf %1197, %1209 : vector<8x32xf32>
    %cst_269 = arith.constant 9.99999974E-6 : f32
    %1211 = vector.broadcast %cst_269 : f32 to vector<8x1xf32>
    %1212 = arith.addf %1208, %1211 : vector<8x1xf32>
    %1213 = math.rsqrt %1212 : vector<8x1xf32>
    %1214 = vector.broadcast %1213 : vector<8x1xf32> to vector<8x32xf32>
    %1215 = arith.mulf %1210, %1214 : vector<8x32xf32>
    %1216 = vector.broadcast %7 : vector<1x32xf32> to vector<8x32xf32>
    %1217 = arith.mulf %1215, %1216 : vector<8x32xf32>
    %1218 = vector.broadcast %8 : vector<1x32xf32> to vector<8x32xf32>
    %1219 = arith.addf %1217, %1218 : vector<8x32xf32>
    %cst_270 = arith.constant dense<0.000000e+00> : vector<8x128xf32>
    %1220 = tpu.matmul %1219, %20, %cst_270 {dimension_numbers = #tpu.dot_dimension_numbers<[1], [0], [0], [1], [0, 0, 1, 1], [], []>} : vector<8x32xf32>, vector<32x128xf32>, vector<8x128xf32> -> vector<8x128xf32>
    %1221 = vector.broadcast %12 : vector<1x128xf32> to vector<8x128xf32>
    %1222 = arith.addf %1220, %1221 : vector<8x128xf32>
    %cst_271 = arith.constant dense<0.000000e+00> : vector<8xf32>
    %1223 = vector.multi_reduction <add>, %1222, %cst_271 [1] : vector<8x128xf32> to vector<8xf32>
    %1224 = vector.shape_cast %1223 : vector<8xf32> to vector<8x1xf32>
    %cst_272 = arith.constant 1.280000e+02 : f32
    %1225 = vector.broadcast %cst_272 : f32 to vector<8x1xf32>
    %1226 = arith.divf %1224, %1225 : vector<8x1xf32>
    %1227 = arith.mulf %1222, %1222 : vector<8x128xf32>
    %cst_273 = arith.constant dense<0.000000e+00> : vector<8xf32>
    %1228 = vector.multi_reduction <add>, %1227, %cst_273 [1] : vector<8x128xf32> to vector<8xf32>
    %1229 = vector.shape_cast %1228 : vector<8xf32> to vector<8x1xf32>
    %cst_274 = arith.constant 1.280000e+02 : f32
    %1230 = vector.broadcast %cst_274 : f32 to vector<8x1xf32>
    %1231 = arith.divf %1229, %1230 : vector<8x1xf32>
    %1232 = arith.mulf %1226, %1226 : vector<8x1xf32>
    %1233 = arith.subf %1231, %1232 : vector<8x1xf32>
    %1234 = vector.broadcast %1226 : vector<8x1xf32> to vector<8x128xf32>
    %1235 = arith.subf %1222, %1234 : vector<8x128xf32>
    %cst_275 = arith.constant 9.99999974E-6 : f32
    %1236 = vector.broadcast %cst_275 : f32 to vector<8x1xf32>
    %1237 = arith.addf %1233, %1236 : vector<8x1xf32>
    %1238 = math.rsqrt %1237 : vector<8x1xf32>
    %1239 = vector.broadcast %1238 : vector<8x1xf32> to vector<8x128xf32>
    %1240 = arith.mulf %1235, %1239 : vector<8x128xf32>
    %1241 = vector.broadcast %14 : vector<1x128xf32> to vector<8x128xf32>
    %1242 = arith.mulf %1240, %1241 : vector<8x128xf32>
    %1243 = vector.broadcast %15 : vector<1x128xf32> to vector<8x128xf32>
    %1244 = arith.addf %1242, %1243 : vector<8x128xf32>
    %1245 = vector.broadcast %13 : vector<1x128xf32> to vector<8x128xf32>
    %1246 = arith.addf %1244, %1245 : vector<8x128xf32>
    %cst_276 = arith.constant dense<0.000000e+00> : vector<8x128xf32>
    %1247 = tpu.matmul %1153, %21, %cst_276 {dimension_numbers = #tpu.dot_dimension_numbers<[1], [0], [0], [1], [0, 0, 1, 1], [], []>} : vector<8x32xf32>, vector<32x128xf32>, vector<8x128xf32> -> vector<8x128xf32>
    %1248 = arith.addf %1246, %1247 : vector<8x128xf32>
    %1249 = arith.negf %1248 : vector<8x128xf32>
    %1250 = math.exp %1249 : vector<8x128xf32>
    %cst_277 = arith.constant 1.000000e+00 : f32
    %1251 = vector.broadcast %cst_277 : f32 to vector<8x128xf32>
    %1252 = arith.addf %1251, %1250 : vector<8x128xf32>
    %1253 = arith.divf %1251, %1252 : vector<8x128xf32>
    %1254 = vector.extract_strided_slice %1253 {offsets = [0, 0], sizes = [8, 32], strides = [1, 1]} : vector<8x128xf32> to vector<8x32xf32>
    %1255 = vector.extract_strided_slice %1253 {offsets = [0, 32], sizes = [8, 32], strides = [1, 1]} : vector<8x128xf32> to vector<8x32xf32>
    %1256 = vector.extract_strided_slice %1253 {offsets = [0, 64], sizes = [8, 32], strides = [1, 1]} : vector<8x128xf32> to vector<8x32xf32>
    %cst_278 = arith.constant 2.000000e+00 : f32
    %1257 = vector.broadcast %cst_278 : f32 to vector<8x32xf32>
    %1258 = arith.mulf %1257, %1256 : vector<8x32xf32>
    %cst_279 = arith.constant 1.000000e+00 : f32
    %1259 = vector.broadcast %cst_279 : f32 to vector<8x32xf32>
    %1260 = arith.subf %1258, %1259 : vector<8x32xf32>
    %1261 = vector.extract_strided_slice %1253 {offsets = [0, 96], sizes = [8, 32], strides = [1, 1]} : vector<8x128xf32> to vector<8x32xf32>
    %1262 = arith.mulf %1255, %1129 : vector<8x32xf32>
    %1263 = arith.mulf %1254, %1260 : vector<8x32xf32>
    %1264 = arith.addf %1262, %1263 : vector<8x32xf32>
    %cst_280 = arith.constant dense<0.000000e+00> : vector<8xf32>
    %1265 = vector.multi_reduction <add>, %1264, %cst_280 [1] : vector<8x32xf32> to vector<8xf32>
    %1266 = vector.shape_cast %1265 : vector<8xf32> to vector<8x1xf32>
    %cst_281 = arith.constant 3.200000e+01 : f32
    %1267 = vector.broadcast %cst_281 : f32 to vector<8x1xf32>
    %1268 = arith.divf %1266, %1267 : vector<8x1xf32>
    %1269 = arith.mulf %1264, %1264 : vector<8x32xf32>
    %cst_282 = arith.constant dense<0.000000e+00> : vector<8xf32>
    %1270 = vector.multi_reduction <add>, %1269, %cst_282 [1] : vector<8x32xf32> to vector<8xf32>
    %1271 = vector.shape_cast %1270 : vector<8xf32> to vector<8x1xf32>
    %cst_283 = arith.constant 3.200000e+01 : f32
    %1272 = vector.broadcast %cst_283 : f32 to vector<8x1xf32>
    %1273 = arith.divf %1271, %1272 : vector<8x1xf32>
    %1274 = arith.mulf %1268, %1268 : vector<8x1xf32>
    %1275 = arith.subf %1273, %1274 : vector<8x1xf32>
    %1276 = vector.broadcast %1268 : vector<8x1xf32> to vector<8x32xf32>
    %1277 = arith.subf %1264, %1276 : vector<8x32xf32>
    %cst_284 = arith.constant 9.99999974E-6 : f32
    %1278 = vector.broadcast %cst_284 : f32 to vector<8x1xf32>
    %1279 = arith.addf %1275, %1278 : vector<8x1xf32>
    %1280 = math.rsqrt %1279 : vector<8x1xf32>
    %1281 = vector.broadcast %1280 : vector<8x1xf32> to vector<8x32xf32>
    %1282 = arith.mulf %1277, %1281 : vector<8x32xf32>
    %1283 = vector.broadcast %16 : vector<1x32xf32> to vector<8x32xf32>
    %1284 = arith.mulf %1282, %1283 : vector<8x32xf32>
    %1285 = vector.broadcast %17 : vector<1x32xf32> to vector<8x32xf32>
    %1286 = arith.addf %1284, %1285 : vector<8x32xf32>
    %1287 = math.tanh %1286 : vector<8x32xf32>
    %1288 = arith.mulf %1261, %1287 : vector<8x32xf32>
    %cst_285 = arith.constant dense<0.000000e+00> : vector<8xf32>
    %1289 = vector.multi_reduction <add>, %1288, %cst_285 [1] : vector<8x32xf32> to vector<8xf32>
    %1290 = vector.shape_cast %1289 : vector<8xf32> to vector<8x1xf32>
    %cst_286 = arith.constant 3.200000e+01 : f32
    %1291 = vector.broadcast %cst_286 : f32 to vector<8x1xf32>
    %1292 = arith.divf %1290, %1291 : vector<8x1xf32>
    %1293 = arith.mulf %1288, %1288 : vector<8x32xf32>
    %cst_287 = arith.constant dense<0.000000e+00> : vector<8xf32>
    %1294 = vector.multi_reduction <add>, %1293, %cst_287 [1] : vector<8x32xf32> to vector<8xf32>
    %1295 = vector.shape_cast %1294 : vector<8xf32> to vector<8x1xf32>
    %cst_288 = arith.constant 3.200000e+01 : f32
    %1296 = vector.broadcast %cst_288 : f32 to vector<8x1xf32>
    %1297 = arith.divf %1295, %1296 : vector<8x1xf32>
    %1298 = arith.mulf %1292, %1292 : vector<8x1xf32>
    %1299 = arith.subf %1297, %1298 : vector<8x1xf32>
    %1300 = vector.broadcast %1292 : vector<8x1xf32> to vector<8x32xf32>
    %1301 = arith.subf %1288, %1300 : vector<8x32xf32>
    %cst_289 = arith.constant 9.99999974E-6 : f32
    %1302 = vector.broadcast %cst_289 : f32 to vector<8x1xf32>
    %1303 = arith.addf %1299, %1302 : vector<8x1xf32>
    %1304 = math.rsqrt %1303 : vector<8x1xf32>
    %1305 = vector.broadcast %1304 : vector<8x1xf32> to vector<8x32xf32>
    %1306 = arith.mulf %1301, %1305 : vector<8x32xf32>
    %1307 = vector.broadcast %18 : vector<1x32xf32> to vector<8x32xf32>
    %1308 = arith.mulf %1306, %1307 : vector<8x32xf32>
    %1309 = vector.broadcast %19 : vector<1x32xf32> to vector<8x32xf32>
    %1310 = arith.addf %1308, %1309 : vector<8x32xf32>
    %c112 = arith.constant 112 : index
    %c0_290 = arith.constant 0 : index
    %1311 = vector.load %arg1[%c112, %c0_290] : memref<144x128xf32, #tpu.memory_space<vmem>>, vector<32x128xf32>
    %c16_291 = arith.constant 16 : index
    %c0_292 = arith.constant 0 : index
    %1312 = vector.load %arg2[%c16_291, %c0_292] : memref<24x128xf32, #tpu.memory_space<vmem>>, vector<1x128xf32>
    %cst_293 = arith.constant dense<0.000000e+00> : vector<8x128xf32>
    %1313 = tpu.matmul %1310, %1311, %cst_293 {dimension_numbers = #tpu.dot_dimension_numbers<[1], [0], [0], [1], [0, 0, 1, 1], [], []>} : vector<8x32xf32>, vector<32x128xf32>, vector<8x128xf32> -> vector<8x128xf32>
    %1314 = vector.broadcast %1312 : vector<1x128xf32> to vector<8x128xf32>
    %1315 = arith.addf %1313, %1314 : vector<8x128xf32>
    %1316 = vector.extract_strided_slice %1315 {offsets = [0, 0], sizes = [8, 8], strides = [1, 1]} : vector<8x128xf32> to vector<8x8xf32>
    %c0_294 = arith.constant 0 : index
    %c0_295 = arith.constant 0 : index
    %1317 = vector.load %arg3[%c0_294, %c0_295] : memref<8x8xf32, #tpu.memory_space<vmem>>, vector<8x8xf32>
    tpu.vector_store %arg3[%c0_294, %c0_295], %1316 {strides = array<i32>} : memref<8x8xf32, #tpu.memory_space<vmem>>, vector<8x8xf32>,
    return
  }
}

</mosaic_0001>

<bundles_post_ra>
// kernel: lstm_network_forward.1
= control target key start
LH: loop header
LB: loop body
LE: loop exit
PB: predicated region body
PF: predicated region fallthrough
CT: control target
= control target key end

     0   :  { %8 = vsyncpa [#allocation3], 0  ;;  %s12279_s0 = inlined_call_operand.hbm [shape: f32[64,16], index: 0, kind: input, shape index: {}]   ;;  %s12280_s1 = inlined_call_operand.hbm [shape: f32[144,128], index: 1, kind: input, shape index: {}]   ;;  %s12281_s2 = inlined_call_operand.hbm [shape: f32[24,128], index: 2, kind: input, shape index: {}]   ;;  %s12282_s3 = inlined_call_operand.hbm [shape: f32[8,8], index: 3, kind: output, shape index: {}]  }
   0x1   :  { %9 = vsyncpa [#allocation6], 0 }
   0x2   :  { %10 = vsyncpa [#allocation4], 0  ;;  %s28_s14 = sshll.u32 %s12280_s1, 4  ;;  %s8638_s15 = smov [#allocation5]   ;;  %s29_s14 = int_to_ptr.hbm [resolvable:$true] %s28_s14 }
   0x3   :  { %s30_s16 = sshll.u32 %s8638_s15, 4  ;;  %s15_s19 = sshll.u32 %s12279_s0, 4  ;;  %s31_s16 = int_to_ptr.vmem [resolvable:$true] %s30_s16  ;;  %s16_s19 = int_to_ptr.hbm [resolvable:$true] %s15_s19 }
   0x4   :  { %s8639_s20 = smov 128   ;;  %s8640_s21 = smov 8  }
   0x5   :  { %36 = dma.hbm_to_vmem [thread:$0]  %s29_s14, 2304, %s31_s16, [#allocation6], %s8639_s20, %s8639_s20, %s8640_s21  }
   0x6   :  { %s8641_s22 = smov [#allocation2]   ;;  %s41_s26 = sshll.u32 %s12281_s2, 4  ;;  %s42_s26 = int_to_ptr.hbm [resolvable:$true] %s41_s26 }
   0x7   :  { %s17_s23 = sshll.u32 %s8641_s22, 4  ;;  %s8642_s1 = smov [#allocation7]   ;;  %s18_s23 = int_to_ptr.vmem [resolvable:$true] %s17_s23 }
   0x8   :  { %23 = dma.hbm_to_vmem [thread:$0]  %s16_s19, 1024, %s18_s23, [#allocation3], %s8639_s20, %s8639_s20, %s8640_s21  }
   0x9   :  { %s43_s27 = sshll.u32 %s8642_s1, 4  ;;  %s44_s27 = int_to_ptr.vmem [resolvable:$true] %s43_s27 }
   0xa   :  { %49 = dma.hbm_to_vmem [thread:$0]  %s42_s26, 384, %s44_s27, [#allocation6], %s8639_s20, %s8639_s20, %s8640_s21  }
   0xb   :  { %8632 = dma.done.wait [#allocation3], 1024  }
   0xc   :  { %8633 = vsyncadd [#allocation3], 4294966272 }
   0xd   :  { %8634 = dma.done.wait [#allocation6], 2688  }
   0xe   :  { %8635 = vsyncadd [#allocation6], 4294964608  ;;  %v64_v0 = vld [vmem:[#allocation5 + $0x8] sm:$0xff]  ;;  %v63_v1 = vld [vmem:[#allocation5] sm:$0xff]  ;;  %vm87_vm0 = vcmask 130048   ;;  %v8643_v15 = vmov 0.0  }
   0xf   :  { %126 = vmatpush.msra.mxu0 %v64_v0  ;;  %v78_v2 = vld [vmem:[#allocation2] sm:$0xff]  ;;  %v79_v3 = vld [vmem:[#allocation2 + $0x8] sm:$0xff]  ;;  %v80_v4 = vld [vmem:[#allocation2 + $0x10] sm:$0xff]  ;;  %v8644_v41 = vmov 128.0   ;;  %s8645_s0 = smov 64   ;;  %s8646_s2 = smov 32  }
  0x10   :  { %v81_v5 = vld [vmem:[#allocation2 + $0x18] sm:$0xff]  ;;  %v82_v6 = vld [vmem:[#allocation2 + $0x20] sm:$0xff]  ;;  %v83_v7 = vld [vmem:[#allocation2 + $0x28] sm:$0xff]  ;;  %7915 = vrcp.f32 %v8644_v41  ;;  %s8647_s28 = smov 96   ;;  %s8649_s29 = smov [#allocation8]  }
  0x11   :  { %127 = vmatpush.msra.mxu0 %v63_v1  ;;  %v84_v8 = vld [vmem:[#allocation2 + $0x30] sm:$0xff]  ;;  %v85_v9 = vld [vmem:[#allocation2 + $0x38] sm:$0xff]  ;;  %v68_v10 = vld [vmem:[#allocation5 + $0x28] sm:$0xff]  ;;  %s7714_s30 = sshll.u32 %s8649_s29, 4  ;;  %s7716_s6 = sshll.u32 %s12282_s3, 4  ;;  %s7715_s30 = int_to_ptr.vmem [resolvable:$true] %s7714_s30  ;;  %s7717_s6 = int_to_ptr.hbm [resolvable:$true] %s7716_s6 }
  0x12   :  { %7727 = vmatmul.msk.f32.vlgmr.msra.gmra.mxu0 %vm87_vm0, %v78_v2  ;;  %v67_v11 = vld [vmem:[#allocation5 + $0x20] sm:$0xff]  ;;  %379 = vmatpush.msra.mxu1 %v68_v10  ;;  %v66_v12 = vld [vmem:[#allocation5 + $0x18] sm:$0xff]  ;;  %v65_v13 = vld [vmem:[#allocation5 + $0x10] sm:$0xff] }
  0x13   :  { %v8687_v14 = vld [vmem:[#allocation7] sm:$0xff] }
  0x14   :  { %380 = vmatpush.msra.mxu1 %v67_v11  ;;  %v86_v16 = vperm.slane %v8687_v14, 0 }
  0x16   :  { %381 = vmatpush.msra.mxu1 %v66_v12  ;;  %v7916_v42 = vpop.eup %7915 }
  0x17   :  { %v170_v43 = vmul.f32 128.0, %v7916_v42  ;;  %vm174_vm1 = vweird.f32 %v7916_v42 }
  0x18   :  { %382 = vmatpush.msra.mxu1 %v65_v13 }
  0x19   :  { %383 = vmatmul.f32.vlgmr.msra.gmra.mxu1 %v8643_v15  ;;  %v171_v44 = vsub.f32 1.0, %v170_v43 }
  0x1a   :  { %7728 = vmatmul.msk.f32.gmra.mxu0 %vm87_vm0, %v79_v3  ;;  %1269 = vmatpush.msrb.mxu1 %v68_v10 }
  0x1b   :  { %v172_v45 = vmul.f32 %v7916_v42, %v171_v44 }
  0x1c   :  { %1270 = vmatpush.msrb.mxu1 %v67_v11 }
  0x1d   :  { %v173_v46 = vadd.f32 %v7916_v42, %v172_v45 }
  0x1e   :  { %1271 = vmatpush.msrb.mxu1 %v66_v12 }
  0x1f   :  { %v8731_v47 = vsel %vm174_vm1, %v7916_v42, %v173_v46 }
  0x20   :  { %1272 = vmatpush.msrb.mxu1 %v65_v13 }
  0x22   :  { %7729 = vmatmul.msk.f32.gmra.mxu0 %vm87_vm0, %v80_v4  ;;  %2186 = vmatpush.msra.mxu1 %v68_v10  ;;  %v8742_v10 = vperm.slane %v8687_v14, 2 }
  0x24   :  { %2187 = vmatpush.msra.mxu1 %v67_v11 }
  0x26   :  { %2188 = vmatpush.msra.mxu1 %v66_v12 }
  0x28   :  { %2189 = vmatpush.msra.mxu1 %v65_v13 }
  0x2a   :  { %7730 = vmatmul.msk.f32.gmra.mxu0 %vm87_vm0, %v81_v5 }
  0x32   :  { %7731 = vmatmul.msk.f32.gmra.mxu0 %vm87_vm0, %v82_v6 }
  0x3a   :  { %7732 = vmatmul.msk.f32.gmra.mxu0 %vm87_vm0, %v83_v7 }
  0x42   :  { %7733 = vmatmul.msk.f32.gmra.mxu0 %vm87_vm0, %v84_v8 }
  0x4a   :  { %7734 = vmatmul.msk.f32.gmra.mxu0 %vm87_vm0, %v85_v9 }
  0x8f   :  { %v129_v17 = vpop.f32.mrf.mxu0 }
  0x90   :  { %v8691_v18 = vadd.f32 %v129_v17, %v86_v16 }
  0x92   :  { %153 = vadd.xlane.f32.xlu1 %v8691_v18  ;;  %v184_v19 = vmul.f32 %v8691_v18, %v8691_v18 }
  0x94   :  { %192 = vadd.xlane.f32.xlu2 %v184_v19  ;;  %v8748_v19 = vperm.slane %v8687_v14, 3 }
  0x96   :  { %v8765_v41 = vpop.f32.mrf.mxu1 }
  0x97   :  { %v132_v20 = vpop.f32.mrf.mxu0 }
  0x98   :  { %v8696_v21 = vadd.f32 %v132_v20, %v86_v16 }
  0x9a   :  { %155 = vadd.xlane.f32.xlu0 %v8696_v21  ;;  %v185_v22 = vmul.f32 %v8696_v21, %v8696_v21 }
  0x9c   :  { %194 = vadd.xlane.f32.xlu2 %v185_v22 }
  0x9f   :  { %v135_v23 = vpop.f32.mrf.mxu0 }
  0xa0   :  { %v8701_v24 = vadd.f32 %v135_v23, %v86_v16 }
  0xa2   :  { %157 = vadd.xlane.f32.xlu0 %v8701_v24  ;;  %v186_v27 = vmul.f32 %v8701_v24, %v8701_v24 }
  0xa7   :  { %v138_v25 = vpop.f32.mrf.mxu0 }
  0xa8   :  { %v8704_v26 = vadd.f32 %v138_v25, %v86_v16 }
  0xaa   :  { %196 = vadd.xlane.f32.xlu0 %v186_v27  ;;  %159 = vadd.xlane.f32.xlu1 %v8704_v26  ;;  %v187_v30 = vmul.f32 %v8704_v26, %v8704_v26 }
  0xaf   :  { %v141_v28 = vpop.f32.mrf.mxu0 }
  0xb0   :  { %v8709_v29 = vadd.f32 %v141_v28, %v86_v16 }
  0xb2   :  { %198 = vadd.xlane.f32.xlu0 %v187_v30  ;;  %161 = vadd.xlane.f32.xlu2 %v8709_v29  ;;  %v188_v33 = vmul.f32 %v8709_v29, %v8709_v29 }
  0xb7   :  { %v144_v31 = vpop.f32.mrf.mxu0 }
  0xb8   :  { %v8714_v32 = vadd.f32 %v144_v31, %v86_v16 }
  0xba   :  { %163 = vadd.xlane.f32.xlu1 %v8714_v32  ;;  %200 = vadd.xlane.f32.xlu2 %v188_v33  ;;  %v189_v39 = vmul.f32 %v8714_v32, %v8714_v32 }
  0xbf   :  { %v147_v34 = vpop.f32.mrf.mxu0 }
  0xc0   :  { %v8719_v35 = vadd.f32 %v147_v34, %v86_v16 }
  0xc2   :  { %165 = vadd.xlane.f32.xlu1 %v8719_v35  ;;  %v190_v36 = vmul.f32 %v8719_v35, %v8719_v35 }
  0xc4   :  { %204 = vadd.xlane.f32.xlu2 %v190_v36 }
  0xc7   :  { %v150_v37 = vpop.f32.mrf.mxu0 }
  0xc8   :  { %v8724_v38 = vadd.f32 %v150_v37, %v86_v16 }
  0xca   :  { %167 = vadd.xlane.f32.xlu0 %v8724_v38  ;;  %202 = vadd.xlane.f32.xlu1 %v189_v39  ;;  %v191_v40 = vmul.f32 %v8724_v38, %v8724_v38 }
  0xd2   :  { %206 = vadd.xlane.f32.xlu0 %v191_v40 }
 0x105   :  { %v154_v48 = vpop.xlane.xlu1 %153 }
 0x106   :  { %v176_v49 = vmul.f32 %v8731_v47, %v154_v48 }
 0x107   :  { %v193_v50 = vpop.xlane.xlu2 %192 }
 0x108   :  { %v216_v51 = vmul.f32 %v176_v49, %v176_v49  ;;  %v208_v52 = vmul.f32 %v193_v50, %v8731_v47  ;;  %v232_v9 = vsub.f32 %v8691_v18, %v176_v49  ;;  %v8751_v18 = vperm.slane %v8687_v14, 1 }
 0x10a   :  { %v224_v53 = vsub.f32 %v208_v52, %v216_v51 }
 0x10c   :  { %v240_v54 = vadd.f32 1e-05, %v224_v53  ;;  %v388_v53 = vrot.slane %v8765_v41, 1 }
 0x10d   :  { %v156_v55 = vpop.xlane.xlu0 %155 }
 0x10e   :  { %7917 = vrsqrt.f32 %v240_v54  ;;  %v177_v56 = vmul.f32 %v8731_v47, %v156_v55  ;;  %vm254_vm3 = vweird.f32 %v240_v54 }
 0x10f   :  { %v195_v57 = vpop.xlane.xlu2 %194 }
 0x110   :  { %v217_v58 = vmul.f32 %v177_v56, %v177_v56  ;;  %v209_v59 = vmul.f32 %v195_v57, %v8731_v47  ;;  %v233_v14 = vsub.f32 %v8696_v21, %v177_v56 }
 0x112   :  { %v225_v60 = vsub.f32 %v209_v59, %v217_v58 }
 0x114   :  { %v7918_v61 = vpop.eup %7917  ;;  %v241_v62 = vadd.f32 1e-05, %v225_v60 }
 0x115   :  { %v249_v63 = vmul.f32 %v7918_v61, %v240_v54  ;;  %v158_v0 = vpop.xlane.xlu0 %157  ;;  %vm255_vm2 = vweird.f32 %v7918_v61 }
 0x116   :  { %7919 = vrsqrt.f32 %v241_v62  ;;  %v8738_v3 = vmul.f32 %v8731_v47, %v158_v0  ;;  %vm256_vm4 = vmor %vm254_vm3, %vm255_vm2  ;;  %vm264_vm6 = vweird.f32 %v241_v62 }
 0x117   :  { %v250_v1 = vmul.f32 %v7918_v61, %v249_v63 }
 0x118   :  { %v218_v11 = vmul.f32 %v8738_v3, %v8738_v3 }
 0x119   :  { %v251_v2 = vmul.f32 0.5, %v250_v1 }
 0x11b   :  { %v252_v4 = vsub.f32 1.5, %v251_v2 }
 0x11c   :  { %v7920_v5 = vpop.eup %7919 }
 0x11d   :  { %v253_v6 = vmul.f32 %v7918_v61, %v252_v4  ;;  %v259_v7 = vmul.f32 %v7920_v5, %v241_v62  ;;  %v197_v8 = vpop.xlane.xlu0 %196  ;;  %v160_v17 = vpop.xlane.xlu1 %159  ;;  %vm265_vm5 = vweird.f32 %v7920_v5 }
 0x11e   :  { %v210_v12 = vmul.f32 %v197_v8, %v8731_v47  ;;  %v8755_v28 = vmul.f32 %v8731_v47, %v160_v17  ;;  %vm266_vm7 = vmor %vm264_vm6, %vm265_vm5 }
 0x11f   :  { %v257_v13 = vsel %vm256_vm4, %v7918_v61, %v253_v6  ;;  %v260_v16 = vmul.f32 %v7920_v5, %v259_v7  ;;  %v234_v7 = vsub.f32 %v8701_v24, %v8738_v3 }
 0x120   :  { %v328_v20 = vmul.f32 %v257_v13, %v232_v9  ;;  %v226_v22 = vsub.f32 %v210_v12, %v218_v11  ;;  %v219_v39 = vmul.f32 %v8755_v28, %v8755_v28 }
 0x121   :  { %v261_v23 = vmul.f32 0.5, %v260_v16 }
 0x122   :  { %v337_v25 = vmul.f32 %v8742_v10, %v328_v20  ;;  %v242_v27 = vadd.f32 1e-05, %v226_v22 }
 0x123   :  { %v262_v30 = vsub.f32 1.5, %v261_v23 }
 0x124   :  { %v346_v31 = vadd.f32 %v8748_v19, %v337_v25  ;;  %7921 = vrsqrt.f32 %v242_v27  ;;  %vm274_vm9 = vweird.f32 %v242_v27  ;;  %v235_v25 = vsub.f32 %v8704_v26, %v8755_v28 }
 0x125   :  { %v263_v33 = vmul.f32 %v7920_v5, %v262_v30  ;;  %v199_v34 = vpop.xlane.xlu0 %198  ;;  %v162_v36 = vpop.xlane.xlu2 %161  ;;  %v389_v30 = vrot.slane %v8765_v41, 2 }
 0x126   :  { %v8759_v37 = vadd.f32 %v8751_v18, %v346_v31  ;;  %v211_v40 = vmul.f32 %v199_v34, %v8731_v47  ;;  %v8771_v21 = vmul.f32 %v8731_v47, %v162_v36  ;;  %v390_v34 = vrot.slane %v8765_v41, 3 }
 0x127   :  { %v267_v42 = vsel %vm266_vm7, %v7920_v5, %v263_v33  ;;  %v391_v36 = vrot.slane %v8765_v41, 4 }
 0x128   :  { %v329_v43 = vmul.f32 %v267_v42, %v233_v14  ;;  %v227_v44 = vsub.f32 %v211_v40, %v219_v39  ;;  %v403_v45 = vadd.f32 %v8765_v41, %v8759_v37  ;;  %v220_v58 = vmul.f32 %v8771_v21, %v8771_v21 }
 0x129   :  { %v236_v42 = vsub.f32 %v8709_v29, %v8771_v21 }
 0x12a   :  { %v7922_v46 = vpop.eup %7921  ;;  %v338_v48 = vmul.f32 %v8742_v10, %v329_v43  ;;  %v243_v49 = vadd.f32 1e-05, %v227_v44  ;;  %v7735_v51 = vmul.f32 -1.442695, %v403_v45 }
 0x12b   :  { %v269_v50 = vmul.f32 %v7922_v46, %v242_v27  ;;  %vm275_vm8 = vweird.f32 %v7922_v46 }
 0x12c   :  { %v347_v52 = vadd.f32 %v8748_v19, %v338_v48  ;;  %7923 = vrsqrt.f32 %v243_v49  ;;  %vm276_vm10 = vmor %vm274_vm9, %vm275_vm8  ;;  %vm284_vm12 = vweird.f32 %v243_v49 }
 0x12d   :  { %v270_v54 = vmul.f32 %v7922_v46, %v269_v50  ;;  %7925 = vpow2.f32 %v7735_v51  ;;  %v164_v55 = vpop.xlane.xlu1 %163  ;;  %v201_v56 = vpop.xlane.xlu2 %200 }
 0x12e   :  { %v8776_v57 = vadd.f32 %v8751_v18, %v347_v52  ;;  %v212_v59 = vmul.f32 %v201_v56, %v8731_v47  ;;  %v8795_v24 = vmul.f32 %v8731_v47, %v164_v55 }
 0x12f   :  { %v271_v60 = vmul.f32 0.5, %v270_v54 }
 0x130   :  { %v404_v61 = vadd.f32 %v388_v53, %v8776_v57  ;;  %v228_v62 = vsub.f32 %v212_v59, %v220_v58  ;;  %v221_v44 = vmul.f32 %v8795_v24, %v8795_v24 }
 0x131   :  { %v272_v63 = vsub.f32 1.5, %v271_v60 }
 0x132   :  { %v7924_v0 = vpop.eup %7923  ;;  %v7736_v1 = vmul.f32 -1.442695, %v404_v61  ;;  %v8782_v2 = vadd.f32 1e-05, %v228_v62 }
 0x133   :  { %v7926_v4 = vpop.eup %7925  ;;  %v273_v5 = vmul.f32 %v7922_v46, %v272_v63  ;;  %v279_v6 = vmul.f32 %v7924_v0, %v243_v49  ;;  %vm285_vm11 = vweird.f32 %v7924_v0 }
 0x134   :  { %7927 = vpow2.f32 %v7736_v1  ;;  %v8786_v8 = vadd.f32 1.0, %v7926_v4  ;;  %vm286_vm13 = vmor %vm284_vm12, %vm285_vm11  ;;  %vm294_vm14 = vweird.f32 %v8782_v2 }
 0x135   :  { %v277_v9 = vsel %vm276_vm10, %v7922_v46, %v273_v5  ;;  %v280_v11 = vmul.f32 %v7924_v0, %v279_v6  ;;  %7929 = vrsqrt.f32 %v8782_v2  ;;  %v166_v12 = vpop.xlane.xlu1 %165 }
 0x136   :  { %v330_v13 = vmul.f32 %v277_v9, %v234_v7  ;;  %7931 = vrcp.f32 %v8786_v8  ;;  %v8791_v16 = vmul.f32 %v8731_v47, %v166_v12  ;;  %v452_v55 = vand.u32 2147483647, %v8786_v8 }
 0x137   :  { %v281_v17 = vmul.f32 0.5, %v280_v11  ;;  %v205_v20 = vpop.xlane.xlu2 %204  ;;  %v454_v56 = vand.u32 2147483648, %v8786_v8  ;;  %vm448_vm15 = vweird.f32 %v8786_v8 }
 0x138   :  { %v339_v22 = vmul.f32 %v8742_v10, %v330_v13  ;;  %v222_v3 = vmul.f32 %v8791_v16, %v8791_v16  ;;  %v214_v23 = vmul.f32 %v205_v20, %v8731_v47  ;;  %vm8834_vm2 = vcmp.eq.f32.partialorder %v452_v55, 8.507059e+37 }
 0x139   :  { %v282_v27 = vsub.f32 1.5, %v281_v17  ;;  %v455_v9 = vor.u32 1.1754944e-38, %v454_v56 }
 0x13a   :  { %v7928_v31 = vpop.eup %7927  ;;  %v348_v33 = vadd.f32 %v8748_v19, %v339_v22  ;;  %v230_v14 = vsub.f32 %v214_v23, %v222_v3 }
 0x13b   :  { %v7930_v39 = vpop.eup %7929  ;;  %v283_v40 = vmul.f32 %v7924_v0, %v282_v27  ;;  %v8808_v43 = vadd.f32 1.0, %v7928_v31 }
 0x13c   :  { %v7932_v26 = vpop.eup %7931  ;;  %v8811_v28 = vadd.f32 %v8751_v18, %v348_v33  ;;  %v289_v45 = vmul.f32 %v7930_v39, %v8782_v2  ;;  %v8816_v46 = vadd.f32 1e-05, %v230_v14  ;;  %vm295_vm0 = vweird.f32 %v7930_v39 }
 0x13d   :  { %v287_v48 = vsel %vm286_vm13, %v7924_v0, %v283_v40  ;;  %v168_v49 = vpop.xlane.xlu0 %167  ;;  %v203_v50 = vpop.xlane.xlu1 %202  ;;  %v444_v29 = vmul.f32 %v7932_v26, %v8786_v8  ;;  %7933 = vrcp.f32 %v8808_v43  ;;  %vm449_vm1 = vweird.f32 %v7932_v26  ;;  %vm296_vm3 = vmor %vm294_vm14, %vm295_vm0 }
 0x13e   :  { %v331_v21 = vmul.f32 %v287_v48, %v235_v25  ;;  %v405_v51 = vadd.f32 %v389_v30, %v8811_v28  ;;  %v290_v52 = vmul.f32 %v7930_v39, %v289_v45  ;;  %7935 = vrsqrt.f32 %v8816_v46  ;;  %vm450_vm5 = vmor %vm448_vm15, %vm449_vm1 }
 0x13f   :  { %v213_v53 = vmul.f32 %v203_v50, %v8731_v47  ;;  %v445_v54 = vsub.f32 1.0, %v444_v29  ;;  %v8830_v1 = vmul.f32 %v8731_v47, %v168_v49  ;;  %vm314_vm4 = vweird.f32 %v8816_v46 }
 0x140   :  { %v340_v58 = vmul.f32 %v8742_v10, %v331_v21  ;;  %v7737_v59 = vmul.f32 -1.442695, %v405_v51  ;;  %v291_v60 = vmul.f32 0.5, %v290_v52  ;;  %vm463_vm6 = vweird.f32 %v8808_v43 }
 0x141   :  { %v229_v61 = vsub.f32 %v213_v53, %v221_v44  ;;  %v446_v62 = vmul.f32 %v7932_v26, %v445_v54  ;;  %v223_v17 = vmul.f32 %v8830_v1, %v8830_v1  ;;  %v467_v2 = vand.u32 2147483647, %v8808_v43 }
 0x142   :  { %v349_v63 = vadd.f32 %v8748_v19, %v340_v58  ;;  %7937 = vpow2.f32 %v7737_v59  ;;  %v292_v0 = vsub.f32 1.5, %v291_v60  ;;  %v469_v49 = vand.u32 2147483648, %v8808_v43 }
 0x143   :  { %v7934_v4 = vpop.eup %7933  ;;  %v8832_v5 = vadd.f32 1e-05, %v229_v61  ;;  %v447_v6 = vadd.f32 %v7932_v26, %v446_v62  ;;  %vm468_vm10 = vcmp.eq.f32.partialorder %v467_v2, 8.507059e+37  ;;  %v238_v60 = vsub.f32 %v8719_v35, %v8791_v16 }
 0x144   :  { %v7936_v11 = vpop.eup %7935  ;;  %v8839_v12 = vadd.f32 %v8751_v18, %v349_v63  ;;  %v293_v13 = vmul.f32 %v7930_v39, %v292_v0  ;;  %v459_v20 = vmul.f32 %v7934_v4, %v8808_v43  ;;  %vm464_vm7 = vweird.f32 %v7934_v4 }
 0x145   :  { %v309_v22 = vmul.f32 %v7936_v11, %v8816_v46  ;;  %7939 = vrsqrt.f32 %v8832_v5  ;;  %v207_v3 = vpop.xlane.xlu0 %206  ;;  %v451_v30 = vsel %vm450_vm5, %v7932_v26, %v447_v6  ;;  %vm315_vm8 = vweird.f32 %v7936_v11  ;;  %vm465_vm9 = vmor %vm463_vm6, %vm464_vm7 }
 0x146   :  { %v406_v23 = vadd.f32 %v390_v34, %v8839_v12  ;;  %v297_v25 = vsel %vm296_vm3, %v7930_v39, %v293_v13  ;;  %v215_v27 = vmul.f32 %v207_v3, %v8731_v47  ;;  %v8859_v14 = vsel %vm8834_vm2, %v455_v9, %v451_v30  ;;  %vm316_vm11 = vmor %vm314_vm4, %vm315_vm8 }
 0x147   :  { %v332_v31 = vmul.f32 %v297_v25, %v236_v42  ;;  %v310_v33 = vmul.f32 %v7936_v11, %v309_v22  ;;  %v460_v40 = vsub.f32 1.0, %v459_v20  ;;  %v563_v48 = vmul.f32 2.0, %v8859_v14 }
 0x148   :  { %v7938_v44 = vpop.eup %7937  ;;  %v7738_v8 = vmul.f32 -1.442695, %v406_v23  ;;  %v231_v45 = vsub.f32 %v215_v27, %v223_v17  ;;  %v470_v55 = vor.u32 1.1754944e-38, %v469_v49  ;;  %v393_v22 = vrot.slane %v8765_v41, 6 }
 0x149   :  { %v341_v34 = vmul.f32 %v8742_v10, %v332_v31  ;;  %v311_v39 = vmul.f32 0.5, %v310_v33  ;;  %v461_v50 = vmul.f32 %v7934_v4, %v460_v40  ;;  %v7743_v26 = vadd.f32 -1.0, %v563_v48 }
 0x14a   :  { %7941 = vpow2.f32 %v7738_v8  ;;  %v8864_v42 = vadd.f32 1e-05, %v231_v45  ;;  %v8866_v29 = vadd.f32 1.0, %v7938_v44  ;;  %vm304_vm13 = vweird.f32 %v8832_v5 }
 0x14b   :  { %v7940_v21 = vpop.eup %7939  ;;  %v350_v51 = vadd.f32 %v8748_v19, %v341_v34  ;;  %v312_v52 = vsub.f32 1.5, %v311_v39  ;;  %v462_v53 = vadd.f32 %v7934_v4, %v461_v50  ;;  %595 = vrot.lane.b32.xlu0 %v7743_v26, %s8645_s0  ;;  %v237_v25 = vsub.f32 %v8714_v32, %v8795_v24 }
 0x14c   :  { %v299_v54 = vmul.f32 %v7940_v21, %v8832_v5  ;;  %7943 = vrsqrt.f32 %v8864_v42  ;;  %vm305_vm12 = vweird.f32 %v7940_v21  ;;  %v482_v30 = vand.u32 2147483647, %v8866_v29 }
 0x14d   :  { %v8875_v56 = vadd.f32 %v8751_v18, %v350_v51  ;;  %v313_v58 = vmul.f32 %v7936_v11, %v312_v52  ;;  %v466_v59 = vsel %vm465_vm9, %v7934_v4, %v462_v53  ;;  %7945 = vrcp.f32 %v8866_v29  ;;  %vm306_vm14 = vmor %vm304_vm13, %vm305_vm12 }
 0x14e   :  { %v300_v61 = vmul.f32 %v7940_v21, %v299_v54  ;;  %v8882_v62 = vsel %vm468_vm10, %v470_v55, %v466_v59  ;;  %v484_v44 = vand.u32 2147483648, %v8866_v29  ;;  %v239_v5 = vsub.f32 %v8724_v38, %v8830_v1 }
 0x14f   :  { %v317_v43 = vsel %vm316_vm11, %v7936_v11, %v313_v58  ;;  %v564_v63 = vmul.f32 2.0, %v8882_v62  ;;  %v407_v0 = vadd.f32 %v391_v36, %v8875_v56  ;;  %v392_v11 = vrot.slane %v8765_v41, 5 }
 0x150   :  { %v7942_v6 = vpop.eup %7941  ;;  %v334_v4 = vmul.f32 %v317_v43, %v238_v60  ;;  %v301_v7 = vmul.f32 0.5, %v300_v61  ;;  %vm324_vm15 = vweird.f32 %v8864_v42  ;;  %vm478_vm0 = vweird.f32 %v8866_v29 }
 0x151   :  { %v7744_v9 = vadd.f32 -1.0, %v564_v63  ;;  %v8888_v13 = vadd.f32 1.0, %v7942_v6  ;;  %v7739_v35 = vmul.f32 -1.442695, %v407_v0  ;;  %vm8912_vm3 = vcmp.eq.f32.partialorder %v482_v30, 8.507059e+37 }
 0x152   :  { %v7944_v16 = vpop.eup %7943  ;;  %v343_v46 = vmul.f32 %v8742_v10, %v334_v4  ;;  %v302_v17 = vsub.f32 1.5, %v301_v7  ;;  %v485_v1 = vor.u32 1.1754944e-38, %v484_v44 }
 0x153   :  { %v7946_v20 = vpop.eup %7945  ;;  %v319_v3 = vmul.f32 %v7944_v16, %v8864_v42  ;;  %597 = vrot.lane.b32.xlu1 %v7744_v9, %s8645_s0  ;;  %7947 = vrcp.f32 %v8888_v13  ;;  %vm325_vm2 = vweird.f32 %v7944_v16  ;;  %v497_v53 = vand.u32 2147483647, %v8888_v13 }
 0x154   :  { %v352_v36 = vadd.f32 %v8748_v19, %v343_v46  ;;  %v303_v2 = vmul.f32 %v7940_v21, %v302_v17  ;;  %v474_v23 = vmul.f32 %v7946_v20, %v8866_v29  ;;  %7949 = vpow2.f32 %v7739_v35  ;;  %vm326_vm5 = vmor %vm324_vm15, %vm325_vm2 }
 0x155   :  { %v320_v27 = vmul.f32 %v7944_v16, %v319_v3  ;;  %vm479_vm1 = vweird.f32 %v7946_v20  ;;  %v499_v54 = vand.u32 2147483648, %v8888_v13  ;;  %vm493_vm7 = vweird.f32 %v8888_v13 }
 0x156   :  { %v8903_v31 = vadd.f32 %v8751_v18, %v352_v36  ;;  %v307_v33 = vsel %vm306_vm14, %v7940_v21, %v303_v2  ;;  %v475_v40 = vsub.f32 1.0, %v474_v23  ;;  %vm480_vm4 = vmor %vm478_vm0, %vm479_vm1  ;;  %vm498_vm9 = vcmp.eq.f32.partialorder %v497_v53, 8.507059e+37 }
 0x157   :  { %v333_v8 = vmul.f32 %v307_v33, %v237_v25  ;;  %v321_v45 = vmul.f32 0.5, %v320_v27  ;;  %v500_v9 = vor.u32 1.1754944e-38, %v499_v54 }
 0x158   :  { %v476_v32 = vmul.f32 %v7946_v20, %v475_v40  ;;  %v409_v24 = vadd.f32 %v393_v22, %v8903_v31 }
 0x159   :  { %v7948_v48 = vpop.eup %7947  ;;  %v342_v49 = vmul.f32 %v8742_v10, %v333_v8  ;;  %v322_v34 = vsub.f32 1.5, %v321_v45 }
 0x15a   :  { %v477_v38 = vadd.f32 %v7946_v20, %v476_v32  ;;  %v489_v50 = vmul.f32 %v7948_v48, %v8888_v13  ;;  %v7741_v26 = vmul.f32 -1.442695, %v409_v24  ;;  %v7950_v21 = vpop.eup %7949  ;;  %vm494_vm6 = vweird.f32 %v7948_v48 }
 0x15b   :  { %v351_v51 = vadd.f32 %v8748_v19, %v342_v49  ;;  %v323_v52 = vmul.f32 %v7944_v16, %v322_v34  ;;  %v439_v59 = vadd.f32 1.0, %v7950_v21  ;;  %vm495_vm8 = vmor %vm493_vm7, %vm494_vm6 }
 0x15c   :  { %v481_v55 = vsel %vm480_vm4, %v7946_v20, %v477_v38  ;;  %v490_v58 = vsub.f32 1.0, %v489_v50  ;;  %7951 = vpow2.f32 %v7741_v26 }
 0x15d   :  { %v8925_v60 = vadd.f32 %v8751_v18, %v351_v51  ;;  %v327_v61 = vsel %vm326_vm5, %v7944_v16, %v323_v52  ;;  %v8929_v43 = vsel %vm8912_vm3, %v485_v1, %v481_v55  ;;  %7953 = vrcp.f32 %v439_v59 }
 0x15e   :  { %v335_v29 = vmul.f32 %v327_v61, %v239_v5  ;;  %v565_v63 = vmul.f32 2.0, %v8929_v43  ;;  %v491_v0 = vmul.f32 %v7948_v48, %v490_v58  ;;  %v514_v25 = vand.u32 2147483648, %v439_v59 }
 0x15f   :  { %v408_v42 = vadd.f32 %v392_v11, %v8925_v60  ;;  %v512_v40 = vand.u32 2147483647, %v439_v59  ;;  %vm508_vm11 = vweird.f32 %v439_v59 }
 0x160   :  { %v344_v6 = vmul.f32 %v8742_v10, %v335_v29  ;;  %v7745_v4 = vadd.f32 -1.0, %v565_v63  ;;  %v492_v7 = vadd.f32 %v7948_v48, %v491_v0  ;;  %v394_v10 = vrot.slane %v8765_v41, 7 }
 0x161   :  { %v7740_v35 = vmul.f32 -1.442695, %v408_v42  ;;  %v515_v5 = vor.u32 1.1754944e-38, %v514_v25  ;;  %vm513_vm13 = vcmp.eq.f32.partialorder %v512_v40, 8.507059e+37 }
 0x162   :  { %v7952_v16 = vpop.eup %7951  ;;  %v353_v46 = vadd.f32 %v8748_v19, %v344_v6  ;;  %599 = vrot.lane.b32.xlu2 %v7745_v4, %s8645_s0  ;;  %v496_v17 = vsel %vm495_vm8, %v7948_v48, %v492_v7 }
 0x163   :  { %v8937_v20 = vsel %vm498_vm9, %v500_v9, %v496_v17  ;;  %v441_v22 = vadd.f32 1.0, %v7952_v16  ;;  %7955 = vpow2.f32 %v7740_v35  ;;  %v7954_v11 = vpop.eup %7953 }
 0x164   :  { %v8941_v3 = vadd.f32 %v8751_v18, %v353_v46  ;;  %v566_v13 = vmul.f32 2.0, %v8937_v20  ;;  %v504_v36 = vmul.f32 %v7954_v11, %v439_v59  ;;  %vm509_vm10 = vweird.f32 %v7954_v11 }
 0x165   :  { %7957 = vrcp.f32 %v441_v22  ;;  %vm510_vm12 = vmor %vm508_vm11, %vm509_vm10  ;;  %v544_v49 = vand.u32 2147483648, %v441_v22  ;;  %v542_v38 = vand.u32 2147483647, %v441_v22  ;;  %vm538_vm15 = vweird.f32 %v441_v22 }
 0x166   :  { %v7746_v2 = vadd.f32 -1.0, %v566_v13  ;;  %v410_v19 = vadd.f32 %v394_v10, %v8941_v3  ;;  %v505_v23 = vsub.f32 1.0, %v504_v36  ;;  %vm12283_vm10 = vcmask 1041409  }
 0x167   :  { %v545_v51 = vor.u32 1.1754944e-38, %v544_v49  ;;  %vm543_vm1 = vcmp.eq.f32.partialorder %v542_v38, 8.507059e+37  ;;  %vm12290_vm11 = vcmask 1042434  }
 0x168   :  { %v7742_v27 = vmul.f32 -1.442695, %v410_v19  ;;  %v506_v33 = vmul.f32 %v7954_v11, %v505_v23 }
 0x169   :  { %v7956_v30 = vpop.eup %7955 }
 0x16a   :  { %601 = vrot.lane.b32.xlu2 %v7746_v2, %s8645_s0  ;;  %v440_v41 = vadd.f32 1.0, %v7956_v30  ;;  %7959 = vpow2.f32 %v7742_v27  ;;  %v507_v44 = vadd.f32 %v7954_v11, %v506_v33 }
 0x16b   :  { %v7958_v18 = vpop.eup %7957 }
 0x16c   :  { %v534_v8 = vmul.f32 %v7958_v18, %v441_v22  ;;  %7961 = vrcp.f32 %v440_v41  ;;  %v511_v45 = vsel %vm510_vm12, %v7954_v11, %v507_v44  ;;  %vm539_vm14 = vweird.f32 %v7958_v18 }
 0x16d   :  { %v8946_v32 = vsel %vm513_vm13, %v515_v5, %v511_v45  ;;  %vm540_vm0 = vmor %vm538_vm15, %vm539_vm14  ;;  %v529_v59 = vand.u32 2147483648, %v440_v41  ;;  %v527_v29 = vand.u32 2147483647, %v440_v41  ;;  %vm523_vm3 = vweird.f32 %v440_v41 }
 0x16e   :  { %v535_v24 = vsub.f32 1.0, %v534_v8  ;;  %v567_v48 = vmul.f32 2.0, %v8946_v32  ;;  %vm12289_vm12 = vcmask 1043459   ;;  %vm12288_vm13 = vcmask 1044484  }
 0x16f   :  { %v530_v6 = vor.u32 1.1754944e-38, %v529_v59  ;;  %vm528_vm5 = vcmp.eq.f32.partialorder %v527_v29, 8.507059e+37  ;;  %vm12287_vm14 = vcmask 1045509   ;;  %vm12286_vm15 = vcmask 1046534  }
 0x170   :  { %v7960_v34 = vpop.eup %7959  ;;  %v536_v39 = vmul.f32 %v7958_v18, %v535_v24  ;;  %v7747_v1 = vadd.f32 -1.0, %v567_v48 }
 0x171   :  { %v442_v50 = vadd.f32 1.0, %v7960_v34 }
 0x172   :  { %v7962_v26 = vpop.eup %7961  ;;  %v537_v21 = vadd.f32 %v7958_v18, %v536_v39  ;;  %603 = vrot.lane.b32.xlu1 %v7747_v1, %s8645_s0 }
 0x173   :  { %v519_v52 = vmul.f32 %v7962_v26, %v440_v41  ;;  %7963 = vrcp.f32 %v442_v50  ;;  %vm524_vm2 = vweird.f32 %v7962_v26  ;;  %v559_v46 = vand.u32 2147483648, %v442_v50 }
 0x174   :  { %v541_v53 = vsel %vm540_vm0, %v7958_v18, %v537_v21  ;;  %vm525_vm4 = vmor %vm523_vm3, %vm524_vm2  ;;  %v557_v22 = vand.u32 2147483647, %v442_v50  ;;  %vm553_vm7 = vweird.f32 %v442_v50  ;;  %vm12285_vm0 = vcmask 1047559  }
 0x175   :  { %v8950_v54 = vsel %vm543_vm1, %v545_v51, %v541_v53  ;;  %v520_v55 = vsub.f32 1.0, %v519_v52  ;;  %v560_v13 = vor.u32 1.1754944e-38, %v559_v46  ;;  %v582_v52 = vmul.f32 0.0, %v8937_v20 }
 0x176   :  { %v569_v58 = vmul.f32 2.0, %v8950_v54  ;;  %vm558_vm9 = vcmp.eq.f32.partialorder %v557_v22, 8.507059e+37  ;;  %v581_v53 = vmul.f32 0.0, %v8929_v43  ;;  %vm12284_vm1 = vcmask 261120  }
 0x177   :  { %v521_v61 = vmul.f32 %v7962_v26, %v520_v55 }
 0x178   :  { %v7749_v63 = vadd.f32 -1.0, %v569_v58  ;;  %v579_v58 = vmul.f32 0.0, %v8859_v14 }
 0x179   :  { %v7964_v0 = vpop.eup %7963  ;;  %v522_v42 = vadd.f32 %v7962_v26, %v521_v61 }
 0x17a   :  { %607 = vrot.lane.b32.xlu2 %v7749_v63, %s8645_s0  ;;  %v549_v4 = vmul.f32 %v7964_v0, %v442_v50  ;;  %vm554_vm6 = vweird.f32 %v7964_v0  ;;  %v580_v50 = vmul.f32 0.0, %v8882_v62 }
 0x17b   :  { %v526_v7 = vsel %vm525_vm4, %v7962_v26, %v522_v42  ;;  %vm555_vm8 = vmor %vm553_vm7, %vm554_vm6 }
 0x17c   :  { %v8954_v9 = vsel %vm528_vm5, %v530_v6, %v526_v7  ;;  %v550_v35 = vsub.f32 1.0, %v549_v4  ;;  %v583_v6 = vmul.f32 0.0, %v8946_v32 }
 0x17d   :  { %v568_v16 = vmul.f32 2.0, %v8954_v9 }
 0x17e   :  { %v551_v17 = vmul.f32 %v7964_v0, %v550_v35 }
 0x17f   :  { %v7748_v11 = vadd.f32 -1.0, %v568_v16 }
 0x180   :  { %v552_v10 = vadd.f32 %v7964_v0, %v551_v17  ;;  %v585_v17 = vmul.f32 0.0, %v8950_v54 }
 0x181   :  { %605 = vrot.lane.b32.xlu0 %v7748_v11, %s8645_s0 }
 0x182   :  { %v556_v36 = vsel %vm555_vm8, %v7964_v0, %v552_v10 }
 0x183   :  { %v8958_v2 = vsel %vm558_vm9, %v560_v13, %v556_v36 }
 0x184   :  { %v570_v19 = vmul.f32 2.0, %v8958_v2  ;;  %v586_v22 = vmul.f32 0.0, %v8958_v2 }
 0x186   :  { %v7750_v23 = vadd.f32 -1.0, %v570_v19 }
 0x188   :  { %609 = vrot.lane.b32.xlu1 %v7750_v23, %s8645_s0 }
 0x1bc   :  { %v600_v25 = vpop.permute.xlu2 %599 }
 0x1bd   :  { %v621_v27 = vmul.f32 %v600_v25, %v8929_v43  ;;  %v596_v30 = vpop.permute.xlu0 %595 }
 0x1be   :  { %v619_v33 = vmul.f32 %v596_v30, %v8859_v14 }
 0x1bf   :  { %639 = vrot.lane.b32.xlu2 %v621_v27, %s8646_s2 }
 0x1c0   :  { %635 = vrot.lane.b32.xlu1 %v619_v33, %s8646_s2  ;;  %v584_v33 = vmul.f32 0.0, %v8954_v9 }
 0x1c4   :  { %v602_v18 = vpop.permute.xlu2 %601 }
 0x1c5   :  { %v598_v40 = vpop.permute.xlu1 %597  ;;  %v622_v44 = vmul.f32 %v602_v18, %v8937_v20 }
 0x1c6   :  { %v620_v41 = vmul.f32 %v598_v40, %v8882_v62 }
 0x1c8   :  { %637 = vrot.lane.b32.xlu0 %v620_v41, %s8646_s2 }
 0x1d0   :  { %641 = vrot.lane.b32.xlu0 %v622_v44, %s8646_s2 }
 0x1d4   :  { %v608_v5 = vpop.permute.xlu2 %607 }
 0x1d5   :  { %v625_v8 = vmul.f32 %v608_v5, %v8950_v54 }
 0x1d8   :  { %647 = vrot.lane.b32.xlu0 %v625_v8, %s8646_s2 }
 0x1e4   :  { %v604_v45 = vpop.permute.xlu1 %603 }
 0x1e5   :  { %v623_v24 = vmul.f32 %v604_v45, %v8946_v32 }
 0x1e7   :  { %643 = vrot.lane.b32.xlu2 %v623_v24, %s8646_s2 }
 0x1f3   :  { %v606_v48 = vpop.permute.xlu0 %605 }
 0x1f4   :  { %v624_v49 = vmul.f32 %v606_v48, %v8954_v9 }
 0x1f6   :  { %645 = vrot.lane.b32.xlu1 %v624_v49, %s8646_s2 }
 0x1fa   :  { %v610_v34 = vpop.permute.xlu1 %609 }
 0x1fb   :  { %v626_v39 = vmul.f32 %v610_v34, %v8958_v2 }
 0x1fd   :  { %649 = vrot.lane.b32.xlu2 %v626_v39, %s8646_s2 }
 0x219   :  { %v640_v1 = vpop.permute.xlu2 %639 }
 0x21a   :  { %v8988_v29 = vadd.f32 %v640_v1, %v581_v53 }
 0x21c   :  { %v712_v7 = vmul.f32 %v8988_v29, %v8988_v29  ;;  %v678_v10 = vrot.slane %v8988_v29, 6 }
 0x21e   :  { %v728_v27 = vrot.slane %v712_v7, 6  ;;  %v9042_v7 = vld [vmem:[#allocation7] sm:$0xff] }
 0x232   :  { %v636_v55 = vpop.permute.xlu1 %635 }
 0x233   :  { %v8990_v63 = vadd.f32 %v636_v55, %v579_v58 }
 0x235   :  { %v710_v16 = vmul.f32 %v8990_v63, %v8990_v63 }
 0x23a   :  { %v638_v38 = vpop.permute.xlu0 %637 }
 0x23b   :  { %v8979_v21 = vadd.f32 %v638_v38, %v580_v50 }
 0x23d   :  { %v711_v59 = vmul.f32 %v8979_v21, %v8979_v21  ;;  %v675_v0 = vrot.slane %v8979_v21, 7 }
 0x23f   :  { %v726_v42 = vrot.slane %v711_v59, 7  ;;  %v677_v13 = vsel %vm12283_vm10, %v675_v0, %v8990_v63 }
 0x240   :  { %v680_v18 = vsel %vm12290_vm11, %v678_v10, %v677_v13  ;;  %v8648_v13 = vmov 32.0  }
 0x241   :  { %v644_v51 = vpop.permute.xlu2 %643  ;;  %v727_v19 = vsel %vm12283_vm10, %v726_v42, %v710_v16  ;;  %v821_v16 = vperm.slane %v9042_v7, 5  ;;  %7965 = vrcp.f32 %v8648_v13 }
 0x242   :  { %v642_v26 = vpop.permute.xlu0 %641  ;;  %v9000_v46 = vadd.f32 %v644_v51, %v583_v6  ;;  %v729_v8 = vsel %vm12290_vm11, %v728_v27, %v727_v19 }
 0x243   :  { %v8986_v61 = vadd.f32 %v642_v26, %v582_v52 }
 0x244   :  { %v714_v40 = vmul.f32 %v9000_v46, %v9000_v46  ;;  %v684_v45 = vrot.slane %v9000_v46, 4 }
 0x245   :  { %v713_v4 = vmul.f32 %v8986_v61, %v8986_v61  ;;  %v681_v36 = vrot.slane %v8986_v61, 5 }
 0x246   :  { %v732_v38 = vrot.slane %v714_v40, 4 }
 0x247   :  { %v730_v23 = vrot.slane %v713_v4, 5  ;;  %v683_v5 = vsel %vm12289_vm12, %v681_v36, %v680_v18  ;;  %v7966_v36 = vpop.eup %7965 }
 0x248   :  { %v686_v50 = vsel %vm12288_vm13, %v684_v45, %v683_v5  ;;  %v703_v19 = vmul.f32 32.0, %v7966_v36  ;;  %vm707_vm2 = vweird.f32 %v7966_v36 }
 0x249   :  { %v731_v48 = vsel %vm12289_vm12, %v730_v23, %v729_v8 }
 0x24a   :  { %v648_v35 = vpop.permute.xlu0 %647  ;;  %v733_v58 = vsel %vm12288_vm13, %v732_v38, %v731_v48  ;;  %v704_v23 = vsub.f32 1.0, %v703_v19 }
 0x24b   :  { %v9009_v25 = vadd.f32 %v648_v35, %v585_v17  ;;  %v808_v35 = vperm.slane %v9042_v7, 4 }
 0x24c   :  { %v705_v27 = vmul.f32 %v7966_v36, %v704_v23 }
 0x24d   :  { %v716_v24 = vmul.f32 %v9009_v25, %v9009_v25  ;;  %v690_v1 = vrot.slane %v9009_v25, 2 }
 0x24f   :  { %v736_v53 = vrot.slane %v716_v24, 2 }
 0x257   :  { %v650_v11 = vpop.permute.xlu2 %649 }
 0x258   :  { %v9011_v30 = vadd.f32 %v650_v11, %v586_v22 }
 0x25a   :  { %v717_v49 = vmul.f32 %v9011_v30, %v9011_v30  ;;  %v693_v52 = vrot.slane %v9011_v30, 1 }
 0x25c   :  { %v738_v42 = vrot.slane %v717_v49, 1 }
 0x268   :  { %v646_v41 = vpop.permute.xlu1 %645 }
 0x269   :  { %v9017_v44 = vadd.f32 %v646_v41, %v584_v33  ;;  %v706_v33 = vadd.f32 %v7966_v36, %v705_v27 }
 0x26b   :  { %v687_v34 = vrot.slane %v9017_v44, 3  ;;  %v715_v39 = vmul.f32 %v9017_v44, %v9017_v44  ;;  %v9050_v40 = vsel %vm707_vm2, %v7966_v36, %v706_v33 }
 0x26d   :  { %v734_v26 = vrot.slane %v715_v39, 3  ;;  %v689_v51 = vsel %vm12287_vm14, %v687_v34, %v686_v50 }
 0x26e   :  { %v692_v55 = vsel %vm12286_vm15, %v690_v1, %v689_v51 }
 0x26f   :  { %v695_v59 = vsel %vm12285_vm0, %v693_v52, %v692_v55  ;;  %v735_v0 = vsel %vm12287_vm14, %v734_v26, %v733_v58 }
 0x270   :  { %696 = vrot.lane.b32.xlu1 %v695_v59, %s8647_s28  ;;  %v737_v6 = vsel %vm12286_vm15, %v736_v53, %v735_v0 }
 0x271   :  { %v739_v4 = vsel %vm12285_vm0, %v738_v42, %v737_v6 }
 0x272   :  { %740 = vrot.lane.b32.xlu0 %v739_v4, %s8647_s28 }
 0x27a   :  { %810 = vrot.lane.b32.xlu0 %v808_v35, %s8646_s2 }
 0x282   :  { %823 = vrot.lane.b32.xlu0 %v821_v16, %s8646_s2 }
 0x2e2   :  { %v697_v17 = vpop.permute.xlu1 %696 }
 0x2e3   :  { %v699_v22 = vsel %vm12284_vm1, %v697_v17, 0.0 }
 0x2e4   :  { %v741_v11 = vpop.permute.xlu0 %740  ;;  %700 = vadd.xlane.f32.xlu2 %v699_v22 }
 0x2e5   :  { %v743_v10 = vsel %vm12284_vm1, %v741_v11, 0.0 }
 0x2e6   :  { %744 = vadd.xlane.f32.xlu1 %v743_v10 }
 0x2ec   :  { %v9058_v38 = vpop.permute.xlu0 %810 }
 0x2ed   :  { %12310 = vst [vmem:[#allocation12_spill] sm:$0xff] %v9058_v38 }
 0x2f4   :  { %v9068_v17 = vpop.permute.xlu0 %823 }
 0x2f5   :  { %12311 = vst [vmem:[#allocation13_spill] sm:$0xff] %v9068_v17 }
 0x357   :  { %v701_v41 = vpop.xlane.xlu2 %700 }
 0x358   :  { %v9053_v18 = vmul.f32 %v9050_v40, %v701_v41 }
 0x359   :  { %v745_v5 = vpop.xlane.xlu1 %744 }
 0x35a   :  { %v747_v8 = vmul.f32 %v9053_v18, %v9053_v18  ;;  %v746_v45 = vmul.f32 %v745_v5, %v9050_v40  ;;  %v753_v50 = vrot.slane %v9053_v18, 4  ;;  %v752_v51 = vrot.slane %v9053_v18, 3 }
 0x35b   :  { %v750_v52 = vrot.slane %v9053_v18, 1  ;;  %v765_v55 = vsub.f32 %v8990_v63, %v9053_v18 }
 0x35c   :  { %v748_v24 = vsub.f32 %v746_v45, %v747_v8  ;;  %v769_v59 = vsub.f32 %v9000_v46, %v753_v50  ;;  %v768_v0 = vsub.f32 %v8986_v61, %v752_v51  ;;  %v754_v45 = vrot.slane %v9053_v18, 5 }
 0x35d   :  { %v766_v42 = vsub.f32 %v8979_v21, %v750_v52  ;;  %v751_v21 = vrot.slane %v9053_v18, 2 }
 0x35e   :  { %v773_v48 = vadd.f32 1e-05, %v748_v24 }
 0x35f   :  { %v767_v33 = vsub.f32 %v8988_v29, %v751_v21  ;;  %v770_v29 = vsub.f32 %v9017_v44, %v754_v45 }
 0x360   :  { %7967 = vrsqrt.f32 %v773_v48  ;;  %vm780_vm4 = vweird.f32 %v773_v48 }
 0x366   :  { %v7968_v49 = vpop.eup %7967 }
 0x367   :  { %v775_v34 = vmul.f32 %v7968_v49, %v773_v48  ;;  %vm781_vm3 = vweird.f32 %v7968_v49 }
 0x368   :  { %vm782_vm5 = vmor %vm780_vm4, %vm781_vm3 }
 0x369   :  { %v776_v39 = vmul.f32 %v7968_v49, %v775_v34 }
 0x36b   :  { %v777_v1 = vmul.f32 0.5, %v776_v39 }
 0x36d   :  { %v778_v26 = vsub.f32 1.5, %v777_v1 }
 0x36f   :  { %v779_v53 = vmul.f32 %v7968_v49, %v778_v26  ;;  %v755_v26 = vrot.slane %v9053_v18, 6 }
 0x371   :  { %v783_v58 = vsel %vm782_vm5, %v7968_v49, %v779_v53  ;;  %v771_v53 = vsub.f32 %v9009_v25, %v755_v26 }
 0x372   :  { %v800_v6 = vmul.f32 %v783_v58, %v765_v55  ;;  %v788_v4 = vrot.slane %v783_v58, 4  ;;  %v787_v35 = vrot.slane %v783_v58, 3  ;;  %v785_v16 = vrot.slane %v783_v58, 1 }
 0x373   :  { %v786_v36 = vrot.slane %v783_v58, 2  ;;  %v789_v49 = vrot.slane %v783_v58, 5  ;;  %v790_v52 = vrot.slane %v783_v58, 6 }
 0x374   :  { %v813_v22 = vmul.f32 %v9058_v38, %v800_v6  ;;  %v804_v11 = vmul.f32 %v788_v4, %v769_v59  ;;  %v803_v10 = vmul.f32 %v787_v35, %v768_v0  ;;  %v801_v13 = vmul.f32 %v785_v16, %v766_v42 }
 0x375   :  { %v802_v5 = vmul.f32 %v786_v36, %v767_v33  ;;  %v805_v1 = vmul.f32 %v789_v49, %v770_v29  ;;  %v806_v44 = vmul.f32 %v790_v52, %v771_v53  ;;  %v756_v0 = vrot.slane %v9053_v18, 7 }
 0x376   :  { %v9072_v63 = vadd.f32 %v9068_v17, %v813_v22  ;;  %v817_v46 = vmul.f32 %v9058_v38, %v804_v11  ;;  %v816_v61 = vmul.f32 %v9058_v38, %v803_v10  ;;  %v814_v27 = vmul.f32 %v9058_v38, %v801_v13 }
 0x377   :  { %v815_v48 = vmul.f32 %v9058_v38, %v802_v5  ;;  %v818_v51 = vmul.f32 %v9058_v38, %v805_v1  ;;  %v819_v42 = vmul.f32 %v9058_v38, %v806_v44  ;;  %v791_v6 = vrot.slane %v783_v58, 7 }
 0x378   :  { %7969 = vtanh.f32 %v9072_v63  ;;  %v9079_v19 = vadd.f32 %v9068_v17, %v817_v46  ;;  %v9082_v23 = vadd.f32 %v9068_v17, %v816_v61  ;;  %v9089_v41 = vadd.f32 %v9068_v17, %v814_v27 }
 0x379   :  { %v9099_v39 = vadd.f32 %v9068_v17, %v815_v48  ;;  %v9107_v55 = vadd.f32 %v9068_v17, %v818_v51  ;;  %v772_v4 = vsub.f32 %v9011_v30, %v756_v0  ;;  %v9115_v35 = vadd.f32 %v9068_v17, %v819_v42 }
 0x37a   :  { %7971 = vtanh.f32 %v9079_v19 }
 0x37b   :  { %7973 = vtanh.f32 %v9082_v23  ;;  %v807_v25 = vmul.f32 %v791_v6, %v772_v4 }
 0x37c   :  { %7975 = vtanh.f32 %v9089_v41 }
 0x37d   :  { %7977 = vtanh.f32 %v9099_v39  ;;  %v820_v18 = vmul.f32 %v9058_v38, %v807_v25 }
 0x37e   :  { %v7970_v8 = vpop.eup %7969  ;;  %7979 = vtanh.f32 %v9107_v55 }
 0x37f   :  { %850 = vrot.lane.b32.xlu0 %v7970_v8, %s8645_s0  ;;  %7981 = vtanh.f32 %v9115_v35  ;;  %v9121_v22 = vadd.f32 %v9068_v17, %v820_v18 }
 0x380   :  { %v7972_v24 = vpop.eup %7971 }
 0x381   :  { %v7974_v34 = vpop.eup %7973  ;;  %858 = vrot.lane.b32.xlu1 %v7972_v24, %s8645_s0  ;;  %7983 = vtanh.f32 %v9121_v22 }
 0x382   :  { %856 = vrot.lane.b32.xlu2 %v7974_v34, %s8645_s0  ;;  %v7976_v50 = vpop.eup %7975 }
 0x383   :  { %v7978_v59 = vpop.eup %7977 }
 0x384   :  { %v7980_v16 = vpop.eup %7979 }
 0x385   :  { %v7982_v11 = vpop.eup %7981 }
 0x387   :  { %852 = vrot.lane.b32.xlu0 %v7976_v50, %s8645_s0  ;;  %v7984_v30 = vpop.eup %7983 }
 0x38f   :  { %854 = vrot.lane.b32.xlu0 %v7978_v59, %s8645_s0 }
 0x397   :  { %860 = vrot.lane.b32.xlu0 %v7980_v16, %s8645_s0 }
 0x39f   :  { %862 = vrot.lane.b32.xlu0 %v7982_v11, %s8645_s0 }
 0x3a7   :  { %864 = vrot.lane.b32.xlu0 %v7984_v30, %s8645_s0 }
 0x3dc   :  { %v857_v36 = vpop.permute.xlu2 %856 }
 0x3dd   :  { %v9137_v5 = vmul.f32 %v857_v36, %v8937_v20 }
 0x3f1   :  { %v851_v58 = vpop.permute.xlu0 %850 }
 0x3f2   :  { %v9140_v8 = vmul.f32 %v851_v58, %v8859_v14  ;;  %v914_v14 = vmul.f32 %v9137_v5, %v9137_v5 }
 0x3f3   :  { %v859_v45 = vpop.permute.xlu1 %858 }
 0x3f4   :  { %v9148_v34 = vmul.f32 %v859_v45, %v8946_v32  ;;  %v911_v1 = vmul.f32 %v9140_v8, %v9140_v8  ;;  %v931_v44 = vrot.slane %v914_v14, 5  ;;  %v1022_v14 = vperm.slane %v9042_v7, 7 }
 0x3f6   :  { %v896_v42 = vrot.slane %v9148_v34, 4 }
 0x3f9   :  { %v853_v10 = vpop.permute.xlu0 %852 }
 0x3fa   :  { %v9127_v61 = vmul.f32 %v853_v10, %v8882_v62 }
 0x3fc   :  { %v912_v27 = vmul.f32 %v9127_v61, %v9127_v61  ;;  %v890_v62 = vrot.slane %v9127_v61, 7 }
 0x3fe   :  { %v927_v48 = vrot.slane %v912_v27, 7  ;;  %v891_v50 = vsel %vm12283_vm10, %v890_v62, %v9140_v8 }
 0x400   :  { %v928_v32 = vsel %vm12283_vm10, %v927_v48, %v911_v1 }
 0x401   :  { %v855_v13 = vpop.permute.xlu0 %854 }
 0x402   :  { %v9130_v21 = vmul.f32 %v855_v13, %v8929_v43 }
 0x404   :  { %v913_v33 = vmul.f32 %v9130_v21, %v9130_v21  ;;  %v892_v24 = vrot.slane %v9130_v21, 6 }
 0x406   :  { %v929_v29 = vrot.slane %v913_v33, 6  ;;  %v893_v26 = vsel %vm12290_vm11, %v892_v24, %v891_v50 }
 0x408   :  { %v930_v52 = vsel %vm12290_vm11, %v929_v29, %v928_v32 }
 0x409   :  { %v861_v46 = vpop.permute.xlu0 %860  ;;  %v932_v18 = vsel %vm12289_vm12, %v931_v44, %v930_v52  ;;  %v9198_v44 = vld [vmem:[#allocation5 + $0x48] sm:$0xff] }
 0x40a   :  { %v9145_v49 = vmul.f32 %v861_v46, %v8954_v9  ;;  %v894_v9 = vrot.slane %v9137_v5, 5  ;;  %1074 = vmatpush.msra.mxu2 %v9198_v44 }
 0x40c   :  { %v916_v51 = vmul.f32 %v9145_v49, %v9145_v49  ;;  %v898_v59 = vrot.slane %v9145_v49, 3  ;;  %v895_v0 = vsel %vm12289_vm12, %v894_v9, %v893_v26 }
 0x40d   :  { %v897_v58 = vsel %vm12288_vm13, %v896_v42, %v895_v0 }
 0x40e   :  { %v935_v25 = vrot.slane %v916_v51, 3  ;;  %v899_v13 = vsel %vm12287_vm14, %v898_v59, %v897_v58  ;;  %v9200_v59 = vld [vmem:[#allocation5 + $0x40] sm:$0xff] }
 0x40f   :  { %1075 = vmatpush.msra.mxu2 %v9200_v59 }
 0x411   :  { %v863_v43 = vpop.permute.xlu0 %862 }
 0x412   :  { %v9151_v20 = vmul.f32 %v863_v43, %v8950_v54  ;;  %v915_v54 = vmul.f32 %v9148_v34, %v9148_v34  ;;  %v1009_v43 = vperm.slane %v9042_v7, 6  ;;  %v9203_v7 = vld [vmem:[#allocation5 + $0x38] sm:$0xff] }
 0x413   :  { %1076 = vmatpush.msra.mxu2 %v9203_v7 }
 0x414   :  { %v917_v53 = vmul.f32 %v9151_v20, %v9151_v20  ;;  %v900_v6 = vrot.slane %v9151_v20, 2  ;;  %v933_v11 = vrot.slane %v915_v54, 4 }
 0x416   :  { %v937_v30 = vrot.slane %v917_v53, 2  ;;  %v901_v36 = vsel %vm12286_vm15, %v900_v6, %v899_v13  ;;  %v934_v27 = vsel %vm12288_vm13, %v933_v11, %v932_v18  ;;  %v9206_v6 = vld [vmem:[#allocation5 + $0x30] sm:$0xff] }
 0x417   :  { %v936_v33 = vsel %vm12287_vm14, %v935_v25, %v934_v27  ;;  %1077 = vmatpush.msra.mxu2 %v9206_v6 }
 0x418   :  { %v938_v62 = vsel %vm12286_vm15, %v937_v30, %v936_v33 }
 0x419   :  { %v865_v4 = vpop.permute.xlu0 %864  ;;  %2009 = vmatpush.msrb.mxu2 %v9198_v44 }
 0x41a   :  { %v9174_v16 = vmul.f32 %v865_v4, %v8958_v2 }
 0x41b   :  { %2010 = vmatpush.msrb.mxu2 %v9200_v59 }
 0x41c   :  { %v918_v10 = vmul.f32 %v9174_v16, %v9174_v16  ;;  %v902_v46 = vrot.slane %v9174_v16, 1 }
 0x41d   :  { %2011 = vmatpush.msrb.mxu2 %v9203_v7 }
 0x41e   :  { %v903_v2 = vsel %vm12285_vm0, %v902_v46, %v901_v36  ;;  %v939_v45 = vrot.slane %v918_v10, 1 }
 0x41f   :  { %904 = vrot.lane.b32.xlu2 %v903_v2, %s8646_s2  ;;  %2012 = vmatpush.msrb.mxu2 %v9206_v6 }
 0x420   :  { %v940_v24 = vsel %vm12285_vm0, %v939_v45, %v938_v62 }
 0x421   :  { %941 = vrot.lane.b32.xlu0 %v940_v24, %s8646_s2 }
 0x429   :  { %1011 = vrot.lane.b32.xlu0 %v1009_v43, %s8647_s28 }
 0x431   :  { %1024 = vrot.lane.b32.xlu0 %v1022_v14, %s8647_s28 }
 0x479   :  { %v905_v48 = vpop.permute.xlu2 %904 }
 0x47a   :  { %v907_v29 = vsel %vm12284_vm1, %v905_v48, 0.0 }
 0x47b   :  { %908 = vadd.xlane.f32.xlu1 %v907_v29 }
 0x493   :  { %v942_v1 = vpop.permute.xlu0 %941 }
 0x494   :  { %v944_v50 = vsel %vm12284_vm1, %v942_v1, 0.0 }
 0x495   :  { %945 = vadd.xlane.f32.xlu2 %v944_v50 }
 0x49b   :  { %v9211_v46 = vpop.permute.xlu0 %1011 }
 0x4ee   :  { %v909_v26 = vpop.xlane.xlu1 %908 }
 0x4ef   :  { %v910_v9 = vmul.f32 %v909_v26, %v9050_v40 }
 0x4f1   :  { %v948_v51 = vmul.f32 %v910_v9, %v910_v9  ;;  %v951_v18 = vrot.slane %v910_v9, 1  ;;  %v952_v11 = vrot.slane %v910_v9, 2  ;;  %v953_v30 = vrot.slane %v910_v9, 3 }
 0x4f2   :  { %v954_v58 = vrot.slane %v910_v9, 4  ;;  %v955_v10 = vrot.slane %v910_v9, 5  ;;  %v956_v36 = vrot.slane %v910_v9, 6  ;;  %v957_v27 = vrot.slane %v910_v9, 7 }
 0x4f3   :  { %v966_v33 = vsub.f32 %v9140_v8, %v910_v9  ;;  %v967_v45 = vsub.f32 %v9127_v61, %v951_v18  ;;  %v968_v62 = vsub.f32 %v9130_v21, %v952_v11  ;;  %v969_v24 = vsub.f32 %v9137_v5, %v953_v30  ;;  %v9229_v18 = vpop.permute.xlu0 %1024 }
 0x4f4   :  { %v970_v43 = vsub.f32 %v9148_v34, %v954_v58  ;;  %v971_v29 = vsub.f32 %v9145_v49, %v955_v10  ;;  %v972_v14 = vsub.f32 %v9151_v20, %v956_v36  ;;  %v973_v1 = vsub.f32 %v9174_v16, %v957_v27 }
 0x508   :  { %v946_v32 = vpop.xlane.xlu2 %945 }
 0x509   :  { %v947_v54 = vmul.f32 %v946_v32, %v9050_v40 }
 0x50b   :  { %v949_v52 = vsub.f32 %v947_v54, %v948_v51 }
 0x50d   :  { %v974_v53 = vadd.f32 1e-05, %v949_v52 }
 0x50f   :  { %7985 = vrsqrt.f32 %v974_v53  ;;  %vm981_vm7 = vweird.f32 %v974_v53 }
 0x515   :  { %v7986_v0 = vpop.eup %7985 }
 0x516   :  { %v976_v42 = vmul.f32 %v7986_v0, %v974_v53  ;;  %vm982_vm6 = vweird.f32 %v7986_v0 }
 0x517   :  { %vm983_vm8 = vmor %vm981_vm7, %vm982_vm6 }
 0x518   :  { %v977_v4 = vmul.f32 %v7986_v0, %v976_v42 }
 0x51a   :  { %v978_v25 = vmul.f32 0.5, %v977_v4 }
 0x51c   :  { %v979_v13 = vsub.f32 1.5, %v978_v25 }
 0x51e   :  { %v980_v2 = vmul.f32 %v7986_v0, %v979_v13 }
 0x520   :  { %v984_v48 = vsel %vm983_vm8, %v7986_v0, %v980_v2 }
 0x521   :  { %v986_v8 = vrot.slane %v984_v48, 1  ;;  %v987_v50 = vrot.slane %v984_v48, 2  ;;  %v988_v26 = vrot.slane %v984_v48, 3  ;;  %v989_v9 = vrot.slane %v984_v48, 4 }
 0x522   :  { %v990_v61 = vrot.slane %v984_v48, 5  ;;  %v991_v32 = vrot.slane %v984_v48, 6  ;;  %v992_v21 = vrot.slane %v984_v48, 7  ;;  %v1001_v51 = vmul.f32 %v984_v48, %v966_v33 }
 0x523   :  { %v1002_v5 = vmul.f32 %v986_v8, %v967_v45  ;;  %v1003_v54 = vmul.f32 %v987_v50, %v968_v62  ;;  %v1004_v34 = vmul.f32 %v988_v26, %v969_v24  ;;  %v1005_v52 = vmul.f32 %v989_v9, %v970_v43 }
 0x524   :  { %v1006_v53 = vmul.f32 %v990_v61, %v971_v29  ;;  %v1007_v49 = vmul.f32 %v991_v32, %v972_v14  ;;  %v1008_v0 = vmul.f32 %v992_v21, %v973_v1  ;;  %v1014_v20 = vmul.f32 %v9211_v46, %v1001_v51 }
 0x525   :  { %v1015_v16 = vmul.f32 %v9211_v46, %v1002_v5  ;;  %v1016_v42 = vmul.f32 %v9211_v46, %v1003_v54  ;;  %v1017_v4 = vmul.f32 %v9211_v46, %v1004_v34  ;;  %v1018_v25 = vmul.f32 %v9211_v46, %v1005_v52  ;;  %v8476_v54 = vld [vmem:[#allocation5 + $0x28] sm:$0xff]  ;;  %v8477_v34 = vld [vmem:[#allocation5 + $0x20] sm:$0xff]  ;;  %v8478_v52 = vld [vmem:[#allocation5 + $0x18] sm:$0xff] }
 0x526   :  { %v1019_v11 = vmul.f32 %v9211_v46, %v1006_v53  ;;  %v1020_v30 = vmul.f32 %v9211_v46, %v1007_v49  ;;  %v1021_v58 = vmul.f32 %v9211_v46, %v1008_v0  ;;  %v1027_v2 = vadd.f32 %v9229_v18, %v1014_v20  ;;  %v8479_v53 = vld [vmem:[#allocation5 + $0x10] sm:$0xff] }
 0x527   :  { %v1028_v10 = vadd.f32 %v9229_v18, %v1015_v16  ;;  %v1029_v13 = vadd.f32 %v9229_v18, %v1016_v42  ;;  %v1030_v36 = vadd.f32 %v9229_v18, %v1017_v4  ;;  %v1031_v27 = vadd.f32 %v9229_v18, %v1018_v25 }
 0x528   :  { %v1032_v33 = vadd.f32 %v9229_v18, %v1019_v11  ;;  %v1033_v24 = vadd.f32 %v9229_v18, %v1020_v30  ;;  %v1034_v43 = vadd.f32 %v9229_v18, %v1021_v58 }
 0x529   :  { %v1044_v45 = vrot.slane %v1028_v10, 7  ;;  %v1046_v62 = vrot.slane %v1029_v13, 6  ;;  %v1048_v29 = vrot.slane %v1030_v36, 5  ;;  %v1050_v1 = vrot.slane %v1031_v27, 4 }
 0x52a   :  { %v1052_v50 = vrot.slane %v1032_v33, 3  ;;  %v1054_v9 = vrot.slane %v1033_v24, 2  ;;  %v1056_v32 = vrot.slane %v1034_v43, 1 }
 0x52b   :  { %v1045_v48 = vsel %vm12283_vm10, %v1044_v45, %v1027_v2 }
 0x52c   :  { %v1047_v14 = vsel %vm12290_vm11, %v1046_v62, %v1045_v48 }
 0x52d   :  { %v1049_v8 = vsel %vm12289_vm12, %v1048_v29, %v1047_v14 }
 0x52e   :  { %v1051_v26 = vsel %vm12288_vm13, %v1050_v1, %v1049_v8 }
 0x52f   :  { %v1053_v61 = vsel %vm12287_vm14, %v1052_v50, %v1051_v26 }
 0x530   :  { %v1055_v21 = vsel %vm12286_vm15, %v1054_v9, %v1053_v61 }
 0x531   :  { %v1057_v51 = vsel %vm12285_vm0, %v1056_v32, %v1055_v21 }
 0x532   :  { %1058 = vrot.lane.b32.xlu0 %v1057_v51, %s8646_s2 }
 0x5a4   :  { %v1059_v5 = vpop.permute.xlu0 %1058 }
 0x5a5   :  { %7751 = vmatmul.msk.f32.vlgmr.msra.gmra.mxu2 %vm12284_vm1, %v1059_v5  ;;  %7754 = vmatmul.msk.f32.vlgmr.msrb.gmra.mxu1 %vm12284_vm1, %v1059_v5 }
 0x5a6   :  { %2926 = vmatpush.msra.mxu2 %v9198_v44  ;;  %3103 = vmatpush.msrb.mxu1 %v8476_v54 }
 0x5a8   :  { %2927 = vmatpush.msra.mxu2 %v9200_v59  ;;  %3104 = vmatpush.msrb.mxu1 %v8477_v34 }
 0x5aa   :  { %2928 = vmatpush.msra.mxu2 %v9203_v7  ;;  %3105 = vmatpush.msrb.mxu1 %v8478_v52 }
 0x5ac   :  { %2929 = vmatpush.msra.mxu2 %v9206_v6  ;;  %3106 = vmatpush.msrb.mxu1 %v8479_v53 }
 0x622   :  { %v1274_v49 = vpop.f32.mrf.mxu1 }
 0x623   :  { %v1278_v0 = vrot.slane %v1274_v49, 7  ;;  %v1279_v20 = vrot.slane %v1274_v49, 1  ;;  %v1280_v16 = vrot.slane %v1274_v49, 2  ;;  %v1281_v42 = vrot.slane %v1274_v49, 3 }
 0x624   :  { %v1282_v44 = vrot.slane %v1274_v49, 4  ;;  %v1283_v4 = vrot.slane %v1274_v49, 5  ;;  %v1284_v25 = vrot.slane %v1274_v49, 6  ;;  %v1294_v59 = vadd.f32 %v1274_v49, %v8776_v57 }
 0x625   :  { %v1293_v11 = vadd.f32 %v1278_v0, %v8759_v37  ;;  %v1295_v7 = vadd.f32 %v1279_v20, %v8811_v28  ;;  %v1296_v30 = vadd.f32 %v1280_v16, %v8839_v12  ;;  %v1297_v6 = vadd.f32 %v1281_v42, %v8875_v56 }
 0x626   :  { %v1298_v58 = vadd.f32 %v1282_v44, %v8925_v60  ;;  %v7756_v10 = vmul.f32 -1.442695, %v1294_v59  ;;  %v1300_v13 = vadd.f32 %v1284_v25, %v8941_v3  ;;  %v1299_v33 = vadd.f32 %v1283_v4, %v8903_v31 }
 0x627   :  { %v7755_v36 = vmul.f32 -1.442695, %v1293_v11  ;;  %v7757_v27 = vmul.f32 -1.442695, %v1295_v7  ;;  %v7758_v2 = vmul.f32 -1.442695, %v1296_v30 }
 0x628   :  { %7987 = vpow2.f32 %v7756_v10  ;;  %v7759_v45 = vmul.f32 -1.442695, %v1297_v6  ;;  %v7760_v62 = vmul.f32 -1.442695, %v1298_v58  ;;  %v7762_v24 = vmul.f32 -1.442695, %v1300_v13 }
 0x629   :  { %7989 = vpow2.f32 %v7755_v36  ;;  %v7761_v43 = vmul.f32 -1.442695, %v1299_v33 }
 0x62a   :  { %7991 = vpow2.f32 %v7757_v27 }
 0x62b   :  { %7993 = vpow2.f32 %v7758_v2 }
 0x62c   :  { %7995 = vpow2.f32 %v7759_v45 }
 0x62d   :  { %7997 = vpow2.f32 %v7760_v62 }
 0x62e   :  { %v7988_v48 = vpop.eup %7987  ;;  %7999 = vpow2.f32 %v7762_v24 }
 0x62f   :  { %v7990_v29 = vpop.eup %7989  ;;  %v1326_v14 = vadd.f32 1.0, %v7988_v48  ;;  %8001 = vpow2.f32 %v7761_v43 }
 0x630   :  { %v7992_v1 = vpop.eup %7991  ;;  %v9264_v8 = vadd.f32 1.0, %v7990_v29 }
 0x631   :  { %v7994_v50 = vpop.eup %7993  ;;  %8003 = vrcp.f32 %v1326_v14  ;;  %v9269_v61 = vadd.f32 1.0, %v7992_v1  ;;  %v1357_v21 = vand.u32 2147483647, %v1326_v14  ;;  %v1359_v51 = vand.u32 2147483648, %v1326_v14 }
 0x632   :  { %v9266_v26 = vadd.f32 1.0, %v7994_v50  ;;  %8005 = vrcp.f32 %v9264_v8  ;;  %v7996_v9 = vpop.eup %7995  ;;  %v1342_v54 = vand.u32 2147483647, %v9264_v8  ;;  %v1344_v34 = vand.u32 2147483648, %v9264_v8 }
 0x633   :  { %v7998_v32 = vpop.eup %7997  ;;  %vm1353_vm9 = vweird.f32 %v1326_v14  ;;  %vm1338_vm2 = vweird.f32 %v9264_v8  ;;  %v9280_v16 = vadd.f32 1.0, %v7996_v9  ;;  %vm9282_vm3 = vcmp.eq.f32.partialorder %v1357_v21, 8.507059e+37 }
 0x634   :  { %8007 = vrcp.f32 %v9266_v26  ;;  %v8000_v5 = vpop.eup %7999  ;;  %v1387_v49 = vand.u32 2147483647, %v9266_v26  ;;  %v1389_v0 = vand.u32 2147483648, %v9266_v26  ;;  %v1360_v25 = vor.u32 1.1754944e-38, %v1359_v51 }
 0x635   :  { %8009 = vrcp.f32 %v9269_v61  ;;  %v8002_v52 = vpop.eup %8001  ;;  %v9278_v20 = vadd.f32 1.0, %v8000_v5  ;;  %v1372_v59 = vand.u32 2147483647, %v9269_v61  ;;  %vm1383_vm4 = vweird.f32 %v9266_v26 }
 0x636   :  { %vm9289_vm5 = vcmp.eq.f32.partialorder %v1342_v54, 8.507059e+37  ;;  %v1345_v30 = vor.u32 1.1754944e-38, %v1344_v34  ;;  %v1374_v6 = vand.u32 2147483648, %v9269_v61  ;;  %vm1368_vm6 = vweird.f32 %v9269_v61 }
 0x637   :  { %v8004_v53 = vpop.eup %8003  ;;  %8011 = vrcp.f32 %v9278_v20  ;;  %v9297_v13 = vadd.f32 1.0, %v7998_v32  ;;  %vm9300_vm7 = vcmp.eq.f32.partialorder %v1387_v49, 8.507059e+37  ;;  %v1390_v33 = vor.u32 1.1754944e-38, %v1389_v0 }
 0x638   :  { %v8006_v42 = vpop.eup %8005  ;;  %v1349_v44 = vmul.f32 %v8004_v53, %v1326_v14  ;;  %8013 = vrcp.f32 %v9280_v16  ;;  %v9304_v62 = vadd.f32 1.0, %v8002_v52  ;;  %vm1354_vm8 = vweird.f32 %v8004_v53 }
 0x639   :  { %v1334_v11 = vmul.f32 %v8006_v42, %v9264_v8  ;;  %vm9307_vm10 = vcmp.eq.f32.partialorder %v1372_v59, 8.507059e+37  ;;  %vm1339_vm1 = vweird.f32 %v8006_v42  ;;  %v1375_v50 = vor.u32 1.1754944e-38, %v1374_v6  ;;  %vm1355_vm15 = vmor %vm1353_vm9, %vm1354_vm8 }
 0x63a   :  { %v8008_v58 = vpop.eup %8007  ;;  %v1350_v10 = vsub.f32 1.0, %v1349_v44  ;;  %vm1443_vm0 = vweird.f32 %v9278_v20  ;;  %v1447_v21 = vand.u32 2147483647, %v9278_v20  ;;  %8015 = vrcp.f32 %v9297_v13  ;;  %vm1340_vm13 = vmor %vm1338_vm2, %vm1339_vm1 }
 0x63b   :  { %v8010_v36 = vpop.eup %8009  ;;  %v1379_v27 = vmul.f32 %v8008_v58, %v9266_v26  ;;  %v1335_v45 = vsub.f32 1.0, %v1334_v11  ;;  %vm1384_vm14 = vweird.f32 %v8008_v58  ;;  %v1449_v34 = vand.u32 2147483648, %v9278_v20 }
 0x63c   :  { %v1351_v24 = vmul.f32 %v8004_v53, %v1350_v10  ;;  %v1364_v43 = vmul.f32 %v8010_v36, %v9269_v61  ;;  %vm1369_vm12 = vweird.f32 %v8010_v36  ;;  %vm1398_vm11 = vweird.f32 %v9280_v16 }
 0x63d   :  { %v1380_v29 = vsub.f32 1.0, %v1379_v27  ;;  %v1336_v1 = vmul.f32 %v8006_v42, %v1335_v45  ;;  %v8012_v51 = vpop.eup %8011  ;;  %v1404_v48 = vand.u32 2147483648, %v9280_v16  ;;  %8017 = vrcp.f32 %v9304_v62 }
 0x63e   :  { %v1352_v9 = vadd.f32 %v8004_v53, %v1351_v24  ;;  %v1365_v32 = vsub.f32 1.0, %v1364_v43  ;;  %v8014_v52 = vpop.eup %8013  ;;  %v1439_v44 = vmul.f32 %v8012_v51, %v9278_v20  ;;  %vm1444_vm1 = vweird.f32 %v8012_v51 }
 0x63f   :  { %v1381_v5 = vmul.f32 %v8008_v58, %v1380_v29  ;;  %v1337_v54 = vadd.f32 %v8006_v42, %v1336_v1  ;;  %v1394_v6 = vmul.f32 %v8014_v52, %v9280_v16  ;;  %vm1445_vm9 = vmor %vm1443_vm0, %vm1444_vm1 }
 0x640   :  { %v1356_v49 = vsel %vm1355_vm15, %v8004_v53, %v1352_v9  ;;  %v1366_v0 = vmul.f32 %v8010_v36, %v1365_v32  ;;  %vm1385_vm15 = vmor %vm1383_vm4, %vm1384_vm14  ;;  %v1440_v27 = vsub.f32 1.0, %v1439_v44  ;;  %vm1399_vm14 = vweird.f32 %v8014_v52 }
 0x641   :  { %v9323_v14 = vsel %vm9282_vm3, %v1360_v25, %v1356_v49  ;;  %v1382_v59 = vadd.f32 %v8008_v58, %v1381_v5  ;;  %v1341_v11 = vsel %vm1340_vm13, %v8006_v42, %v1337_v54  ;;  %vm1370_vm13 = vmor %vm1368_vm6, %vm1369_vm12  ;;  %v1395_v42 = vsub.f32 1.0, %v1394_v6  ;;  %v8016_v25 = vpop.eup %8015 }
 0x642   :  { %v1454_v53 = vmul.f32 2.0, %v9323_v14  ;;  %v9332_v8 = vsel %vm9289_vm5, %v1345_v30, %v1341_v11  ;;  %v1367_v10 = vadd.f32 %v8010_v36, %v1366_v0  ;;  %v1441_v7 = vmul.f32 %v8012_v51, %v1440_v27 }
 0x643   :  { %v1386_v45 = vsel %vm1385_vm15, %v8008_v58, %v1382_v59  ;;  %v1453_v4 = vmul.f32 2.0, %v9332_v8  ;;  %v1396_v1 = vmul.f32 %v8014_v52, %v1395_v42  ;;  %vm1448_vm12 = vcmp.eq.f32.partialorder %v1447_v21, 8.507059e+37  ;;  %v8018_v6 = vpop.eup %8017 }
 0x644   :  { %v7764_v24 = vadd.f32 -1.0, %v1454_v53  ;;  %v9339_v26 = vsel %vm9300_vm7, %v1390_v33, %v1386_v45  ;;  %v1371_v43 = vsel %vm1370_vm13, %v8010_v36, %v1367_v10  ;;  %v1442_v61 = vadd.f32 %v8012_v51, %v1441_v7 }
 0x645   :  { %v1456_v30 = vmul.f32 2.0, %v9339_v26  ;;  %v7763_v29 = vadd.f32 -1.0, %v1453_v4  ;;  %v9344_v58 = vsel %vm9307_vm10, %v1375_v50, %v1371_v43  ;;  %v1409_v9 = vmul.f32 %v8016_v25, %v9297_v13  ;;  %vm1400_vm10 = vmor %vm1398_vm11, %vm1399_vm14 }
 0x646   :  { %1511 = vrot.lane.b32.xlu0 %v7764_v24, %s8645_s0  ;;  %v1450_v36 = vor.u32 1.1754944e-38, %v1449_v34  ;;  %v1397_v33 = vadd.f32 %v8014_v52, %v1396_v1  ;;  %v1455_v50 = vmul.f32 2.0, %v9344_v58  ;;  %v1446_v32 = vsel %vm1445_vm9, %v8012_v51, %v1442_v61 }
 0x647   :  { %v7766_v2 = vadd.f32 -1.0, %v1456_v30  ;;  %1509 = vrot.lane.b32.xlu1 %v7763_v29, %s8645_s0  ;;  %v1402_v5 = vand.u32 2147483647, %v9280_v16  ;;  %v1410_v21 = vsub.f32 1.0, %v1409_v9  ;;  %v1405_v0 = vor.u32 1.1754944e-38, %v1404_v48 }
 0x648   :  { %v9356_v54 = vsel %vm1448_vm12, %v1450_v36, %v1446_v32  ;;  %v1401_v34 = vsel %vm1400_vm10, %v8014_v52, %v1397_v33  ;;  %v7765_v44 = vadd.f32 -1.0, %v1455_v50  ;;  %vm1414_vm2 = vweird.f32 %v8016_v25 }
 0x649   :  { %1515 = vrot.lane.b32.xlu2 %v7766_v2, %s8645_s0  ;;  %v1460_v20 = vmul.f32 2.0, %v9356_v54  ;;  %v1411_v49 = vmul.f32 %v8016_v25, %v1410_v21  ;;  %vm1403_vm0 = vcmp.eq.f32.partialorder %v1402_v5, 8.507059e+37  ;;  %v1419_v16 = vand.u32 2147483648, %v9297_v13 }
 0x64a   :  { %v9362_v59 = vsel %vm1403_vm0, %v1405_v0, %v1401_v34  ;;  %vm1413_vm11 = vweird.f32 %v9297_v13  ;;  %v1417_v52 = vand.u32 2147483647, %v9297_v13  ;;  %v1424_v10 = vmul.f32 %v8018_v6, %v9304_v62 }
 0x64b   :  { %v7770_v51 = vadd.f32 -1.0, %v1460_v20  ;;  %v1412_v11 = vadd.f32 %v8016_v25, %v1411_v49  ;;  %v1457_v53 = vmul.f32 2.0, %v9362_v59  ;;  %vm1415_vm3 = vmor %vm1413_vm11, %vm1414_vm2  ;;  %v1420_v4 = vor.u32 1.1754944e-38, %v1419_v16 }
 0x64c   :  { %v1425_v45 = vsub.f32 1.0, %v1424_v10  ;;  %vm1418_vm4 = vcmp.eq.f32.partialorder %v1417_v52, 8.507059e+37  ;;  %vm1429_vm5 = vweird.f32 %v8018_v6  ;;  %v1434_v30 = vand.u32 2147483648, %v9304_v62 }
 0x64d   :  { %v1416_v27 = vsel %vm1415_vm3, %v8016_v25, %v1412_v11  ;;  %v7767_v42 = vadd.f32 -1.0, %v1457_v53  ;;  %vm1428_vm6 = vweird.f32 %v9304_v62  ;;  %v1432_v13 = vand.u32 2147483647, %v9304_v62 }
 0x64e   :  { %1513 = vrot.lane.b32.xlu0 %v7765_v44, %s8645_s0  ;;  %v1426_v24 = vmul.f32 %v8018_v6, %v1425_v45  ;;  %v9371_v43 = vsel %vm1418_vm4, %v1420_v4, %v1416_v27  ;;  %vm1430_vm7 = vmor %vm1428_vm6, %vm1429_vm5  ;;  %v1435_v1 = vor.u32 1.1754944e-38, %v1434_v30  ;;  %v1479_v10 = vrot.slane %v9099_v39, 7 }
 0x64f   :  { %1523 = vrot.lane.b32.xlu1 %v7770_v51, %s8645_s0  ;;  %v1458_v29 = vmul.f32 2.0, %v9371_v43  ;;  %vm1433_vm8 = vcmp.eq.f32.partialorder %v1432_v13, 8.507059e+37  ;;  %v1478_v27 = vrot.slane %v9089_v41, 7  ;;  %v1481_v13 = vrot.slane %v9079_v19, 7 }
 0x650   :  { %v1427_v7 = vadd.f32 %v8018_v6, %v1426_v24  ;;  %v1495_v4 = vmul.f32 %v1479_v10, %v9344_v58  ;;  %v1477_v24 = vrot.slane %v9072_v63, 7  ;;  %v1483_v63 = vrot.slane %v9115_v35, 7 }
 0x651   :  { %v7768_v61 = vadd.f32 -1.0, %v1458_v29  ;;  %v1484_v35 = vrot.slane %v9121_v22, 7  ;;  %vm12320_vm15 = vcmask 1042434   ;;  %vm12321_vm13 = vcmask 1043459  }
 0x652   :  { %v1431_v25 = vsel %vm1430_vm7, %v8018_v6, %v1427_v7  ;;  %v1480_v7 = vrot.slane %v9082_v23, 7  ;;  %v1493_v39 = vmul.f32 %v1477_v24, %v9332_v8  ;;  %vm12322_vm1 = vmmov %vm12320_vm15  ;;  %vm12324_vm14 = vcmask 1044484  }
 0x653   :  { %v9378_v9 = vsel %vm1433_vm8, %v1435_v1, %v1431_v25  ;;  %v1497_v1 = vmul.f32 %v1481_v13, %v9362_v59  ;;  %vm12323_vm12 = vmmov %vm12321_vm13  ;;  %vm12325_vm9 = vcmask 1045509   ;;  %vm12326_vm10 = vcmask 1046534  }
 0x654   :  { %v1459_v2 = vmul.f32 2.0, %v9378_v9  ;;  %v1496_v41 = vmul.f32 %v1480_v7, %v9339_v26  ;;  %vm12327_vm0 = vmmov %vm12324_vm14  ;;  %vm12328_vm2 = vcmask 1047559   ;;  %vm1608_vm5 = vcmask 261121  }
 0x655   :  { %vm12329_vm11 = vmmov %vm12325_vm9  ;;  %vm1612_vm6 = vcmask 253952  }
 0x656   :  { %1517 = vrot.lane.b32.xlu0 %v7767_v42, %s8645_s0  ;;  %v7769_v36 = vadd.f32 -1.0, %v1459_v2  ;;  %v1494_v42 = vmul.f32 %v1478_v27, %v9323_v14  ;;  %vm12330_vm3 = vmmov %vm12326_vm10 }
 0x657   :  { %vm12331_vm4 = vmmov %vm12328_vm2 }
 0x65e   :  { %1519 = vrot.lane.b32.xlu0 %v7768_v61, %s8645_s0 }
 0x666   :  { %1521 = vrot.lane.b32.xlu0 %v7769_v36, %s8645_s0 }
 0x6a3   :  { %v1516_v32 = vpop.permute.xlu2 %1515 }
 0x6a4   :  { %v1536_v21 = vmul.f32 %v1516_v32, %v9339_v26 }
 0x6b8   :  { %v1512_v33 = vpop.permute.xlu0 %1511 }
 0x6b9   :  { %v1534_v48 = vmul.f32 %v1512_v33, %v9323_v14  ;;  %v1510_v50 = vpop.permute.xlu1 %1509 }
 0x6ba   :  { %v1533_v62 = vmul.f32 %v1510_v50, %v9332_v8  ;;  %v1499_v50 = vmul.f32 %v1483_v63, %v9378_v9 }
 0x6bb   :  { %1551 = vrot.lane.b32.xlu2 %v1534_v48, %s8646_s2 }
 0x6bc   :  { %1549 = vrot.lane.b32.xlu1 %v1533_v62, %s8646_s2 }
 0x6c0   :  { %v1514_v5 = vpop.permute.xlu0 %1513 }
 0x6c1   :  { %v1535_v20 = vmul.f32 %v1514_v5, %v9344_v58  ;;  %v1524_v0 = vpop.permute.xlu1 %1523 }
 0x6c2   :  { %v1540_v51 = vmul.f32 %v1524_v0, %v9356_v54 }
 0x6c3   :  { %1555 = vrot.lane.b32.xlu2 %v1536_v21, %s8646_s2  ;;  %1553 = vrot.lane.b32.xlu0 %v1535_v20, %s8646_s2  ;;  %v1482_v21 = vrot.slane %v9107_v55, 7 }
 0x6c8   :  { %v1518_v34 = vpop.permute.xlu0 %1517 }
 0x6c9   :  { %v1537_v49 = vmul.f32 %v1518_v34, %v9362_v59 }
 0x6cb   :  { %1557 = vrot.lane.b32.xlu0 %v1537_v49, %s8646_s2 }
 0x6d0   :  { %v1520_v44 = vpop.permute.xlu0 %1519 }
 0x6d1   :  { %v1538_v11 = vmul.f32 %v1520_v44, %v9371_v43 }
 0x6d3   :  { %1559 = vrot.lane.b32.xlu1 %v1538_v11, %s8646_s2  ;;  %1563 = vrot.lane.b32.xlu0 %v1540_v51, %s8646_s2  ;;  %v1500_v11 = vmul.f32 %v1484_v35, %v9356_v54 }
 0x6d8   :  { %v1522_v6 = vpop.permute.xlu0 %1521 }
 0x6d9   :  { %v1539_v16 = vmul.f32 %v1522_v6, %v9378_v9  ;;  %v1498_v6 = vmul.f32 %v1482_v21, %v9371_v43 }
 0x6db   :  { %1561 = vrot.lane.b32.xlu2 %v1539_v16, %s8646_s2 }
 0x715   :  { %v1552_v53 = vpop.permute.xlu2 %1551 }
 0x716   :  { %v9408_v25 = vadd.f32 %v1552_v53, %v1494_v42 }
 0x718   :  { %v1619_v19 = vmul.f32 %v9408_v25, %v9408_v25  ;;  %v1589_v32 = vrot.slane %v9408_v25, 7 }
 0x71a   :  { %v1634_v44 = vrot.slane %v1619_v19, 7 }
 0x71d   :  { %v1556_v45 = vpop.permute.xlu2 %1555 }
 0x71e   :  { %v9415_v36 = vadd.f32 %v1556_v45, %v1496_v41 }
 0x720   :  { %v1621_v20 = vmul.f32 %v9415_v36, %v9415_v36 }
 0x72e   :  { %v1550_v30 = vpop.permute.xlu1 %1549 }
 0x72f   :  { %v9413_v2 = vadd.f32 %v1550_v30, %v1493_v39 }
 0x731   :  { %v1618_v5 = vmul.f32 %v9413_v2, %v9413_v2  ;;  %v1590_v51 = vsel %vm12320_vm15, %v1589_v32, %v9413_v2 }
 0x733   :  { %v1635_v10 = vsel %vm12322_vm1, %v1634_v44, %v1618_v5  ;;  %v74_v44 = vld [vmem:[#allocation5 + $0x50] sm:$0xff] }
 0x735   :  { %v1554_v52 = vpop.permute.xlu0 %1553  ;;  %v1562_v48 = vpop.permute.xlu2 %1561 }
 0x736   :  { %v9405_v29 = vadd.f32 %v1554_v52, %v1495_v4  ;;  %v9433_v34 = vadd.f32 %v1562_v48, %v1499_v50  ;;  %v1593_v52 = vrot.slane %v9415_v36, 5  ;;  %v1638_v4 = vrot.slane %v1621_v20, 5  ;;  %v77_v20 = vld [vmem:[#allocation5 + $0x68] sm:$0xff] }
 0x737   :  { %1122 = vmatpush.msra.mxu3 %v77_v20 }
 0x738   :  { %v1620_v23 = vmul.f32 %v9405_v29, %v9405_v29  ;;  %v1591_v62 = vrot.slane %v9405_v29, 6  ;;  %v1624_v42 = vmul.f32 %v9433_v34, %v9433_v34 }
 0x73a   :  { %v1636_v49 = vrot.slane %v1620_v23, 6  ;;  %v1592_v53 = vsel %vm12321_vm13, %v1591_v62, %v1590_v51  ;;  %v1644_v62 = vrot.slane %v1624_v42, 2  ;;  %v9472_v51 = vld [vmem:[#allocation7 + $0x8] sm:$0xff] }
 0x73b   :  { %v1594_v41 = vsel %vm12324_vm14, %v1593_v52, %v1592_v53 }
 0x73c   :  { %v1637_v7 = vsel %vm12323_vm12, %v1636_v49, %v1635_v10  ;;  %v76_v49 = vld [vmem:[#allocation5 + $0x60] sm:$0xff] }
 0x73d   :  { %v1558_v61 = vpop.permute.xlu0 %1557  ;;  %v1639_v19 = vsel %vm12327_vm0, %v1638_v4, %v1637_v7  ;;  %1123 = vmatpush.msra.mxu3 %v76_v49 }
 0x73e   :  { %v9420_v33 = vadd.f32 %v1558_v61, %v1497_v1  ;;  %v1599_v61 = vrot.slane %v9433_v34, 2 }
 0x740   :  { %v1622_v0 = vmul.f32 %v9420_v33, %v9420_v33  ;;  %v1595_v22 = vrot.slane %v9420_v33, 4 }
 0x742   :  { %v1640_v24 = vrot.slane %v1622_v0, 4  ;;  %v1596_v1 = vsel %vm12325_vm9, %v1595_v22, %v1594_v41  ;;  %v75_v0 = vld [vmem:[#allocation5 + $0x58] sm:$0xff] }
 0x743   :  { %1124 = vmatpush.msra.mxu3 %v75_v0 }
 0x744   :  { %v1641_v50 = vsel %vm12329_vm11, %v1640_v24, %v1639_v19 }
 0x745   :  { %v1564_v55 = vpop.permute.xlu0 %1563  ;;  %v1560_v16 = vpop.permute.xlu1 %1559  ;;  %1125 = vmatpush.msra.mxu3 %v74_v44 }
 0x746   :  { %v9445_v27 = vadd.f32 %v1564_v55, %v1500_v11  ;;  %v9447_v45 = vadd.f32 %v1560_v16, %v1498_v6  ;;  %1126 = vmatmul.f32.vlgmr.msra.gmra.mxu3 %v8643_v15  ;;  %v9475_v11 = vperm.slane %v9472_v51, 0  ;;  %v1079_v6 = vpop.f32.mrf.mxu2 }
 0x747   :  { %2059 = vmatpush.msrb.mxu3 %v77_v20 }
 0x748   :  { %v1597_v30 = vrot.slane %v9447_v45, 3  ;;  %v1623_v13 = vmul.f32 %v9447_v45, %v9447_v45  ;;  %v1601_v39 = vrot.slane %v9445_v27, 1  ;;  %v1625_v35 = vmul.f32 %v9445_v27, %v9445_v27 }
 0x749   :  { %2060 = vmatpush.msrb.mxu3 %v76_v49  ;;  %v1080_v22 = vadd.f32 %v1079_v6, %v9475_v11 }
 0x74a   :  { %v1642_v63 = vrot.slane %v1623_v13, 3  ;;  %1604 = vrot.lane.b32.xlu0 %v1601_v39, %s8647_s28  ;;  %v1598_v23 = vsel %vm12326_vm10, %v1597_v30, %v1596_v1  ;;  %v1646_v21 = vrot.slane %v1625_v35, 1 }
 0x74b   :  { %v1600_v48 = vsel %vm12328_vm2, %v1599_v61, %v1598_v23  ;;  %2061 = vmatpush.msrb.mxu3 %v75_v0  ;;  %v1085_v55 = vmul.f32 %v1080_v22, %v1080_v22 }
 0x74c   :  { %1602 = vrot.lane.b32.xlu1 %v1600_v48, %s8647_s28  ;;  %v1643_v32 = vsel %vm12330_vm3, %v1642_v63, %v1641_v50 }
 0x74d   :  { %v1645_v5 = vsel %vm12331_vm4, %v1644_v62, %v1643_v32  ;;  %2062 = vmatpush.msrb.mxu3 %v74_v44  ;;  %vm12335_vm4 = vcmask 1042434  }
 0x74e   :  { %1647 = vrot.lane.b32.xlu2 %v1645_v5, %s8647_s28 }
 0x74f   :  { %2976 = vmatpush.msra.mxu3 %v77_v20 }
 0x751   :  { %2977 = vmatpush.msra.mxu3 %v76_v49  ;;  %v9489_v49 = vperm.slane %v9472_v51, 3 }
 0x753   :  { %2978 = vmatpush.msra.mxu3 %v75_v0  ;;  %12333 = vst [vmem:[#allocation15_spill] sm:$0xff] %v9489_v49 }
 0x754   :  { %1649 = vrot.lane.b32.xlu1 %v1646_v21, %s8647_s28  ;;  %v9485_v21 = vperm.slane %v9472_v51, 2 }
 0x755   :  { %2979 = vmatpush.msra.mxu3 %v74_v44  ;;  %v9493_v44 = vperm.slane %v9472_v51, 1 }
 0x756   :  { %12332 = vst [vmem:[#allocation14_spill] sm:$0xff] %v9485_v21 }
 0x757   :  { %12334 = vst [vmem:[#allocation16_spill] sm:$0xff] %v9493_v44 }
 0x774   :  { %1086 = vadd.xlane.f32.xlu0 %v1085_v55 }
 0x777   :  { %1082 = vadd.xlane.f32.xlu2 %v1080_v22 }
 0x7a8   :  { %v1648_v15 = vpop.permute.xlu2 %1647 }
 0x7a9   :  { %v1653_v16 = vsel %vm1608_vm5, %v1648_v15, 0.0 }
 0x7aa   :  { %1654 = vadd.xlane.f32.xlu2 %v1653_v16 }
 0x7bc   :  { %v1605_v53 = vpop.permute.xlu0 %1604 }
 0x7bd   :  { %v1613_v52 = vsel %vm1612_vm6, %v1605_v53, 0.0 }
 0x7be   :  { %v1603_v10 = vpop.permute.xlu1 %1602  ;;  %1614 = vadd.xlane.f32.xlu0 %v1613_v52 }
 0x7bf   :  { %v1609_v4 = vsel %vm1608_vm5, %v1603_v10, 0.0 }
 0x7c0   :  { %1610 = vadd.xlane.f32.xlu1 %v1609_v4 }
 0x7c6   :  { %v1650_v42 = vpop.permute.xlu1 %1649 }
 0x7c7   :  { %v1656_v24 = vsel %vm1612_vm6, %v1650_v42, 0.0 }
 0x7c8   :  { %1657 = vadd.xlane.f32.xlu1 %v1656_v24 }
 0x7c9   :  { %v1127_v53 = vpop.f32.mrf.mxu3 }
 0x7e7   :  { %v1087_v13 = vpop.xlane.xlu0 %1086 }
 0x7e8   :  { %v1088_v41 = vmul.f32 %v1087_v13, %v8731_v47 }
 0x7ea   :  { %v1083_v7 = vpop.xlane.xlu2 %1082 }
 0x7eb   :  { %v1084_v30 = vmul.f32 %v1083_v7, %v8731_v47 }
 0x7ed   :  { %v1089_v39 = vmul.f32 %v1084_v30, %v1084_v30  ;;  %v1091_v5 = vsub.f32 %v1080_v22, %v1084_v30 }
 0x7ef   :  { %v1090_v1 = vsub.f32 %v1088_v41, %v1089_v39 }
 0x7f1   :  { %v1092_v61 = vadd.f32 1e-05, %v1090_v1 }
 0x7f3   :  { %8019 = vrsqrt.f32 %v1092_v61  ;;  %vm1099_vm8 = vweird.f32 %v1092_v61 }
 0x7f9   :  { %v8020_v63 = vpop.eup %8019 }
 0x7fa   :  { %v1094_v23 = vmul.f32 %v8020_v63, %v1092_v61  ;;  %vm1100_vm7 = vweird.f32 %v8020_v63 }
 0x7fb   :  { %vm1101_vm15 = vmor %vm1099_vm8, %vm1100_vm7  ;;  %vm12336_vm7 = vcmask 1043459   ;;  %vm12337_vm8 = vcmask 1044484  }
 0x7fc   :  { %v1095_v19 = vmul.f32 %v8020_v63, %v1094_v23 }
 0x7fe   :  { %v1096_v48 = vmul.f32 0.5, %v1095_v19 }
 0x800   :  { %v1097_v50 = vsub.f32 1.5, %v1096_v48 }
 0x802   :  { %v1098_v62 = vmul.f32 %v8020_v63, %v1097_v50 }
 0x804   :  { %v1102_v32 = vsel %vm1101_vm15, %v8020_v63, %v1098_v62  ;;  %vm12338_vm15 = vcmask 1045509  }
 0x805   :  { %v1103_v35 = vmul.f32 %v1102_v32, %v1091_v5 }
 0x807   :  { %v1105_v20 = vmul.f32 %v9485_v21, %v1103_v35 }
 0x809   :  { %v1107_v0 = vadd.f32 %v9489_v49, %v1105_v20 }
 0x80b   :  { %v1109_v22 = vadd.f32 %v9493_v44, %v1107_v0 }
 0x80d   :  { %v1130_v24 = vadd.f32 %v1127_v53, %v1109_v22 }
 0x80f   :  { %v7752_v41 = vmul.f32 -1.442695, %v1130_v24 }
 0x81d   :  { %v1655_v6 = vpop.xlane.xlu2 %1654 }
 0x81e   :  { %v1659_v52 = vmul.f32 %v1655_v6, %v9050_v40 }
 0x831   :  { %v1615_v16 = vpop.xlane.xlu0 %1614 }
 0x832   :  { %v9503_v4 = vmul.f32 %v1615_v16, %v9050_v40 }
 0x833   :  { %v1611_v55 = vpop.xlane.xlu1 %1610 }
 0x834   :  { %v9496_v15 = vmul.f32 %v1611_v55, %v9050_v40  ;;  %v1662_v13 = vmul.f32 %v9503_v4, %v9503_v4 }
 0x836   :  { %v1661_v10 = vmul.f32 %v9496_v15, %v9496_v15  ;;  %v1667_v32 = vrot.slane %v9496_v15, 1  ;;  %v1668_v5 = vrot.slane %v9496_v15, 2  ;;  %v1672_v35 = vrot.slane %v9496_v15, 6 }
 0x837   :  { %v1670_v6 = vrot.slane %v9496_v15, 4  ;;  %v1682_v53 = vsub.f32 %v9413_v2, %v9496_v15 }
 0x838   :  { %v1663_v42 = vsub.f32 %v1659_v52, %v1661_v10  ;;  %v1683_v52 = vsub.f32 %v9408_v25, %v1667_v32  ;;  %v1684_v10 = vsub.f32 %v9405_v29, %v1668_v5 }
 0x83a   :  { %v1690_v7 = vadd.f32 1e-05, %v1663_v42  ;;  %v1669_v42 = vrot.slane %v9496_v15, 3 }
 0x83b   :  { %v1658_v30 = vpop.xlane.xlu1 %1657 }
 0x83c   :  { %8021 = vrsqrt.f32 %v1690_v7  ;;  %v1660_v39 = vmul.f32 %v1658_v30, %v9050_v40  ;;  %vm1698_vm1 = vweird.f32 %v1690_v7 }
 0x83d   :  { %8023 = vpow2.f32 %v7752_v41 }
 0x83e   :  { %v1664_v1 = vsub.f32 %v1660_v39, %v1662_v13  ;;  %v1688_v13 = vsub.f32 %v9433_v34, %v1672_v35  ;;  %v1686_v39 = vsub.f32 %v9420_v33, %v1670_v6  ;;  %v1685_v34 = vsub.f32 %v9415_v36, %v1669_v42 }
 0x840   :  { %v1691_v61 = vadd.f32 1e-05, %v1664_v1 }
 0x842   :  { %v8022_v63 = vpop.eup %8021  ;;  %8025 = vrsqrt.f32 %v1691_v61  ;;  %vm1708_vm9 = vweird.f32 %v1691_v61 }
 0x843   :  { %v1693_v23 = vmul.f32 %v8022_v63, %v1690_v7  ;;  %v8024_v48 = vpop.eup %8023  ;;  %vm1699_vm13 = vweird.f32 %v8022_v63 }
 0x844   :  { %v9512_v55 = vadd.f32 1.0, %v8024_v48  ;;  %vm1700_vm12 = vmor %vm1698_vm1, %vm1699_vm13  ;;  %vm12339_vm13 = vcmask 1046534   ;;  %vm12340_vm1 = vcmask 1047559  }
 0x845   :  { %v1694_v19 = vmul.f32 %v8022_v63, %v1693_v23 }
 0x846   :  { %8027 = vrcp.f32 %v9512_v55  ;;  %vm1140_vm2 = vweird.f32 %v9512_v55 }
 0x847   :  { %v1695_v50 = vmul.f32 0.5, %v1694_v19 }
 0x848   :  { %v8026_v62 = vpop.eup %8025 }
 0x849   :  { %v1703_v20 = vmul.f32 %v8026_v62, %v1691_v61  ;;  %v1696_v0 = vsub.f32 1.5, %v1695_v50  ;;  %vm1709_vm14 = vweird.f32 %v8026_v62 }
 0x84a   :  { %vm1710_vm10 = vmor %vm1708_vm9, %vm1709_vm14 }
 0x84b   :  { %v1704_v22 = vmul.f32 %v8026_v62, %v1703_v20  ;;  %v1697_v16 = vmul.f32 %v8022_v63, %v1696_v0  ;;  %v1673_v0 = vrot.slane %v9503_v4, 7  ;;  %vm12342_vm14 = vmmov %vm12336_vm7 }
 0x84c   :  { %v8028_v4 = vpop.eup %8027  ;;  %vm12343_vm9 = vmmov %vm12337_vm8 }
 0x84d   :  { %v1705_v24 = vmul.f32 0.5, %v1704_v22  ;;  %v1701_v30 = vsel %vm1700_vm12, %v8022_v63, %v1697_v16  ;;  %vm1141_vm0 = vweird.f32 %v8028_v4  ;;  %vm12341_vm12 = vmmov %vm12335_vm4 }
 0x84e   :  { %v1729_v41 = vmul.f32 %v1701_v30, %v1682_v53  ;;  %v1714_v1 = vrot.slane %v1701_v30, 1  ;;  %v1715_v23 = vrot.slane %v1701_v30, 2  ;;  %v1719_v7 = vrot.slane %v1701_v30, 6  ;;  %vm1142_vm11 = vmor %vm1140_vm2, %vm1141_vm0 }
 0x84f   :  { %v1706_v19 = vsub.f32 1.5, %v1705_v24  ;;  %v1717_v2 = vrot.slane %v1701_v30, 4  ;;  %v1716_v48 = vrot.slane %v1701_v30, 3  ;;  %v1671_v53 = vrot.slane %v9496_v15, 5  ;;  %vm12345_vm0 = vmmov %vm12339_vm13 }
 0x850   :  { %v1737_v25 = vmul.f32 %v1729_v41, %v9058_v38  ;;  %v1730_v50 = vmul.f32 %v1714_v1, %v1683_v52  ;;  %v1731_v29 = vmul.f32 %v1715_v23, %v1684_v10  ;;  %v1735_v32 = vmul.f32 %v1719_v7, %v1688_v13  ;;  %vm12346_vm2 = vmmov %vm12340_vm1 }
 0x851   :  { %v1707_v63 = vmul.f32 %v8026_v62, %v1706_v19  ;;  %v1733_v20 = vmul.f32 %v1717_v2, %v1686_v39  ;;  %v1732_v22 = vmul.f32 %v1716_v48, %v1685_v34  ;;  %v1718_v42 = vrot.slane %v1701_v30, 5 }
 0x852   :  { %v9525_v33 = vadd.f32 %v1737_v25, %v9068_v17  ;;  %v1738_v5 = vmul.f32 %v1730_v50, %v9058_v38  ;;  %v1739_v35 = vmul.f32 %v1731_v29, %v9058_v38  ;;  %v1743_v61 = vmul.f32 %v1735_v32, %v9058_v38 }
 0x853   :  { %v1711_v6 = vsel %vm1710_vm10, %v8026_v62, %v1707_v63  ;;  %v1741_v10 = vmul.f32 %v1733_v20, %v9058_v38  ;;  %v1740_v62 = vmul.f32 %v1732_v22, %v9058_v38  ;;  %v1689_v24 = vsub.f32 %v9445_v27, %v1673_v0  ;;  %vm12344_vm10 = vmmov %vm12338_vm15 }
 0x854   :  { %8029 = vtanh.f32 %v9525_v33  ;;  %v9532_v16 = vadd.f32 %v1738_v5, %v9068_v17  ;;  %v9535_v36 = vadd.f32 %v1739_v35, %v9068_v17  ;;  %v1720_v52 = vrot.slane %v1711_v6, 7 }
 0x855   :  { %v9545_v13 = vadd.f32 %v1743_v61, %v9068_v17  ;;  %v1687_v39 = vsub.f32 %v9447_v45, %v1671_v53  ;;  %v1136_v15 = vmul.f32 %v8028_v4, %v9512_v55  ;;  %v9550_v23 = vadd.f32 %v1741_v10, %v9068_v17 }
 0x856   :  { %8031 = vtanh.f32 %v9532_v16  ;;  %v1736_v1 = vmul.f32 %v1720_v52, %v1689_v24  ;;  %v9554_v7 = vadd.f32 %v1740_v62, %v9068_v17  ;;  %v1146_v35 = vand.u32 2147483648, %v9512_v55 }
 0x857   :  { %8033 = vtanh.f32 %v9535_v36  ;;  %v1734_v30 = vmul.f32 %v1718_v42, %v1687_v39  ;;  %v1137_v45 = vsub.f32 1.0, %v1136_v15  ;;  %v1144_v20 = vand.u32 2147483647, %v9512_v55 }
 0x858   :  { %8035 = vtanh.f32 %v9545_v13  ;;  %v1744_v2 = vmul.f32 %v1736_v1, %v9058_v38  ;;  %v1147_v6 = vor.u32 1.1754944e-38, %v1146_v35 }
 0x859   :  { %8037 = vtanh.f32 %v9550_v23  ;;  %v1742_v48 = vmul.f32 %v1734_v30, %v9058_v38  ;;  %v1138_v29 = vmul.f32 %v8028_v4, %v1137_v45  ;;  %vm1145_vm3 = vcmp.eq.f32.partialorder %v1144_v20, 8.507059e+37 }
 0x85a   :  { %v8030_v41 = vpop.eup %8029  ;;  %8039 = vtanh.f32 %v9554_v7  ;;  %v9564_v50 = vadd.f32 %v1744_v2, %v9068_v17 }
 0x85b   :  { %1769 = vrot.lane.b32.xlu1 %v8030_v41, %s8645_s0  ;;  %v9568_v32 = vadd.f32 %v1742_v48, %v9068_v17  ;;  %v1139_v5 = vadd.f32 %v8028_v4, %v1138_v29 }
 0x85c   :  { %v8032_v19 = vpop.eup %8031  ;;  %8041 = vtanh.f32 %v9564_v50 }
 0x85d   :  { %v8034_v27 = vpop.eup %8033  ;;  %1771 = vrot.lane.b32.xlu2 %v8032_v19, %s8645_s0  ;;  %8043 = vtanh.f32 %v9568_v32  ;;  %v1143_v0 = vsel %vm1142_vm11, %v8028_v4, %v1139_v5 }
 0x85e   :  { %1773 = vrot.lane.b32.xlu0 %v8034_v27, %s8645_s0  ;;  %v8036_v25 = vpop.eup %8035  ;;  %v9578_v53 = vsel %vm1145_vm3, %v1147_v6, %v1143_v0 }
 0x85f   :  { %v8038_v63 = vpop.eup %8037  ;;  %v1150_v52 = vmul.f32 2.0, %v9578_v53 }
 0x860   :  { %v8040_v34 = vpop.eup %8039 }
 0x861   :  { %v7753_v10 = vadd.f32 -1.0, %v1150_v52 }
 0x862   :  { %v8042_v22 = vpop.eup %8041 }
 0x863   :  { %1781 = vrot.lane.b32.xlu1 %v8036_v25, %s8645_s0  ;;  %v8044_v61 = vpop.eup %8043 }
 0x865   :  { %1777 = vrot.lane.b32.xlu2 %v8038_v63, %s8645_s0 }
 0x866   :  { %1775 = vrot.lane.b32.xlu0 %v8040_v34, %s8645_s0 }
 0x86d   :  { %1783 = vrot.lane.b32.xlu2 %v8042_v22, %s8645_s0 }
 0x86e   :  { %1779 = vrot.lane.b32.xlu0 %v8044_v61, %s8645_s0 }
 0x876   :  { %1154 = vrot.lane.b32.xlu0 %v7753_v10, %s8645_s0 }
 0x8b7   :  { %v1772_v62 = vpop.permute.xlu2 %1771 }
 0x8b8   :  { %v9595_v27 = vmul.f32 %v1772_v62, %v9323_v14 }
 0x8ba   :  { %v1809_v48 = vrot.slane %v9595_v27, 7  ;;  %v1837_v20 = vmul.f32 %v9595_v27, %v9595_v27 }
 0x8bc   :  { %v1852_v62 = vrot.slane %v1837_v20, 7 }
 0x8bf   :  { %v1778_v42 = vpop.permute.xlu2 %1777 }
 0x8c7   :  { %v1784_v55 = vpop.permute.xlu2 %1783 }
 0x8c8   :  { %v9584_v4 = vmul.f32 %v1784_v55, %v9356_v54 }
 0x8ca   :  { %v1821_v24 = vrot.slane %v9584_v4, 1  ;;  %v1843_v39 = vmul.f32 %v9584_v4, %v9584_v4 }
 0x8cc   :  { %1824 = vrot.lane.b32.xlu0 %v1821_v24, %s8646_s2  ;;  %v1864_v41 = vrot.slane %v1843_v39, 1 }
 0x8cd   :  { %v1770_v1 = vpop.permute.xlu1 %1769 }
 0x8ce   :  { %1867 = vrot.lane.b32.xlu1 %v1864_v41, %s8646_s2  ;;  %v9601_v45 = vmul.f32 %v1770_v1, %v9332_v8 }
 0x8d0   :  { %v1774_v15 = vpop.permute.xlu0 %1773  ;;  %v1810_v14 = vsel %vm12335_vm4, %v1809_v48, %v9601_v45  ;;  %v1836_v22 = vmul.f32 %v9601_v45, %v9601_v45 }
 0x8d1   :  { %v9592_v30 = vmul.f32 %v1774_v15, %v9344_v58  ;;  %v9607_v58 = vmul.f32 %v1778_v42, %v9362_v59 }
 0x8d2   :  { %v1853_v41 = vsel %vm12341_vm12, %v1852_v62, %v1836_v22 }
 0x8d3   :  { %v1811_v2 = vrot.slane %v9592_v30, 6  ;;  %v1815_v35 = vrot.slane %v9607_v58, 4  ;;  %v1838_v59 = vmul.f32 %v9592_v30, %v9592_v30  ;;  %v1840_v24 = vmul.f32 %v9607_v58, %v9607_v58 }
 0x8d5   :  { %v1782_v25 = vpop.permute.xlu1 %1781  ;;  %v1812_v8 = vsel %vm12336_vm7, %v1811_v2, %v1810_v14  ;;  %v1854_v52 = vrot.slane %v1838_v59, 6  ;;  %v1858_v48 = vrot.slane %v1840_v24, 4 }
 0x8d6   :  { %v9612_v63 = vmul.f32 %v1782_v25, %v9378_v9 }
 0x8d7   :  { %v1855_v1 = vsel %vm12342_vm14, %v1854_v52, %v1853_v41 }
 0x8d8   :  { %v1776_v19 = vpop.permute.xlu0 %1775  ;;  %v1842_v25 = vmul.f32 %v9612_v63, %v9612_v63 }
 0x8d9   :  { %v9598_v54 = vmul.f32 %v1776_v19, %v9339_v26 }
 0x8db   :  { %v1813_v29 = vrot.slane %v9598_v54, 5  ;;  %v1839_v9 = vmul.f32 %v9598_v54, %v9598_v54 }
 0x8dd   :  { %v1814_v5 = vsel %vm12337_vm8, %v1813_v29, %v1812_v8  ;;  %v1856_v42 = vrot.slane %v1839_v9, 5 }
 0x8de   :  { %v1816_v6 = vsel %vm12338_vm15, %v1815_v35, %v1814_v5 }
 0x8df   :  { %v1857_v2 = vsel %vm12343_vm9, %v1856_v42, %v1855_v1 }
 0x8e0   :  { %v1780_v26 = vpop.permute.xlu0 %1779  ;;  %v1859_v29 = vsel %vm12344_vm10, %v1858_v48, %v1857_v2 }
 0x8e1   :  { %v9616_v34 = vmul.f32 %v1780_v26, %v9371_v43  ;;  %v1819_v43 = vrot.slane %v9612_v63, 2  ;;  %v1862_v26 = vrot.slane %v1842_v25, 2 }
 0x8e3   :  { %v1817_v0 = vrot.slane %v9616_v34, 3  ;;  %v1841_v55 = vmul.f32 %v9616_v34, %v9616_v34 }
 0x8e5   :  { %v1818_v61 = vsel %vm12339_vm13, %v1817_v0, %v1816_v6  ;;  %v1860_v19 = vrot.slane %v1841_v55, 3  ;;  %v1152_v0 = vmul.f32 0.0, %v9578_v53  ;;  %vm12349_vm13 = vcmask 1041409  }
 0x8e6   :  { %v1820_v10 = vsel %vm12340_vm1, %v1819_v43, %v1818_v61  ;;  %vm12350_vm1 = vmmov %vm12341_vm12 }
 0x8e7   :  { %1822 = vrot.lane.b32.xlu1 %v1820_v10, %s8646_s2  ;;  %v1861_v14 = vsel %vm12345_vm0, %v1860_v19, %v1859_v29  ;;  %vm12351_vm12 = vmmov %vm12342_vm14 }
 0x8e8   :  { %v1155_v39 = vpop.permute.xlu0 %1154  ;;  %v1863_v8 = vsel %vm12346_vm2, %v1862_v26, %v1861_v14  ;;  %v1201_v26 = vperm.slane %v9472_v51, 5  ;;  %vm12352_vm14 = vmmov %vm12343_vm9 }
 0x8e9   :  { %v1157_v15 = vmul.f32 %v1155_v39, %v9578_v53  ;;  %vm12353_vm9 = vmmov %vm12344_vm10 }
 0x8ea   :  { %vm12354_vm10 = vmmov %vm12345_vm0 }
 0x8eb   :  { %1159 = vrot.lane.b32.xlu2 %v1157_v15, %s8646_s2  ;;  %vm12355_vm0 = vmmov %vm12346_vm2 }
 0x8f3   :  { %1865 = vrot.lane.b32.xlu2 %v1863_v8, %s8646_s2  ;;  %v1195_v8 = vperm.slane %v9472_v51, 4 }
 0x93e   :  { %v1825_v5 = vpop.permute.xlu0 %1824 }
 0x93f   :  { %v1831_v35 = vsel %vm1612_vm6, %v1825_v5, 0.0 }
 0x940   :  { %1832 = vadd.xlane.f32.xlu2 %v1831_v35  ;;  %v1868_v6 = vpop.permute.xlu1 %1867 }
 0x941   :  { %v1874_v10 = vsel %vm1612_vm6, %v1868_v6, 0.0 }
 0x945   :  { %v1160_v59 = vpop.permute.xlu2 %1159 }
 0x946   :  { %v9652_v43 = vadd.f32 %v1160_v59, %v1152_v0 }
 0x948   :  { %v1171_v22 = vmul.f32 %v9652_v43, %v9652_v43 }
 0x94d   :  { %v1866_v20 = vpop.permute.xlu2 %1865 }
 0x94e   :  { %v1871_v9 = vsel %vm1608_vm5, %v1866_v20, 0.0 }
 0x94f   :  { %1872 = vadd.xlane.f32.xlu1 %v1871_v9 }
 0x958   :  { %1173 = vrot.lane.b32.xlu2 %v1171_v22, %s8647_s28 }
 0x959   :  { %v1823_v61 = vpop.permute.xlu1 %1822 }
 0x95a   :  { %v1828_v52 = vsel %vm1608_vm5, %v1823_v61, 0.0  ;;  %vm12347_vm5 = vcmask 261120  }
 0x95b   :  { %1829 = vadd.xlane.f32.xlu0 %v1828_v52  ;;  %vm12348_vm6 = vmmov %vm12347_vm5 }
 0x960   :  { %1197 = vrot.lane.b32.xlu2 %v1195_v8, %s8646_s2 }
 0x963   :  { %1875 = vadd.xlane.f32.xlu0 %v1874_v10 }
 0x968   :  { %1164 = vrot.lane.b32.xlu1 %v9652_v43, %s8647_s28 }
 0x970   :  { %1203 = vrot.lane.b32.xlu1 %v1201_v26, %s8646_s2 }
 0x9b3   :  { %v1833_v24 = vpop.xlane.xlu2 %1832 }
 0x9b4   :  { %v1835_v15 = vmul.f32 %v1833_v24, %v9050_v40 }
 0x9b6   :  { %v1880_v48 = vmul.f32 %v1835_v15, %v1835_v15  ;;  %v1891_v6 = vrot.slane %v1835_v15, 7 }
 0x9b8   :  { %v1907_v15 = vsub.f32 %v9584_v4, %v1891_v6 }
 0x9bb   :  { %v1174_v9 = vpop.permute.xlu2 %1173 }
 0x9bc   :  { %v1176_v61 = vsel %vm12348_vm6, %v1174_v9, 0.0 }
 0x9c2   :  { %v1873_v62 = vpop.xlane.xlu1 %1872 }
 0x9c3   :  { %v1877_v39 = vmul.f32 %v1873_v62, %v9050_v40 }
 0x9ce   :  { %v1830_v42 = vpop.xlane.xlu0 %1829 }
 0x9cf   :  { %v9662_v55 = vmul.f32 %v1830_v42, %v9050_v40 }
 0x9d1   :  { %v1879_v41 = vmul.f32 %v9662_v55, %v9662_v55  ;;  %v1885_v22 = vrot.slane %v9662_v55, 1  ;;  %v1886_v52 = vrot.slane %v9662_v55, 2  ;;  %v1887_v42 = vrot.slane %v9662_v55, 3 }
 0x9d2   :  { %v1888_v24 = vrot.slane %v9662_v55, 4 }
 0x9d3   :  { %v1881_v1 = vsub.f32 %v1877_v39, %v1879_v41  ;;  %v1889_v39 = vrot.slane %v9662_v55, 5  ;;  %v1890_v41 = vrot.slane %v9662_v55, 6  ;;  %v1903_v8 = vsub.f32 %v9598_v54, %v1887_v42 }
 0x9d5   :  { %v1908_v19 = vadd.f32 1e-05, %v1881_v1  ;;  %v1906_v9 = vsub.f32 %v9612_v63, %v1890_v41 }
 0x9d6   :  { %v1876_v2 = vpop.xlane.xlu0 %1875 }
 0x9d7   :  { %v1878_v25 = vmul.f32 %v1876_v2, %v9050_v40  ;;  %8045 = vrsqrt.f32 %v1908_v19  ;;  %vm1916_vm3 = vweird.f32 %v1908_v19 }
 0x9d9   :  { %v1882_v29 = vsub.f32 %v1878_v25, %v1880_v48  ;;  %v1900_v48 = vsub.f32 %v9601_v45, %v9662_v55  ;;  %v1901_v25 = vsub.f32 %v9595_v27, %v1885_v22 }
 0x9da   :  { %v1165_v14 = vpop.permute.xlu1 %1164 }
 0x9db   :  { %v1909_v5 = vadd.f32 1e-05, %v1882_v29  ;;  %v1167_v35 = vsel %vm12347_vm5, %v1165_v14, 0.0  ;;  %v1902_v14 = vsub.f32 %v9592_v30, %v1886_v52 }
 0x9dc   :  { %1168 = vadd.xlane.f32.xlu0 %v1167_v35  ;;  %v1904_v35 = vsub.f32 %v9607_v58, %v1888_v24 }
 0x9dd   :  { %v8046_v59 = vpop.eup %8045  ;;  %8047 = vrsqrt.f32 %v1909_v5  ;;  %vm1926_vm7 = vweird.f32 %v1909_v5 }
 0x9de   :  { %v1911_v20 = vmul.f32 %v8046_v59, %v1908_v19  ;;  %vm1917_vm11 = vweird.f32 %v8046_v59 }
 0x9df   :  { %vm1918_vm4 = vmor %vm1916_vm3, %vm1917_vm11 }
 0x9e0   :  { %v1912_v0 = vmul.f32 %v8046_v59, %v1911_v20  ;;  %v1905_v20 = vsub.f32 %v9616_v34, %v1889_v39  ;;  %vm12356_vm11 = vmmov %vm12348_vm6 }
 0x9e2   :  { %v1913_v10 = vmul.f32 0.5, %v1912_v0 }
 0x9e3   :  { %v8048_v62 = vpop.eup %8047 }
 0x9e4   :  { %v1921_v1 = vmul.f32 %v8048_v62, %v1909_v5  ;;  %1177 = vadd.xlane.f32.xlu0 %v1176_v61  ;;  %v1914_v2 = vsub.f32 1.5, %v1913_v10  ;;  %vm1927_vm8 = vweird.f32 %v8048_v62 }
 0x9e5   :  { %vm1928_vm15 = vmor %vm1926_vm7, %vm1927_vm8 }
 0x9e6   :  { %v1922_v29 = vmul.f32 %v8048_v62, %v1921_v1  ;;  %v1915_v26 = vmul.f32 %v8046_v59, %v1914_v2 }
 0x9e8   :  { %v1923_v4 = vmul.f32 0.5, %v1922_v29  ;;  %v1919_v45 = vsel %vm1918_vm4, %v8046_v59, %v1915_v26 }
 0x9e9   :  { %v1932_v55 = vrot.slane %v1919_v45, 1  ;;  %v1933_v27 = vrot.slane %v1919_v45, 2  ;;  %v1934_v0 = vrot.slane %v1919_v45, 3  ;;  %v1935_v6 = vrot.slane %v1919_v45, 4 }
 0x9ea   :  { %v1924_v30 = vsub.f32 1.5, %v1923_v4  ;;  %v1936_v22 = vrot.slane %v1919_v45, 5  ;;  %v1937_v19 = vrot.slane %v1919_v45, 6  ;;  %v1947_v61 = vmul.f32 %v1919_v45, %v1900_v48 }
 0x9eb   :  { %v1948_v54 = vmul.f32 %v1932_v55, %v1901_v25  ;;  %v1949_v52 = vmul.f32 %v1933_v27, %v1902_v14  ;;  %v1950_v58 = vmul.f32 %v1934_v0, %v1903_v8  ;;  %v1951_v10 = vmul.f32 %v1935_v6, %v1904_v35 }
 0x9ec   :  { %v1925_v34 = vmul.f32 %v8048_v62, %v1924_v30  ;;  %v1952_v42 = vmul.f32 %v1936_v22, %v1905_v20  ;;  %v1953_v63 = vmul.f32 %v1937_v19, %v1906_v9  ;;  %v1955_v24 = vmul.f32 %v1947_v61, %v9211_v46 }
 0x9ed   :  { %v1956_v59 = vmul.f32 %v1948_v54, %v9211_v46  ;;  %v1957_v39 = vmul.f32 %v1949_v52, %v9211_v46  ;;  %v1958_v41 = vmul.f32 %v1950_v58, %v9211_v46  ;;  %v1959_v1 = vmul.f32 %v1951_v10, %v9211_v46 }
 0x9ee   :  { %v1929_v2 = vsel %vm1928_vm15, %v8048_v62, %v1925_v34  ;;  %v1960_v48 = vmul.f32 %v1952_v42, %v9211_v46  ;;  %v1961_v25 = vmul.f32 %v1953_v63, %v9211_v46  ;;  %v1963_v29 = vadd.f32 %v1955_v24, %v9229_v18 }
 0x9ef   :  { %v1938_v14 = vrot.slane %v1929_v2, 7  ;;  %v1964_v26 = vadd.f32 %v1956_v59, %v9229_v18  ;;  %v1965_v5 = vadd.f32 %v1957_v39, %v9229_v18  ;;  %v1966_v8 = vadd.f32 %v1958_v41, %v9229_v18 }
 0x9f0   :  { %v1967_v35 = vadd.f32 %v1959_v1, %v9229_v18  ;;  %v1968_v20 = vadd.f32 %v1960_v48, %v9229_v18  ;;  %v1979_v9 = vrot.slane %v1963_v29, 1  ;;  %v1969_v62 = vadd.f32 %v1961_v25, %v9229_v18 }
 0x9f1   :  { %v1954_v4 = vmul.f32 %v1938_v14, %v1907_v15  ;;  %v1981_v45 = vrot.slane %v1965_v5, 7  ;;  %v1983_v55 = vrot.slane %v1966_v8, 6 }
 0x9f2   :  { %v1980_v27 = vsel %vm12349_vm13, %v1964_v26, %v1979_v9  ;;  %v1985_v30 = vrot.slane %v1967_v35, 5  ;;  %v1987_v19 = vrot.slane %v1968_v20, 4  ;;  %v1989_v52 = vrot.slane %v1969_v62, 3  ;;  %v8480_v35 = vld [vmem:[#allocation5 + $0x48] sm:$0xff] }
 0x9f3   :  { %v1962_v0 = vmul.f32 %v1954_v4, %v9211_v46  ;;  %v1982_v6 = vsel %vm12350_vm1, %v1981_v45, %v1980_v27  ;;  %v8481_v20 = vld [vmem:[#allocation5 + $0x28] sm:$0xff]  ;;  %v9721_v4 = vpop.permute.xlu2 %1197  ;;  %v8482_v45 = vld [vmem:[#allocation5 + $0x40] sm:$0xff]  ;;  %v9723_v27 = vpop.permute.xlu1 %1203 }
 0x9f4   :  { %v1984_v22 = vsel %vm12351_vm12, %v1983_v55, %v1982_v6  ;;  %12357 = vst [vmem:[#allocation17_spill] sm:$0xff] %v9721_v4  ;;  %v8483_v55 = vld [vmem:[#allocation5 + $0x20] sm:$0xff]  ;;  %v8484_v6 = vld [vmem:[#allocation5 + $0x38] sm:$0xff] }
 0x9f5   :  { %v1970_v61 = vadd.f32 %v1962_v0, %v9229_v18  ;;  %v1986_v54 = vsel %vm12352_vm14, %v1985_v30, %v1984_v22  ;;  %12358 = vst [vmem:[#allocation18_spill] sm:$0xff] %v9723_v27  ;;  %v8486_v22 = vld [vmem:[#allocation5 + $0x30] sm:$0xff] }
 0x9f6   :  { %v1988_v15 = vsel %vm12353_vm9, %v1987_v19, %v1986_v54  ;;  %v8487_v19 = vld [vmem:[#allocation5 + $0x10] sm:$0xff] }
 0x9f7   :  { %v1990_v58 = vsel %vm12354_vm10, %v1989_v52, %v1988_v15  ;;  %v1991_v10 = vrot.slane %v1970_v61, 2 }
 0x9f9   :  { %v1992_v34 = vsel %vm12355_vm0, %v1991_v10, %v1990_v58  ;;  %v1245_v58 = vperm.slane %v9472_v51, 6  ;;  %v1251_v10 = vperm.slane %v9472_v51, 7 }
 0x9fa   :  { %1993 = vrot.lane.b32.xlu0 %v1992_v34, %s8646_s2 }
 0xa4f   :  { %v1169_v42 = vpop.xlane.xlu0 %1168 }
 0xa50   :  { %v1170_v63 = vmul.f32 %v1169_v42, %v9050_v40 }
 0xa52   :  { %v1180_v59 = vmul.f32 %v1170_v63, %v1170_v63  ;;  %v1182_v8 = vsub.f32 %v9652_v43, %v1170_v63  ;;  %v8485_v43 = vld [vmem:[#allocation5 + $0x18] sm:$0xff] }
 0xa57   :  { %v1178_v24 = vpop.xlane.xlu0 %1177 }
 0xa58   :  { %v1179_v39 = vmul.f32 %v1178_v24, %v9050_v40 }
 0xa5a   :  { %v1181_v41 = vsub.f32 %v1179_v39, %v1180_v59 }
 0xa5c   :  { %v1183_v1 = vadd.f32 1e-05, %v1181_v41 }
 0xa5e   :  { %8049 = vrsqrt.f32 %v1183_v1  ;;  %vm1190_vm5 = vweird.f32 %v1183_v1 }
 0xa64   :  { %v8050_v2 = vpop.eup %8049 }
 0xa65   :  { %v1185_v48 = vmul.f32 %v8050_v2, %v1183_v1  ;;  %vm1191_vm2 = vweird.f32 %v8050_v2 }
 0xa66   :  { %vm1192_vm3 = vmor %vm1190_vm5, %vm1191_vm2 }
 0xa67   :  { %v1186_v25 = vmul.f32 %v8050_v2, %v1185_v48  ;;  %vm12359_vm5 = vmmov %vm12348_vm6 }
 0xa69   :  { %v1187_v29 = vmul.f32 0.5, %v1186_v25 }
 0xa6b   :  { %v1188_v14 = vsub.f32 1.5, %v1187_v29 }
 0xa6c   :  { %v1994_v26 = vpop.permute.xlu0 %1993 }
 0xa6d   :  { %v1189_v5 = vmul.f32 %v8050_v2, %v1188_v14  ;;  %7771 = vmatmul.msk.f32.vlgmr.msrb.gmra.mxu2 %vm12348_vm6, %v1994_v26  ;;  %7775 = vmatmul.msk.f32.vlgmr.msra.gmra.mxu1 %vm12356_vm11, %v1994_v26 }
 0xa6e   :  { %3843 = vmatpush.msrb.mxu2 %v8480_v35  ;;  %4020 = vmatpush.msra.mxu1 %v8481_v20 }
 0xa6f   :  { %v1193_v9 = vsel %vm1192_vm3, %v8050_v2, %v1189_v5 }
 0xa70   :  { %v1194_v62 = vmul.f32 %v1193_v9, %v1182_v8  ;;  %3844 = vmatpush.msrb.mxu2 %v8482_v45  ;;  %4021 = vmatpush.msra.mxu1 %v8483_v55 }
 0xa72   :  { %v1200_v0 = vmul.f32 %v9721_v4, %v1194_v62  ;;  %3845 = vmatpush.msrb.mxu2 %v8484_v6  ;;  %4022 = vmatpush.msra.mxu1 %v8485_v43 }
 0xa74   :  { %v9727_v30 = vadd.f32 %v9723_v27, %v1200_v0  ;;  %3846 = vmatpush.msrb.mxu2 %v8486_v22  ;;  %4023 = vmatpush.msra.mxu1 %v8487_v19 }
 0xa76   :  { %8051 = vtanh.f32 %v9727_v30 }
 0xa7c   :  { %v8052_v61 = vpop.eup %8051 }
 0xa7d   :  { %1209 = vrot.lane.b32.xlu2 %v8052_v61, %s8645_s0 }
 0xad7   :  { %v1210_v54 = vpop.permute.xlu2 %1209 }
 0xad8   :  { %v9732_v52 = vmul.f32 %v1210_v54, %v9578_v53 }
 0xada   :  { %1214 = vrot.lane.b32.xlu1 %v9732_v52, %s8646_s2  ;;  %v1221_v15 = vmul.f32 %v9732_v52, %v9732_v52 }
 0xadc   :  { %1223 = vrot.lane.b32.xlu2 %v1221_v15, %s8646_s2 }
 0xae4   :  { %1247 = vrot.lane.b32.xlu2 %v1245_v58, %s8647_s28 }
 0xaea   :  { %v9742_v34 = vpop.f32.mrf.mxu1 }
 0xaeb   :  { %v2195_v42 = vrot.slane %v9742_v34, 6  ;;  %v2196_v53 = vrot.slane %v9742_v34, 7  ;;  %v2212_v63 = vadd.f32 %v9742_v34, %v8811_v28 }
 0xaec   :  { %1253 = vrot.lane.b32.xlu2 %v1251_v10, %s8647_s28 }
 0xaed   :  { %v2210_v24 = vadd.f32 %v2195_v42, %v8759_v37  ;;  %v2211_v59 = vadd.f32 %v2196_v53, %v8776_v57  ;;  %v7778_v39 = vmul.f32 -1.442695, %v2212_v63 }
 0xaef   :  { %v7776_v41 = vmul.f32 -1.442695, %v2210_v24  ;;  %v7777_v1 = vmul.f32 -1.442695, %v2211_v59  ;;  %8053 = vpow2.f32 %v7778_v39 }
 0xaf1   :  { %8055 = vpow2.f32 %v7776_v41 }
 0xaf2   :  { %8057 = vpow2.f32 %v7777_v1  ;;  %v2198_v1 = vrot.slane %v9742_v34, 2 }
 0xaf5   :  { %v8054_v51 = vpop.eup %8053 }
 0xaf6   :  { %v2244_v48 = vadd.f32 1.0, %v8054_v51 }
 0xaf7   :  { %v8056_v2 = vpop.eup %8055 }
 0xaf8   :  { %v8058_v25 = vpop.eup %8057  ;;  %v2242_v29 = vadd.f32 1.0, %v8056_v2  ;;  %8059 = vrcp.f32 %v2244_v48  ;;  %v2291_v62 = vand.u32 2147483648, %v2244_v48  ;;  %v2289_v0 = vand.u32 2147483647, %v2244_v48 }
 0xaf9   :  { %v2243_v14 = vadd.f32 1.0, %v8058_v25  ;;  %vm2285_vm7 = vweird.f32 %v2244_v48 }
 0xafa   :  { %8061 = vrcp.f32 %v2242_v29  ;;  %v2292_v19 = vor.u32 1.1754944e-38, %v2291_v62  ;;  %vm2290_vm13 = vcmp.eq.f32.partialorder %v2289_v0, 8.507059e+37  ;;  %v2261_v2 = vand.u32 2147483648, %v2242_v29 }
 0xafb   :  { %8063 = vrcp.f32 %v2243_v14  ;;  %v2276_v54 = vand.u32 2147483648, %v2243_v14  ;;  %v2274_v58 = vand.u32 2147483647, %v2243_v14  ;;  %vm2270_vm1 = vweird.f32 %v2243_v14 }
 0xafc   :  { %vm2255_vm10 = vweird.f32 %v2242_v29  ;;  %v2259_v25 = vand.u32 2147483647, %v2242_v29 }
 0xafd   :  { %v2277_v59 = vor.u32 1.1754944e-38, %v2276_v54  ;;  %vm2275_vm14 = vcmp.eq.f32.partialorder %v2274_v58, 8.507059e+37 }
 0xafe   :  { %v8060_v26 = vpop.eup %8059  ;;  %vm2260_vm2 = vcmp.eq.f32.partialorder %v2259_v25, 8.507059e+37 }
 0xaff   :  { %v2281_v8 = vmul.f32 %v8060_v26, %v2244_v48  ;;  %vm2286_vm4 = vweird.f32 %v8060_v26 }
 0xb00   :  { %v8062_v5 = vpop.eup %8061  ;;  %vm2287_vm8 = vmor %vm2285_vm7, %vm2286_vm4 }
 0xb01   :  { %v8064_v35 = vpop.eup %8063  ;;  %v2282_v20 = vsub.f32 1.0, %v2281_v8  ;;  %v2251_v9 = vmul.f32 %v8062_v5, %v2242_v29  ;;  %vm2256_vm9 = vweird.f32 %v8062_v5  ;;  %v2262_v8 = vor.u32 1.1754944e-38, %v2261_v2 }
 0xb02   :  { %v2266_v45 = vmul.f32 %v8064_v35, %v2243_v14  ;;  %vm2271_vm15 = vweird.f32 %v8064_v35  ;;  %vm2257_vm0 = vmor %vm2255_vm10, %vm2256_vm9  ;;  %v2214_v14 = vadd.f32 %v2198_v1, %v8875_v56 }
 0xb03   :  { %v2283_v55 = vmul.f32 %v8060_v26, %v2282_v20  ;;  %v2252_v22 = vsub.f32 1.0, %v2251_v9  ;;  %vm2272_vm12 = vmor %vm2270_vm1, %vm2271_vm15  ;;  %v2201_v9 = vrot.slane %v9742_v34, 5 }
 0xb04   :  { %v2267_v6 = vsub.f32 1.0, %v2266_v45  ;;  %v7780_v62 = vmul.f32 -1.442695, %v2214_v14  ;;  %vm12360_vm1 = vmmov %vm12359_vm5 }
 0xb05   :  { %v2284_v43 = vadd.f32 %v8060_v26, %v2283_v55  ;;  %v2253_v63 = vmul.f32 %v8062_v5, %v2252_v22  ;;  %v2217_v55 = vadd.f32 %v2201_v9, %v8941_v3  ;;  %v2197_v22 = vrot.slane %v9742_v34, 1 }
 0xb06   :  { %v2268_v61 = vmul.f32 %v8064_v35, %v2267_v6  ;;  %8065 = vpow2.f32 %v7780_v62 }
 0xb07   :  { %v2288_v15 = vsel %vm2287_vm8, %v8060_v26, %v2284_v43  ;;  %v2254_v51 = vadd.f32 %v8062_v5, %v2253_v63  ;;  %v7783_v0 = vmul.f32 -1.442695, %v2217_v55  ;;  %v2213_v54 = vadd.f32 %v2197_v22, %v8839_v12 }
 0xb08   :  { %v9751_v10 = vsel %vm2290_vm13, %v2292_v19, %v2288_v15  ;;  %v2269_v42 = vadd.f32 %v8064_v35, %v2268_v61 }
 0xb09   :  { %v2372_v53 = vmul.f32 2.0, %v9751_v10  ;;  %v2258_v26 = vsel %vm2257_vm0, %v8062_v5, %v2254_v51  ;;  %8067 = vpow2.f32 %v7783_v0  ;;  %v7779_v58 = vmul.f32 -1.442695, %v2213_v54 }
 0xb0a   :  { %v2273_v24 = vsel %vm2272_vm12, %v8064_v35, %v2269_v42  ;;  %v9760_v20 = vsel %vm2260_vm2, %v2262_v8, %v2258_v26 }
 0xb0b   :  { %v7786_v39 = vadd.f32 -1.0, %v2372_v53  ;;  %v9754_v41 = vsel %vm2275_vm14, %v2277_v59, %v2273_v24  ;;  %v2370_v45 = vmul.f32 2.0, %v9760_v20 }
 0xb0c   :  { %v2371_v48 = vmul.f32 2.0, %v9754_v41  ;;  %v8066_v5 = vpop.eup %8065 }
 0xb0d   :  { %2430 = vrot.lane.b32.xlu2 %v7786_v39, %s8645_s0  ;;  %v7784_v29 = vadd.f32 -1.0, %v2370_v45  ;;  %v2246_v6 = vadd.f32 1.0, %v8066_v5 }
 0xb0e   :  { %v7785_v35 = vadd.f32 -1.0, %v2371_v48 }
 0xb0f   :  { %8069 = vrcp.f32 %v2246_v6  ;;  %v8068_v43 = vpop.eup %8067  ;;  %v2321_v48 = vand.u32 2147483648, %v2246_v6  ;;  %vm2315_vm11 = vweird.f32 %v2246_v6  ;;  %v2319_v25 = vand.u32 2147483647, %v2246_v6 }
 0xb10   :  { %v2249_v19 = vadd.f32 1.0, %v8068_v43 }
 0xb11   :  { %vm2320_vm4 = vcmp.eq.f32.partialorder %v2319_v25, 8.507059e+37 }
 0xb12   :  { %8071 = vrcp.f32 %v2249_v19  ;;  %v2366_v45 = vand.u32 2147483648, %v2249_v19  ;;  %vm2360_vm8 = vweird.f32 %v2249_v19 }
 0xb13   :  { %8073 = vpow2.f32 %v7779_v58 }
 0xb15   :  { %2428 = vrot.lane.b32.xlu2 %v7785_v35, %s8645_s0  ;;  %v8070_v61 = vpop.eup %8069  ;;  %v2322_v35 = vor.u32 1.1754944e-38, %v2321_v48 }
 0xb16   :  { %v2311_v15 = vmul.f32 %v8070_v61, %v2246_v6  ;;  %vm2316_vm6 = vweird.f32 %v8070_v61  ;;  %v2367_v6 = vor.u32 1.1754944e-38, %v2366_v45 }
 0xb17   :  { %vm2317_vm3 = vmor %vm2315_vm11, %vm2316_vm6 }
 0xb18   :  { %v2312_v42 = vsub.f32 1.0, %v2311_v15  ;;  %v8072_v53 = vpop.eup %8071 }
 0xb19   :  { %v2356_v39 = vmul.f32 %v8072_v53, %v2249_v19  ;;  %v8074_v1 = vpop.eup %8073  ;;  %vm2361_vm7 = vweird.f32 %v8072_v53 }
 0xb1a   :  { %v2313_v59 = vmul.f32 %v8070_v61, %v2312_v42  ;;  %v2245_v14 = vadd.f32 1.0, %v8074_v1  ;;  %vm2362_vm15 = vmor %vm2360_vm8, %vm2361_vm7 }
 0xb1b   :  { %v2357_v2 = vsub.f32 1.0, %v2356_v39 }
 0xb1c   :  { %v2314_v51 = vadd.f32 %v8070_v61, %v2313_v59  ;;  %8075 = vrcp.f32 %v2245_v14  ;;  %v2306_v59 = vand.u32 2147483648, %v2245_v14  ;;  %vm2300_vm14 = vweird.f32 %v2245_v14 }
 0xb1d   :  { %2426 = vrot.lane.b32.xlu2 %v7784_v29, %s8645_s0  ;;  %v2358_v8 = vmul.f32 %v8072_v53, %v2357_v2  ;;  %v2364_v29 = vand.u32 2147483647, %v2249_v19  ;;  %v2304_v39 = vand.u32 2147483647, %v2245_v14 }
 0xb1e   :  { %v2318_v26 = vsel %vm2317_vm3, %v8070_v61, %v2314_v51  ;;  %v2307_v51 = vor.u32 1.1754944e-38, %v2306_v59 }
 0xb1f   :  { %v9770_v9 = vsel %vm2320_vm4, %v2322_v35, %v2318_v26  ;;  %v2359_v62 = vadd.f32 %v8072_v53, %v2358_v8  ;;  %vm2365_vm13 = vcmp.eq.f32.partialorder %v2364_v29, 8.507059e+37  ;;  %vm2305_vm10 = vcmp.eq.f32.partialorder %v2304_v39, 8.507059e+37 }
 0xb20   :  { %v2374_v55 = vmul.f32 2.0, %v9770_v9 }
 0xb21   :  { %v2363_v5 = vsel %vm2362_vm15, %v8072_v53, %v2359_v62 }
 0xb22   :  { %v8076_v0 = vpop.eup %8075  ;;  %v7788_v43 = vadd.f32 -1.0, %v2374_v55  ;;  %v9773_v22 = vsel %vm2365_vm13, %v2367_v6, %v2363_v5  ;;  %v2199_v55 = vrot.slane %v9742_v34, 3 }
 0xb23   :  { %v2296_v61 = vmul.f32 %v8076_v0, %v2245_v14  ;;  %v2377_v58 = vmul.f32 2.0, %v9773_v22  ;;  %vm2301_vm12 = vweird.f32 %v8076_v0 }
 0xb24   :  { %vm2302_vm9 = vmor %vm2300_vm14, %vm2301_vm12  ;;  %v2215_v29 = vadd.f32 %v2199_v55, %v8925_v60  ;;  %vm12361_vm12 = vcmask 1043459   ;;  %vm12362_vm14 = vcmask 1044484  }
 0xb25   :  { %v2297_v42 = vsub.f32 1.0, %v2296_v61 }
 0xb26   :  { %v7781_v5 = vmul.f32 -1.442695, %v2215_v29 }
 0xb27   :  { %v2298_v19 = vmul.f32 %v8076_v0, %v2297_v42 }
 0xb28   :  { %8077 = vpow2.f32 %v7781_v5 }
 0xb2e   :  { %v8078_v61 = vpop.eup %8077 }
 0xb36   :  { %v1224_v63 = vpop.permute.xlu2 %1223 }
 0xb37   :  { %v1226_v24 = vsel %vm12359_vm5, %v1224_v63, 0.0  ;;  %v7791_v63 = vadd.f32 -1.0, %v2377_v58  ;;  %v2247_v58 = vadd.f32 1.0, %v8078_v61 }
 0xb38   :  { %1227 = vadd.xlane.f32.xlu0 %v1226_v24  ;;  %v2299_v24 = vadd.f32 %v8076_v0, %v2298_v19 }
 0xb39   :  { %vm2330_vm11 = vweird.f32 %v2247_v58 }
 0xb3a   :  { %v2303_v1 = vsel %vm2302_vm9, %v8076_v0, %v2299_v24  ;;  %v2200_v0 = vrot.slane %v9742_v34, 4  ;;  %vm12363_vm9 = vmmov %vm12361_vm12 }
 0xb3b   :  { %v9783_v48 = vsel %vm2305_vm10, %v2307_v51, %v2303_v1  ;;  %vm12364_vm10 = vmmov %vm12362_vm14 }
 0xb3c   :  { %v2373_v25 = vmul.f32 2.0, %v9783_v48  ;;  %v2216_v6 = vadd.f32 %v2200_v0, %v8903_v31 }
 0xb3e   :  { %v9779_v53 = vpop.permute.xlu2 %1247  ;;  %v7787_v26 = vadd.f32 -1.0, %v2373_v25 }
 0xb46   :  { %v9781_v2 = vpop.permute.xlu2 %1253 }
 0xb4c   :  { %v1215_v54 = vpop.permute.xlu1 %1214  ;;  %2434 = vrot.lane.b32.xlu0 %v7788_v43, %s8645_s0  ;;  %v7782_v43 = vmul.f32 -1.442695, %v2216_v6 }
 0xb4d   :  { %v1217_v15 = vsel %vm12360_vm1, %v1215_v54, 0.0 }
 0xb4e   :  { %1218 = vadd.xlane.f32.xlu1 %v1217_v15  ;;  %8079 = vpow2.f32 %v7782_v43 }
 0xb4f   :  { %8081 = vrcp.f32 %v2247_v58 }
 0xb54   :  { %2440 = vrot.lane.b32.xlu0 %v7791_v63, %s8645_s0  ;;  %v8080_v24 = vpop.eup %8079 }
 0xb55   :  { %v2248_v34 = vadd.f32 1.0, %v8080_v24  ;;  %v8082_v1 = vpop.eup %8081 }
 0xb56   :  { %v2326_v51 = vmul.f32 %v8082_v1, %v2247_v58  ;;  %vm2331_vm5 = vweird.f32 %v8082_v1 }
 0xb57   :  { %vm2332_vm3 = vmor %vm2330_vm11, %vm2331_vm5  ;;  %vm2345_vm8 = vweird.f32 %v2248_v34  ;;  %vm12367_vm5 = vcmask 1047559  }
 0xb67   :  { %2432 = vrot.lane.b32.xlu1 %v7787_v26, %s8645_s0  ;;  %v9787_v8 = vpop.permute.xlu2 %2430 }
 0xb6f   :  { %v2429_v35 = vpop.permute.xlu2 %2428 }
 0xb70   :  { %v2451_v62 = vmul.f32 %v2429_v35, %v9754_v41  ;;  %v2327_v35 = vsub.f32 1.0, %v2326_v51 }
 0xb72   :  { %2468 = vrot.lane.b32.xlu1 %v2451_v62, %s8646_s2  ;;  %v2328_v55 = vmul.f32 %v8082_v1, %v2327_v35 }
 0xb77   :  { %v2427_v14 = vpop.permute.xlu2 %2426 }
 0xb78   :  { %v2450_v45 = vmul.f32 %v2427_v14, %v9760_v20 }
 0xb7a   :  { %2466 = vrot.lane.b32.xlu0 %v2450_v45, %s8646_s2 }
 0xbab   :  { %v1228_v54 = vpop.xlane.xlu0 %1227 }
 0xbac   :  { %v1229_v63 = vmul.f32 %v1228_v54, %v9050_v40  ;;  %v2329_v54 = vadd.f32 %v8082_v1, %v2328_v55 }
 0xbc1   :  { %v1219_v15 = vpop.xlane.xlu1 %1218 }
 0xbc2   :  { %v1220_v42 = vmul.f32 %v1219_v15, %v9050_v40 }
 0xbc4   :  { %v1230_v19 = vmul.f32 %v1220_v42, %v1220_v42  ;;  %v1232_v43 = vsub.f32 %v9732_v52, %v1220_v42 }
 0xbc6   :  { %v1231_v59 = vsub.f32 %v1229_v63, %v1230_v19  ;;  %v2336_v19 = vand.u32 2147483648, %v2247_v58 }
 0xbc8   :  { %v1233_v39 = vadd.f32 1e-05, %v1231_v59  ;;  %v2334_v59 = vand.u32 2147483647, %v2247_v58  ;;  %v2337_v35 = vor.u32 1.1754944e-38, %v2336_v19  ;;  %v8489_v19 = vld [vmem:[#allocation5 + $0x60] sm:$0xff] }
 0xbc9   :  { %v2349_v58 = vand.u32 2147483647, %v2248_v34 }
 0xbca   :  { %8083 = vrsqrt.f32 %v1233_v39  ;;  %vm1240_vm2 = vweird.f32 %v1233_v39  ;;  %vm2335_vm4 = vcmp.eq.f32.partialorder %v2334_v59, 8.507059e+37  ;;  %v8491_v59 = vld [vmem:[#allocation5 + $0x50] sm:$0xff] }
 0xbcb   :  { %8085 = vrcp.f32 %v2248_v34  ;;  %vm2350_vm13 = vcmp.eq.f32.partialorder %v2349_v58, 8.507059e+37 }
 0xbd0   :  { %v8084_v25 = vpop.eup %8083 }
 0xbd1   :  { %v1235_v26 = vmul.f32 %v8084_v25, %v1233_v39  ;;  %v8086_v62 = vpop.eup %8085  ;;  %vm1241_vm0 = vweird.f32 %v8084_v25  ;;  %v2333_v39 = vsel %vm2332_vm3, %v8082_v1, %v2329_v54  ;;  %vm12370_vm3 = vmmov %vm12367_vm5 }
 0xbd2   :  { %v2341_v29 = vmul.f32 %v8086_v62, %v2248_v34  ;;  %vm1242_vm6 = vmor %vm1240_vm2, %vm1241_vm0  ;;  %v9804_v42 = vsel %vm2335_vm4, %v2337_v35, %v2333_v39  ;;  %vm2346_vm7 = vweird.f32 %v8086_v62  ;;  %vm12365_vm0 = vcmask 1045509  }
 0xbd3   :  { %v1236_v14 = vmul.f32 %v8084_v25, %v1235_v26  ;;  %vm2347_vm15 = vmor %vm2345_vm8, %vm2346_vm7  ;;  %vm12366_vm2 = vcmask 1046534   ;;  %vm12371_vm4 = vcmask 1041409   ;;  %vm2529_vm8 = vcmask 254976  }
 0xbd4   :  { %v2342_v15 = vsub.f32 1.0, %v2341_v29  ;;  %vm12369_vm11 = vmmov %vm12366_vm2 }
 0xbd5   :  { %v1237_v45 = vmul.f32 0.5, %v1236_v14  ;;  %v2351_v14 = vand.u32 2147483648, %v2248_v34  ;;  %v2435_v34 = vpop.permute.xlu0 %2434  ;;  %vm12372_vm7 = vmmov %vm12371_vm4 }
 0xbd6   :  { %v2343_v26 = vmul.f32 %v8086_v62, %v2342_v15 }
 0xbd7   :  { %v1238_v0 = vsub.f32 1.5, %v1237_v45  ;;  %v2375_v45 = vmul.f32 2.0, %v9804_v42  ;;  %v2352_v29 = vor.u32 1.1754944e-38, %v2351_v14  ;;  %v2395_v14 = vrot.slane %v9532_v16, 7 }
 0xbd9   :  { %v1239_v5 = vmul.f32 %v8084_v25, %v1238_v0  ;;  %v2433_v6 = vpop.permute.xlu1 %2432  ;;  %v7789_v1 = vadd.f32 -1.0, %v2375_v45  ;;  %v2411_v58 = vmul.f32 %v2395_v14, %v9754_v41  ;;  %v2401_v14 = vrot.slane %v9564_v50, 7 }
 0xbda   :  { %v2453_v61 = vmul.f32 %v2433_v6, %v9783_v48 }
 0xbdb   :  { %v1243_v63 = vsel %vm1242_vm6, %v8084_v25, %v1239_v5  ;;  %v2344_v25 = vadd.f32 %v8086_v62, %v2343_v26  ;;  %vm12368_vm6 = vmmov %vm12365_vm0 }
 0xbdc   :  { %v1244_v24 = vmul.f32 %v1243_v63, %v1232_v43  ;;  %2472 = vrot.lane.b32.xlu1 %v2453_v61, %s8646_s2  ;;  %v2452_v43 = vmul.f32 %v9787_v8, %v9751_v10  ;;  %v8488_v63 = vld [vmem:[#allocation5 + $0x68] sm:$0xff]  ;;  %v8490_v8 = vld [vmem:[#allocation5 + $0x58] sm:$0xff] }
 0xbdd   :  { %v2348_v55 = vsel %vm2347_vm15, %v8086_v62, %v2344_v25  ;;  %v2454_v62 = vmul.f32 %v2435_v34, %v9770_v9  ;;  %v2441_v61 = vpop.permute.xlu0 %2440  ;;  %v2396_v25 = vrot.slane %v9535_v36, 7  ;;  %v2397_v34 = vrot.slane %v9554_v7, 7 }
 0xbde   :  { %v1250_v51 = vmul.f32 %v9779_v53, %v1244_v24  ;;  %v9808_v0 = vsel %vm2350_vm13, %v2352_v29, %v2348_v55  ;;  %v2457_v54 = vmul.f32 %v2441_v61, %v9773_v22  ;;  %v2394_v55 = vrot.slane %v9525_v33, 7 }
 0xbdf   :  { %v2376_v5 = vmul.f32 2.0, %v9808_v0  ;;  %v2412_v45 = vmul.f32 %v2396_v25, %v9751_v10  ;;  %vm2525_vm15 = vcmask 261122  }
 0xbe0   :  { %v1256_v52 = vadd.f32 %v9781_v2, %v1250_v51 }
 0xbe1   :  { %v7790_v6 = vadd.f32 -1.0, %v2376_v5  ;;  %v2398_v5 = vrot.slane %v9550_v23, 7 }
 0xbe2   :  { %2043 = vrot.lane.b32.xlu2 %v1256_v52, %s8646_s2 }
 0xbe3   :  { %v2414_v16 = vmul.f32 %v2398_v5, %v9770_v9 }
 0xbe4   :  { %v2469_v52 = vpop.permute.xlu1 %2468 }
 0xbea   :  { %2436 = vrot.lane.b32.xlu2 %v7789_v1, %s8645_s0 }
 0xbec   :  { %v2467_v29 = vpop.permute.xlu0 %2466 }
 0xbf2   :  { %2438 = vrot.lane.b32.xlu2 %v7790_v6, %s8645_s0  ;;  %v9833_v6 = vadd.f32 %v2469_v52, %v2411_v58 }
 0xbf4   :  { %v2536_v23 = vmul.f32 %v9833_v6, %v9833_v6 }
 0xbfa   :  { %2470 = vrot.lane.b32.xlu2 %v2452_v43, %s8646_s2  ;;  %v2410_v43 = vmul.f32 %v2394_v55, %v9760_v20 }
 0xbfc   :  { %v9838_v61 = vadd.f32 %v2467_v29, %v2410_v43  ;;  %v2417_v43 = vmul.f32 %v2401_v14, %v9773_v22 }
 0xc02   :  { %2474 = vrot.lane.b32.xlu2 %v2454_v62, %s8646_s2 }
 0xc0a   :  { %2480 = vrot.lane.b32.xlu2 %v2457_v54, %s8646_s2  ;;  %v2413_v54 = vmul.f32 %v2397_v34, %v9783_v48 }
 0xc3c   :  { %v2044_v15 = vpop.permute.xlu2 %2043 }
 0xc3d   :  { %7772 = vmatmul.msk.f32.vlgmr.msrb.gmra.mxu3 %vm12360_vm1, %v2044_v15 }
 0xc3e   :  { %3893 = vmatpush.msrb.mxu3 %v8488_v63 }
 0xc40   :  { %3894 = vmatpush.msrb.mxu3 %v8489_v19  ;;  %v2506_v19 = vrot.slane %v9833_v6, 7 }
 0xc42   :  { %3895 = vmatpush.msrb.mxu3 %v8490_v8  ;;  %v2535_v8 = vmul.f32 %v9838_v61, %v9838_v61 }
 0xc44   :  { %v2437_v24 = vpop.permute.xlu2 %2436  ;;  %3896 = vmatpush.msrb.mxu3 %v8491_v59 }
 0xc45   :  { %v2455_v51 = vmul.f32 %v2437_v24, %v9804_v42  ;;  %v2399_v24 = vrot.slane %v9568_v32, 7 }
 0xc47   :  { %2476 = vrot.lane.b32.xlu0 %v2455_v51, %s8646_s2  ;;  %v2415_v52 = vmul.f32 %v2399_v24, %v9804_v42 }
 0xc4c   :  { %v2439_v39 = vpop.permute.xlu2 %2438 }
 0xc4d   :  { %v2456_v26 = vmul.f32 %v2439_v39, %v9808_v0  ;;  %v2551_v39 = vrot.slane %v2536_v23, 7  ;;  %v2400_v23 = vrot.slane %v9545_v13, 7 }
 0xc4e   :  { %v2473_v62 = vpop.permute.xlu1 %2472 }
 0xc4f   :  { %2478 = vrot.lane.b32.xlu1 %v2456_v26, %s8646_s2  ;;  %v9847_v63 = vadd.f32 %v2473_v62, %v2413_v54  ;;  %v2507_v26 = vsel %vm12361_vm12, %v2506_v19, %v9838_v61  ;;  %v2552_v29 = vsel %vm12363_vm9, %v2551_v39, %v2535_v8 }
 0xc51   :  { %v2510_v58 = vrot.slane %v9847_v63, 5 }
 0xc54   :  { %v2471_v35 = vpop.permute.xlu2 %2470 }
 0xc55   :  { %v9830_v1 = vadd.f32 %v2471_v35, %v2412_v45  ;;  %v2538_v35 = vmul.f32 %v9847_v63, %v9847_v63 }
 0xc57   :  { %v2537_v33 = vmul.f32 %v9830_v1, %v9830_v1  ;;  %v2508_v7 = vrot.slane %v9830_v1, 6  ;;  %v2555_v62 = vrot.slane %v2538_v35, 5 }
 0xc59   :  { %v2553_v59 = vrot.slane %v2537_v33, 6  ;;  %v2509_v32 = vsel %vm12362_vm14, %v2508_v7, %v2507_v26 }
 0xc5a   :  { %v2511_v54 = vsel %vm12365_vm0, %v2510_v58, %v2509_v32 }
 0xc5c   :  { %v2475_v36 = vpop.permute.xlu2 %2474 }
 0xc5d   :  { %v9843_v15 = vadd.f32 %v2475_v36, %v2414_v16  ;;  %v2554_v36 = vsel %vm12364_vm10, %v2553_v59, %v2552_v29 }
 0xc5e   :  { %v2556_v8 = vsel %vm12368_vm6, %v2555_v62, %v2554_v36 }
 0xc5f   :  { %v2539_v51 = vmul.f32 %v9843_v15, %v9843_v15  ;;  %v2512_v25 = vrot.slane %v9843_v15, 4 }
 0xc61   :  { %v2557_v5 = vrot.slane %v2539_v51, 4  ;;  %v2513_v33 = vsel %vm12366_vm2, %v2512_v25, %v2511_v54  ;;  %v2416_v51 = vmul.f32 %v2400_v23, %v9808_v0 }
 0xc63   :  { %v2558_v59 = vsel %vm12369_vm11, %v2557_v5, %v2556_v8  ;;  %v2014_v5 = vpop.f32.mrf.mxu2 }
 0xc64   :  { %v2481_v34 = vpop.permute.xlu2 %2480 }
 0xc65   :  { %v9876_v7 = vadd.f32 %v2481_v34, %v2417_v43  ;;  %v2015_v43 = vadd.f32 %v2014_v5, %v9475_v11 }
 0xc67   :  { %v2542_v13 = vmul.f32 %v9876_v7, %v9876_v7  ;;  %v2517_v14 = vrot.slane %v9876_v7, 1  ;;  %v2020_v34 = vmul.f32 %v2015_v43, %v2015_v43 }
 0xcb9   :  { %v2477_v45 = vpop.permute.xlu0 %2476 }
 0xcba   :  { %v9865_v55 = vadd.f32 %v2477_v45, %v2415_v52  ;;  %v2562_v45 = vrot.slane %v2542_v13, 1 }
 0xcbc   :  { %v2514_v16 = vrot.slane %v9865_v55, 3  ;;  %v2540_v50 = vmul.f32 %v9865_v55, %v9865_v55 }
 0xcbe   :  { %v2515_v19 = vsel %vm12367_vm5, %v2514_v16, %v2513_v33  ;;  %v2559_v24 = vrot.slane %v2540_v50, 3 }
 0xcbf   :  { %2519 = vrot.lane.b32.xlu0 %v2515_v19, %s8647_s28 }
 0xcc0   :  { %v2560_v39 = vsel %vm12370_vm3, %v2559_v24, %v2558_v59 }
 0xcc1   :  { %v2479_v26 = vpop.permute.xlu1 %2478  ;;  %2564 = vrot.lane.b32.xlu1 %v2560_v39, %s8647_s28 }
 0xcc2   :  { %v9887_v35 = vadd.f32 %v2479_v26, %v2416_v51 }
 0xcc4   :  { %v2541_v52 = vmul.f32 %v9887_v35, %v9887_v35  ;;  %v2516_v25 = vrot.slane %v9887_v35, 2 }
 0xcc6   :  { %v2561_v32 = vrot.slane %v2541_v52, 2  ;;  %v2518_v58 = vsel %vm12371_vm4, %v2517_v14, %v2516_v25 }
 0xcc7   :  { %2521 = vrot.lane.b32.xlu2 %v2518_v58, %s8647_s28 }
 0xcc8   :  { %v2563_v29 = vsel %vm12372_vm7, %v2562_v45, %v2561_v32  ;;  %vm12373_vm7 = vcmask 1043459  }
 0xcc9   :  { %2566 = vrot.lane.b32.xlu0 %v2563_v29, %s8647_s28 }
 0xceb   :  { %2017 = vadd.xlane.f32.xlu1 %v2015_v43 }
 0xcf0   :  { %2021 = vadd.xlane.f32.xlu2 %v2020_v34 }
 0xd21   :  { %v2522_v36 = vpop.permute.xlu2 %2521 }
 0xd22   :  { %v2530_v62 = vsel %vm2529_vm8, %v2522_v36, 0.0 }
 0xd23   :  { %2531 = vadd.xlane.f32.xlu2 %v2530_v62 }
 0xd31   :  { %v2520_v16 = vpop.permute.xlu0 %2519 }
 0xd32   :  { %v2526_v50 = vsel %vm2525_vm15, %v2520_v16, 0.0 }
 0xd33   :  { %v2565_v54 = vpop.permute.xlu1 %2564  ;;  %2527 = vadd.xlane.f32.xlu0 %v2526_v50  ;;  %v2064_v50 = vpop.f32.mrf.mxu3 }
 0xd34   :  { %v2570_v33 = vsel %vm2525_vm15, %v2565_v54, 0.0 }
 0xd35   :  { %2571 = vadd.xlane.f32.xlu1 %v2570_v33 }
 0xd3b   :  { %v2567_v23 = vpop.permute.xlu0 %2566 }
 0xd3c   :  { %v2573_v19 = vsel %vm2529_vm8, %v2567_v23, 0.0 }
 0xd3d   :  { %2574 = vadd.xlane.f32.xlu0 %v2573_v19 }
 0xd5e   :  { %v2018_v8 = vpop.xlane.xlu1 %2017 }
 0xd5f   :  { %v2019_v24 = vmul.f32 %v2018_v8, %v8731_v47 }
 0xd61   :  { %v2024_v51 = vmul.f32 %v2019_v24, %v2019_v24  ;;  %v2026_v29 = vsub.f32 %v2015_v43, %v2019_v24 }
 0xd63   :  { %v2022_v59 = vpop.xlane.xlu2 %2021 }
 0xd64   :  { %v2023_v39 = vmul.f32 %v2022_v59, %v8731_v47 }
 0xd66   :  { %v2025_v26 = vsub.f32 %v2023_v39, %v2024_v51 }
 0xd68   :  { %v2027_v13 = vadd.f32 1e-05, %v2025_v26 }
 0xd6a   :  { %8087 = vrsqrt.f32 %v2027_v13  ;;  %vm2034_vm1 = vweird.f32 %v2027_v13 }
 0xd70   :  { %v8088_v52 = vpop.eup %8087 }
 0xd71   :  { %v2029_v25 = vmul.f32 %v8088_v52, %v2027_v13  ;;  %vm2035_vm13 = vweird.f32 %v8088_v52 }
 0xd72   :  { %vm2036_vm12 = vmor %vm2034_vm1, %vm2035_vm13  ;;  %vm12374_vm13 = vcmask 1044484  }
 0xd73   :  { %v2030_v14 = vmul.f32 %v8088_v52, %v2029_v25  ;;  %vm12375_vm1 = vmmov %vm12373_vm7 }
 0xd75   :  { %v2031_v45 = vmul.f32 0.5, %v2030_v14 }
 0xd77   :  { %v2032_v32 = vsub.f32 1.5, %v2031_v45 }
 0xd79   :  { %v2033_v58 = vmul.f32 %v8088_v52, %v2032_v32 }
 0xd7b   :  { %v2037_v5 = vsel %vm2036_vm12, %v8088_v52, %v2033_v58  ;;  %vm12376_vm12 = vcmask 1045509  }
 0xd7c   :  { %v2038_v34 = vmul.f32 %v2037_v5, %v2026_v29 }
 0xd7e   :  { %v2039_v36 = vmul.f32 %v2038_v34, %v9485_v21 }
 0xd80   :  { %v2040_v62 = vadd.f32 %v2039_v36, %v9489_v49 }
 0xd82   :  { %v2041_v16 = vadd.f32 %v2040_v62, %v9493_v44 }
 0xd84   :  { %v2067_v54 = vadd.f32 %v2064_v50, %v2041_v16 }
 0xd86   :  { %v7773_v33 = vmul.f32 -1.442695, %v2067_v54 }
 0xd88   :  { %8089 = vpow2.f32 %v7773_v33 }
 0xd8e   :  { %v8090_v23 = vpop.eup %8089 }
 0xd8f   :  { %v2071_v19 = vadd.f32 1.0, %v8090_v23 }
 0xd91   :  { %8091 = vrcp.f32 %v2071_v19  ;;  %v2083_v43 = vand.u32 2147483648, %v2071_v19  ;;  %v2081_v39 = vand.u32 2147483647, %v2071_v19  ;;  %vm2077_vm9 = vweird.f32 %v2071_v19 }
 0xd93   :  { %v2084_v13 = vor.u32 1.1754944e-38, %v2083_v43  ;;  %vm2082_vm0 = vcmp.eq.f32.partialorder %v2081_v39, 8.507059e+37 }
 0xd96   :  { %v2532_v36 = vpop.xlane.xlu2 %2531 }
 0xd97   :  { %v8092_v8 = vpop.eup %8091  ;;  %v9914_v16 = vmul.f32 %v2532_v36, %v9050_v40 }
 0xd98   :  { %v2073_v59 = vmul.f32 %v8092_v8, %v2071_v19  ;;  %vm2078_vm14 = vweird.f32 %v8092_v8 }
 0xd99   :  { %vm2079_vm10 = vmor %vm2077_vm9, %vm2078_vm14  ;;  %v2579_v33 = vmul.f32 %v9914_v16, %v9914_v16  ;;  %vm12377_vm14 = vcmask 1046534  }
 0xd9a   :  { %v2074_v51 = vsub.f32 1.0, %v2073_v59  ;;  %vm12378_vm9 = vmmov %vm12374_vm13 }
 0xd9c   :  { %v2075_v24 = vmul.f32 %v8092_v8, %v2074_v51 }
 0xd9e   :  { %v2076_v26 = vadd.f32 %v8092_v8, %v2075_v24 }
 0xda0   :  { %v2080_v52 = vsel %vm2079_vm10, %v8092_v8, %v2076_v26  ;;  %vm12379_vm10 = vcmask 1047559  }
 0xda1   :  { %v9907_v25 = vsel %vm2082_vm0, %v2084_v13, %v2080_v52  ;;  %vm12380_vm0 = vmmov %vm12376_vm12 }
 0xda2   :  { %v2087_v14 = vmul.f32 2.0, %v9907_v25 }
 0xda4   :  { %v7774_v45 = vadd.f32 -1.0, %v2087_v14 }
 0xda6   :  { %2091 = vrot.lane.b32.xlu1 %v7774_v45, %s8645_s0  ;;  %v2528_v32 = vpop.xlane.xlu0 %2527 }
 0xda7   :  { %v2533_v58 = vmul.f32 %v2528_v32, %v9050_v40 }
 0xda8   :  { %v2572_v29 = vpop.xlane.xlu1 %2571 }
 0xda9   :  { %v2576_v5 = vmul.f32 %v2572_v29, %v9050_v40  ;;  %v2578_v34 = vmul.f32 %v2533_v58, %v2533_v58  ;;  %v2585_v39 = vrot.slane %v2533_v58, 2  ;;  %v2584_v13 = vrot.slane %v2533_v58, 1 }
 0xdaa   :  { %v2588_v14 = vrot.slane %v2533_v58, 5  ;;  %v2586_v29 = vrot.slane %v2533_v58, 3 }
 0xdab   :  { %v2580_v62 = vsub.f32 %v2576_v5, %v2578_v34  ;;  %v2599_v5 = vsub.f32 %v9838_v61, %v2533_v58  ;;  %v2587_v34 = vrot.slane %v2533_v58, 4  ;;  %v2601_v36 = vsub.f32 %v9830_v1, %v2585_v39 }
 0xdac   :  { %v2602_v49 = vsub.f32 %v9847_v63, %v2586_v29 }
 0xdad   :  { %v2607_v50 = vadd.f32 1e-05, %v2580_v62  ;;  %v2603_v58 = vsub.f32 %v9843_v15, %v2587_v34 }
 0xdaf   :  { %8093 = vrsqrt.f32 %v2607_v50  ;;  %vm2615_vm5 = vweird.f32 %v2607_v50 }
 0xdb0   :  { %v2575_v54 = vpop.xlane.xlu0 %2574 }
 0xdb1   :  { %v2577_v23 = vmul.f32 %v2575_v54, %v9050_v40 }
 0xdb3   :  { %v2581_v19 = vsub.f32 %v2577_v23, %v2579_v33  ;;  %v2600_v33 = vsub.f32 %v9833_v6, %v2584_v13 }
 0xdb5   :  { %v8094_v8 = vpop.eup %8093  ;;  %v2608_v59 = vadd.f32 1e-05, %v2581_v19 }
 0xdb6   :  { %v2610_v51 = vmul.f32 %v8094_v8, %v2607_v50  ;;  %vm2616_vm2 = vweird.f32 %v8094_v8 }
 0xdb7   :  { %8095 = vrsqrt.f32 %v2608_v59  ;;  %vm2617_vm6 = vmor %vm2615_vm5, %vm2616_vm2  ;;  %vm2625_vm3 = vweird.f32 %v2608_v59 }
 0xdb8   :  { %v2611_v43 = vmul.f32 %v8094_v8, %v2610_v51  ;;  %vm12381_vm2 = vmmov %vm12377_vm14 }
 0xdb9   :  { %vm12382_vm5 = vmmov %vm12379_vm10 }
 0xdba   :  { %v2612_v24 = vmul.f32 0.5, %v2611_v43  ;;  %v2604_v43 = vsub.f32 %v9865_v55, %v2588_v14 }
 0xdbc   :  { %v2613_v26 = vsub.f32 1.5, %v2612_v24 }
 0xdbd   :  { %v8096_v52 = vpop.eup %8095 }
 0xdbe   :  { %v2614_v45 = vmul.f32 %v8094_v8, %v2613_v26  ;;  %v2620_v32 = vmul.f32 %v8096_v52, %v2608_v59  ;;  %vm2626_vm11 = vweird.f32 %v8096_v52 }
 0xdbf   :  { %vm2627_vm4 = vmor %vm2625_vm3, %vm2626_vm11  ;;  %vm12385_vm3 = vcmask 261120  }
 0xdc0   :  { %v2618_v62 = vsel %vm2617_vm6, %v8094_v8, %v2614_v45  ;;  %v2621_v54 = vmul.f32 %v8096_v52, %v2620_v32  ;;  %v2589_v32 = vrot.slane %v9914_v16, 6  ;;  %vm12383_vm6 = vcmask 1041409  }
 0xdc1   :  { %v2631_v23 = vrot.slane %v2618_v62, 1  ;;  %v2632_v19 = vrot.slane %v2618_v62, 2  ;;  %v2633_v51 = vrot.slane %v2618_v62, 3  ;;  %v2634_v24 = vrot.slane %v2618_v62, 4  ;;  %vm12384_vm11 = vmmov %vm12383_vm6 }
 0xdc2   :  { %v2635_v26 = vrot.slane %v2618_v62, 5  ;;  %v2646_v50 = vmul.f32 %v2618_v62, %v2599_v5  ;;  %v2622_v44 = vmul.f32 0.5, %v2621_v54  ;;  %v2605_v62 = vsub.f32 %v9887_v35, %v2589_v32 }
 0xdc3   :  { %v2648_v61 = vmul.f32 %v2632_v19, %v2601_v36  ;;  %v2647_v21 = vmul.f32 %v2631_v23, %v2600_v33  ;;  %v2649_v39 = vmul.f32 %v2633_v51, %v2602_v49  ;;  %v2650_v63 = vmul.f32 %v2634_v24, %v2603_v58 }
 0xdc4   :  { %v2623_v1 = vsub.f32 1.5, %v2622_v44  ;;  %v2654_v8 = vmul.f32 %v2646_v50, %v9058_v38  ;;  %v2651_v6 = vmul.f32 %v2635_v26, %v2604_v43  ;;  %v2590_v49 = vrot.slane %v9914_v16, 7 }
 0xdc5   :  { %v2656_v13 = vmul.f32 %v2648_v61, %v9058_v38  ;;  %v2655_v55 = vmul.f32 %v2647_v21, %v9058_v38  ;;  %v2657_v59 = vmul.f32 %v2649_v39, %v9058_v38  ;;  %v2658_v36 = vmul.f32 %v2650_v63, %v9058_v38 }
 0xdc6   :  { %v2624_v14 = vmul.f32 %v8096_v52, %v2623_v1  ;;  %v9929_v45 = vadd.f32 %v2654_v8, %v9068_v17  ;;  %v2659_v21 = vmul.f32 %v2651_v6, %v9058_v38  ;;  %v2606_v54 = vsub.f32 %v9876_v7, %v2590_v49 }
 0xdc7   :  { %v9933_v15 = vadd.f32 %v2656_v13, %v9068_v17  ;;  %v9936_v44 = vadd.f32 %v2655_v55, %v9068_v17  ;;  %v9954_v51 = vadd.f32 %v2658_v36, %v9068_v17 }
 0xdc8   :  { %v2628_v29 = vsel %vm2627_vm4, %v8096_v52, %v2624_v14  ;;  %8097 = vtanh.f32 %v9929_v45  ;;  %v9948_v16 = vadd.f32 %v2659_v21, %v9068_v17  ;;  %v9951_v52 = vadd.f32 %v2657_v59, %v9068_v17  ;;  %vm12386_vm4 = vmmov %vm12385_vm3 }
 0xdc9   :  { %v2636_v5 = vrot.slane %v2628_v29, 6  ;;  %8099 = vtanh.f32 %v9933_v15  ;;  %v2637_v34 = vrot.slane %v2628_v29, 7 }
 0xdca   :  { %8101 = vtanh.f32 %v9936_v44 }
 0xdcb   :  { %v2652_v33 = vmul.f32 %v2636_v5, %v2605_v62  ;;  %v2653_v19 = vmul.f32 %v2637_v34, %v2606_v54  ;;  %8103 = vtanh.f32 %v9948_v16 }
 0xdcc   :  { %8105 = vtanh.f32 %v9951_v52 }
 0xdcd   :  { %v2660_v7 = vmul.f32 %v2652_v33, %v9058_v38  ;;  %v2661_v35 = vmul.f32 %v2653_v19, %v9058_v38  ;;  %8107 = vtanh.f32 %v9954_v51 }
 0xdce   :  { %v8098_v23 = vpop.eup %8097 }
 0xdcf   :  { %v8100_v43 = vpop.eup %8099  ;;  %2686 = vrot.lane.b32.xlu1 %v8098_v23, %s8645_s0  ;;  %v9965_v26 = vadd.f32 %v2660_v7, %v9068_v17  ;;  %v9968_v61 = vadd.f32 %v2661_v35, %v9068_v17 }
 0xdd0   :  { %v8102_v24 = vpop.eup %8101  ;;  %2690 = vrot.lane.b32.xlu0 %v8100_v43, %s8645_s0 }
 0xdd1   :  { %2688 = vrot.lane.b32.xlu2 %v8102_v24, %s8645_s0  ;;  %v8104_v50 = vpop.eup %8103  ;;  %8109 = vtanh.f32 %v9965_v26 }
 0xdd2   :  { %v8106_v58 = vpop.eup %8105  ;;  %8111 = vtanh.f32 %v9968_v61 }
 0xdd3   :  { %v8108_v1 = vpop.eup %8107 }
 0xdd7   :  { %2696 = vrot.lane.b32.xlu1 %v8104_v50, %s8645_s0  ;;  %v8110_v8 = vpop.eup %8109 }
 0xdd8   :  { %2692 = vrot.lane.b32.xlu0 %v8106_v58, %s8645_s0  ;;  %v8112_v6 = vpop.eup %8111 }
 0xdd9   :  { %2694 = vrot.lane.b32.xlu2 %v8108_v1, %s8645_s0 }
 0xde0   :  { %2698 = vrot.lane.b32.xlu0 %v8110_v8, %s8645_s0 }
 0xde1   :  { %2700 = vrot.lane.b32.xlu2 %v8112_v6, %s8645_s0 }
 0xe18   :  { %v2092_v39 = vpop.permute.xlu1 %2091 }
 0xe19   :  { %v2094_v13 = vmul.f32 %v2092_v39, %v9907_v25 }
 0xe1b   :  { %2096 = vrot.lane.b32.xlu1 %v2094_v13, %s8646_s2 }
 0xe2b   :  { %v2689_v55 = vpop.permute.xlu2 %2688 }
 0xe2c   :  { %v9980_v49 = vmul.f32 %v2689_v55, %v9754_v41 }
 0xe2e   :  { %v2754_v59 = vmul.f32 %v9980_v49, %v9980_v49  ;;  %v2726_v54 = vrot.slane %v9980_v49, 7 }
 0xe33   :  { %v2695_v14 = vpop.permute.xlu2 %2694 }
 0xe34   :  { %v9991_v5 = vmul.f32 %v2695_v14, %v9770_v9  ;;  %v2769_v9 = vrot.slane %v2754_v59, 7 }
 0xe36   :  { %v2757_v19 = vmul.f32 %v9991_v5, %v9991_v5  ;;  %v2732_v50 = vrot.slane %v9991_v5, 4 }
 0xe38   :  { %v2775_v13 = vrot.slane %v2757_v19, 4 }
 0xe41   :  { %v2687_v63 = vpop.permute.xlu1 %2686 }
 0xe42   :  { %v2691_v32 = vpop.permute.xlu0 %2690  ;;  %v9986_v21 = vmul.f32 %v2687_v63, %v9760_v20  ;;  %v2701_v20 = vpop.permute.xlu2 %2700 }
 0xe43   :  { %v9983_v29 = vmul.f32 %v2691_v32, %v9751_v10 }
 0xe44   :  { %v2753_v33 = vmul.f32 %v9986_v21, %v9986_v21  ;;  %v2727_v24 = vsel %vm12373_vm7, %v2726_v54, %v9986_v21 }
 0xe45   :  { %v2755_v34 = vmul.f32 %v9983_v29, %v9983_v29  ;;  %v2728_v62 = vrot.slane %v9983_v29, 6 }
 0xe46   :  { %v2770_v1 = vsel %vm12375_vm1, %v2769_v9, %v2753_v33 }
 0xe47   :  { %v2771_v43 = vrot.slane %v2755_v34, 6  ;;  %v2729_v58 = vsel %vm12374_vm13, %v2728_v62, %v2727_v24  ;;  %v2089_v24 = vmul.f32 %v9907_v25, %v9727_v30 }
 0xe49   :  { %v2697_v36 = vpop.permute.xlu1 %2696  ;;  %v2772_v14 = vsel %vm12378_vm9, %v2771_v43, %v2770_v1  ;;  %vm12388_vm9 = vcmask 1042434  }
 0xe4a   :  { %v9997_v41 = vmul.f32 %v2697_v36, %v9804_v42  ;;  %v2693_v10 = vpop.permute.xlu0 %2692 }
 0xe4b   :  { %v10003_v23 = vmul.f32 %v2693_v10, %v9783_v48  ;;  %v10016_v48 = vmul.f32 %v2701_v20, %v9773_v22 }
 0xe4c   :  { %v2758_v42 = vmul.f32 %v9997_v41, %v9997_v41  ;;  %v2734_v8 = vrot.slane %v9997_v41, 3 }
 0xe4d   :  { %v2730_v7 = vrot.slane %v10003_v23, 5  ;;  %v2756_v35 = vmul.f32 %v10003_v23, %v10003_v23  ;;  %v2760_v36 = vmul.f32 %v10016_v48, %v10016_v48  ;;  %v2737_v33 = vrot.slane %v10016_v48, 1 }
 0xe4e   :  { %v2777_v63 = vrot.slane %v2758_v42, 3 }
 0xe4f   :  { %v2773_v6 = vrot.slane %v2756_v35, 5  ;;  %v2731_v39 = vsel %vm12376_vm12, %v2730_v7, %v2729_v58  ;;  %v2780_v9 = vrot.slane %v2760_v36, 1 }
 0xe50   :  { %v2733_v55 = vsel %vm12377_vm14, %v2732_v50, %v2731_v39  ;;  %vm12387_vm14 = vmmov %vm12383_vm6 }
 0xe51   :  { %v2735_v32 = vsel %vm12379_vm10, %v2734_v8, %v2733_v55  ;;  %v2774_v22 = vsel %vm12380_vm0, %v2773_v6, %v2772_v14  ;;  %vm12389_vm10 = vcmask 1043459   ;;  %vm12390_vm0 = vcmask 1044484  }
 0xe52   :  { %2739 = vrot.lane.b32.xlu0 %v2735_v32, %s8646_s2  ;;  %v2699_v59 = vpop.permute.xlu0 %2698  ;;  %v2776_v34 = vsel %vm12381_vm2, %v2775_v13, %v2774_v22  ;;  %vm12391_vm2 = vcmask 1045509  }
 0xe53   :  { %v10031_v62 = vmul.f32 %v2699_v59, %v9808_v0  ;;  %v2778_v10 = vsel %vm12382_vm5, %v2777_v63, %v2776_v34  ;;  %vm12392_vm5 = vcmask 1046534  }
 0xe54   :  { %2782 = vrot.lane.b32.xlu2 %v2778_v10, %s8646_s2 }
 0xe55   :  { %v2759_v54 = vmul.f32 %v10031_v62, %v10031_v62  ;;  %v2736_v20 = vrot.slane %v10031_v62, 2 }
 0xe57   :  { %v2779_v19 = vrot.slane %v2759_v54, 2  ;;  %v2738_v43 = vsel %vm12383_vm6, %v2737_v33, %v2736_v20  ;;  %vm12393_vm6 = vcmask 1047559  }
 0xe58   :  { %2741 = vrot.lane.b32.xlu1 %v2738_v43, %s8646_s2 }
 0xe59   :  { %v2781_v0 = vsel %vm12384_vm11, %v2780_v9, %v2779_v19 }
 0xe5a   :  { %2784 = vrot.lane.b32.xlu0 %v2781_v0, %s8646_s2 }
 0xe8d   :  { %v2097_v42 = vpop.permute.xlu1 %2096 }
 0xe8e   :  { %v10045_v7 = vadd.f32 %v2097_v42, %v2089_v24 }
 0xe90   :  { %2101 = vrot.lane.b32.xlu2 %v10045_v7, %s8647_s28  ;;  %v2108_v35 = vmul.f32 %v10045_v7, %v10045_v7 }
 0xe92   :  { %2110 = vrot.lane.b32.xlu1 %v2108_v35, %s8647_s28 }
 0xeae   :  { %v2783_v50 = vpop.permute.xlu2 %2782 }
 0xeaf   :  { %v2788_v58 = vsel %vm2525_vm15, %v2783_v50, 0.0 }
 0xeb9   :  { %2789 = vadd.xlane.f32.xlu2 %v2788_v58 }
 0xec4   :  { %v2740_v1 = vpop.permute.xlu0 %2739 }
 0xec5   :  { %v2745_v8 = vsel %vm2525_vm15, %v2740_v1, 0.0 }
 0xec6   :  { %2746 = vadd.xlane.f32.xlu0 %v2745_v8 }
 0xeca   :  { %v2742_v30 = vpop.permute.xlu1 %2741 }
 0xecb   :  { %v2748_v6 = vsel %vm2529_vm8, %v2742_v30, 0.0 }
 0xecc   :  { %2749 = vadd.xlane.f32.xlu1 %v2748_v6  ;;  %v2785_v39 = vpop.permute.xlu0 %2784 }
 0xecd   :  { %v2791_v13 = vsel %vm2529_vm8, %v2785_v39, 0.0 }
 0xece   :  { %2792 = vadd.xlane.f32.xlu0 %v2791_v13 }
 0xeea   :  { %v2102_v55 = vpop.permute.xlu2 %2101 }
 0xeeb   :  { %v2104_v14 = vsel %vm12385_vm3, %v2102_v55, 0.0 }
 0xeec   :  { %2105 = vadd.xlane.f32.xlu2 %v2104_v14 }
 0xf04   :  { %v2111_v63 = vpop.permute.xlu1 %2110 }
 0xf05   :  { %v2113_v32 = vsel %vm12386_vm4, %v2111_v63, 0.0 }
 0xf06   :  { %2114 = vadd.xlane.f32.xlu1 %v2113_v32 }
 0xf2c   :  { %v2790_v22 = vpop.xlane.xlu2 %2789 }
 0xf2d   :  { %v2794_v36 = vmul.f32 %v2790_v22, %v9050_v40 }
 0xf39   :  { %v2747_v59 = vpop.xlane.xlu0 %2746 }
 0xf3a   :  { %v2751_v34 = vmul.f32 %v2747_v59, %v9050_v40 }
 0xf3c   :  { %v2796_v10 = vmul.f32 %v2751_v34, %v2751_v34  ;;  %v2802_v8 = vrot.slane %v2751_v34, 1  ;;  %v2803_v30 = vrot.slane %v2751_v34, 2  ;;  %v2804_v6 = vrot.slane %v2751_v34, 3 }
 0xf3d   :  { %v2805_v13 = vrot.slane %v2751_v34, 4  ;;  %v2806_v55 = vrot.slane %v2751_v34, 5  ;;  %v2817_v32 = vsub.f32 %v9986_v21, %v2751_v34 }
 0xf3e   :  { %v2798_v54 = vsub.f32 %v2794_v36, %v2796_v10  ;;  %v2818_v36 = vsub.f32 %v9980_v49, %v2802_v8  ;;  %v2819_v10 = vsub.f32 %v9983_v29, %v2803_v30 }
 0xf3f   :  { %v2750_v20 = vpop.xlane.xlu1 %2749 }
 0xf40   :  { %v2825_v33 = vadd.f32 1e-05, %v2798_v54  ;;  %v10061_v9 = vmul.f32 %v2750_v20, %v9050_v40  ;;  %v2820_v54 = vsub.f32 %v10003_v23, %v2804_v6 }
 0xf41   :  { %v2793_v19 = vpop.xlane.xlu0 %2792 }
 0xf42   :  { %8113 = vrsqrt.f32 %v2825_v33  ;;  %v2797_v43 = vmul.f32 %v10061_v9, %v10061_v9  ;;  %v2795_v0 = vmul.f32 %v2793_v19, %v9050_v40  ;;  %vm2833_vm15 = vweird.f32 %v2825_v33 }
 0xf43   :  { %v2807_v20 = vrot.slane %v10061_v9, 6  ;;  %v2821_v19 = vsub.f32 %v9991_v5, %v2805_v13  ;;  %v2808_v30 = vrot.slane %v10061_v9, 7 }
 0xf44   :  { %v2799_v24 = vsub.f32 %v2795_v0, %v2797_v43  ;;  %v2822_v43 = vsub.f32 %v9997_v41, %v2806_v55 }
 0xf46   :  { %v2826_v42 = vadd.f32 1e-05, %v2799_v24 }
 0xf48   :  { %v8114_v35 = vpop.eup %8113  ;;  %8115 = vrsqrt.f32 %v2826_v42  ;;  %vm2843_vm1 = vweird.f32 %v2826_v42 }
 0xf49   :  { %v2828_v50 = vmul.f32 %v8114_v35, %v2825_v33  ;;  %vm2834_vm8 = vweird.f32 %v8114_v35 }
 0xf4a   :  { %vm2835_vm7 = vmor %vm2833_vm15, %vm2834_vm8  ;;  %vm12394_vm8 = vcmask 261120  }
 0xf4b   :  { %v2829_v58 = vmul.f32 %v8114_v35, %v2828_v50  ;;  %vm12395_vm15 = vmmov %vm12394_vm8 }
 0xf4d   :  { %v2830_v1 = vmul.f32 0.5, %v2829_v58 }
 0xf4e   :  { %v8116_v39 = vpop.eup %8115 }
 0xf4f   :  { %v2831_v14 = vsub.f32 1.5, %v2830_v1  ;;  %v2838_v63 = vmul.f32 %v8116_v39, %v2826_v42  ;;  %vm2844_vm13 = vweird.f32 %v8116_v39 }
 0xf50   :  { %vm2845_vm12 = vmor %vm2843_vm1, %vm2844_vm13 }
 0xf51   :  { %v2832_v22 = vmul.f32 %v8114_v35, %v2831_v14  ;;  %v2839_v59 = vmul.f32 %v8116_v39, %v2838_v63 }
 0xf53   :  { %v2836_v0 = vsel %vm2835_vm7, %v8114_v35, %v2832_v22  ;;  %v2840_v24 = vmul.f32 0.5, %v2839_v59  ;;  %v2823_v22 = vsub.f32 %v10031_v62, %v2807_v20  ;;  %vm12396_vm7 = vmmov %vm12394_vm8 }
 0xf54   :  { %v2849_v50 = vrot.slane %v2836_v0, 1  ;;  %v2850_v21 = vrot.slane %v2836_v0, 2  ;;  %v2851_v34 = vrot.slane %v2836_v0, 3  ;;  %v2852_v33 = vrot.slane %v2836_v0, 4  ;;  %vm12397_vm13 = vmmov %vm12396_vm7 }
 0xf55   :  { %v2853_v58 = vrot.slane %v2836_v0, 5  ;;  %v2864_v49 = vmul.f32 %v2836_v0, %v2817_v32  ;;  %v2841_v1 = vsub.f32 1.5, %v2840_v24 }
 0xf56   :  { %v2865_v29 = vmul.f32 %v2849_v50, %v2818_v36  ;;  %v2866_v8 = vmul.f32 %v2850_v21, %v2819_v10  ;;  %v2867_v23 = vmul.f32 %v2851_v34, %v2820_v54  ;;  %v2868_v6 = vmul.f32 %v2852_v33, %v2821_v19 }
 0xf57   :  { %v2869_v14 = vmul.f32 %v2853_v58, %v2822_v43  ;;  %v2872_v5 = vmul.f32 %v2864_v49, %v9211_v46  ;;  %v2842_v41 = vmul.f32 %v8116_v39, %v2841_v1  ;;  %v2824_v10 = vsub.f32 %v10016_v48, %v2808_v30 }
 0xf58   :  { %v2873_v35 = vmul.f32 %v2865_v29, %v9211_v46  ;;  %v2875_v13 = vmul.f32 %v2867_v23, %v9211_v46  ;;  %v2874_v55 = vmul.f32 %v2866_v8, %v9211_v46  ;;  %v2876_v63 = vmul.f32 %v2868_v6, %v9211_v46 }
 0xf59   :  { %v2877_v32 = vmul.f32 %v2869_v14, %v9211_v46  ;;  %v2880_v9 = vadd.f32 %v2872_v5, %v9229_v18  ;;  %v2846_v59 = vsel %vm2845_vm12, %v8116_v39, %v2842_v41 }
 0xf5a   :  { %v2881_v36 = vadd.f32 %v2873_v35, %v9229_v18  ;;  %v2883_v42 = vadd.f32 %v2875_v13, %v9229_v18  ;;  %v2854_v54 = vrot.slane %v2846_v59, 6  ;;  %v2855_v19 = vrot.slane %v2846_v59, 7 }
 0xf5b   :  { %v2884_v43 = vadd.f32 %v2876_v63, %v9229_v18  ;;  %v2885_v0 = vadd.f32 %v2877_v32, %v9229_v18  ;;  %v2896_v24 = vrot.slane %v2880_v9, 2  ;;  %v2882_v33 = vadd.f32 %v2874_v55, %v9229_v18 }
 0xf5c   :  { %v2897_v50 = vrot.slane %v2881_v36, 1  ;;  %v2870_v21 = vmul.f32 %v2854_v54, %v2823_v22  ;;  %v2871_v34 = vmul.f32 %v2855_v19, %v2824_v10  ;;  %v2900_v39 = vrot.slane %v2883_v42, 7 }
 0xf5d   :  { %v2902_v49 = vrot.slane %v2884_v43, 6  ;;  %v2904_v29 = vrot.slane %v2885_v0, 5 }
 0xf5e   :  { %v2898_v62 = vsel %vm12387_vm14, %v2897_v50, %v2896_v24  ;;  %v2878_v20 = vmul.f32 %v2870_v21, %v9211_v46  ;;  %v2879_v58 = vmul.f32 %v2871_v34, %v9211_v46 }
 0xf5f   :  { %v2899_v48 = vsel %vm12388_vm9, %v2882_v33, %v2898_v62  ;;  %v2106_v13 = vpop.xlane.xlu2 %2105 }
 0xf60   :  { %v2901_v1 = vsel %vm12389_vm10, %v2900_v39, %v2899_v48  ;;  %v2886_v8 = vadd.f32 %v2878_v20, %v9229_v18  ;;  %v2887_v23 = vadd.f32 %v2879_v58, %v9229_v18  ;;  %v2107_v55 = vmul.f32 %v2106_v13, %v9050_v40  ;;  %v8492_v39 = vld [vmem:[#allocation5 + $0x48] sm:$0xff]  ;;  %v8494_v20 = vld [vmem:[#allocation5 + $0x40] sm:$0xff]  ;;  %v8496_v48 = vld [vmem:[#allocation5 + $0x38] sm:$0xff] }
 0xf61   :  { %v2903_v30 = vsel %vm12390_vm0, %v2902_v49, %v2901_v1  ;;  %v8495_v58 = vld [vmem:[#allocation5 + $0x20] sm:$0xff]  ;;  %v8497_v49 = vld [vmem:[#allocation5 + $0x18] sm:$0xff]  ;;  %v8498_v1 = vld [vmem:[#allocation5 + $0x30] sm:$0xff] }
 0xf62   :  { %v2905_v6 = vsel %vm12391_vm2, %v2904_v29, %v2903_v30  ;;  %v2906_v14 = vrot.slane %v2886_v8, 4  ;;  %v2908_v5 = vrot.slane %v2887_v23, 3  ;;  %v2117_v32 = vmul.f32 %v2107_v55, %v2107_v55  ;;  %v8499_v29 = vld [vmem:[#allocation5 + $0x10] sm:$0xff] }
 0xf63   :  { %v2119_v0 = vsub.f32 %v10045_v7, %v2107_v55  ;;  %v8493_v7 = vld [vmem:[#allocation5 + $0x28] sm:$0xff] }
 0xf64   :  { %v2907_v41 = vsel %vm12392_vm5, %v2906_v14, %v2905_v6 }
 0xf65   :  { %v2909_v35 = vsel %vm12393_vm6, %v2908_v5, %v2907_v41 }
 0xf66   :  { %2910 = vrot.lane.b32.xlu0 %v2909_v35, %s8646_s2 }
 0xf79   :  { %v2115_v63 = vpop.xlane.xlu1 %2114 }
 0xf7a   :  { %v2116_v9 = vmul.f32 %v2115_v63, %v9050_v40 }
 0xf7c   :  { %v2118_v22 = vsub.f32 %v2116_v9, %v2117_v32 }
 0xf7e   :  { %v2120_v59 = vadd.f32 1e-05, %v2118_v22 }
 0xf80   :  { %8117 = vrsqrt.f32 %v2120_v59  ;;  %vm2127_vm3 = vweird.f32 %v2120_v59 }
 0xf86   :  { %v8118_v36 = vpop.eup %8117 }
 0xf87   :  { %v2122_v42 = vmul.f32 %v8118_v36, %v2120_v59  ;;  %vm2128_vm11 = vweird.f32 %v8118_v36 }
 0xf88   :  { %vm2129_vm4 = vmor %vm2127_vm3, %vm2128_vm11 }
 0xf89   :  { %v2123_v10 = vmul.f32 %v8118_v36, %v2122_v42 }
 0xf8b   :  { %v2124_v54 = vmul.f32 0.5, %v2123_v10 }
 0xf8d   :  { %v2125_v19 = vsub.f32 1.5, %v2124_v54 }
 0xf8f   :  { %v2126_v43 = vmul.f32 %v8118_v36, %v2125_v19 }
 0xf91   :  { %v2130_v24 = vsel %vm2129_vm4, %v8118_v36, %v2126_v43 }
 0xf92   :  { %v2131_v50 = vmul.f32 %v2130_v24, %v2119_v0 }
 0xf94   :  { %v2132_v21 = vmul.f32 %v2131_v50, %v9721_v4 }
 0xf96   :  { %v10106_v34 = vadd.f32 %v2132_v21, %v9723_v27 }
 0xf98   :  { %8119 = vtanh.f32 %v10106_v34 }
 0xf9e   :  { %v8120_v33 = vpop.eup %8119 }
 0xf9f   :  { %2136 = vrot.lane.b32.xlu2 %v8120_v33, %s8645_s0 }
 0xfd8   :  { %v2911_v62 = vpop.permute.xlu0 %2910 }
 0xfd9   :  { %7792 = vmatmul.msk.f32.vlgmr.msra.gmra.mxu2 %vm12394_vm8, %v2911_v62  ;;  %7796 = vmatmul.msk.f32.vlgmr.msrb.gmra.mxu1 %vm12395_vm15, %v2911_v62 }
 0xfda   :  { %4760 = vmatpush.msra.mxu2 %v8492_v39  ;;  %4937 = vmatpush.msrb.mxu1 %v8493_v7 }
 0xfdc   :  { %4761 = vmatpush.msra.mxu2 %v8494_v20  ;;  %4938 = vmatpush.msrb.mxu1 %v8495_v58 }
 0xfde   :  { %4762 = vmatpush.msra.mxu2 %v8496_v48  ;;  %4939 = vmatpush.msrb.mxu1 %v8497_v49 }
 0xfe0   :  { %4763 = vmatpush.msra.mxu2 %v8498_v1  ;;  %4940 = vmatpush.msrb.mxu1 %v8499_v29 }
 0xff9   :  { %v2137_v8 = vpop.permute.xlu2 %2136 }
 0xffa   :  { %v10113_v23 = vmul.f32 %v2137_v8, %v9907_v25 }
 0xffc   :  { %v2148_v30 = vmul.f32 %v10113_v23, %v10113_v23  ;;  %2141 = vrot.lane.b32.xlu1 %v10113_v23, %s8646_s2 }
 0xffe   :  { %2150 = vrot.lane.b32.xlu0 %v2148_v30, %s8646_s2 }
0x1056   :  { %v10120_v6 = vpop.f32.mrf.mxu1 }
0x1057   :  { %v3115_v14 = vrot.slane %v10120_v6, 1  ;;  %v3116_v5 = vrot.slane %v10120_v6, 2 }
0x1059   :  { %v3131_v41 = vadd.f32 %v3115_v14, %v8875_v56  ;;  %v3132_v35 = vadd.f32 %v3116_v5, %v8925_v60 }
0x105b   :  { %v7801_v25 = vmul.f32 -1.442695, %v3131_v41  ;;  %v7802_v13 = vmul.f32 -1.442695, %v3132_v35 }
0x105d   :  { %8121 = vpow2.f32 %v7801_v25  ;;  %v3130_v25 = vadd.f32 %v10120_v6, %v8839_v12 }
0x105e   :  { %8123 = vpow2.f32 %v7802_v13  ;;  %v3113_v13 = vrot.slane %v10120_v6, 6 }
0x1063   :  { %v8122_v55 = vpop.eup %8121 }
0x1064   :  { %v8124_v63 = vpop.eup %8123  ;;  %v3163_v32 = vadd.f32 1.0, %v8122_v55  ;;  %v7800_v55 = vmul.f32 -1.442695, %v3130_v25 }
0x1065   :  { %v3164_v9 = vadd.f32 1.0, %v8124_v63  ;;  %v3128_v63 = vadd.f32 %v3113_v13, %v8776_v57  ;;  %v3118_v13 = vrot.slane %v10120_v6, 4 }
0x1066   :  { %8125 = vrcp.f32 %v3163_v32  ;;  %v3238_v20 = vand.u32 2147483648, %v3163_v32  ;;  %vm3232_vm10 = vweird.f32 %v3163_v32  ;;  %v3236_v48 = vand.u32 2147483647, %v3163_v32 }
0x1067   :  { %8127 = vrcp.f32 %v3164_v9  ;;  %vm3247_vm12 = vweird.f32 %v3164_v9  ;;  %v3253_v33 = vand.u32 2147483648, %v3164_v9  ;;  %v3251_v39 = vand.u32 2147483647, %v3164_v9 }
0x1068   :  { %v3239_v8 = vor.u32 1.1754944e-38, %v3238_v20  ;;  %vm3237_vm5 = vcmp.eq.f32.partialorder %v3236_v48, 8.507059e+37  ;;  %8129 = vpow2.f32 %v7800_v55  ;;  %v3117_v20 = vrot.slane %v10120_v6, 3 }
0x1069   :  { %v3254_v49 = vor.u32 1.1754944e-38, %v3253_v33  ;;  %vm3252_vm2 = vcmp.eq.f32.partialorder %v3251_v39, 8.507059e+37 }
0x106c   :  { %v8126_v36 = vpop.eup %8125 }
0x106d   :  { %v8128_v10 = vpop.eup %8127  ;;  %v3228_v19 = vmul.f32 %v8126_v36, %v3163_v32  ;;  %vm3233_vm14 = vweird.f32 %v8126_v36  ;;  %v3114_v32 = vrot.slane %v10120_v6, 7 }
0x106e   :  { %v2142_v22 = vpop.permute.xlu1 %2141  ;;  %v3243_v43 = vmul.f32 %v8128_v10, %v3164_v9  ;;  %vm3248_vm1 = vweird.f32 %v8128_v10  ;;  %vm3234_vm0 = vmor %vm3232_vm10, %vm3233_vm14  ;;  %v7798_v9 = vmul.f32 -1.442695, %v3128_v63 }
0x106f   :  { %v2144_v59 = vsel %vm12396_vm7, %v2142_v22, 0.0  ;;  %v3229_v0 = vsub.f32 1.0, %v3228_v19  ;;  %vm3249_vm9 = vmor %vm3247_vm12, %vm3248_vm1  ;;  %v8130_v22 = vpop.eup %8129  ;;  %v3112_v19 = vrot.slane %v10120_v6, 5 }
0x1070   :  { %2145 = vadd.xlane.f32.xlu2 %v2144_v59  ;;  %v2151_v42 = vpop.permute.xlu0 %2150  ;;  %v3244_v24 = vsub.f32 1.0, %v3243_v43  ;;  %v3129_v59 = vadd.f32 %v3114_v32, %v8811_v28  ;;  %8131 = vpow2.f32 %v7798_v9 }
0x1071   :  { %v2153_v54 = vsel %vm12397_vm13, %v2151_v42, 0.0  ;;  %v3230_v50 = vmul.f32 %v8126_v36, %v3229_v0  ;;  %v3127_v33 = vadd.f32 %v3112_v19, %v8759_v37 }
0x1072   :  { %2154 = vadd.xlane.f32.xlu0 %v2153_v54  ;;  %v3245_v21 = vmul.f32 %v8128_v10, %v3244_v24  ;;  %v7799_v43 = vmul.f32 -1.442695, %v3129_v59 }
0x1073   :  { %v3231_v7 = vadd.f32 %v8126_v36, %v3230_v50 }
0x1074   :  { %v3246_v62 = vadd.f32 %v8128_v10, %v3245_v21 }
0x1075   :  { %v3235_v1 = vsel %vm3234_vm0, %v8126_v36, %v3231_v7  ;;  %v10142_v36 = vadd.f32 1.0, %v8130_v22 }
0x1076   :  { %v3250_v58 = vsel %vm3249_vm9, %v8128_v10, %v3246_v62  ;;  %v10130_v30 = vsel %vm3237_vm5, %v3239_v8, %v3235_v1  ;;  %v8132_v50 = vpop.eup %8131  ;;  %v3133_v8 = vadd.f32 %v3117_v20, %v8903_v31 }
0x1077   :  { %v10128_v29 = vsel %vm3252_vm2, %v3254_v49, %v3250_v58  ;;  %v3291_v5 = vmul.f32 2.0, %v10130_v30  ;;  %8133 = vrcp.f32 %v10142_v36  ;;  %v10149_v39 = vadd.f32 1.0, %v8132_v50 }
0x1078   :  { %v3292_v14 = vmul.f32 2.0, %v10128_v29  ;;  %8135 = vpow2.f32 %v7799_v43  ;;  %v7797_v58 = vmul.f32 -1.442695, %v3127_v33  ;;  %v7803_v55 = vmul.f32 -1.442695, %v3133_v8 }
0x1079   :  { %v7809_v35 = vadd.f32 -1.0, %v3291_v5  ;;  %vm3217_vm8 = vweird.f32 %v10142_v36  ;;  %vm3187_vm1 = vweird.f32 %v10149_v39 }
0x107a   :  { %v7810_v41 = vadd.f32 -1.0, %v3292_v14 }
0x107d   :  { %v8134_v7 = vpop.eup %8133 }
0x107e   :  { %v8136_v48 = vpop.eup %8135  ;;  %v3213_v49 = vmul.f32 %v8134_v7, %v10142_v36  ;;  %vm3218_vm4 = vweird.f32 %v8134_v7 }
0x107f   :  { %v10155_v14 = vadd.f32 1.0, %v8136_v48  ;;  %vm3219_vm15 = vmor %vm3217_vm8, %vm3218_vm4 }
0x1081   :  { %vm3202_vm10 = vweird.f32 %v10155_v14 }
0x1086   :  { %3353 = vrot.lane.b32.xlu0 %v7810_v41, %s8645_s0  ;;  %v3214_v41 = vsub.f32 1.0, %v3213_v49 }
0x1088   :  { %3351 = vrot.lane.b32.xlu2 %v7809_v35, %s8645_s0  ;;  %v3215_v9 = vmul.f32 %v8134_v7, %v3214_v41 }
0x108a   :  { %v3216_v6 = vadd.f32 %v8134_v7, %v3215_v9 }
0x10e3   :  { %v2146_v42 = vpop.xlane.xlu2 %2145 }
0x10e4   :  { %v2147_v10 = vmul.f32 %v2146_v42, %v9050_v40  ;;  %v3134_v42 = vadd.f32 %v3118_v13, %v8941_v3 }
0x10e5   :  { %v2155_v54 = vpop.xlane.xlu0 %2154 }
0x10e6   :  { %v2157_v0 = vmul.f32 %v2147_v10, %v2147_v10  ;;  %v2156_v24 = vmul.f32 %v2155_v54, %v9050_v40  ;;  %v2159_v43 = vsub.f32 %v10113_v23, %v2147_v10  ;;  %v7804_v33 = vmul.f32 -1.442695, %v3134_v42 }
0x10e7   :  { %v3220_v10 = vsel %vm3219_vm15, %v8134_v7, %v3216_v6  ;;  %v3193_v7 = vand.u32 2147483648, %v10149_v39 }
0x10e8   :  { %v2158_v21 = vsub.f32 %v2156_v24, %v2157_v0 }
0x10e9   :  { %v3194_v42 = vor.u32 1.1754944e-38, %v3193_v7 }
0x10ea   :  { %v2160_v62 = vadd.f32 1e-05, %v2158_v21  ;;  %v3223_v21 = vand.u32 2147483648, %v10142_v36 }
0x10ec   :  { %8137 = vrsqrt.f32 %v2160_v62  ;;  %vm2167_vm11 = vweird.f32 %v2160_v62  ;;  %v3224_v8 = vor.u32 1.1754944e-38, %v3223_v21  ;;  %v3208_v21 = vand.u32 2147483648, %v10155_v14 }
0x10ed   :  { %8139 = vrcp.f32 %v10149_v39 }
0x10ee   :  { %8141 = vpow2.f32 %v7797_v58  ;;  %v3221_v58 = vand.u32 2147483647, %v10142_v36 }
0x10ef   :  { %8143 = vrcp.f32 %v10155_v14 }
0x10f0   :  { %8145 = vpow2.f32 %v7803_v55  ;;  %vm3222_vm7 = vcmp.eq.f32.partialorder %v3221_v58, 8.507059e+37 }
0x10f1   :  { %v10173_v41 = vsel %vm3222_vm7, %v3224_v8, %v3220_v10 }
0x10f2   :  { %v8138_v1 = vpop.eup %8137  ;;  %v3290_v55 = vmul.f32 2.0, %v10173_v41 }
0x10f3   :  { %v2162_v5 = vmul.f32 %v8138_v1, %v2160_v62  ;;  %v8140_v35 = vpop.eup %8139  ;;  %vm2168_vm6 = vweird.f32 %v8138_v1 }
0x10f4   :  { %v8142_v32 = vpop.eup %8141  ;;  %v3183_v22 = vmul.f32 %v8140_v35, %v10149_v39  ;;  %vm2169_vm3 = vmor %vm2167_vm11, %vm2168_vm6  ;;  %vm3188_vm13 = vweird.f32 %v8140_v35 }
0x10f5   :  { %v2163_v25 = vmul.f32 %v8138_v1, %v2162_v5  ;;  %v10161_v54 = vadd.f32 1.0, %v8142_v32  ;;  %v8144_v24 = vpop.eup %8143  ;;  %vm3189_vm12 = vmor %vm3187_vm1, %vm3188_vm13 }
0x10f6   :  { %v3184_v0 = vsub.f32 1.0, %v3183_v22  ;;  %v8146_v62 = vpop.eup %8145  ;;  %v3198_v49 = vmul.f32 %v8144_v24, %v10155_v14  ;;  %vm3203_vm9 = vweird.f32 %v8144_v24 }
0x10f7   :  { %v2164_v63 = vmul.f32 0.5, %v2163_v25  ;;  %8147 = vrcp.f32 %v10161_v54  ;;  %v10171_v5 = vadd.f32 1.0, %v8146_v62  ;;  %vm3204_vm0 = vmor %vm3202_vm10, %vm3203_vm9  ;;  %vm3172_vm6 = vweird.f32 %v10161_v54 }
0x10f8   :  { %v3185_v48 = vmul.f32 %v8140_v35, %v3184_v0  ;;  %8149 = vpow2.f32 %v7804_v33  ;;  %v3199_v25 = vsub.f32 1.0, %v3198_v49  ;;  %v3206_v33 = vand.u32 2147483647, %v10155_v14 }
0x10f9   :  { %v2165_v59 = vsub.f32 1.5, %v2164_v63  ;;  %v3191_v63 = vand.u32 2147483647, %v10149_v39  ;;  %8151 = vrcp.f32 %v10171_v5  ;;  %v3178_v14 = vand.u32 2147483648, %v10161_v54 }
0x10fa   :  { %v3186_v36 = vadd.f32 %v8140_v35, %v3185_v48  ;;  %v3200_v22 = vmul.f32 %v8144_v24, %v3199_v25  ;;  %vm3207_vm2 = vcmp.eq.f32.partialorder %v3206_v33, 8.507059e+37  ;;  %vm3262_vm8 = vweird.f32 %v10171_v5 }
0x10fb   :  { %v2166_v19 = vmul.f32 %v8138_v1, %v2165_v59  ;;  %vm3192_vm14 = vcmp.eq.f32.partialorder %v3191_v63, 8.507059e+37  ;;  %v3179_v63 = vor.u32 1.1754944e-38, %v3178_v14  ;;  %vm12398_vm9 = vcmask 261120  }
0x10fc   :  { %v3190_v9 = vsel %vm3189_vm12, %v8140_v35, %v3186_v36  ;;  %v3201_v0 = vadd.f32 %v8144_v24, %v3200_v22  ;;  %vm12399_vm10 = vcmask 1044484  }
0x10fd   :  { %v2170_v50 = vsel %vm2169_vm3, %v8138_v1, %v2166_v19  ;;  %v8148_v13 = vpop.eup %8147  ;;  %v7808_v19 = vadd.f32 -1.0, %v3290_v55  ;;  %v10184_v6 = vsel %vm3192_vm14, %v3194_v42, %v3190_v9  ;;  %v3268_v42 = vand.u32 2147483648, %v10171_v5 }
0x10fe   :  { %v2171_v20 = vmul.f32 %v2170_v50, %v2159_v43  ;;  %v8150_v32 = vpop.eup %8149  ;;  %v3168_v59 = vmul.f32 %v8148_v13, %v10161_v54  ;;  %v3288_v35 = vmul.f32 2.0, %v10184_v6  ;;  %vm3173_vm5 = vweird.f32 %v8148_v13 }
0x10ff   :  { %v10182_v43 = vadd.f32 1.0, %v8150_v32  ;;  %v8152_v50 = vpop.eup %8151  ;;  %vm3174_vm11 = vmor %vm3172_vm6, %vm3173_vm5  ;;  %vm12402_vm5 = vcmask 1045509   ;;  %vm12403_vm6 = vcmask 1046534  }
0x1100   :  { %v2172_v23 = vmul.f32 %v2171_v20, %v9779_v53  ;;  %v3169_v39 = vsub.f32 1.0, %v3168_v59  ;;  %v3205_v20 = vsel %vm3204_vm0, %v8144_v24, %v3201_v0  ;;  %v3258_v62 = vmul.f32 %v8152_v50, %v10171_v5 }
0x1101   :  { %8153 = vrcp.f32 %v10182_v43  ;;  %v7806_v10 = vadd.f32 -1.0, %v3288_v35  ;;  %v3176_v24 = vand.u32 2147483647, %v10161_v54  ;;  %vm3263_vm4 = vweird.f32 %v8152_v50 }
0x1102   :  { %v2173_v1 = vadd.f32 %v2172_v23, %v9781_v2  ;;  %v3170_v58 = vmul.f32 %v8148_v13, %v3169_v39  ;;  %v3209_v23 = vor.u32 1.1754944e-38, %v3208_v21  ;;  %v3259_v8 = vsub.f32 1.0, %v3258_v62  ;;  %vm3264_vm15 = vmor %vm3262_vm8, %vm3263_vm4 }
0x1103   :  { %vm3177_vm3 = vcmp.eq.f32.partialorder %v3176_v24, 8.507059e+37  ;;  %v3266_v54 = vand.u32 2147483647, %v10171_v5  ;;  %v3269_v39 = vor.u32 1.1754944e-38, %v3268_v42  ;;  %vm3277_vm1 = vweird.f32 %v10182_v43  ;;  %vm12406_vm4 = vmmov %vm12402_vm5 }
0x1104   :  { %2960 = vrot.lane.b32.xlu1 %v2173_v1, %s8646_s2  ;;  %v10193_v48 = vsel %vm3207_vm2, %v3209_v23, %v3205_v20  ;;  %v3171_v49 = vadd.f32 %v8148_v13, %v3170_v58  ;;  %v3260_v7 = vmul.f32 %v8152_v50, %v3259_v8  ;;  %v3283_v20 = vand.u32 2147483648, %v10182_v43  ;;  %vm12407_vm8 = vmmov %vm12403_vm6 }
0x1105   :  { %v3289_v36 = vmul.f32 2.0, %v10193_v48  ;;  %vm3267_vm7 = vcmp.eq.f32.partialorder %v3266_v54, 8.507059e+37  ;;  %v3281_v5 = vand.u32 2147483647, %v10182_v43  ;;  %vm12400_vm0 = vcmask 1041409  }
0x1106   :  { %v3175_v25 = vsel %vm3174_vm11, %v8148_v13, %v3171_v49  ;;  %v3261_v22 = vadd.f32 %v8152_v50, %v3260_v7  ;;  %v3284_v62 = vor.u32 1.1754944e-38, %v3283_v20  ;;  %vm12401_vm2 = vcmask 1042434   ;;  %vm12404_vm11 = vmmov %vm12399_vm10 }
0x1107   :  { %v8154_v1 = vpop.eup %8153  ;;  %v7807_v32 = vadd.f32 -1.0, %v3289_v36  ;;  %v10201_v9 = vsel %vm3177_vm3, %v3179_v63, %v3175_v25  ;;  %vm3282_vm14 = vcmp.eq.f32.partialorder %v3281_v5, 8.507059e+37  ;;  %v8500_v36 = vld [vmem:[#allocation5 + $0x68] sm:$0xff]  ;;  %v8503_v25 = vld [vmem:[#allocation5 + $0x50] sm:$0xff]  ;;  %vm12405_vm3 = vcmask 1047559  }
0x1108   :  { %v3273_v55 = vmul.f32 %v8154_v1, %v10182_v43  ;;  %v3265_v13 = vsel %vm3264_vm15, %v8152_v50, %v3261_v22  ;;  %vm3278_vm13 = vweird.f32 %v8154_v1  ;;  %v8501_v43 = vld [vmem:[#allocation5 + $0x60] sm:$0xff]  ;;  %vm12408_vm15 = vmmov %vm12405_vm3 }
0x1109   :  { %v10208_v35 = vsel %vm3267_vm7, %v3269_v39, %v3265_v13  ;;  %vm3279_vm12 = vmor %vm3277_vm1, %vm3278_vm13  ;;  %v3354_v13 = vpop.permute.xlu0 %3353 }
0x110a   :  { %v3274_v59 = vsub.f32 1.0, %v3273_v55  ;;  %v3293_v58 = vmul.f32 2.0, %v10208_v35  ;;  %v3372_v39 = vmul.f32 %v3354_v13, %v10128_v29  ;;  %vm12409_vm7 = vmmov %vm12400_vm0 }
0x110b   :  { %vm12410_vm13 = vmmov %vm12401_vm2 }
0x110c   :  { %3349 = vrot.lane.b32.xlu1 %v7808_v19, %s8645_s0  ;;  %v3287_v19 = vmul.f32 2.0, %v10201_v9  ;;  %v3275_v0 = vmul.f32 %v8154_v1, %v3274_v59  ;;  %v7811_v23 = vadd.f32 -1.0, %v3293_v58  ;;  %v3352_v59 = vpop.permute.xlu2 %3351  ;;  %v2931_v58 = vpop.f32.mrf.mxu2 }
0x110d   :  { %v10238_v5 = vadd.f32 %v2931_v58, %v9475_v11  ;;  %v3315_v58 = vrot.slane %v9954_v51, 7 }
0x110e   :  { %v7805_v21 = vadd.f32 -1.0, %v3287_v19  ;;  %v3276_v33 = vadd.f32 %v8154_v1, %v3275_v0  ;;  %v3371_v19 = vmul.f32 %v3352_v59, %v10130_v30 }
0x1110   :  { %v3280_v50 = vsel %vm3279_vm12, %v8154_v1, %v3276_v33  ;;  %v8502_v1 = vld [vmem:[#allocation5 + $0x58] sm:$0xff] }
0x1114   :  { %3345 = vrot.lane.b32.xlu1 %v7806_v10, %s8645_s0  ;;  %v10215_v10 = vsel %vm3282_vm14, %v3284_v62, %v3280_v50  ;;  %v2937_v50 = vmul.f32 %v10238_v5, %v10238_v5 }
0x1115   :  { %v3294_v49 = vmul.f32 2.0, %v10215_v10 }
0x1117   :  { %v7812_v8 = vadd.f32 -1.0, %v3294_v49 }
0x111c   :  { %3347 = vrot.lane.b32.xlu1 %v7807_v32, %s8645_s0 }
0x1124   :  { %3343 = vrot.lane.b32.xlu1 %v7805_v21, %s8645_s0 }
0x112c   :  { %3355 = vrot.lane.b32.xlu1 %v7811_v23, %s8645_s0 }
0x1134   :  { %3357 = vrot.lane.b32.xlu1 %v7812_v8, %s8645_s0 }
0x1176   :  { %v2961_v14 = vpop.permute.xlu1 %2960 }
0x1177   :  { %7793 = vmatmul.msk.f32.vlgmr.msra.gmra.mxu3 %vm12398_vm9, %v2961_v14  ;;  %vm3446_vm9 = vcmask 256000  }
0x1178   :  { %4810 = vmatpush.msra.mxu3 %v8500_v36  ;;  %v3312_v36 = vrot.slane %v9936_v44, 7 }
0x117a   :  { %4811 = vmatpush.msra.mxu3 %v8501_v43  ;;  %v3318_v43 = vrot.slane %v9968_v61, 7 }
0x117c   :  { %4812 = vmatpush.msra.mxu3 %v8502_v1  ;;  %v3328_v1 = vmul.f32 %v3312_v36, %v10184_v6  ;;  %v3331_v36 = vmul.f32 %v3315_v58, %v10130_v30 }
0x117e   :  { %v3350_v24 = vpop.permute.xlu1 %3349  ;;  %4813 = vmatpush.msra.mxu3 %v8503_v25  ;;  %v3311_v25 = vrot.slane %v9929_v45, 7 }
0x117f   :  { %v3370_v7 = vmul.f32 %v3350_v24, %v10173_v41 }
0x1180   :  { %v3327_v59 = vmul.f32 %v3311_v25, %v10201_v9 }
0x1181   :  { %3389 = vrot.lane.b32.xlu1 %v3370_v7, %s8646_s2  ;;  %v3317_v7 = vrot.slane %v9965_v26, 7 }
0x1183   :  { %v3333_v44 = vmul.f32 %v3317_v7, %v10208_v35 }
0x1186   :  { %v3346_v55 = vpop.permute.xlu1 %3345 }
0x1187   :  { %v3368_v63 = vmul.f32 %v3346_v55, %v10184_v6  ;;  %v3316_v55 = vrot.slane %v9948_v16, 7  ;;  %v3314_v16 = vrot.slane %v9951_v52, 7 }
0x1189   :  { %3385 = vrot.lane.b32.xlu1 %v3368_v63, %s8646_s2  ;;  %v3313_v63 = vrot.slane %v9933_v15, 7  ;;  %v3332_v61 = vmul.f32 %v3316_v55, %v10128_v29 }
0x118e   :  { %v3348_v32 = vpop.permute.xlu1 %3347 }
0x118f   :  { %v3369_v22 = vmul.f32 %v3348_v32, %v10193_v48  ;;  %v3334_v32 = vmul.f32 %v3318_v43, %v10215_v10 }
0x1191   :  { %3387 = vrot.lane.b32.xlu2 %v3369_v22, %s8646_s2 }
0x1196   :  { %v3344_v42 = vpop.permute.xlu1 %3343 }
0x1197   :  { %v3367_v54 = vmul.f32 %v3344_v42, %v10201_v9  ;;  %v3329_v42 = vmul.f32 %v3313_v63, %v10193_v48 }
0x1199   :  { %3391 = vrot.lane.b32.xlu2 %v3371_v19, %s8646_s2  ;;  %3383 = vrot.lane.b32.xlu0 %v3367_v54, %s8646_s2 }
0x119e   :  { %v3356_v0 = vpop.permute.xlu1 %3355 }
0x119f   :  { %v3373_v21 = vmul.f32 %v3356_v0, %v10208_v35 }
0x11a1   :  { %3395 = vrot.lane.b32.xlu1 %v3373_v21, %s8646_s2  ;;  %3393 = vrot.lane.b32.xlu0 %v3372_v39, %s8646_s2  ;;  %v3330_v39 = vmul.f32 %v3314_v16, %v10173_v41 }
0x11a6   :  { %v3358_v33 = vpop.permute.xlu1 %3357 }
0x11a7   :  { %v3374_v20 = vmul.f32 %v3358_v33, %v10215_v10 }
0x11a9   :  { %3397 = vrot.lane.b32.xlu2 %v3374_v20, %s8646_s2 }
0x11cb   :  { %2938 = vadd.xlane.f32.xlu1 %v2937_v50  ;;  %2934 = vadd.xlane.f32.xlu0 %v10238_v5 }
0x11eb   :  { %v3388_v62 = vpop.permute.xlu2 %3387 }
0x11ec   :  { %v10266_v0 = vadd.f32 %v3388_v62, %v3329_v42 }
0x11ee   :  { %v3454_v7 = vmul.f32 %v10266_v0, %v10266_v0 }
0x11f3   :  { %v3390_v23 = vpop.permute.xlu1 %3389  ;;  %v3392_v49 = vpop.permute.xlu2 %3391 }
0x11f4   :  { %v10274_v50 = vadd.f32 %v3390_v23, %v3330_v39  ;;  %v10285_v51 = vadd.f32 %v3392_v49, %v3331_v36 }
0x11f6   :  { %v3456_v42 = vmul.f32 %v10285_v51, %v10285_v51 }
0x11fb   :  { %v3386_v8 = vpop.permute.xlu1 %3385 }
0x11fc   :  { %v10251_v22 = vadd.f32 %v3386_v8, %v3328_v1 }
0x11fe   :  { %v3423_v21 = vrot.slane %v10251_v22, 7  ;;  %v3453_v1 = vmul.f32 %v10251_v22, %v10251_v22 }
0x1200   :  { %v3468_v55 = vrot.slane %v3453_v1, 7 }
0x1203   :  { %v3398_v24 = vpop.permute.xlu2 %3397 }
0x1204   :  { %v10257_v19 = vadd.f32 %v3398_v24, %v3334_v32  ;;  %v3427_v24 = vrot.slane %v10274_v50, 5  ;;  %v3429_v32 = vrot.slane %v10285_v51, 4 }
0x1206   :  { %v3434_v52 = vrot.slane %v10257_v19, 1 }
0x120b   :  { %v3384_v14 = vpop.permute.xlu0 %3383 }
0x120c   :  { %v10260_v54 = vadd.f32 %v3384_v14, %v3327_v59  ;;  %v3425_v14 = vrot.slane %v10266_v0, 6  ;;  %v3455_v59 = vmul.f32 %v10274_v50, %v10274_v50 }
0x120e   :  { %v3424_v8 = vsel %vm12399_vm10, %v3423_v21, %v10260_v54  ;;  %v3452_v25 = vmul.f32 %v10260_v54, %v10260_v54  ;;  %vm3442_vm10 = vcmask 261123  }
0x120f   :  { %v3426_v23 = vsel %vm12402_vm5, %v3425_v14, %v3424_v8  ;;  %v3459_v8 = vmul.f32 %v10257_v19, %v10257_v19 }
0x1210   :  { %v3428_v63 = vsel %vm12403_vm6, %v3427_v24, %v3426_v23  ;;  %v3469_v49 = vsel %vm12404_vm11, %v3468_v55, %v3452_v25 }
0x1211   :  { %v3479_v14 = vrot.slane %v3459_v8, 1 }
0x1213   :  { %v3396_v45 = vpop.permute.xlu1 %3395  ;;  %v3394_v26 = vpop.permute.xlu0 %3393 }
0x1214   :  { %v10262_v15 = vadd.f32 %v3396_v45, %v3333_v44  ;;  %v10264_v13 = vadd.f32 %v3394_v26, %v3332_v61  ;;  %v3470_v44 = vrot.slane %v3454_v7, 6  ;;  %v3430_v61 = vsel %vm12405_vm3, %v3429_v32, %v3428_v63 }
0x1215   :  { %v3472_v26 = vrot.slane %v3455_v59, 5 }
0x1216   :  { %v3432_v33 = vrot.slane %v10262_v15, 2  ;;  %v3431_v20 = vrot.slane %v10264_v13, 3  ;;  %v3471_v45 = vsel %vm12406_vm4, %v3470_v44, %v3469_v49  ;;  %v3458_v16 = vmul.f32 %v10262_v15, %v10262_v15 }
0x1217   :  { %v3457_v39 = vmul.f32 %v10264_v13, %v10264_v13  ;;  %v3473_v21 = vsel %vm12407_vm8, %v3472_v26, %v3471_v45 }
0x1218   :  { %v3433_v62 = vsel %vm12400_vm0, %v3432_v33, %v3431_v20  ;;  %v3474_v33 = vrot.slane %v3456_v42, 4  ;;  %v3477_v58 = vrot.slane %v3458_v16, 2  ;;  %v12411_v16 = vld [vmem:[#allocation14_spill] sm:$0xff] }
0x1219   :  { %v3435_v43 = vsel %vm12401_vm2, %v3434_v52, %v3433_v62  ;;  %v3476_v52 = vrot.slane %v3457_v39, 3 }
0x121a   :  { %3438 = vrot.lane.b32.xlu2 %v3435_v43, %s8647_s28  ;;  %v3475_v20 = vsel %vm12408_vm15, %v3474_v33, %v3473_v21  ;;  %v12412_v21 = vld [vmem:[#allocation15_spill] sm:$0xff] }
0x121b   :  { %v3478_v62 = vsel %vm12409_vm7, %v3477_v58, %v3476_v52  ;;  %v2981_v52 = vpop.f32.mrf.mxu3 }
0x121c   :  { %v3480_v36 = vsel %vm12410_vm13, %v3479_v14, %v3478_v62  ;;  %vm12414_vm13 = vcmask 1044484  }
0x1222   :  { %3436 = vrot.lane.b32.xlu2 %v3430_v61, %s8647_s28 }
0x122a   :  { %3481 = vrot.lane.b32.xlu2 %v3475_v20, %s8647_s28  ;;  %v12413_v20 = vld [vmem:[#allocation16_spill] sm:$0xff] }
0x1232   :  { %3483 = vrot.lane.b32.xlu2 %v3480_v36, %s8647_s28 }
0x123e   :  { %v2939_v43 = vpop.xlane.xlu1 %2938  ;;  %v2935_v1 = vpop.xlane.xlu0 %2934 }
0x123f   :  { %v2936_v23 = vmul.f32 %v2935_v1, %v8731_v47  ;;  %v2940_v24 = vmul.f32 %v2939_v43, %v8731_v47 }
0x1241   :  { %v2941_v25 = vmul.f32 %v2936_v23, %v2936_v23  ;;  %v2943_v42 = vsub.f32 %v10238_v5, %v2936_v23 }
0x1243   :  { %v2942_v7 = vsub.f32 %v2940_v24, %v2941_v25 }
0x1245   :  { %v2944_v55 = vadd.f32 1e-05, %v2942_v7 }
0x1247   :  { %8155 = vrsqrt.f32 %v2944_v55  ;;  %vm2951_vm12 = vweird.f32 %v2944_v55 }
0x124d   :  { %v8156_v63 = vpop.eup %8155 }
0x124e   :  { %v2946_v32 = vmul.f32 %v8156_v63, %v2944_v55  ;;  %vm2952_vm1 = vweird.f32 %v8156_v63 }
0x124f   :  { %vm2953_vm14 = vmor %vm2951_vm12, %vm2952_vm1  ;;  %vm12415_vm1 = vcmask 1045509  }
0x1250   :  { %v2947_v59 = vmul.f32 %v8156_v63, %v2946_v32  ;;  %vm12416_vm12 = vmmov %vm12414_vm13 }
0x1252   :  { %v2948_v49 = vmul.f32 0.5, %v2947_v59 }
0x1254   :  { %v2949_v44 = vsub.f32 1.5, %v2948_v49 }
0x1256   :  { %v2950_v61 = vmul.f32 %v8156_v63, %v2949_v44 }
0x1258   :  { %v2954_v45 = vsel %vm2953_vm14, %v8156_v63, %v2950_v61  ;;  %vm12417_vm14 = vcmask 1046534  }
0x1259   :  { %v2955_v26 = vmul.f32 %v2954_v45, %v2943_v42 }
0x125b   :  { %v2956_v39 = vmul.f32 %v2955_v26, %v12411_v16 }
0x125d   :  { %v2957_v33 = vadd.f32 %v2956_v39, %v12412_v21 }
0x125f   :  { %v2958_v58 = vadd.f32 %v2957_v33, %v12413_v20 }
0x1261   :  { %v2984_v8 = vadd.f32 %v2981_v52, %v2958_v58 }
0x1263   :  { %v7794_v62 = vmul.f32 -1.442695, %v2984_v8 }
0x1265   :  { %8157 = vpow2.f32 %v7794_v62 }
0x126b   :  { %v8158_v14 = vpop.eup %8157 }
0x126c   :  { %v2988_v36 = vadd.f32 1.0, %v8158_v14 }
0x126e   :  { %8159 = vrcp.f32 %v2988_v36  ;;  %v3000_v32 = vand.u32 2147483648, %v2988_v36  ;;  %vm2994_vm2 = vweird.f32 %v2988_v36  ;;  %v2998_v59 = vand.u32 2147483647, %v2988_v36 }
0x1270   :  { %v3001_v61 = vor.u32 1.1754944e-38, %v3000_v32  ;;  %vm2999_vm6 = vcmp.eq.f32.partialorder %v2998_v59, 8.507059e+37 }
0x1274   :  { %v8160_v43 = vpop.eup %8159  ;;  %v3439_v1 = vpop.permute.xlu2 %3438 }
0x1275   :  { %v3447_v5 = vsel %vm3446_vm9, %v3439_v1, 0.0  ;;  %v2990_v23 = vmul.f32 %v8160_v43, %v2988_v36  ;;  %vm2995_vm0 = vweird.f32 %v8160_v43 }
0x1276   :  { %3448 = vadd.xlane.f32.xlu1 %v3447_v5  ;;  %vm2996_vm5 = vmor %vm2994_vm2, %vm2995_vm0  ;;  %vm12418_vm0 = vcmask 1047559  }
0x1277   :  { %v2991_v24 = vsub.f32 1.0, %v2990_v23  ;;  %vm12419_vm2 = vmmov %vm12415_vm1 }
0x1279   :  { %v2992_v25 = vmul.f32 %v8160_v43, %v2991_v24 }
0x127b   :  { %v2993_v63 = vadd.f32 %v8160_v43, %v2992_v25 }
0x127c   :  { %v3437_v7 = vpop.permute.xlu2 %3436 }
0x127d   :  { %v3443_v55 = vsel %vm3442_vm10, %v3437_v7, 0.0  ;;  %v2997_v49 = vsel %vm2996_vm5, %v8160_v43, %v2993_v63  ;;  %vm12420_vm5 = vmmov %vm12417_vm14 }
0x127e   :  { %3444 = vadd.xlane.f32.xlu2 %v3443_v55  ;;  %v10324_v45 = vsel %vm2999_vm6, %v3001_v61, %v2997_v49  ;;  %vm12421_vm6 = vmmov %vm12418_vm0 }
0x127f   :  { %v3004_v26 = vmul.f32 2.0, %v10324_v45 }
0x1281   :  { %v7795_v58 = vadd.f32 -1.0, %v3004_v26 }
0x1284   :  { %v3482_v44 = vpop.permute.xlu2 %3481 }
0x1285   :  { %v3487_v42 = vsel %vm3442_vm10, %v3482_v44, 0.0 }
0x1286   :  { %3488 = vadd.xlane.f32.xlu0 %v3487_v42 }
0x128c   :  { %v3484_v39 = vpop.permute.xlu2 %3483 }
0x128d   :  { %v3490_v33 = vsel %vm3446_vm9, %v3484_v39, 0.0 }
0x128e   :  { %3491 = vadd.xlane.f32.xlu0 %v3490_v33 }
0x128f   :  { %3008 = vrot.lane.b32.xlu1 %v7795_v58, %s8645_s0 }
0x12e9   :  { %v3449_v43 = vpop.xlane.xlu1 %3448 }
0x12ea   :  { %v10332_v5 = vmul.f32 %v3449_v43, %v9050_v40 }
0x12ec   :  { %v3496_v25 = vmul.f32 %v10332_v5, %v10332_v5 }
0x12f1   :  { %v3445_v52 = vpop.xlane.xlu2 %3444 }
0x12f2   :  { %v3450_v8 = vmul.f32 %v3445_v52, %v9050_v40 }
0x12f4   :  { %v3495_v14 = vmul.f32 %v3450_v8, %v3450_v8  ;;  %v3501_v26 = vrot.slane %v3450_v8, 1  ;;  %v3502_v39 = vrot.slane %v3450_v8, 2  ;;  %v3516_v52 = vsub.f32 %v10260_v54, %v3450_v8 }
0x12f9   :  { %v3489_v62 = vpop.xlane.xlu0 %3488 }
0x12fa   :  { %v3493_v36 = vmul.f32 %v3489_v62, %v9050_v40 }
0x12fc   :  { %v3497_v1 = vsub.f32 %v3493_v36, %v3495_v14  ;;  %v3517_v36 = vsub.f32 %v10251_v22, %v3501_v26  ;;  %v3504_v26 = vrot.slane %v3450_v8, 4 }
0x12fe   :  { %v3524_v23 = vadd.f32 1e-05, %v3497_v1 }
0x1300   :  { %8161 = vrsqrt.f32 %v3524_v23  ;;  %vm3532_vm3 = vweird.f32 %v3524_v23 }
0x1301   :  { %v3492_v24 = vpop.xlane.xlu0 %3491 }
0x1302   :  { %v3494_v7 = vmul.f32 %v3492_v24, %v9050_v40  ;;  %v3518_v24 = vsub.f32 %v10266_v0, %v3502_v39 }
0x1304   :  { %v3498_v55 = vsub.f32 %v3494_v7, %v3496_v25 }
0x1306   :  { %v8162_v63 = vpop.eup %8161  ;;  %v3525_v32 = vadd.f32 1e-05, %v3498_v55 }
0x1307   :  { %v3527_v59 = vmul.f32 %v8162_v63, %v3524_v23  ;;  %vm3533_vm11 = vweird.f32 %v8162_v63  ;;  %v3505_v23 = vrot.slane %v10332_v5, 5 }
0x1308   :  { %8163 = vrsqrt.f32 %v3525_v32  ;;  %vm3534_vm4 = vmor %vm3532_vm3, %vm3533_vm11  ;;  %vm3542_vm15 = vweird.f32 %v3525_v32  ;;  %vm12422_vm11 = vcmask 1041409   ;;  %vm12423_vm3 = vcmask 1042434  }
0x1309   :  { %v3528_v49 = vmul.f32 %v8162_v63, %v3527_v59 }
0x130b   :  { %v3529_v44 = vmul.f32 0.5, %v3528_v49 }
0x130d   :  { %v3530_v61 = vsub.f32 1.5, %v3529_v44 }
0x130e   :  { %v8164_v42 = vpop.eup %8163 }
0x130f   :  { %v3531_v33 = vmul.f32 %v8162_v63, %v3530_v61  ;;  %v3537_v58 = vmul.f32 %v8164_v42, %v3525_v32  ;;  %vm3543_vm8 = vweird.f32 %v8164_v42 }
0x1310   :  { %vm3544_vm7 = vmor %vm3542_vm15, %vm3543_vm8  ;;  %vm12426_vm15 = vcmask 261120  }
0x1311   :  { %v3535_v62 = vsel %vm3534_vm4, %v8162_v63, %v3531_v33  ;;  %v3538_v14 = vmul.f32 %v8164_v42, %v3537_v58  ;;  %v3503_v63 = vrot.slane %v3450_v8, 3  ;;  %v3520_v8 = vsub.f32 %v10285_v51, %v3504_v26  ;;  %vm12424_vm4 = vmmov %vm12422_vm11 }
0x1312   :  { %v3548_v43 = vrot.slane %v3535_v62, 1  ;;  %v3549_v1 = vrot.slane %v3535_v62, 2  ;;  %v3563_v25 = vmul.f32 %v3535_v62, %v3516_v52  ;;  %v3550_v39 = vrot.slane %v3535_v62, 3  ;;  %vm12425_vm8 = vmmov %vm12423_vm3 }
0x1313   :  { %v3539_v7 = vmul.f32 0.5, %v3538_v14  ;;  %v3521_v52 = vsub.f32 %v10264_v13, %v3505_v23  ;;  %v3551_v14 = vrot.slane %v3535_v62, 4  ;;  %v3507_v62 = vrot.slane %v10332_v5, 7 }
0x1314   :  { %v3564_v55 = vmul.f32 %v3548_v43, %v3517_v36  ;;  %v3565_v59 = vmul.f32 %v3549_v1, %v3518_v24  ;;  %v3571_v49 = vmul.f32 %v3563_v25, %v9058_v38  ;;  %v3519_v43 = vsub.f32 %v10274_v50, %v3503_v63 }
0x1315   :  { %v3540_v44 = vsub.f32 1.5, %v3539_v7  ;;  %v3567_v25 = vmul.f32 %v3551_v14, %v3520_v8 }
0x1316   :  { %v3572_v54 = vmul.f32 %v3564_v55, %v9058_v38  ;;  %v10344_v61 = vadd.f32 %v3571_v49, %v9068_v17  ;;  %v3573_v33 = vmul.f32 %v3565_v59, %v9058_v38  ;;  %v3566_v1 = vmul.f32 %v3550_v39, %v3519_v43 }
0x1317   :  { %v3541_v22 = vmul.f32 %v8164_v42, %v3540_v44  ;;  %v3575_v49 = vmul.f32 %v3567_v25, %v9058_v38 }
0x1318   :  { %v10347_v0 = vadd.f32 %v3572_v54, %v9068_v17  ;;  %8165 = vtanh.f32 %v10344_v61  ;;  %v10356_v24 = vadd.f32 %v3573_v33, %v9068_v17  ;;  %v3574_v50 = vmul.f32 %v3566_v1, %v9058_v38 }
0x1319   :  { %v3545_v58 = vsel %vm3544_vm7, %v8164_v42, %v3541_v22  ;;  %v3506_v42 = vrot.slane %v10332_v5, 6  ;;  %v3523_v5 = vsub.f32 %v10257_v19, %v3507_v62  ;;  %v10376_v22 = vadd.f32 %v3575_v49, %v9068_v17  ;;  %vm12427_vm7 = vmmov %vm12426_vm15 }
0x131a   :  { %8167 = vtanh.f32 %v10347_v0  ;;  %v3552_v36 = vrot.slane %v3545_v58, 5  ;;  %v3553_v51 = vrot.slane %v3545_v58, 6  ;;  %v3554_v44 = vrot.slane %v3545_v58, 7 }
0x131b   :  { %8169 = vtanh.f32 %v10356_v24  ;;  %v3522_v23 = vsub.f32 %v10262_v15, %v3506_v42  ;;  %v10373_v54 = vadd.f32 %v3574_v50, %v9068_v17 }
0x131c   :  { %v3568_v32 = vmul.f32 %v3552_v36, %v3521_v52  ;;  %v3570_v26 = vmul.f32 %v3554_v44, %v3523_v5 }
0x131d   :  { %v3569_v63 = vmul.f32 %v3553_v51, %v3522_v23 }
0x131e   :  { %v3576_v7 = vmul.f32 %v3568_v32, %v9058_v38  ;;  %v8166_v55 = vpop.eup %8165  ;;  %v3578_v19 = vmul.f32 %v3570_v26, %v9058_v38  ;;  %v3009_v32 = vpop.permute.xlu1 %3008 }
0x131f   :  { %3603 = vrot.lane.b32.xlu2 %v8166_v55, %s8645_s0  ;;  %v3577_v58 = vmul.f32 %v3569_v63, %v9058_v38  ;;  %v3011_v1 = vmul.f32 %v3009_v32, %v10324_v45 }
0x1320   :  { %v8168_v13 = vpop.eup %8167  ;;  %v10362_v59 = vadd.f32 %v3576_v7, %v9068_v17  ;;  %v10388_v52 = vadd.f32 %v3578_v19, %v9068_v17 }
0x1321   :  { %3605 = vrot.lane.b32.xlu0 %v8168_v13, %s8645_s0  ;;  %v8170_v39 = vpop.eup %8169  ;;  %v10385_v15 = vadd.f32 %v3577_v58, %v9068_v17 }
0x1322   :  { %8171 = vtanh.f32 %v10362_v59 }
0x1323   :  { %8173 = vtanh.f32 %v10373_v54 }
0x1324   :  { %8175 = vtanh.f32 %v10376_v22 }
0x1325   :  { %8177 = vtanh.f32 %v10385_v15 }
0x1326   :  { %8179 = vtanh.f32 %v10388_v52 }
0x1328   :  { %v8172_v33 = vpop.eup %8171 }
0x1329   :  { %3607 = vrot.lane.b32.xlu0 %v8170_v39, %s8645_s0  ;;  %3613 = vrot.lane.b32.xlu1 %v8172_v33, %s8645_s0  ;;  %v8174_v14 = vpop.eup %8173 }
0x132a   :  { %v8176_v36 = vpop.eup %8175 }
0x132b   :  { %v8178_v43 = vpop.eup %8177 }
0x132c   :  { %v8180_v8 = vpop.eup %8179 }
0x1331   :  { %3611 = vrot.lane.b32.xlu0 %v8176_v36, %s8645_s0  ;;  %3609 = vrot.lane.b32.xlu1 %v8174_v14, %s8645_s0 }
0x1339   :  { %3615 = vrot.lane.b32.xlu0 %v8178_v43, %s8645_s0  ;;  %3617 = vrot.lane.b32.xlu1 %v8180_v8, %s8645_s0 }
0x1341   :  { %3013 = vrot.lane.b32.xlu0 %v3011_v1, %s8646_s2 }
0x1379   :  { %v3604_v62 = vpop.permute.xlu2 %3603 }
0x137a   :  { %v10407_v51 = vmul.f32 %v3604_v62, %v10201_v9 }
0x137c   :  { %v3670_v9 = vmul.f32 %v10407_v51, %v10407_v51 }
0x1393   :  { %v3606_v25 = vpop.permute.xlu0 %3605 }
0x1394   :  { %v10399_v7 = vmul.f32 %v3606_v25, %v10184_v6 }
0x1396   :  { %v3671_v50 = vmul.f32 %v10399_v7, %v10399_v7  ;;  %v3643_v49 = vrot.slane %v10399_v7, 7 }
0x1398   :  { %v3686_v23 = vrot.slane %v3671_v50, 7  ;;  %v3644_v33 = vsel %vm12414_vm13, %v3643_v49, %v10407_v51 }
0x139a   :  { %v3687_v36 = vsel %vm12416_vm12, %v3686_v23, %v3670_v9 }
0x139b   :  { %v3614_v55 = vpop.permute.xlu1 %3613  ;;  %v3608_v42 = vpop.permute.xlu0 %3607 }
0x139c   :  { %v10402_v13 = vmul.f32 %v3608_v42, %v10193_v48  ;;  %v10432_v43 = vmul.f32 %v3614_v55, %v10128_v29 }
0x139e   :  { %v3672_v44 = vmul.f32 %v10402_v13, %v10402_v13  ;;  %v3645_v6 = vrot.slane %v10402_v13, 6  ;;  %v3675_v29 = vmul.f32 %v10432_v43, %v10432_v43 }
0x13a0   :  { %v3688_v39 = vrot.slane %v3672_v44, 6 }
0x13a2   :  { %v3689_v42 = vsel %vm12419_vm2, %v3688_v39, %v3687_v36 }
0x13a3   :  { %v3610_v5 = vpop.permute.xlu1 %3609  ;;  %v3612_v63 = vpop.permute.xlu0 %3611 }
0x13a4   :  { %v10414_v48 = vmul.f32 %v3610_v5, %v10173_v41  ;;  %v10417_v26 = vmul.f32 %v3612_v63, %v10130_v30  ;;  %v3646_v30 = vsel %vm12415_vm1, %v3645_v6, %v3644_v33  ;;  %v3651_v6 = vrot.slane %v10432_v43, 3 }
0x13a5   :  { %v3694_v33 = vrot.slane %v3675_v29, 3 }
0x13a6   :  { %v3647_v58 = vrot.slane %v10414_v48, 5  ;;  %v3673_v19 = vmul.f32 %v10414_v48, %v10414_v48  ;;  %v3649_v14 = vrot.slane %v10417_v26, 4  ;;  %v3674_v41 = vmul.f32 %v10417_v26, %v10417_v26 }
0x13a8   :  { %v3690_v8 = vrot.slane %v3673_v19, 5  ;;  %v3692_v32 = vrot.slane %v3674_v41, 4  ;;  %v3648_v1 = vsel %vm12417_vm14, %v3647_v58, %v3646_v30 }
0x13a9   :  { %v3650_v25 = vsel %vm12418_vm0, %v3649_v14, %v3648_v1  ;;  %v3006_v14 = vmul.f32 %v10324_v45, %v10106_v34 }
0x13aa   :  { %3656 = vrot.lane.b32.xlu2 %v3650_v25, %s8646_s2  ;;  %v3691_v62 = vsel %vm12420_vm5, %v3690_v8, %v3689_v42  ;;  %vm12428_vm5 = vmmov %vm12424_vm4 }
0x13ab   :  { %v3618_v50 = vpop.permute.xlu1 %3617  ;;  %v3616_v49 = vpop.permute.xlu0 %3615  ;;  %v3693_v44 = vsel %vm12421_vm6, %v3692_v32, %v3691_v62  ;;  %vm12429_vm6 = vmmov %vm12423_vm3 }
0x13ac   :  { %v10443_v55 = vmul.f32 %v3618_v50, %v10215_v10  ;;  %v10446_v23 = vmul.f32 %v3616_v49, %v10208_v35  ;;  %3699 = vrot.lane.b32.xlu1 %v3693_v44, %s8646_s2 }
0x13ae   :  { %v3654_v5 = vrot.slane %v10443_v55, 1  ;;  %v3677_v63 = vmul.f32 %v10443_v55, %v10443_v55  ;;  %v3652_v9 = vrot.slane %v10446_v23, 2  ;;  %v3676_v39 = vmul.f32 %v10446_v23, %v10446_v23 }
0x13b0   :  { %v3697_v10 = vrot.slane %v3677_v63, 1  ;;  %v3695_v58 = vrot.slane %v3676_v39, 2  ;;  %v3653_v35 = vsel %vm12422_vm11, %v3652_v9, %v3651_v6 }
0x13b1   :  { %v3655_v19 = vsel %vm12423_vm3, %v3654_v5, %v3653_v35  ;;  %vm12430_vm3 = vcmask 1043459  }
0x13b2   :  { %3658 = vrot.lane.b32.xlu0 %v3655_v19, %s8646_s2  ;;  %v3696_v41 = vsel %vm12424_vm4, %v3695_v58, %v3694_v33  ;;  %vm12431_vm4 = vcmask 1044484  }
0x13b3   :  { %v3014_v30 = vpop.permute.xlu0 %3013  ;;  %v3698_v36 = vsel %vm12425_vm8, %v3697_v10, %v3696_v41  ;;  %vm12432_vm8 = vcmask 1045509  }
0x13b4   :  { %v10463_v8 = vadd.f32 %v3014_v30, %v3006_v14  ;;  %3701 = vrot.lane.b32.xlu2 %v3698_v36, %s8646_s2 }
0x13b6   :  { %3018 = vrot.lane.b32.xlu1 %v10463_v8, %s8647_s28  ;;  %v3025_v32 = vmul.f32 %v10463_v8, %v10463_v8 }
0x13ba   :  { %3027 = vrot.lane.b32.xlu0 %v3025_v32, %s8647_s28 }
0x1404   :  { %v3657_v1 = vpop.permute.xlu2 %3656 }
0x1405   :  { %v3662_v34 = vsel %vm3442_vm10, %v3657_v1, 0.0 }
0x1406   :  { %3663 = vadd.xlane.f32.xlu2 %v3662_v34 }
0x140e   :  { %v3702_v25 = vpop.permute.xlu2 %3701 }
0x140f   :  { %v3708_v42 = vsel %vm3446_vm9, %v3702_v25, 0.0 }
0x1410   :  { %3709 = vadd.xlane.f32.xlu2 %v3708_v42 }
0x141e   :  { %v3700_v62 = vpop.permute.xlu1 %3699 }
0x141f   :  { %v3705_v50 = vsel %vm3442_vm10, %v3700_v62, 0.0 }
0x1420   :  { %3706 = vadd.xlane.f32.xlu1 %v3705_v50 }
0x1424   :  { %v3659_v49 = vpop.permute.xlu0 %3658 }
0x1425   :  { %v3665_v44 = vsel %vm3446_vm9, %v3659_v49, 0.0 }
0x1426   :  { %3666 = vadd.xlane.f32.xlu0 %v3665_v44 }
0x1428   :  { %v3019_v29 = vpop.permute.xlu1 %3018 }
0x1429   :  { %v3021_v6 = vsel %vm12426_vm15, %v3019_v29, 0.0  ;;  %vm12433_vm15 = vcmask 1046534  }
0x142a   :  { %3022 = vadd.xlane.f32.xlu1 %v3021_v6 }
0x142c   :  { %v3028_v5 = vpop.permute.xlu0 %3027 }
0x142d   :  { %v3030_v63 = vsel %vm12427_vm7, %v3028_v5, 0.0  ;;  %vm12434_vm7 = vcmask 1047559  }
0x142e   :  { %3031 = vadd.xlane.f32.xlu0 %v3030_v63 }
0x1479   :  { %v3664_v9 = vpop.xlane.xlu2 %3663 }
0x147a   :  { %v3668_v39 = vmul.f32 %v3664_v9, %v9050_v40 }
0x147c   :  { %v3713_v10 = vmul.f32 %v3668_v39, %v3668_v39  ;;  %v3719_v9 = vrot.slane %v3668_v39, 1 }
0x1483   :  { %v3710_v14 = vpop.xlane.xlu2 %3709 }
0x1484   :  { %v3712_v36 = vmul.f32 %v3710_v14, %v9050_v40 }
0x1493   :  { %v3707_v33 = vpop.xlane.xlu1 %3706 }
0x1494   :  { %v3711_v58 = vmul.f32 %v3707_v33, %v9050_v40  ;;  %v3720_v33 = vrot.slane %v3668_v39, 2 }
0x1496   :  { %v3715_v35 = vsub.f32 %v3711_v58, %v3713_v10  ;;  %v3721_v10 = vrot.slane %v3668_v39, 3 }
0x1498   :  { %v3742_v19 = vadd.f32 1e-05, %v3715_v35 }
0x1499   :  { %v3667_v41 = vpop.xlane.xlu0 %3666 }
0x149a   :  { %8181 = vrsqrt.f32 %v3742_v19  ;;  %v10480_v30 = vmul.f32 %v3667_v41, %v9050_v40  ;;  %v3722_v41 = vrot.slane %v3668_v39, 4  ;;  %vm3750_vm10 = vweird.f32 %v3742_v19 }
0x149c   :  { %v3714_v32 = vmul.f32 %v10480_v30, %v10480_v30 }
0x149d   :  { %v3023_v1 = vpop.xlane.xlu1 %3022 }
0x149e   :  { %v3716_v34 = vsub.f32 %v3712_v36, %v3714_v32  ;;  %v10486_v25 = vmul.f32 %v3023_v1, %v9050_v40  ;;  %v3734_v1 = vsub.f32 %v10407_v51, %v3668_v39  ;;  %v3725_v51 = vrot.slane %v10480_v30, 7 }
0x14a0   :  { %v8182_v42 = vpop.eup %8181  ;;  %v3743_v62 = vadd.f32 1e-05, %v3716_v34  ;;  %v3034_v44 = vmul.f32 %v10486_v25, %v10486_v25  ;;  %v3735_v34 = vsub.f32 %v10399_v7, %v3719_v9  ;;  %v3738_v7 = vsub.f32 %v10417_v26, %v3722_v41 }
0x14a1   :  { %v3745_v50 = vmul.f32 %v8182_v42, %v3742_v19  ;;  %v3032_v49 = vpop.xlane.xlu0 %3031  ;;  %vm3751_vm9 = vweird.f32 %v8182_v42 }
0x14a2   :  { %8183 = vrsqrt.f32 %v3743_v62  ;;  %v3033_v29 = vmul.f32 %v3032_v49, %v9050_v40  ;;  %v3737_v49 = vsub.f32 %v10414_v48, %v3721_v10  ;;  %vm3752_vm13 = vmor %vm3750_vm10, %vm3751_vm9  ;;  %vm3760_vm12 = vweird.f32 %v3743_v62 }
0x14a3   :  { %v3746_v6 = vmul.f32 %v8182_v42, %v3745_v50  ;;  %v3736_v50 = vsub.f32 %v10402_v13, %v3720_v33  ;;  %vm12435_vm9 = vcmask 261120  }
0x14a4   :  { %v3035_v5 = vsub.f32 %v3033_v29, %v3034_v44  ;;  %v3723_v29 = vrot.slane %v10480_v30, 5  ;;  %vm12436_vm10 = vmmov %vm12435_vm9 }
0x14a5   :  { %v3747_v63 = vmul.f32 0.5, %v3746_v6  ;;  %v3724_v6 = vrot.slane %v10480_v30, 6 }
0x14a6   :  { %v10491_v58 = vadd.f32 1e-05, %v3035_v5 }
0x14a7   :  { %v3748_v35 = vsub.f32 1.5, %v3747_v63  ;;  %v3740_v30 = vsub.f32 %v10446_v23, %v3724_v6 }
0x14a8   :  { %v8184_v14 = vpop.eup %8183  ;;  %8185 = vrsqrt.f32 %v10491_v58  ;;  %vm3044_vm0 = vweird.f32 %v10491_v58 }
0x14a9   :  { %v3749_v36 = vmul.f32 %v8182_v42, %v3748_v35  ;;  %v3755_v32 = vmul.f32 %v8184_v14, %v3743_v62  ;;  %vm3761_vm1 = vweird.f32 %v8184_v14 }
0x14aa   :  { %vm3762_vm14 = vmor %vm3760_vm12, %vm3761_vm1 }
0x14ab   :  { %v3753_v44 = vsel %vm3752_vm13, %v8182_v42, %v3749_v36  ;;  %v3756_v5 = vmul.f32 %v8184_v14, %v3755_v32  ;;  %vm12437_vm13 = vmmov %vm12435_vm9 }
0x14ac   :  { %v3766_v63 = vrot.slane %v3753_v44, 1  ;;  %v3767_v17 = vrot.slane %v3753_v44, 2  ;;  %v3768_v35 = vrot.slane %v3753_v44, 3  ;;  %v3769_v19 = vrot.slane %v3753_v44, 4  ;;  %vm12438_vm1 = vmmov %vm12435_vm9 }
0x14ad   :  { %v3781_v38 = vmul.f32 %v3753_v44, %v3734_v1  ;;  %v3757_v39 = vmul.f32 0.5, %v3756_v5  ;;  %v3739_v1 = vsub.f32 %v10432_v43, %v3723_v29 }
0x14ae   :  { %v8186_v13 = vpop.eup %8185  ;;  %v3782_v9 = vmul.f32 %v3766_v63, %v3735_v34  ;;  %v3783_v48 = vmul.f32 %v3767_v17, %v3736_v50  ;;  %v3784_v33 = vmul.f32 %v3768_v35, %v3737_v49  ;;  %v3785_v32 = vmul.f32 %v3769_v19, %v3738_v7 }
0x14af   :  { %v3789_v42 = vmul.f32 %v3781_v38, %v9211_v46  ;;  %v3758_v10 = vsub.f32 1.5, %v3757_v39  ;;  %v3039_v36 = vmul.f32 %v8186_v13, %v10491_v58  ;;  %v3741_v34 = vsub.f32 %v10443_v55, %v3725_v51 }
0x14b0   :  { %v3790_v20 = vmul.f32 %v3782_v9, %v9211_v46  ;;  %v3791_v44 = vmul.f32 %v3783_v48, %v9211_v46  ;;  %v3792_v38 = vmul.f32 %v3784_v33, %v9211_v46  ;;  %v3793_v23 = vmul.f32 %v3785_v32, %v9211_v46 }
0x14b1   :  { %v3759_v26 = vmul.f32 %v8184_v14, %v3758_v10  ;;  %v3040_v41 = vmul.f32 %v8186_v13, %v3039_v36  ;;  %v3797_v17 = vadd.f32 %v3789_v42, %v9229_v18  ;;  %vm3045_vm2 = vweird.f32 %v8186_v13 }
0x14b2   :  { %v3798_v50 = vadd.f32 %v3790_v20, %v9229_v18  ;;  %v3799_v49 = vadd.f32 %v3791_v44, %v9229_v18  ;;  %v3801_v48 = vadd.f32 %v3793_v23, %v9229_v18  ;;  %v3036_v42 = vsub.f32 %v10463_v8, %v10486_v25  ;;  %vm3046_vm11 = vmor %vm3044_vm0, %vm3045_vm2 }
0x14b3   :  { %v3763_v5 = vsel %vm3762_vm14, %v8184_v14, %v3759_v26  ;;  %v3041_v43 = vmul.f32 0.5, %v3040_v41  ;;  %v3813_v29 = vrot.slane %v3797_v17, 3  ;;  %v3800_v14 = vadd.f32 %v3792_v38, %v9229_v18 }
0x14b4   :  { %v3770_v6 = vrot.slane %v3763_v5, 5  ;;  %v3771_v63 = vrot.slane %v3763_v5, 6  ;;  %v3772_v62 = vrot.slane %v3763_v5, 7  ;;  %v3814_v35 = vrot.slane %v3798_v50, 2 }
0x14b5   :  { %v3042_v19 = vsub.f32 1.5, %v3041_v43  ;;  %v3816_v55 = vrot.slane %v3799_v49, 1  ;;  %v3819_v17 = vrot.slane %v3801_v48, 7 }
0x14b6   :  { %v3786_v51 = vmul.f32 %v3770_v6, %v3739_v1  ;;  %v3787_v39 = vmul.f32 %v3771_v63, %v3740_v30  ;;  %v3788_v7 = vmul.f32 %v3772_v62, %v3741_v34  ;;  %v3815_v20 = vsel %vm12428_vm5, %v3814_v35, %v3813_v29  ;;  %v8504_v6 = vld [vmem:[#allocation5 + $0x48] sm:$0xff]  ;;  %v8506_v62 = vld [vmem:[#allocation5 + $0x40] sm:$0xff] }
0x14b7   :  { %v3043_v9 = vmul.f32 %v8186_v13, %v3042_v19  ;;  %v3817_v33 = vsel %vm12429_vm6, %v3816_v55, %v3815_v20  ;;  %v8505_v63 = vld [vmem:[#allocation5 + $0x28] sm:$0xff]  ;;  %v8507_v35 = vld [vmem:[#allocation5 + $0x20] sm:$0xff]  ;;  %v8508_v19 = vld [vmem:[#allocation5 + $0x38] sm:$0xff] }
0x14b8   :  { %v3794_v58 = vmul.f32 %v3786_v51, %v9211_v46  ;;  %v3795_v10 = vmul.f32 %v3787_v39, %v9211_v46  ;;  %v3796_v36 = vmul.f32 %v3788_v7, %v9211_v46  ;;  %v3818_v1 = vsel %vm12430_vm3, %v3800_v14, %v3817_v33  ;;  %v8509_v55 = vld [vmem:[#allocation5 + $0x18] sm:$0xff]  ;;  %v8510_v51 = vld [vmem:[#allocation5 + $0x30] sm:$0xff] }
0x14b9   :  { %v3047_v32 = vsel %vm3046_vm11, %v8186_v13, %v3043_v9  ;;  %v3820_v38 = vsel %vm12431_vm4, %v3819_v17, %v3818_v1  ;;  %v8511_v39 = vld [vmem:[#allocation5 + $0x10] sm:$0xff] }
0x14ba   :  { %v3048_v30 = vmul.f32 %v3047_v32, %v3036_v42  ;;  %v3802_v44 = vadd.f32 %v3794_v58, %v9229_v18  ;;  %v3803_v26 = vadd.f32 %v3795_v10, %v9229_v18  ;;  %v3804_v41 = vadd.f32 %v3796_v36, %v9229_v18 }
0x14bc   :  { %v3049_v8 = vmul.f32 %v3048_v30, %v9721_v4  ;;  %v3821_v25 = vrot.slane %v3802_v44, 6  ;;  %v3823_v34 = vrot.slane %v3803_v26, 5  ;;  %v3825_v49 = vrot.slane %v3804_v41, 4 }
0x14be   :  { %v10531_v50 = vadd.f32 %v3049_v8, %v9723_v27  ;;  %v3822_v13 = vsel %vm12432_vm8, %v3821_v25, %v3820_v38 }
0x14bf   :  { %v3824_v5 = vsel %vm12433_vm15, %v3823_v34, %v3822_v13 }
0x14c0   :  { %8187 = vtanh.f32 %v10531_v50  ;;  %v3826_v43 = vsel %vm12434_vm7, %v3825_v49, %v3824_v5 }
0x14c1   :  { %3827 = vrot.lane.b32.xlu2 %v3826_v43, %s8646_s2 }
0x14c6   :  { %v8188_v23 = vpop.eup %8187 }
0x14c7   :  { %3053 = vrot.lane.b32.xlu1 %v8188_v23, %s8645_s0 }
0x151b   :  { %v3828_v29 = vpop.permute.xlu2 %3827 }
0x151c   :  { %7813 = vmatmul.msk.f32.vlgmr.msrb.gmra.mxu2 %vm12435_vm9, %v3828_v29  ;;  %7817 = vmatmul.msk.f32.vlgmr.msra.gmra.mxu1 %vm12436_vm10, %v3828_v29 }
0x151d   :  { %5677 = vmatpush.msrb.mxu2 %v8504_v6  ;;  %5854 = vmatpush.msra.mxu1 %v8505_v63 }
0x151f   :  { %5678 = vmatpush.msrb.mxu2 %v8506_v62  ;;  %5855 = vmatpush.msra.mxu1 %v8507_v35 }
0x1521   :  { %5679 = vmatpush.msrb.mxu2 %v8508_v19  ;;  %5856 = vmatpush.msra.mxu1 %v8509_v55 }
0x1523   :  { %5680 = vmatpush.msrb.mxu2 %v8510_v51  ;;  %5857 = vmatpush.msra.mxu1 %v8511_v39 }
0x1539   :  { %v3054_v7 = vpop.permute.xlu1 %3053 }
0x153a   :  { %v10542_v20 = vmul.f32 %v3054_v7, %v10324_v45 }
0x153c   :  { %v3065_v9 = vmul.f32 %v10542_v20, %v10542_v20  ;;  %3058 = vrot.lane.b32.xlu0 %v10542_v20, %s8646_s2 }
0x153e   :  { %3067 = vrot.lane.b32.xlu2 %v3065_v9, %s8646_s2 }
0x1598   :  { %v3068_v14 = vpop.permute.xlu2 %3067 }
0x1599   :  { %v10549_v48 = vpop.f32.mrf.mxu1  ;;  %v3070_v33 = vsel %vm12437_vm13, %v3068_v14, 0.0 }
0x159a   :  { %3071 = vadd.xlane.f32.xlu1 %v3070_v33  ;;  %v4033_v42 = vrot.slane %v10549_v48, 1  ;;  %v4048_v45 = vadd.f32 %v10549_v48, %v8875_v56 }
0x159c   :  { %v4049_v58 = vadd.f32 %v4033_v42, %v8925_v60  ;;  %v7822_v10 = vmul.f32 -1.442695, %v4048_v45  ;;  %v4030_v45 = vrot.slane %v10549_v48, 5 }
0x159e   :  { %8189 = vpow2.f32 %v7822_v10  ;;  %v7823_v36 = vmul.f32 -1.442695, %v4049_v58  ;;  %v4045_v58 = vadd.f32 %v4030_v45, %v8776_v57  ;;  %v4031_v10 = vrot.slane %v10549_v48, 6 }
0x15a0   :  { %8191 = vpow2.f32 %v7823_v36  ;;  %v7819_v36 = vmul.f32 -1.442695, %v4045_v58 }
0x15a4   :  { %v8190_v32 = vpop.eup %8189 }
0x15a5   :  { %v4080_v1 = vadd.f32 1.0, %v8190_v32  ;;  %v4046_v32 = vadd.f32 %v4031_v10, %v8811_v28  ;;  %v4035_v10 = vrot.slane %v10549_v48, 3 }
0x15a6   :  { %v8192_v30 = vpop.eup %8191 }
0x15a7   :  { %8193 = vrcp.f32 %v4080_v1  ;;  %v4081_v44 = vadd.f32 1.0, %v8192_v30  ;;  %v4155_v5 = vand.u32 2147483648, %v4080_v1  ;;  %vm4149_vm14 = vweird.f32 %v4080_v1 }
0x15a8   :  { %v4153_v23 = vand.u32 2147483647, %v4080_v1  ;;  %v7820_v30 = vmul.f32 -1.442695, %v4046_v32 }
0x15a9   :  { %8195 = vrcp.f32 %v4081_v44  ;;  %v4170_v29 = vand.u32 2147483648, %v4081_v44  ;;  %v4168_v63 = vand.u32 2147483647, %v4081_v44  ;;  %v4156_v35 = vor.u32 1.1754944e-38, %v4155_v5 }
0x15aa   :  { %vm4164_vm5 = vweird.f32 %v4081_v44  ;;  %vm4154_vm6 = vcmp.eq.f32.partialorder %v4153_v23, 8.507059e+37  ;;  %8197 = vpow2.f32 %v7819_v36 }
0x15ab   :  { %v4171_v55 = vor.u32 1.1754944e-38, %v4170_v29  ;;  %vm4169_vm3 = vcmp.eq.f32.partialorder %v4168_v63, 8.507059e+37  ;;  %8199 = vpow2.f32 %v7820_v30 }
0x15ad   :  { %v8194_v26 = vpop.eup %8193 }
0x15ae   :  { %v3059_v41 = vpop.permute.xlu0 %3058  ;;  %v4145_v8 = vmul.f32 %v8194_v26, %v4080_v1  ;;  %vm4150_vm12 = vweird.f32 %v8194_v26  ;;  %v4029_v1 = vrot.slane %v10549_v48, 4 }
0x15af   :  { %v3061_v17 = vsel %vm12438_vm1, %v3059_v41, 0.0  ;;  %v8196_v34 = vpop.eup %8195  ;;  %vm4151_vm0 = vmor %vm4149_vm14, %vm4150_vm12 }
0x15b0   :  { %3062 = vadd.xlane.f32.xlu0 %v3061_v17  ;;  %v4146_v25 = vsub.f32 1.0, %v4145_v8  ;;  %v4160_v13 = vmul.f32 %v8196_v34, %v4081_v44  ;;  %vm4165_vm2 = vweird.f32 %v8196_v34  ;;  %v8198_v44 = vpop.eup %8197 }
0x15b1   :  { %vm4166_vm11 = vmor %vm4164_vm5, %vm4165_vm2  ;;  %v10571_v41 = vadd.f32 1.0, %v8198_v44  ;;  %v8200_v5 = vpop.eup %8199 }
0x15b2   :  { %v4147_v38 = vmul.f32 %v8194_v26, %v4146_v25  ;;  %v4161_v43 = vsub.f32 1.0, %v4160_v13 }
0x15b3   :  { %8201 = vrcp.f32 %v10571_v41  ;;  %vm4104_vm9 = vweird.f32 %v10571_v41 }
0x15b4   :  { %v4148_v49 = vadd.f32 %v8194_v26, %v4147_v38  ;;  %v4162_v6 = vmul.f32 %v8196_v34, %v4161_v43 }
0x15b6   :  { %v4152_v62 = vsel %vm4151_vm0, %v8194_v26, %v4148_v49  ;;  %v4163_v19 = vadd.f32 %v8196_v34, %v4162_v6  ;;  %v4044_v26 = vadd.f32 %v4029_v1, %v8759_v37  ;;  %v10578_v6 = vadd.f32 1.0, %v8200_v5 }
0x15b7   :  { %v10557_v51 = vsel %vm4154_vm6, %v4156_v35, %v4152_v62  ;;  %v4034_v62 = vrot.slane %v10549_v48, 2 }
0x15b8   :  { %v4167_v39 = vsel %vm4166_vm11, %v8196_v34, %v4163_v19  ;;  %v4208_v14 = vmul.f32 2.0, %v10557_v51  ;;  %v4032_v34 = vrot.slane %v10549_v48, 7  ;;  %v7818_v38 = vmul.f32 -1.442695, %v4044_v26 }
0x15b9   :  { %v10559_v7 = vsel %vm4169_vm3, %v4171_v55, %v4167_v39  ;;  %v8202_v63 = vpop.eup %8201  ;;  %vm4119_vm12 = vweird.f32 %v10578_v6 }
0x15ba   :  { %v4209_v9 = vmul.f32 2.0, %v10559_v7  ;;  %v7830_v42 = vadd.f32 -1.0, %v4208_v14  ;;  %v4047_v23 = vadd.f32 %v4032_v34, %v8839_v12  ;;  %8203 = vpow2.f32 %v7818_v38 }
0x15bb   :  { %v4100_v55 = vmul.f32 %v8202_v63, %v10571_v41  ;;  %v4051_v34 = vadd.f32 %v4035_v10, %v8941_v3  ;;  %vm4105_vm7 = vweird.f32 %v8202_v63 }
0x15bc   :  { %v7831_v33 = vadd.f32 -1.0, %v4209_v9  ;;  %v7821_v35 = vmul.f32 -1.442695, %v4047_v23  ;;  %v4050_v9 = vadd.f32 %v4034_v62, %v8903_v31  ;;  %v4110_v62 = vand.u32 2147483648, %v10571_v41  ;;  %vm4106_vm10 = vmor %vm4104_vm9, %vm4105_vm7 }
0x15be   :  { %4270 = vrot.lane.b32.xlu1 %v7831_v33, %s8645_s0  ;;  %v7824_v36 = vmul.f32 -1.442695, %v4050_v9 }
0x15c0   :  { %v8204_v19 = vpop.eup %8203 }
0x15c1   :  { %v10584_v14 = vadd.f32 1.0, %v8204_v19 }
0x15c3   :  { %vm4089_vm5 = vweird.f32 %v10584_v14 }
0x15c4   :  { %4268 = vrot.lane.b32.xlu0 %v7830_v42, %s8645_s0  ;;  %v4101_v42 = vsub.f32 1.0, %v4100_v55  ;;  %v4108_v55 = vand.u32 2147483647, %v10571_v41 }
0x15c6   :  { %v4102_v26 = vmul.f32 %v8202_v63, %v4101_v42  ;;  %vm4109_vm13 = vcmp.eq.f32.partialorder %v4108_v55, 8.507059e+37 }
0x160d   :  { %v3072_v17 = vpop.xlane.xlu1 %3071 }
0x160e   :  { %v3073_v13 = vmul.f32 %v3072_v17, %v9050_v40 }
0x1623   :  { %v3063_v8 = vpop.xlane.xlu0 %3062 }
0x1624   :  { %v3064_v25 = vmul.f32 %v3063_v8, %v9050_v40 }
0x1626   :  { %v3074_v49 = vmul.f32 %v3064_v25, %v3064_v25 }
0x1628   :  { %v3075_v43 = vsub.f32 %v3073_v13, %v3074_v49  ;;  %v3076_v13 = vsub.f32 %v10542_v20, %v3064_v25  ;;  %v4103_v49 = vadd.f32 %v8202_v63, %v4102_v26 }
0x162a   :  { %v3077_v29 = vadd.f32 1e-05, %v3075_v43  ;;  %v4107_v25 = vsel %vm4106_vm10, %v8202_v63, %v4103_v49 }
0x162c   :  { %8205 = vrsqrt.f32 %v3077_v29  ;;  %vm3084_vm8 = vweird.f32 %v3077_v29 }
0x162d   :  { %8207 = vrcp.f32 %v10578_v6 }
0x162e   :  { %8209 = vpow2.f32 %v7821_v35  ;;  %v7825_v35 = vmul.f32 -1.442695, %v4051_v34 }
0x162f   :  { %8211 = vrcp.f32 %v10584_v14 }
0x1630   :  { %8213 = vpow2.f32 %v7824_v36 }
0x1632   :  { %v8206_v39 = vpop.eup %8205 }
0x1633   :  { %v3079_v33 = vmul.f32 %v8206_v39, %v3077_v29  ;;  %v10586_v45 = vpop.eup %8207  ;;  %vm3085_vm4 = vweird.f32 %v8206_v39 }
0x1634   :  { %v8210_v44 = vpop.eup %8209  ;;  %v4115_v17 = vmul.f32 %v10586_v45, %v10578_v6  ;;  %vm3086_vm15 = vmor %vm3084_vm8, %vm3085_vm4  ;;  %vm4120_vm1 = vweird.f32 %v10586_v45 }
0x1635   :  { %v3080_v58 = vmul.f32 %v8206_v39, %v3079_v33  ;;  %v10595_v48 = vadd.f32 1.0, %v8210_v44  ;;  %v8212_v43 = vpop.eup %8211  ;;  %vm4121_vm14 = vmor %vm4119_vm12, %vm4120_vm1 }
0x1636   :  { %v4269_v32 = vpop.permute.xlu0 %4268  ;;  %v4116_v5 = vsub.f32 1.0, %v4115_v17  ;;  %v8214_v29 = vpop.eup %8213  ;;  %v4085_v33 = vmul.f32 %v8212_v43, %v10584_v14  ;;  %vm4090_vm2 = vweird.f32 %v8212_v43 }
0x1637   :  { %v3081_v1 = vmul.f32 0.5, %v3080_v58  ;;  %v4288_v30 = vmul.f32 %v4269_v32, %v10557_v51  ;;  %8215 = vrcp.f32 %v10595_v48  ;;  %v10606_v58 = vadd.f32 1.0, %v8214_v29  ;;  %vm4091_vm6 = vmor %vm4089_vm5, %vm4090_vm2 }
0x1638   :  { %v4117_v9 = vmul.f32 %v10586_v45, %v4116_v5  ;;  %8217 = vpow2.f32 %v7825_v35  ;;  %v4086_v63 = vsub.f32 1.0, %v4085_v33  ;;  %v4125_v32 = vand.u32 2147483648, %v10578_v6 }
0x1639   :  { %v3082_v8 = vsub.f32 1.5, %v3081_v1  ;;  %4308 = vrot.lane.b32.xlu0 %v4288_v30, %s8646_s2  ;;  %v4123_v30 = vand.u32 2147483647, %v10578_v6  ;;  %8219 = vrcp.f32 %v10606_v58  ;;  %v4093_v35 = vand.u32 2147483647, %v10584_v14 }
0x163a   :  { %v4118_v41 = vadd.f32 %v10586_v45, %v4117_v9  ;;  %v4087_v17 = vmul.f32 %v8212_v43, %v4086_v63  ;;  %v4126_v34 = vor.u32 1.1754944e-38, %v4125_v32  ;;  %vm4134_vm4 = vweird.f32 %v10595_v48 }
0x163b   :  { %v3083_v38 = vmul.f32 %v8206_v39, %v3082_v8  ;;  %vm4124_vm0 = vcmp.eq.f32.partialorder %v4123_v30, 8.507059e+37  ;;  %vm4094_vm11 = vcmp.eq.f32.partialorder %v4093_v35, 8.507059e+37  ;;  %vm4179_vm9 = vweird.f32 %v10606_v58 }
0x163c   :  { %v4122_v26 = vsel %vm4121_vm14, %v10586_v45, %v4118_v41  ;;  %v4088_v5 = vadd.f32 %v8212_v43, %v4087_v17  ;;  %vm12439_vm2 = vcmask 261120   ;;  %vm12440_vm5 = vcmask 1045509  }
0x163d   :  { %v3087_v23 = vsel %vm3086_vm15, %v8206_v39, %v3083_v38  ;;  %v4111_v39 = vor.u32 1.1754944e-38, %v4110_v62  ;;  %v8216_v36 = vpop.eup %8215  ;;  %v10622_v49 = vsel %vm4124_vm0, %v4126_v34, %v4122_v26  ;;  %v4095_v62 = vand.u32 2147483648, %v10584_v14 }
0x163e   :  { %v3088_v19 = vmul.f32 %v3087_v23, %v3076_v13  ;;  %v8218_v44 = vpop.eup %8217  ;;  %v4130_v8 = vmul.f32 %v8216_v36, %v10595_v48  ;;  %v4206_v45 = vmul.f32 2.0, %v10622_v49  ;;  %vm4135_vm3 = vweird.f32 %v8216_v36 }
0x163f   :  { %v10608_v10 = vsel %vm4109_vm13, %v4111_v39, %v4107_v25  ;;  %v10620_v13 = vadd.f32 1.0, %v8218_v44  ;;  %v8220_v23 = vpop.eup %8219  ;;  %v4140_v14 = vand.u32 2147483648, %v10595_v48  ;;  %vm4136_vm8 = vmor %vm4134_vm4, %vm4135_vm3  ;;  %v4185_v34 = vand.u32 2147483648, %v10606_v58 }
0x1640   :  { %v3089_v20 = vmul.f32 %v3088_v19, %v9779_v53  ;;  %v4205_v1 = vmul.f32 2.0, %v10608_v10  ;;  %v4131_v6 = vsub.f32 1.0, %v4130_v8  ;;  %v4092_v19 = vsel %vm4091_vm6, %v8212_v43, %v4088_v5 }
0x1641   :  { %8221 = vrcp.f32 %v10620_v13  ;;  %v4175_v29 = vmul.f32 %v8220_v23, %v10606_v58  ;;  %v7828_v25 = vadd.f32 -1.0, %v4206_v45  ;;  %v4138_v43 = vand.u32 2147483647, %v10595_v48 }
0x1642   :  { %v3090_v42 = vadd.f32 %v3089_v20, %v9781_v2  ;;  %v7827_v38 = vadd.f32 -1.0, %v4205_v1  ;;  %v4132_v55 = vmul.f32 %v8216_v36, %v4131_v6  ;;  %v4096_v20 = vor.u32 1.1754944e-38, %v4095_v62 }
0x1643   :  { %v4176_v39 = vsub.f32 1.0, %v4175_v29  ;;  %v4141_v30 = vor.u32 1.1754944e-38, %v4140_v14  ;;  %vm4139_vm15 = vcmp.eq.f32.partialorder %v4138_v43, 8.507059e+37  ;;  %vm4180_vm7 = vweird.f32 %v8220_v23 }
0x1644   :  { %3877 = vrot.lane.b32.xlu2 %v3090_v42, %s8646_s2  ;;  %v10631_v9 = vsel %vm4094_vm11, %v4096_v20, %v4092_v19  ;;  %v4133_v33 = vadd.f32 %v8216_v36, %v4132_v55  ;;  %v4183_v48 = vand.u32 2147483647, %v10606_v58  ;;  %vm4181_vm10 = vmor %vm4179_vm9, %vm4180_vm7  ;;  %v4186_v6 = vor.u32 1.1754944e-38, %v4185_v34 }
0x1645   :  { %v4204_v41 = vmul.f32 2.0, %v10631_v9  ;;  %v4177_v32 = vmul.f32 %v8220_v23, %v4176_v39  ;;  %v4200_v19 = vand.u32 2147483648, %v10620_v13  ;;  %vm4194_vm12 = vweird.f32 %v10620_v13 }
0x1646   :  { %v4137_v63 = vsel %vm4136_vm8, %v8216_v36, %v4133_v33  ;;  %vm4184_vm13 = vcmp.eq.f32.partialorder %v4183_v48, 8.507059e+37  ;;  %v4198_v58 = vand.u32 2147483647, %v10620_v13  ;;  %vm12441_vm6 = vcmask 1046534  }
0x1647   :  { %v8222_v42 = vpop.eup %8221  ;;  %v7826_v44 = vadd.f32 -1.0, %v4204_v41  ;;  %v10639_v26 = vsel %vm4139_vm15, %v4141_v30, %v4137_v63  ;;  %v4178_v17 = vadd.f32 %v8220_v23, %v4177_v32  ;;  %v4201_v29 = vor.u32 1.1754944e-38, %v4200_v19  ;;  %v8512_v41 = vld [vmem:[#allocation5 + $0x68] sm:$0xff]  ;;  %v8515_v63 = vld [vmem:[#allocation5 + $0x50] sm:$0xff]  ;;  %vm12446_vm15 = vmmov %vm12440_vm5 }
0x1648   :  { %v4190_v1 = vmul.f32 %v8222_v42, %v10620_v13  ;;  %vm4195_vm1 = vweird.f32 %v8222_v42  ;;  %vm4199_vm0 = vcmp.eq.f32.partialorder %v4198_v58, 8.507059e+37  ;;  %v8513_v13 = vld [vmem:[#allocation5 + $0x60] sm:$0xff]  ;;  %vm12442_vm11 = vcmask 1047559   ;;  %vm12447_vm7 = vmmov %vm12441_vm6 }
0x1649   :  { %v4182_v36 = vsel %vm4181_vm10, %v8220_v23, %v4178_v17  ;;  %vm4196_vm14 = vmor %vm4194_vm12, %vm4195_vm1  ;;  %vm12443_vm3 = vcmask 1041409   ;;  %vm12444_vm4 = vcmask 1042434   ;;  %vm12445_vm8 = vcmask 1043459  }
0x164a   :  { %v4191_v8 = vsub.f32 1.0, %v4190_v1  ;;  %v10646_v45 = vsel %vm4184_vm13, %v4186_v6, %v4182_v36  ;;  %vm12448_vm9 = vmmov %vm12442_vm11 }
0x164b   :  { %v4210_v55 = vmul.f32 2.0, %v10646_v45  ;;  %vm12449_vm10 = vmmov %vm12443_vm3 }
0x164c   :  { %4262 = vrot.lane.b32.xlu2 %v7827_v38, %s8645_s0  ;;  %v4207_v38 = vmul.f32 2.0, %v10639_v26  ;;  %v4192_v5 = vmul.f32 %v8222_v42, %v4191_v8  ;;  %v4271_v8 = vpop.permute.xlu1 %4270  ;;  %vm12450_vm13 = vmmov %vm12444_vm4 }
0x164d   :  { %v7832_v20 = vadd.f32 -1.0, %v4210_v55  ;;  %vm12451_vm1 = vmmov %vm12445_vm8 }
0x164e   :  { %v7829_v62 = vadd.f32 -1.0, %v4207_v38  ;;  %v4193_v35 = vadd.f32 %v8222_v42, %v4192_v5  ;;  %v4289_v38 = vmul.f32 %v4271_v8, %v10559_v7 }
0x1650   :  { %v4197_v23 = vsel %vm4196_vm14, %v8222_v42, %v4193_v35  ;;  %v8514_v42 = vld [vmem:[#allocation5 + $0x58] sm:$0xff]  ;;  %v3848_v35 = vpop.f32.mrf.mxu2 }
0x1651   :  { %v10674_v19 = vadd.f32 %v3848_v35, %v9475_v11  ;;  %v4234_v35 = vrot.slane %v10385_v15, 7 }
0x1653   :  { %v3854_v55 = vmul.f32 %v10674_v19, %v10674_v19 }
0x1654   :  { %4264 = vrot.lane.b32.xlu2 %v7828_v25, %s8645_s0  ;;  %v10653_v25 = vsel %vm4199_vm0, %v4201_v29, %v4197_v23  ;;  %v4229_v29 = vrot.slane %v10347_v0, 7 }
0x1655   :  { %v4211_v33 = vmul.f32 2.0, %v10653_v25 }
0x1657   :  { %v7833_v39 = vadd.f32 -1.0, %v4211_v33  ;;  %v4245_v33 = vmul.f32 %v4229_v29, %v10608_v10  ;;  %v4250_v29 = vmul.f32 %v4234_v35, %v10646_v45 }
0x165c   :  { %4260 = vrot.lane.b32.xlu2 %v7826_v44, %s8645_s0 }
0x1664   :  { %4266 = vrot.lane.b32.xlu2 %v7829_v62, %s8645_s0 }
0x166c   :  { %4272 = vrot.lane.b32.xlu2 %v7832_v20, %s8645_s0  ;;  %v4230_v20 = vrot.slane %v10356_v24, 7 }
0x1674   :  { %4274 = vrot.lane.b32.xlu2 %v7833_v39, %s8645_s0  ;;  %v4231_v39 = vrot.slane %v10373_v54, 7 }
0x169e   :  { %v3878_v14 = vpop.permute.xlu2 %3877 }
0x169f   :  { %7814 = vmatmul.msk.f32.vlgmr.msrb.gmra.mxu3 %vm12439_vm2, %v3878_v14  ;;  %vm4359_vm2 = vcmask 261124  }
0x16a0   :  { %5727 = vmatpush.msrb.mxu3 %v8512_v41 }
0x16a2   :  { %5728 = vmatpush.msrb.mxu3 %v8513_v13  ;;  %v4246_v13 = vmul.f32 %v4230_v20, %v10622_v49 }
0x16a4   :  { %5729 = vmatpush.msrb.mxu3 %v8514_v42 }
0x16a6   :  { %v4263_v43 = vpop.permute.xlu2 %4262  ;;  %5730 = vmatpush.msrb.mxu3 %v8515_v63  ;;  %v4228_v63 = vrot.slane %v10344_v61, 7 }
0x16a7   :  { %v4285_v32 = vmul.f32 %v4263_v43, %v10608_v10  ;;  %v4247_v43 = vmul.f32 %v4231_v39, %v10639_v26 }
0x16a8   :  { %v4244_v0 = vmul.f32 %v4228_v63, %v10631_v9 }
0x16a9   :  { %4302 = vrot.lane.b32.xlu2 %v4285_v32, %s8646_s2 }
0x16ab   :  { %v4309_v58 = vpop.permute.xlu0 %4308 }
0x16ae   :  { %v4265_v1 = vpop.permute.xlu2 %4264 }
0x16af   :  { %v4286_v30 = vmul.f32 %v4265_v1, %v10622_v49 }
0x16b1   :  { %4304 = vrot.lane.b32.xlu0 %v4286_v30, %s8646_s2 }
0x16b6   :  { %v4261_v44 = vpop.permute.xlu2 %4260 }
0x16b7   :  { %v4284_v17 = vmul.f32 %v4261_v44, %v10631_v9 }
0x16b9   :  { %4300 = vrot.lane.b32.xlu1 %v4284_v17, %s8646_s2 }
0x16be   :  { %v4267_v34 = vpop.permute.xlu2 %4266 }
0x16bf   :  { %v4287_v48 = vmul.f32 %v4267_v34, %v10639_v26 }
0x16c1   :  { %4306 = vrot.lane.b32.xlu2 %v4287_v48, %s8646_s2  ;;  %4310 = vrot.lane.b32.xlu1 %v4289_v38, %s8646_s2  ;;  %v4233_v38 = vrot.slane %v10362_v59, 7  ;;  %v4235_v59 = vrot.slane %v10388_v52, 7 }
0x16c3   :  { %v4251_v39 = vmul.f32 %v4235_v59, %v10653_v25 }
0x16c6   :  { %v4273_v36 = vpop.permute.xlu2 %4272 }
0x16c7   :  { %v4290_v5 = vmul.f32 %v4273_v36, %v10646_v45  ;;  %v4232_v36 = vrot.slane %v10376_v22, 7 }
0x16c9   :  { %4312 = vrot.lane.b32.xlu2 %v4290_v5, %s8646_s2  ;;  %v4249_v5 = vmul.f32 %v4233_v38, %v10559_v7 }
0x16ce   :  { %v4275_v6 = vpop.permute.xlu2 %4274 }
0x16cf   :  { %v4291_v62 = vmul.f32 %v4275_v6, %v10653_v25  ;;  %v4248_v6 = vmul.f32 %v4232_v36, %v10557_v51 }
0x16d1   :  { %4314 = vrot.lane.b32.xlu0 %v4291_v62, %s8646_s2 }
0x16eb   :  { %3851 = vadd.xlane.f32.xlu1 %v10674_v19 }
0x16f2   :  { %3855 = vadd.xlane.f32.xlu2 %v3854_v55  ;;  %v10710_v55 = vadd.f32 %v4309_v58, %v4248_v6 }
0x16f4   :  { %v4346_v22 = vrot.slane %v10710_v55, 4  ;;  %v4373_v38 = vmul.f32 %v10710_v55, %v10710_v55 }
0x1703   :  { %v4303_v23 = vpop.permute.xlu2 %4302 }
0x1704   :  { %v10684_v42 = vadd.f32 %v4303_v23, %v4245_v33 }
0x1706   :  { %v4340_v30 = vrot.slane %v10684_v42, 7 }
0x171b   :  { %v4307_v41 = vpop.permute.xlu2 %4306 }
0x171c   :  { %v10690_v1 = vadd.f32 %v4307_v41, %v4247_v43  ;;  %v4370_v41 = vmul.f32 %v10684_v42, %v10684_v42 }
0x171e   :  { %v4344_v17 = vrot.slane %v10690_v1, 5 }
0x1723   :  { %v4305_v14 = vpop.permute.xlu0 %4304  ;;  %v4313_v23 = vpop.permute.xlu2 %4312 }
0x1724   :  { %v10688_v32 = vadd.f32 %v4305_v14, %v4246_v13  ;;  %v10715_v33 = vadd.f32 %v4313_v23, %v4250_v29  ;;  %v4391_v23 = vrot.slane %v4373_v38, 4 }
0x1726   :  { %v4342_v44 = vrot.slane %v10688_v32, 6  ;;  %v4349_v13 = vrot.slane %v10715_v33, 2  ;;  %v4371_v63 = vmul.f32 %v10688_v32, %v10688_v32  ;;  %v4375_v35 = vmul.f32 %v10715_v33, %v10715_v33 }
0x1728   :  { %v4394_v59 = vrot.slane %v4375_v35, 2  ;;  %v3898_v35 = vpop.f32.mrf.mxu3 }
0x172b   :  { %v4301_v24 = vpop.permute.xlu1 %4300 }
0x172c   :  { %v10694_v54 = vadd.f32 %v4301_v24, %v4244_v0  ;;  %v4385_v24 = vrot.slane %v4370_v41, 7 }
0x172e   :  { %v4341_v8 = vsel %vm12440_vm5, %v4340_v30, %v10694_v54  ;;  %v4369_v43 = vmul.f32 %v10694_v54, %v10694_v54  ;;  %vm4363_vm5 = vcmask 257024  }
0x172f   :  { %v4343_v61 = vsel %vm12441_vm6, %v4342_v44, %v4341_v8  ;;  %v4372_v44 = vmul.f32 %v10690_v1, %v10690_v1  ;;  %v4387_v8 = vrot.slane %v4371_v63, 6 }
0x1730   :  { %v4345_v34 = vsel %vm12442_vm11, %v4344_v17, %v4343_v61  ;;  %v4386_v17 = vsel %vm12446_vm15, %v4385_v24, %v4369_v43 }
0x1731   :  { %4353 = vrot.lane.b32.xlu0 %v4345_v34, %s8647_s28  ;;  %v4388_v34 = vsel %vm12447_vm7, %v4387_v8, %v4386_v17 }
0x1733   :  { %v4311_v48 = vpop.permute.xlu1 %4310 }
0x1734   :  { %v10707_v62 = vadd.f32 %v4311_v48, %v4249_v5  ;;  %v4389_v48 = vrot.slane %v4372_v44, 5 }
0x1736   :  { %v4347_v20 = vrot.slane %v10707_v62, 3  ;;  %v4374_v61 = vmul.f32 %v10707_v62, %v10707_v62  ;;  %v4390_v6 = vsel %vm12448_vm9, %v4389_v48, %v4388_v34 }
0x1738   :  { %v4348_v58 = vsel %vm12443_vm3, %v4347_v20, %v4346_v22  ;;  %v4392_v36 = vrot.slane %v4374_v61, 3 }
0x1739   :  { %v4350_v0 = vsel %vm12444_vm4, %v4349_v13, %v4348_v58 }
0x173a   :  { %v4393_v20 = vsel %vm12449_vm10, %v4392_v36, %v4391_v23 }
0x173b   :  { %v4395_v22 = vsel %vm12450_vm13, %v4394_v59, %v4393_v20 }
0x1743   :  { %v4315_v14 = vpop.permute.xlu0 %4314 }
0x1744   :  { %v10721_v15 = vadd.f32 %v4315_v14, %v4251_v39 }
0x1746   :  { %v4351_v52 = vrot.slane %v10721_v15, 1  ;;  %v4376_v5 = vmul.f32 %v10721_v15, %v10721_v15 }
0x1748   :  { %v4352_v30 = vsel %vm12445_vm8, %v4351_v52, %v4350_v0  ;;  %v4396_v29 = vrot.slane %v4376_v5, 1  ;;  %v12452_v5 = vld [vmem:[#allocation16_spill] sm:$0xff] }
0x1749   :  { %4355 = vrot.lane.b32.xlu0 %v4352_v30, %s8647_s28 }
0x174a   :  { %v4397_v39 = vsel %vm12451_vm1, %v4396_v29, %v4395_v22  ;;  %vm12455_vm1 = vcmask 1045509  }
0x1751   :  { %4398 = vrot.lane.b32.xlu0 %v4390_v6, %s8647_s28 }
0x1759   :  { %4400 = vrot.lane.b32.xlu0 %v4397_v39, %s8647_s28 }
0x175e   :  { %v3852_v14 = vpop.xlane.xlu1 %3851 }
0x175f   :  { %v3853_v41 = vmul.f32 %v3852_v14, %v8731_v47 }
0x1761   :  { %v3858_v13 = vmul.f32 %v3853_v41, %v3853_v41  ;;  %v3860_v34 = vsub.f32 %v10674_v19, %v3853_v41 }
0x1765   :  { %v3856_v58 = vpop.xlane.xlu2 %3855 }
0x1766   :  { %v3857_v43 = vmul.f32 %v3856_v58, %v8731_v47 }
0x1768   :  { %v3859_v52 = vsub.f32 %v3857_v43, %v3858_v13 }
0x176a   :  { %v3861_v63 = vadd.f32 1e-05, %v3859_v52 }
0x176c   :  { %8223 = vrsqrt.f32 %v3861_v63  ;;  %vm3868_vm14 = vweird.f32 %v3861_v63 }
0x1772   :  { %v8224_v0 = vpop.eup %8223 }
0x1773   :  { %v3863_v24 = vmul.f32 %v8224_v0, %v3861_v63  ;;  %vm3869_vm12 = vweird.f32 %v8224_v0 }
0x1774   :  { %vm3870_vm0 = vmor %vm3868_vm14, %vm3869_vm12  ;;  %vm12456_vm12 = vcmask 1046534   ;;  %vm12457_vm14 = vcmask 1047559  }
0x1775   :  { %v3864_v30 = vmul.f32 %v8224_v0, %v3863_v24 }
0x1777   :  { %v3865_v44 = vmul.f32 0.5, %v3864_v30 }
0x1779   :  { %v3866_v17 = vsub.f32 1.5, %v3865_v44 }
0x177b   :  { %v3867_v8 = vmul.f32 %v8224_v0, %v3866_v17 }
0x177d   :  { %v3871_v61 = vsel %vm3870_vm0, %v8224_v0, %v3867_v8  ;;  %vm12458_vm0 = vmmov %vm12455_vm1 }
0x177e   :  { %v3872_v38 = vmul.f32 %v3871_v61, %v3860_v34 }
0x1780   :  { %v3873_v48 = vmul.f32 %v3872_v38, %v12411_v16 }
0x1782   :  { %v3874_v36 = vadd.f32 %v3873_v48, %v12412_v21 }
0x1784   :  { %v3875_v6 = vadd.f32 %v3874_v36, %v12452_v5 }
0x1786   :  { %v3901_v23 = vadd.f32 %v3898_v35, %v3875_v6 }
0x1788   :  { %v7815_v29 = vmul.f32 -1.442695, %v3901_v23 }
0x178a   :  { %8225 = vpow2.f32 %v7815_v29 }
0x1790   :  { %v8226_v22 = vpop.eup %8225 }
0x1791   :  { %v3905_v39 = vadd.f32 1.0, %v8226_v22 }
0x1793   :  { %8227 = vrcp.f32 %v3905_v39  ;;  %v3917_v24 = vand.u32 2147483648, %v3905_v39  ;;  %vm3911_vm11 = vweird.f32 %v3905_v39  ;;  %v3915_v30 = vand.u32 2147483647, %v3905_v39 }
0x1795   :  { %v3918_v17 = vor.u32 1.1754944e-38, %v3917_v24  ;;  %vm3916_vm4 = vcmp.eq.f32.partialorder %v3915_v30, 8.507059e+37 }
0x1799   :  { %v8228_v19 = vpop.eup %8227 }
0x179a   :  { %v3907_v14 = vmul.f32 %v8228_v19, %v3905_v39  ;;  %vm3912_vm6 = vweird.f32 %v8228_v19 }
0x179b   :  { %vm3913_vm3 = vmor %vm3911_vm11, %vm3912_vm6 }
0x179c   :  { %v3908_v13 = vsub.f32 1.0, %v3907_v14  ;;  %vm12459_vm6 = vmmov %vm12456_vm12 }
0x179d   :  { %vm12460_vm11 = vmmov %vm12457_vm14 }
0x179e   :  { %v3909_v43 = vmul.f32 %v8228_v19, %v3908_v13 }
0x17a0   :  { %v3910_v0 = vadd.f32 %v8228_v19, %v3909_v43 }
0x17a2   :  { %v3914_v44 = vsel %vm3913_vm3, %v8228_v19, %v3910_v0  ;;  %vm12461_vm3 = vcmask 1041409  }
0x17a3   :  { %v4354_v20 = vpop.permute.xlu0 %4353  ;;  %v10761_v34 = vsel %vm3916_vm4, %v3918_v17, %v3914_v44  ;;  %vm12462_vm4 = vmmov %vm12461_vm3 }
0x17a4   :  { %v4360_v59 = vsel %vm4359_vm2, %v4354_v20, 0.0  ;;  %v3921_v38 = vmul.f32 2.0, %v10761_v34 }
0x17a5   :  { %4361 = vadd.xlane.f32.xlu0 %v4360_v59 }
0x17a6   :  { %v7816_v48 = vadd.f32 -1.0, %v3921_v38 }
0x17bb   :  { %v4356_v41 = vpop.permute.xlu0 %4355 }
0x17bc   :  { %v4364_v58 = vsel %vm4363_vm5, %v4356_v41, 0.0 }
0x17bd   :  { %4365 = vadd.xlane.f32.xlu2 %v4364_v58 }
0x17c3   :  { %v4399_v52 = vpop.permute.xlu0 %4398 }
0x17c4   :  { %v4404_v63 = vsel %vm4359_vm2, %v4399_v52, 0.0 }
0x17c5   :  { %4405 = vadd.xlane.f32.xlu1 %v4404_v63 }
0x17cb   :  { %v4401_v8 = vpop.permute.xlu0 %4400 }
0x17cc   :  { %v4407_v61 = vsel %vm4363_vm5, %v4401_v8, 0.0 }
0x17cd   :  { %4408 = vadd.xlane.f32.xlu1 %v4407_v61 }
0x17d5   :  { %3925 = vrot.lane.b32.xlu2 %v7816_v48, %s8645_s0 }
0x1818   :  { %v4362_v6 = vpop.xlane.xlu0 %4361 }
0x1819   :  { %v4367_v35 = vmul.f32 %v4362_v6, %v9050_v40 }
0x181b   :  { %v4412_v59 = vmul.f32 %v4367_v35, %v4367_v35  ;;  %v4418_v44 = vrot.slane %v4367_v35, 1  ;;  %v4419_v17 = vrot.slane %v4367_v35, 2  ;;  %v4420_v38 = vrot.slane %v4367_v35, 3 }
0x181c   :  { %v4433_v6 = vsub.f32 %v10694_v54, %v4367_v35 }
0x1830   :  { %v4366_v36 = vpop.xlane.xlu2 %4365 }
0x1831   :  { %v10770_v19 = vmul.f32 %v4366_v36, %v9050_v40 }
0x1833   :  { %v4413_v58 = vmul.f32 %v10770_v19, %v10770_v19  ;;  %v4423_v35 = vrot.slane %v10770_v19, 6 }
0x1838   :  { %v3926_v23 = vpop.permute.xlu2 %3925  ;;  %v4406_v29 = vpop.xlane.xlu1 %4405 }
0x1839   :  { %v3928_v20 = vmul.f32 %v3926_v23, %v10761_v34  ;;  %v4410_v22 = vmul.f32 %v4406_v29, %v9050_v40  ;;  %v4434_v23 = vsub.f32 %v10684_v42, %v4418_v44  ;;  %v4435_v29 = vsub.f32 %v10688_v32, %v4419_v17  ;;  %v12454_v17 = vld [vmem:[#allocation13_spill] sm:$0xff] }
0x183b   :  { %v4414_v39 = vsub.f32 %v4410_v22, %v4412_v59  ;;  %3930 = vrot.lane.b32.xlu1 %v3928_v20, %s8646_s2 }
0x183d   :  { %v4441_v14 = vadd.f32 1e-05, %v4414_v39 }
0x183f   :  { %8229 = vrsqrt.f32 %v4441_v14  ;;  %vm4449_vm15 = vweird.f32 %v4441_v14 }
0x1840   :  { %v4409_v41 = vpop.xlane.xlu1 %4408 }
0x1841   :  { %v4411_v13 = vmul.f32 %v4409_v41, %v9050_v40 }
0x1843   :  { %v4415_v43 = vsub.f32 %v4411_v13, %v4413_v58  ;;  %v4436_v13 = vsub.f32 %v10690_v1, %v4420_v38  ;;  %v4422_v1 = vrot.slane %v10770_v19, 5 }
0x1845   :  { %v8230_v52 = vpop.eup %8229  ;;  %v4442_v63 = vadd.f32 1e-05, %v4415_v43 }
0x1846   :  { %v4444_v0 = vmul.f32 %v8230_v52, %v4441_v14  ;;  %vm4450_vm8 = vweird.f32 %v8230_v52 }
0x1847   :  { %8231 = vrsqrt.f32 %v4442_v63  ;;  %vm4451_vm7 = vmor %vm4449_vm15, %vm4450_vm8  ;;  %vm4459_vm10 = vweird.f32 %v4442_v63  ;;  %vm12463_vm8 = vcmask 1042434   ;;  %vm12464_vm15 = vcmask 1043459  }
0x1848   :  { %v4445_v24 = vmul.f32 %v8230_v52, %v4444_v0  ;;  %v4421_v0 = vrot.slane %v10770_v19, 4 }
0x184a   :  { %v4446_v30 = vmul.f32 0.5, %v4445_v24 }
0x184c   :  { %v4447_v8 = vsub.f32 1.5, %v4446_v30  ;;  %v12453_v30 = vld [vmem:[#allocation12_spill] sm:$0xff] }
0x184d   :  { %v8232_v61 = vpop.eup %8231 }
0x184e   :  { %v4448_v48 = vmul.f32 %v8230_v52, %v4447_v8  ;;  %v4454_v36 = vmul.f32 %v8232_v61, %v4442_v63  ;;  %vm4460_vm9 = vweird.f32 %v8232_v61 }
0x184f   :  { %vm4461_vm13 = vmor %vm4459_vm10, %vm4460_vm9  ;;  %vm12467_vm10 = vcmask 261120  }
0x1850   :  { %v4452_v20 = vsel %vm4451_vm7, %v8230_v52, %v4448_v48  ;;  %v4455_v59 = vmul.f32 %v8232_v61, %v4454_v36  ;;  %v4424_v48 = vrot.slane %v10770_v19, 7  ;;  %vm12465_vm7 = vmmov %vm12463_vm8 }
0x1851   :  { %v4465_v22 = vrot.slane %v4452_v20, 1  ;;  %v4466_v39 = vrot.slane %v4452_v20, 2  ;;  %v4467_v41 = vrot.slane %v4452_v20, 3  ;;  %v4480_v58 = vmul.f32 %v4452_v20, %v4433_v6  ;;  %vm12466_vm9 = vmmov %vm12464_vm15 }
0x1852   :  { %v4456_v43 = vmul.f32 0.5, %v4455_v59 }
0x1853   :  { %v4481_v14 = vmul.f32 %v4465_v22, %v4434_v23  ;;  %v4482_v24 = vmul.f32 %v4466_v39, %v4435_v29  ;;  %v4488_v54 = vmul.f32 %v4480_v58, %v12453_v30  ;;  %v4483_v42 = vmul.f32 %v4467_v41, %v4436_v13 }
0x1854   :  { %v4457_v44 = vsub.f32 1.5, %v4456_v43  ;;  %v4437_v23 = vsub.f32 %v10710_v55, %v4421_v0  ;;  %v4439_v29 = vsub.f32 %v10715_v33, %v4423_v35  ;;  %v4438_v39 = vsub.f32 %v10707_v62, %v4422_v1 }
0x1855   :  { %v4489_v32 = vmul.f32 %v4481_v14, %v12453_v30  ;;  %v4490_v52 = vmul.f32 %v4482_v24, %v12453_v30  ;;  %v10785_v8 = vadd.f32 %v4488_v54, %v12454_v17  ;;  %v4491_v20 = vmul.f32 %v4483_v42, %v12453_v30 }
0x1856   :  { %v4458_v38 = vmul.f32 %v8232_v61, %v4457_v44  ;;  %v4440_v58 = vsub.f32 %v10721_v15, %v4424_v48 }
0x1857   :  { %v10790_v36 = vadd.f32 %v4489_v32, %v12454_v17  ;;  %v10793_v6 = vadd.f32 %v4490_v52, %v12454_v17  ;;  %8233 = vtanh.f32 %v10785_v8  ;;  %v10804_v55 = vadd.f32 %v4491_v20, %v12454_v17 }
0x1858   :  { %v4462_v59 = vsel %vm4461_vm13, %v8232_v61, %v4458_v38  ;;  %v3923_v20 = vmul.f32 %v10761_v34, %v10531_v50  ;;  %vm12468_vm13 = vmmov %vm12467_vm10 }
0x1859   :  { %8235 = vtanh.f32 %v10790_v36  ;;  %v4468_v63 = vrot.slane %v4462_v59, 4  ;;  %v4469_v19 = vrot.slane %v4462_v59, 5  ;;  %v4470_v22 = vrot.slane %v4462_v59, 6 }
0x185a   :  { %8237 = vtanh.f32 %v10793_v6  ;;  %v4471_v41 = vrot.slane %v4462_v59, 7 }
0x185b   :  { %v4484_v13 = vmul.f32 %v4468_v63, %v4437_v23  ;;  %v4486_v43 = vmul.f32 %v4470_v22, %v4439_v29  ;;  %v4485_v33 = vmul.f32 %v4469_v19, %v4438_v39  ;;  %8239 = vtanh.f32 %v10804_v55 }
0x185c   :  { %v4487_v61 = vmul.f32 %v4471_v41, %v4440_v58 }
0x185d   :  { %v8234_v0 = vpop.eup %8233  ;;  %v4492_v14 = vmul.f32 %v4484_v13, %v12453_v30  ;;  %v4494_v24 = vmul.f32 %v4486_v43, %v12453_v30  ;;  %v4493_v42 = vmul.f32 %v4485_v33, %v12453_v30 }
0x185e   :  { %4520 = vrot.lane.b32.xlu1 %v8234_v0, %s8645_s0  ;;  %v4495_v44 = vmul.f32 %v4487_v61, %v12453_v30 }
0x185f   :  { %v8236_v62 = vpop.eup %8235  ;;  %v10810_v54 = vadd.f32 %v4492_v14, %v12454_v17  ;;  %v10813_v15 = vadd.f32 %v4494_v24, %v12454_v17  ;;  %v10823_v32 = vadd.f32 %v4493_v42, %v12454_v17 }
0x1860   :  { %v8238_v35 = vpop.eup %8237  ;;  %4522 = vrot.lane.b32.xlu2 %v8236_v62, %s8645_s0  ;;  %v10826_v52 = vadd.f32 %v4495_v44, %v12454_v17 }
0x1861   :  { %8241 = vtanh.f32 %v10810_v54  ;;  %4524 = vrot.lane.b32.xlu0 %v8238_v35, %s8645_s0  ;;  %v8240_v1 = vpop.eup %8239 }
0x1862   :  { %8243 = vtanh.f32 %v10813_v15 }
0x1863   :  { %8245 = vtanh.f32 %v10823_v32 }
0x1864   :  { %8247 = vtanh.f32 %v10826_v52 }
0x1867   :  { %v8242_v38 = vpop.eup %8241 }
0x1868   :  { %4526 = vrot.lane.b32.xlu2 %v8240_v1, %s8645_s0  ;;  %4528 = vrot.lane.b32.xlu1 %v8242_v38, %s8645_s0  ;;  %v8244_v48 = vpop.eup %8243 }
0x1869   :  { %4532 = vrot.lane.b32.xlu0 %v8244_v48, %s8645_s0  ;;  %v8246_v23 = vpop.eup %8245 }
0x186a   :  { %v8248_v29 = vpop.eup %8247 }
0x1870   :  { %4530 = vrot.lane.b32.xlu2 %v8246_v23, %s8645_s0  ;;  %4534 = vrot.lane.b32.xlu1 %v8248_v29, %s8645_s0 }
0x18ad   :  { %v3931_v59 = vpop.permute.xlu1 %3930 }
0x18ae   :  { %v10837_v63 = vadd.f32 %v3931_v59, %v3923_v20 }
0x18b0   :  { %v3942_v19 = vmul.f32 %v10837_v63, %v10837_v63  ;;  %3935 = vrot.lane.b32.xlu2 %v10837_v63, %s8647_s28 }
0x18b2   :  { %3944 = vrot.lane.b32.xlu0 %v3942_v19, %s8647_s28 }
0x18ba   :  { %v4523_v22 = vpop.permute.xlu2 %4522 }
0x18bb   :  { %v10845_v41 = vmul.f32 %v4523_v22, %v10608_v10 }
0x18bd   :  { %v4588_v43 = vmul.f32 %v10845_v41, %v10845_v41  ;;  %v4560_v61 = vrot.slane %v10845_v41, 7 }
0x18bf   :  { %v4603_v24 = vrot.slane %v4588_v43, 7 }
0x18c2   :  { %v4527_v39 = vpop.permute.xlu2 %4526 }
0x18c3   :  { %v10848_v13 = vmul.f32 %v4527_v39, %v10639_v26 }
0x18c5   :  { %v4590_v10 = vmul.f32 %v10848_v13, %v10848_v13  ;;  %v4564_v62 = vrot.slane %v10848_v13, 5 }
0x18c7   :  { %v4607_v1 = vrot.slane %v4590_v10, 5 }
0x18ca   :  { %v4531_v35 = vpop.permute.xlu2 %4530 }
0x18cb   :  { %v10875_v20 = vmul.f32 %v4531_v35, %v10559_v7 }
0x18cd   :  { %v4592_v43 = vmul.f32 %v10875_v20, %v10875_v20 }
0x18d0   :  { %v4521_v58 = vpop.permute.xlu1 %4520 }
0x18d1   :  { %v10851_v50 = vmul.f32 %v4521_v58, %v10631_v9 }
0x18d3   :  { %v4525_v33 = vpop.permute.xlu0 %4524  ;;  %v4587_v14 = vmul.f32 %v10851_v50, %v10851_v50 }
0x18d4   :  { %v10856_v0 = vmul.f32 %v4525_v33, %v10622_v49  ;;  %v4561_v49 = vsel %vm12455_vm1, %v4560_v61, %v10851_v50  ;;  %v4567_v33 = vrot.slane %v10875_v20, 3 }
0x18d5   :  { %v4604_v48 = vsel %vm12458_vm0, %v4603_v24, %v4587_v14 }
0x18d6   :  { %v4562_v26 = vrot.slane %v10856_v0, 6  ;;  %v4589_v9 = vmul.f32 %v10856_v0, %v10856_v0 }
0x18d8   :  { %v4605_v42 = vrot.slane %v4589_v9, 6  ;;  %v4563_v44 = vsel %vm12456_vm12, %v4562_v26, %v4561_v49  ;;  %v4610_v26 = vrot.slane %v4592_v43, 3 }
0x18d9   :  { %v4565_v38 = vsel %vm12457_vm14, %v4564_v62, %v4563_v44 }
0x18da   :  { %4573 = vrot.lane.b32.xlu1 %v4565_v38, %s8646_s2  ;;  %v4529_v23 = vpop.permute.xlu1 %4528  ;;  %v4606_v29 = vsel %vm12459_vm6, %v4605_v42, %v4604_v48 }
0x18db   :  { %v10878_v59 = vmul.f32 %v4529_v23, %v10557_v51  ;;  %v4608_v19 = vsel %vm12460_vm11, %v4607_v1, %v4606_v29  ;;  %v4533_v22 = vpop.permute.xlu0 %4532 }
0x18dc   :  { %4616 = vrot.lane.b32.xlu2 %v4608_v19, %s8646_s2  ;;  %v10883_v39 = vmul.f32 %v4533_v22, %v10646_v45 }
0x18dd   :  { %v4591_v58 = vmul.f32 %v10878_v59, %v10878_v59  ;;  %v4566_v7 = vrot.slane %v10878_v59, 4 }
0x18de   :  { %v4593_v51 = vmul.f32 %v10883_v39, %v10883_v39  ;;  %v4569_v10 = vrot.slane %v10883_v39, 2 }
0x18df   :  { %v4609_v61 = vrot.slane %v4591_v58, 4  ;;  %v4568_v9 = vsel %vm12461_vm3, %v4567_v33, %v4566_v7 }
0x18e0   :  { %v4612_v24 = vrot.slane %v4593_v51, 2  ;;  %v4570_v42 = vsel %vm12463_vm8, %v4569_v10, %v4568_v9  ;;  %vm12469_vm8 = vmmov %vm12465_vm7 }
0x18e1   :  { %v4611_v35 = vsel %vm12462_vm4, %v4610_v26, %v4609_v61 }
0x18e2   :  { %v4535_v14 = vpop.permute.xlu1 %4534 }
0x18e3   :  { %v10895_v45 = vmul.f32 %v4535_v14, %v10653_v25  ;;  %v4613_v25 = vsel %vm12465_vm7, %v4612_v24, %v4611_v35  ;;  %vm12471_vm7 = vcmask 1044484  }
0x18e5   :  { %v4571_v62 = vrot.slane %v10895_v45, 1  ;;  %v4594_v49 = vmul.f32 %v10895_v45, %v10895_v45 }
0x18e7   :  { %v4614_v44 = vrot.slane %v4594_v49, 1  ;;  %v4572_v1 = vsel %vm12464_vm15, %v4571_v62, %v4570_v42  ;;  %vm12470_vm15 = vmmov %vm12466_vm9 }
0x18e8   :  { %4575 = vrot.lane.b32.xlu0 %v4572_v1, %s8646_s2 }
0x18e9   :  { %v4615_v38 = vsel %vm12466_vm9, %v4614_v44, %v4613_v25  ;;  %vm12472_vm9 = vcmask 1045509  }
0x18ea   :  { %4618 = vrot.lane.b32.xlu1 %v4615_v38, %s8646_s2 }
0x190a   :  { %v3936_v48 = vpop.permute.xlu2 %3935 }
0x190b   :  { %v3938_v23 = vsel %vm12467_vm10, %v3936_v48, 0.0  ;;  %vm12473_vm10 = vcmask 1046534  }
0x190c   :  { %3939 = vadd.xlane.f32.xlu2 %v3938_v23 }
0x1924   :  { %v3945_v29 = vpop.permute.xlu0 %3944 }
0x1925   :  { %v3947_v19 = vsel %vm12468_vm13, %v3945_v29, 0.0  ;;  %vm12474_vm13 = vcmask 1047559  }
0x1926   :  { %3948 = vadd.xlane.f32.xlu0 %v3947_v19 }
0x1936   :  { %v4617_v22 = vpop.permute.xlu2 %4616 }
0x1937   :  { %v4622_v58 = vsel %vm4359_vm2, %v4617_v22, 0.0 }
0x1938   :  { %4623 = vadd.xlane.f32.xlu2 %v4622_v58 }
0x194c   :  { %v4574_v43 = vpop.permute.xlu1 %4573 }
0x194d   :  { %v4579_v7 = vsel %vm4359_vm2, %v4574_v43, 0.0 }
0x194e   :  { %4580 = vadd.xlane.f32.xlu1 %v4579_v7 }
0x195a   :  { %v4576_v51 = vpop.permute.xlu0 %4575 }
0x195b   :  { %v4582_v33 = vsel %vm4363_vm5, %v4576_v51, 0.0 }
0x195c   :  { %4583 = vadd.xlane.f32.xlu0 %v4582_v33  ;;  %v4619_v61 = vpop.permute.xlu1 %4618 }
0x195d   :  { %v4625_v10 = vsel %vm4363_vm5, %v4619_v61, 0.0 }
0x195e   :  { %4626 = vadd.xlane.f32.xlu2 %v4625_v10 }
0x197f   :  { %v3940_v14 = vpop.xlane.xlu2 %3939 }
0x1980   :  { %v3941_v26 = vmul.f32 %v3940_v14, %v9050_v40 }
0x1982   :  { %v3951_v24 = vmul.f32 %v3941_v26, %v3941_v26  ;;  %v3953_v23 = vsub.f32 %v10837_v63, %v3941_v26 }
0x1999   :  { %v3949_v9 = vpop.xlane.xlu0 %3948 }
0x199a   :  { %v3950_v62 = vmul.f32 %v3949_v9, %v9050_v40 }
0x199c   :  { %v3952_v49 = vsub.f32 %v3950_v62, %v3951_v24 }
0x199e   :  { %v3954_v35 = vadd.f32 1e-05, %v3952_v49 }
0x19a0   :  { %8249 = vrsqrt.f32 %v3954_v35  ;;  %vm3961_vm1 = vweird.f32 %v3954_v35 }
0x19a6   :  { %v8250_v42 = vpop.eup %8249 }
0x19a7   :  { %v3956_v44 = vmul.f32 %v8250_v42, %v3954_v35  ;;  %vm3962_vm2 = vweird.f32 %v8250_v42 }
0x19a8   :  { %vm3963_vm5 = vmor %vm3961_vm1, %vm3962_vm2  ;;  %vm12475_vm2 = vcmask 261120  }
0x19a9   :  { %v3957_v1 = vmul.f32 %v8250_v42, %v3956_v44  ;;  %vm12476_vm1 = vmmov %vm12475_vm2 }
0x19ab   :  { %v3958_v25 = vmul.f32 0.5, %v3957_v1  ;;  %v4624_v7 = vpop.xlane.xlu2 %4623 }
0x19ac   :  { %v4628_v61 = vmul.f32 %v4624_v7, %v9050_v40 }
0x19ad   :  { %v3959_v38 = vsub.f32 1.5, %v3958_v25 }
0x19af   :  { %v3960_v48 = vmul.f32 %v8250_v42, %v3959_v38 }
0x19b1   :  { %v3964_v29 = vsel %vm3963_vm5, %v8250_v42, %v3960_v48  ;;  %vm12477_vm5 = vmmov %vm12476_vm1 }
0x19b2   :  { %v3965_v19 = vmul.f32 %v3964_v29, %v3953_v23 }
0x19b4   :  { %v3966_v22 = vmul.f32 %v3965_v19, %v9721_v4 }
0x19b6   :  { %v10919_v58 = vadd.f32 %v3966_v22, %v9723_v27 }
0x19b8   :  { %8251 = vtanh.f32 %v10919_v58 }
0x19be   :  { %v8252_v43 = vpop.eup %8251 }
0x19bf   :  { %3970 = vrot.lane.b32.xlu1 %v8252_v43, %s8645_s0 }
0x19c1   :  { %v4581_v51 = vpop.xlane.xlu1 %4580 }
0x19c2   :  { %v4585_v33 = vmul.f32 %v4581_v51, %v9050_v40 }
0x19c4   :  { %v4630_v63 = vmul.f32 %v4585_v33, %v4585_v33  ;;  %v4636_v38 = vrot.slane %v4585_v33, 1  ;;  %v4637_v29 = vrot.slane %v4585_v33, 2  ;;  %v4651_v22 = vsub.f32 %v10851_v50, %v4585_v33 }
0x19c6   :  { %v4632_v10 = vsub.f32 %v4628_v61, %v4630_v63  ;;  %v4652_v43 = vsub.f32 %v10845_v41, %v4636_v38  ;;  %v4653_v51 = vsub.f32 %v10856_v0, %v4637_v29 }
0x19c8   :  { %v4659_v14 = vadd.f32 1e-05, %v4632_v10 }
0x19ca   :  { %8253 = vrsqrt.f32 %v4659_v14  ;;  %vm4667_vm14 = vweird.f32 %v4659_v14 }
0x19cf   :  { %v4584_v26 = vpop.xlane.xlu0 %4583 }
0x19d0   :  { %v8254_v9 = vpop.eup %8253  ;;  %v4586_v24 = vmul.f32 %v4584_v26, %v9050_v40  ;;  %v4638_v26 = vrot.slane %v4585_v33, 3 }
0x19d1   :  { %v4662_v62 = vmul.f32 %v8254_v9, %v4659_v14  ;;  %v4627_v49 = vpop.xlane.xlu2 %4626  ;;  %vm4668_vm12 = vweird.f32 %v8254_v9 }
0x19d2   :  { %v4631_v42 = vmul.f32 %v4586_v24, %v4586_v24  ;;  %v4629_v44 = vmul.f32 %v4627_v49, %v9050_v40  ;;  %vm4669_vm0 = vmor %vm4667_vm14, %vm4668_vm12  ;;  %v4654_v50 = vsub.f32 %v10848_v13, %v4638_v26  ;;  %v4640_v29 = vrot.slane %v4586_v24, 5 }
0x19d3   :  { %v4663_v35 = vmul.f32 %v8254_v9, %v4662_v62  ;;  %vm12478_vm12 = vmmov %vm12476_vm1 }
0x19d4   :  { %v4633_v25 = vsub.f32 %v4629_v44, %v4631_v42  ;;  %v4656_v26 = vsub.f32 %v10875_v20, %v4640_v29 }
0x19d5   :  { %v4664_v1 = vmul.f32 0.5, %v4663_v35 }
0x19d6   :  { %v4660_v23 = vadd.f32 1e-05, %v4633_v25 }
0x19d7   :  { %v4665_v48 = vsub.f32 1.5, %v4664_v1 }
0x19d8   :  { %8255 = vrsqrt.f32 %v4660_v23  ;;  %vm4677_vm11 = vweird.f32 %v4660_v23 }
0x19d9   :  { %v4666_v19 = vmul.f32 %v8254_v9, %v4665_v48  ;;  %v4639_v48 = vrot.slane %v4586_v24, 4 }
0x19db   :  { %v4670_v7 = vsel %vm4669_vm0, %v8254_v9, %v4666_v19  ;;  %v4641_v19 = vrot.slane %v4586_v24, 6 }
0x19dc   :  { %v4683_v61 = vrot.slane %v4670_v7, 1  ;;  %v4684_v63 = vrot.slane %v4670_v7, 2  ;;  %v4698_v10 = vmul.f32 %v4670_v7, %v4651_v22  ;;  %v4685_v42 = vrot.slane %v4670_v7, 3 }
0x19dd   :  { %v4642_v22 = vrot.slane %v4586_v24, 7 }
0x19de   :  { %v4699_v62 = vmul.f32 %v4683_v61, %v4652_v43  ;;  %v4700_v49 = vmul.f32 %v4684_v63, %v4653_v51  ;;  %v8256_v35 = vpop.eup %8255  ;;  %v4706_v44 = vmul.f32 %v4698_v10, %v9211_v46  ;;  %v4701_v25 = vmul.f32 %v4685_v42, %v4654_v50 }
0x19df   :  { %v4672_v1 = vmul.f32 %v8256_v35, %v4660_v23  ;;  %vm4678_vm6 = vweird.f32 %v8256_v35  ;;  %v4655_v10 = vsub.f32 %v10878_v59, %v4639_v48  ;;  %v4658_v24 = vsub.f32 %v10895_v45, %v4642_v22 }
0x19e0   :  { %v4707_v14 = vmul.f32 %v4699_v62, %v9211_v46  ;;  %v4708_v41 = vmul.f32 %v4700_v49, %v9211_v46  ;;  %v4714_v38 = vadd.f32 %v4706_v44, %v9229_v18  ;;  %v4709_v63 = vmul.f32 %v4701_v25, %v9211_v46  ;;  %vm4679_vm3 = vmor %vm4677_vm11, %vm4678_vm6 }
0x19e1   :  { %v4673_v9 = vmul.f32 %v8256_v35, %v4672_v1  ;;  %v4657_v62 = vsub.f32 %v10883_v39, %v4641_v19 }
0x19e2   :  { %v4715_v0 = vadd.f32 %v4707_v14, %v9229_v18  ;;  %v4716_v7 = vadd.f32 %v4708_v41, %v9229_v18  ;;  %v4730_v61 = vrot.slane %v4714_v38, 4  ;;  %v4717_v23 = vadd.f32 %v4709_v63, %v9229_v18 }
0x19e3   :  { %v4674_v33 = vmul.f32 0.5, %v4673_v9 }
0x19e4   :  { %v4731_v51 = vrot.slane %v4715_v0, 3  ;;  %v4733_v44 = vrot.slane %v4716_v7, 2 }
0x19e5   :  { %v4675_v43 = vsub.f32 1.5, %v4674_v33  ;;  %v4735_v33 = vrot.slane %v4717_v23, 1  ;;  %v8522_v23 = vld [vmem:[#allocation5 + $0x30] sm:$0xff] }
0x19e6   :  { %v4732_v42 = vsel %vm12462_vm4, %v4731_v51, %v4730_v61 }
0x19e7   :  { %v4676_v13 = vmul.f32 %v8256_v35, %v4675_v43  ;;  %v4734_v20 = vsel %vm12469_vm8, %v4733_v44, %v4732_v42  ;;  %v8516_v44 = vld [vmem:[#allocation5 + $0x48] sm:$0xff] }
0x19e8   :  { %v4736_v43 = vsel %vm12470_vm15, %v4735_v33, %v4734_v20 }
0x19e9   :  { %v4680_v49 = vsel %vm4679_vm3, %v8256_v35, %v4676_v13 }
0x19ea   :  { %v4686_v14 = vrot.slane %v4680_v49, 4  ;;  %v4687_v1 = vrot.slane %v4680_v49, 5  ;;  %v4688_v50 = vrot.slane %v4680_v49, 6  ;;  %v4689_v41 = vrot.slane %v4680_v49, 7 }
0x19ec   :  { %v4702_v9 = vmul.f32 %v4686_v14, %v4655_v10  ;;  %v4703_v0 = vmul.f32 %v4687_v1, %v4656_v26  ;;  %v4704_v59 = vmul.f32 %v4688_v50, %v4657_v62  ;;  %v4705_v25 = vmul.f32 %v4689_v41, %v4658_v24  ;;  %v8517_v14 = vld [vmem:[#allocation5 + $0x28] sm:$0xff]  ;;  %v8518_v1 = vld [vmem:[#allocation5 + $0x40] sm:$0xff]  ;;  %v8520_v50 = vld [vmem:[#allocation5 + $0x38] sm:$0xff] }
0x19ed   :  { %v8521_v41 = vld [vmem:[#allocation5 + $0x18] sm:$0xff] }
0x19ee   :  { %v4710_v39 = vmul.f32 %v4702_v9, %v9211_v46  ;;  %v4711_v35 = vmul.f32 %v4703_v0, %v9211_v46  ;;  %v4712_v45 = vmul.f32 %v4704_v59, %v9211_v46  ;;  %v4713_v38 = vmul.f32 %v4705_v25, %v9211_v46  ;;  %v8523_v9 = vld [vmem:[#allocation5 + $0x10] sm:$0xff] }
0x19f0   :  { %v4718_v48 = vadd.f32 %v4710_v39, %v9229_v18  ;;  %v4719_v29 = vadd.f32 %v4711_v35, %v9229_v18  ;;  %v4720_v19 = vadd.f32 %v4712_v45, %v9229_v18  ;;  %v4721_v22 = vadd.f32 %v4713_v38, %v9229_v18 }
0x19f2   :  { %v4737_v7 = vsel %vm12471_vm7, %v4718_v48, %v4736_v43  ;;  %v4738_v51 = vrot.slane %v4719_v29, 7  ;;  %v4740_v61 = vrot.slane %v4720_v19, 6  ;;  %v4742_v63 = vrot.slane %v4721_v22, 5 }
0x19f4   :  { %v4739_v13 = vsel %vm12472_vm9, %v4738_v51, %v4737_v7 }
0x19f5   :  { %v4741_v10 = vsel %vm12473_vm10, %v4740_v61, %v4739_v13 }
0x19f6   :  { %v4743_v26 = vsel %vm12474_vm13, %v4742_v63, %v4741_v10 }
0x19f7   :  { %4744 = vrot.lane.b32.xlu0 %v4743_v26, %s8646_s2 }
0x1a31   :  { %v3971_v62 = vpop.permute.xlu1 %3970 }
0x1a32   :  { %v10960_v49 = vmul.f32 %v3971_v62, %v10761_v34  ;;  %v8519_v34 = vld [vmem:[#allocation5 + $0x20] sm:$0xff] }
0x1a34   :  { %v3982_v24 = vmul.f32 %v10960_v49, %v10960_v49  ;;  %3975 = vrot.lane.b32.xlu2 %v10960_v49, %s8646_s2 }
0x1a36   :  { %3984 = vrot.lane.b32.xlu1 %v3982_v24, %s8646_s2 }
0x1a69   :  { %v4745_v42 = vpop.permute.xlu0 %4744 }
0x1a6a   :  { %7834 = vmatmul.msk.f32.vlgmr.msra.gmra.mxu2 %vm12475_vm2, %v4745_v42  ;;  %7838 = vmatmul.msk.f32.vlgmr.msrb.gmra.mxu1 %vm12476_vm1, %v4745_v42 }
0x1a6b   :  { %6594 = vmatpush.msra.mxu2 %v8516_v44  ;;  %6771 = vmatpush.msrb.mxu1 %v8517_v14 }
0x1a6d   :  { %6595 = vmatpush.msra.mxu2 %v8518_v1  ;;  %6772 = vmatpush.msrb.mxu1 %v8519_v34 }
0x1a6f   :  { %6596 = vmatpush.msra.mxu2 %v8520_v50  ;;  %6773 = vmatpush.msrb.mxu1 %v8521_v41 }
0x1a71   :  { %6597 = vmatpush.msra.mxu2 %v8522_v23  ;;  %6774 = vmatpush.msrb.mxu1 %v8523_v9 }
0x1a8e   :  { %v3976_v0 = vpop.permute.xlu2 %3975 }
0x1a8f   :  { %v3978_v59 = vsel %vm12477_vm5, %v3976_v0, 0.0 }
0x1a90   :  { %3979 = vadd.xlane.f32.xlu0 %v3978_v59 }
0x1aa8   :  { %v3985_v25 = vpop.permute.xlu1 %3984 }
0x1aa9   :  { %v3987_v20 = vsel %vm12478_vm12, %v3985_v25, 0.0 }
0x1aaa   :  { %3988 = vadd.xlane.f32.xlu2 %v3987_v20 }
0x1ae7   :  { %v10971_v39 = vpop.f32.mrf.mxu1 }
0x1ae8   :  { %v4948_v35 = vrot.slane %v10971_v39, 5  ;;  %v4951_v45 = vrot.slane %v10971_v39, 1  ;;  %v4966_v23 = vadd.f32 %v10971_v39, %v8925_v60 }
0x1aea   :  { %v4963_v38 = vadd.f32 %v4948_v35, %v8811_v28  ;;  %v4967_v33 = vadd.f32 %v4951_v45, %v8903_v31 }
0x1aec   :  { %v7841_v48 = vmul.f32 -1.442695, %v4963_v38  ;;  %v7845_v29 = vmul.f32 -1.442695, %v4967_v33  ;;  %v4949_v38 = vrot.slane %v10971_v39, 6 }
0x1aed   :  { %v7844_v33 = vmul.f32 -1.442695, %v4966_v23  ;;  %v4952_v23 = vrot.slane %v10971_v39, 2 }
0x1aee   :  { %8257 = vpow2.f32 %v7841_v48 }
0x1aef   :  { %8259 = vpow2.f32 %v7845_v29 }
0x1af4   :  { %v8258_v19 = vpop.eup %8257 }
0x1af5   :  { %v4995_v22 = vadd.f32 1.0, %v8258_v19  ;;  %v8260_v43 = vpop.eup %8259  ;;  %v4964_v19 = vadd.f32 %v4949_v38, %v8839_v12 }
0x1af6   :  { %v4999_v7 = vadd.f32 1.0, %v8260_v43 }
0x1af7   :  { %8261 = vrcp.f32 %v4995_v22  ;;  %v5042_v26 = vand.u32 2147483648, %v4995_v22  ;;  %v5040_v24 = vand.u32 2147483647, %v4995_v22  ;;  %vm5036_vm0 = vweird.f32 %v4995_v22 }
0x1af8   :  { %8263 = vrcp.f32 %v4999_v7  ;;  %v5102_v44 = vand.u32 2147483648, %v4999_v7  ;;  %v5100_v34 = vand.u32 2147483647, %v4999_v7  ;;  %vm5096_vm4 = vweird.f32 %v4999_v7 }
0x1af9   :  { %v5043_v50 = vor.u32 1.1754944e-38, %v5042_v26  ;;  %vm5041_vm3 = vcmp.eq.f32.partialorder %v5040_v24, 8.507059e+37  ;;  %8265 = vpow2.f32 %v7844_v33  ;;  %v7842_v43 = vmul.f32 -1.442695, %v4964_v19 }
0x1afa   :  { %v5103_v59 = vor.u32 1.1754944e-38, %v5102_v44  ;;  %vm5101_vm15 = vcmp.eq.f32.partialorder %v5100_v34, 8.507059e+37  ;;  %v4947_v26 = vrot.slane %v10971_v39, 4 }
0x1afb   :  { %8267 = vpow2.f32 %v7842_v43 }
0x1afd   :  { %v8262_v51 = vpop.eup %8261 }
0x1afe   :  { %v5032_v61 = vmul.f32 %v8262_v51, %v4995_v22  ;;  %v8264_v13 = vpop.eup %8263  ;;  %vm5037_vm14 = vweird.f32 %v8262_v51  ;;  %v4950_v22 = vrot.slane %v10971_v39, 7 }
0x1aff   :  { %v5092_v10 = vmul.f32 %v8264_v13, %v4999_v7  ;;  %vm5097_vm6 = vweird.f32 %v8264_v13  ;;  %vm5038_vm11 = vmor %vm5036_vm0, %vm5037_vm14 }
0x1b00   :  { %v5033_v63 = vsub.f32 1.0, %v5032_v61  ;;  %vm5098_vm8 = vmor %vm5096_vm4, %vm5097_vm6  ;;  %v4965_v61 = vadd.f32 %v4950_v22, %v8875_v56  ;;  %v4946_v22 = vrot.slane %v10971_v39, 3 }
0x1b01   :  { %v5093_v42 = vsub.f32 1.0, %v5092_v10 }
0x1b02   :  { %v5034_v62 = vmul.f32 %v8262_v51, %v5033_v63 }
0x1b03   :  { %v5094_v1 = vmul.f32 %v8264_v13, %v5093_v42  ;;  %v3980_v7 = vpop.xlane.xlu0 %3979 }
0x1b04   :  { %v5035_v14 = vadd.f32 %v8262_v51, %v5034_v62  ;;  %v7843_v62 = vmul.f32 -1.442695, %v4965_v61 }
0x1b05   :  { %v5095_v9 = vadd.f32 %v8264_v13, %v5094_v1  ;;  %v4962_v1 = vadd.f32 %v4947_v26, %v8776_v57 }
0x1b06   :  { %v5039_v41 = vsel %vm5038_vm11, %v8262_v51, %v5035_v14  ;;  %v8266_v51 = vpop.eup %8265 }
0x1b07   :  { %v10979_v0 = vsel %vm5041_vm3, %v5043_v50, %v5039_v41  ;;  %v5099_v20 = vsel %vm5098_vm8, %v8264_v13, %v5095_v9  ;;  %v3981_v13 = vmul.f32 %v3980_v7, %v9050_v40  ;;  %v10992_v63 = vadd.f32 1.0, %v8266_v51  ;;  %v8268_v44 = vpop.eup %8267 }
0x1b08   :  { %v5123_v25 = vmul.f32 2.0, %v10979_v0  ;;  %v10982_v35 = vsel %vm5101_vm15, %v5103_v59, %v5099_v20  ;;  %v10998_v50 = vadd.f32 1.0, %v8268_v44  ;;  %v7840_v9 = vmul.f32 -1.442695, %v4962_v1 }
0x1b09   :  { %v5127_v48 = vmul.f32 2.0, %v10982_v35  ;;  %v3991_v24 = vmul.f32 %v3981_v13, %v3981_v13  ;;  %8269 = vrcp.f32 %v10992_v63  ;;  %v3993_v39 = vsub.f32 %v10960_v49, %v3981_v13 }
0x1b0a   :  { %v7849_v45 = vadd.f32 -1.0, %v5123_v25  ;;  %8271 = vpow2.f32 %v7843_v62  ;;  %v4961_v62 = vadd.f32 %v4946_v22, %v8759_v37  ;;  %vm5081_vm2 = vweird.f32 %v10992_v63 }
0x1b0b   :  { %v7853_v29 = vadd.f32 -1.0, %v5127_v48  ;;  %vm5051_vm14 = vweird.f32 %v10998_v50 }
0x1b0c   :  { %5181 = vrot.lane.b32.xlu2 %v7849_v45, %s8645_s0  ;;  %v4968_v45 = vadd.f32 %v4952_v23, %v8941_v3 }
0x1b0d   :  { %5189 = vrot.lane.b32.xlu0 %v7853_v29, %s8645_s0 }
0x1b0e   :  { %v7846_v43 = vmul.f32 -1.442695, %v4968_v45  ;;  %v5085_v45 = vand.u32 2147483647, %v10992_v63 }
0x1b0f   :  { %v8270_v41 = vpop.eup %8269 }
0x1b10   :  { %v8272_v59 = vpop.eup %8271  ;;  %v5077_v25 = vmul.f32 %v8270_v41, %v10992_v63  ;;  %vm5082_vm13 = vweird.f32 %v8270_v41  ;;  %vm5086_vm5 = vcmp.eq.f32.partialorder %v5085_v45, 8.507059e+37 }
0x1b11   :  { %v11004_v38 = vadd.f32 1.0, %v8272_v59  ;;  %v7839_v59 = vmul.f32 -1.442695, %v4961_v62  ;;  %vm5083_vm1 = vmor %vm5081_vm2, %vm5082_vm13  ;;  %v5055_v62 = vand.u32 2147483647, %v10998_v50 }
0x1b12   :  { %v5078_v48 = vsub.f32 1.0, %v5077_v25 }
0x1b13   :  { %vm5056_vm6 = vcmp.eq.f32.partialorder %v5055_v62, 8.507059e+37  ;;  %vm5066_vm3 = vweird.f32 %v11004_v38 }
0x1b14   :  { %v5079_v61 = vmul.f32 %v8270_v41, %v5078_v48 }
0x1b16   :  { %v5080_v44 = vadd.f32 %v8270_v41, %v5079_v61 }
0x1b18   :  { %v5084_v13 = vsel %vm5083_vm1, %v8270_v41, %v5080_v44 }
0x1b1d   :  { %v3989_v10 = vpop.xlane.xlu2 %3988 }
0x1b1e   :  { %v3990_v42 = vmul.f32 %v3989_v10, %v9050_v40 }
0x1b20   :  { %v3992_v14 = vsub.f32 %v3990_v42, %v3991_v24 }
0x1b22   :  { %v3994_v34 = vadd.f32 1e-05, %v3992_v14 }
0x1b24   :  { %8273 = vrsqrt.f32 %v3994_v34  ;;  %vm4001_vm9 = vweird.f32 %v3994_v34 }
0x1b25   :  { %8275 = vrcp.f32 %v10998_v50 }
0x1b26   :  { %8277 = vpow2.f32 %v7840_v9  ;;  %v5087_v9 = vand.u32 2147483648, %v10992_v63 }
0x1b27   :  { %8279 = vrcp.f32 %v11004_v38 }
0x1b28   :  { %8281 = vpow2.f32 %v7846_v43 }
0x1b2a   :  { %v8274_v20 = vpop.eup %8273 }
0x1b2b   :  { %v3996_v33 = vmul.f32 %v8274_v20, %v3994_v34  ;;  %v11006_v29 = vpop.eup %8275  ;;  %vm4002_vm7 = vweird.f32 %v8274_v20 }
0x1b2c   :  { %v8278_v51 = vpop.eup %8277  ;;  %v5047_v10 = vmul.f32 %v11006_v29, %v10998_v50  ;;  %vm4003_vm10 = vmor %vm4001_vm9, %vm4002_vm7  ;;  %vm5052_vm12 = vweird.f32 %v11006_v29 }
0x1b2d   :  { %v3997_v19 = vmul.f32 %v8274_v20, %v3996_v33  ;;  %v11013_v24 = vadd.f32 1.0, %v8278_v51  ;;  %v8280_v1 = vpop.eup %8279  ;;  %v4765_v33 = vpop.f32.mrf.mxu2  ;;  %vm5053_vm0 = vmor %vm5051_vm14, %vm5052_vm12 }
0x1b2e   :  { %v5048_v14 = vsub.f32 1.0, %v5047_v10  ;;  %v8282_v34 = vpop.eup %8281  ;;  %v11024_v22 = vadd.f32 %v4765_v33, %v9475_v11  ;;  %v5057_v10 = vand.u32 2147483648, %v10998_v50  ;;  %vm5067_vm11 = vweird.f32 %v8280_v1 }
0x1b2f   :  { %v3998_v7 = vmul.f32 0.5, %v3997_v19  ;;  %8283 = vrcp.f32 %v11013_v24  ;;  %v5088_v19 = vor.u32 1.1754944e-38, %v5087_v9  ;;  %v11027_v63 = vadd.f32 1.0, %v8282_v34  ;;  %vm5068_vm4 = vmor %vm5066_vm3, %vm5067_vm11 }
0x1b30   :  { %v5049_v48 = vmul.f32 %v11006_v29, %v5048_v14  ;;  %8285 = vpow2.f32 %v7839_v59  ;;  %v5072_v34 = vand.u32 2147483648, %v11004_v38  ;;  %vm5021_vm7 = vweird.f32 %v11013_v24 }
0x1b31   :  { %v3999_v26 = vsub.f32 1.5, %v3998_v7  ;;  %v11029_v7 = vsel %vm5086_vm5, %v5088_v19, %v5084_v13  ;;  %8287 = vrcp.f32 %v11027_v63  ;;  %vm5111_vm2 = vweird.f32 %v11027_v63 }
0x1b32   :  { %v5050_v41 = vadd.f32 %v11006_v29, %v5049_v48  ;;  %v5073_v19 = vor.u32 1.1754944e-38, %v5072_v34  ;;  %v5117_v34 = vand.u32 2147483648, %v11027_v63  ;;  %vm12479_vm11 = vcmask 261120  }
0x1b33   :  { %v4000_v42 = vmul.f32 %v8274_v20, %v3999_v26  ;;  %v5126_v26 = vmul.f32 2.0, %v11029_v7  ;;  %vm12480_vm3 = vcmask 1046534  }
0x1b35   :  { %v4004_v23 = vsel %vm4003_vm10, %v8274_v20, %v4000_v42  ;;  %v5062_v20 = vmul.f32 %v8280_v1, %v11004_v38  ;;  %v8284_v61 = vpop.eup %8283  ;;  %v7852_v9 = vadd.f32 -1.0, %v5126_v26 }
0x1b36   :  { %v4005_v25 = vmul.f32 %v4004_v23, %v3993_v39  ;;  %v8286_v42 = vpop.eup %8285  ;;  %v5054_v39 = vsel %vm5053_vm0, %v11006_v29, %v5050_v41  ;;  %v5017_v14 = vmul.f32 %v8284_v61, %v11013_v24  ;;  %v5058_v23 = vor.u32 1.1754944e-38, %v5057_v10 }
0x1b37   :  { %4768 = vadd.xlane.f32.xlu0 %v11024_v22  ;;  %v5063_v51 = vsub.f32 1.0, %v5062_v20  ;;  %v11042_v59 = vadd.f32 1.0, %v8286_v42  ;;  %v8288_v33 = vpop.eup %8287  ;;  %vm5022_vm15 = vweird.f32 %v8284_v61 }
0x1b38   :  { %v4006_v49 = vmul.f32 %v4005_v25, %v9779_v53  ;;  %v11044_v25 = vsel %vm5056_vm6, %v5058_v23, %v5054_v39  ;;  %v5018_v50 = vsub.f32 1.0, %v5017_v14  ;;  %v5107_v20 = vmul.f32 %v8288_v33, %v11027_v63  ;;  %vm5023_vm9 = vmor %vm5021_vm7, %vm5022_vm15 }
0x1b39   :  { %v5064_v44 = vmul.f32 %v8280_v1, %v5063_v51  ;;  %v5124_v29 = vmul.f32 2.0, %v11044_v25  ;;  %8289 = vrcp.f32 %v11042_v59  ;;  %vm5112_vm13 = vweird.f32 %v8288_v33 }
0x1b3a   :  { %v4007_v43 = vadd.f32 %v4006_v49, %v9781_v2  ;;  %v5070_v49 = vand.u32 2147483647, %v11004_v38  ;;  %v5019_v48 = vmul.f32 %v8284_v61, %v5018_v50  ;;  %v5108_v10 = vsub.f32 1.0, %v5107_v20  ;;  %vm5113_vm1 = vmor %vm5111_vm2, %vm5112_vm13 }
0x1b3b   :  { %v5065_v45 = vadd.f32 %v8280_v1, %v5064_v44  ;;  %v5027_v38 = vand.u32 2147483648, %v11013_v24  ;;  %vm5006_vm14 = vweird.f32 %v11042_v59  ;;  %vm12484_vm7 = vcmask 1041409  }
0x1b3c   :  { %4794 = vrot.lane.b32.xlu1 %v4007_v43, %s8646_s2  ;;  %v7850_v43 = vadd.f32 -1.0, %v5124_v29  ;;  %vm5071_vm8 = vcmp.eq.f32.partialorder %v5070_v49, 8.507059e+37  ;;  %v5020_v51 = vadd.f32 %v8284_v61, %v5019_v48  ;;  %v5109_v39 = vmul.f32 %v8288_v33, %v5108_v10 }
0x1b3d   :  { %v5069_v13 = vsel %vm5068_vm4, %v8280_v1, %v5065_v45  ;;  %v5025_v1 = vand.u32 2147483647, %v11013_v24  ;;  %v5028_v14 = vor.u32 1.1754944e-38, %v5027_v38  ;;  %v5115_v24 = vand.u32 2147483647, %v11027_v63 }
0x1b3e   :  { %v11053_v41 = vsel %vm5071_vm8, %v5073_v19, %v5069_v13  ;;  %v5024_v42 = vsel %vm5023_vm9, %v8284_v61, %v5020_v51  ;;  %v5110_v45 = vadd.f32 %v8288_v33, %v5109_v39  ;;  %v5118_v13 = vor.u32 1.1754944e-38, %v5117_v34  ;;  %v8527_v34 = vld [vmem:[#allocation5 + $0x50] sm:$0xff]  ;;  %vm12482_vm8 = vmmov %vm12480_vm3 }
0x1b3f   :  { %v8290_v26 = vpop.eup %8289  ;;  %v5125_v62 = vmul.f32 2.0, %v11053_v41  ;;  %vm5026_vm10 = vcmp.eq.f32.partialorder %v5025_v1, 8.507059e+37  ;;  %vm5116_vm5 = vcmp.eq.f32.partialorder %v5115_v24, 8.507059e+37  ;;  %v5010_v63 = vand.u32 2147483647, %v11042_v59  ;;  %vm12485_vm9 = vmmov %vm12484_vm7 }
0x1b40   :  { %v5002_v44 = vmul.f32 %v8290_v26, %v11042_v59  ;;  %v5114_v61 = vsel %vm5113_vm1, %v8288_v33, %v5110_v45  ;;  %vm5007_vm12 = vweird.f32 %v8290_v26  ;;  %v8526_v45 = vld [vmem:[#allocation5 + $0x58] sm:$0xff]  ;;  %vm12481_vm4 = vcmask 1047559  }
0x1b41   :  { %v7851_v23 = vadd.f32 -1.0, %v5125_v62  ;;  %v11068_v20 = vsel %vm5116_vm5, %v5118_v13, %v5114_v61  ;;  %vm5008_vm0 = vmor %vm5006_vm14, %vm5007_vm12  ;;  %vm5011_vm6 = vcmp.eq.f32.partialorder %v5010_v63, 8.507059e+37  ;;  %vm12487_vm13 = vcmask 1043459  }
0x1b42   :  { %v5003_v50 = vsub.f32 1.0, %v5002_v44  ;;  %v5128_v51 = vmul.f32 2.0, %v11068_v20  ;;  %vm12483_vm15 = vmmov %vm12481_vm4  ;;  %vm12488_vm2 = vcmask 1044484  }
0x1b43   :  { %vm12490_vm5 = vmmov %vm12487_vm13 }
0x1b44   :  { %5187 = vrot.lane.b32.xlu1 %v7852_v9, %s8645_s0  ;;  %v11061_v9 = vsel %vm5026_vm10, %v5028_v14, %v5024_v42  ;;  %v5004_v49 = vmul.f32 %v8290_v26, %v5003_v50  ;;  %v7854_v38 = vadd.f32 -1.0, %v5128_v51  ;;  %v8524_v14 = vld [vmem:[#allocation5 + $0x68] sm:$0xff]  ;;  %vm12486_vm10 = vcmask 1042434   ;;  %vm12491_vm12 = vmmov %vm12488_vm2 }
0x1b45   :  { %v5122_v29 = vmul.f32 2.0, %v11061_v9  ;;  %vm12489_vm1 = vmmov %vm12486_vm10 }
0x1b46   :  { %v5005_v19 = vadd.f32 %v8290_v26, %v5004_v49 }
0x1b47   :  { %v7848_v48 = vadd.f32 -1.0, %v5122_v29 }
0x1b48   :  { %v5009_v33 = vsel %vm5008_vm0, %v8290_v26, %v5005_v19 }
0x1b4c   :  { %5183 = vrot.lane.b32.xlu1 %v7850_v43, %s8645_s0  ;;  %v5012_v43 = vand.u32 2147483648, %v11042_v59  ;;  %v4771_v59 = vmul.f32 %v11024_v22, %v11024_v22 }
0x1b4e   :  { %v5013_v10 = vor.u32 1.1754944e-38, %v5012_v43 }
0x1b50   :  { %v11075_v62 = vsel %vm5011_vm6, %v5013_v10, %v5009_v33 }
0x1b51   :  { %v5121_v1 = vmul.f32 2.0, %v11075_v62 }
0x1b53   :  { %v7847_v44 = vadd.f32 -1.0, %v5121_v1 }
0x1b54   :  { %5185 = vrot.lane.b32.xlu1 %v7851_v23, %s8645_s0  ;;  %v8525_v23 = vld [vmem:[#allocation5 + $0x60] sm:$0xff] }
0x1b5c   :  { %5179 = vrot.lane.b32.xlu1 %v7848_v48, %s8645_s0 }
0x1b64   :  { %5191 = vrot.lane.b32.xlu1 %v7854_v38, %s8645_s0 }
0x1b66   :  { %v5182_v42 = vpop.permute.xlu2 %5181 }
0x1b67   :  { %v5203_v39 = vmul.f32 %v5182_v42, %v10979_v0 }
0x1b69   :  { %5221 = vrot.lane.b32.xlu0 %v5203_v39, %s8646_s2 }
0x1b6c   :  { %5177 = vrot.lane.b32.xlu1 %v7847_v44, %s8645_s0 }
0x1b7f   :  { %v5190_v43 = vpop.permute.xlu0 %5189 }
0x1b80   :  { %v5207_v63 = vmul.f32 %v5190_v43, %v10982_v35 }
0x1b96   :  { %4772 = vadd.xlane.f32.xlu1 %v4771_v59 }
0x1baa   :  { %v11099_v59 = vpop.xlane.xlu0 %4768 }
0x1bae   :  { %v4795_v26 = vpop.permute.xlu1 %4794 }
0x1baf   :  { %7835 = vmatmul.msk.f32.vlgmr.msra.gmra.mxu3 %vm12479_vm11, %v4795_v26  ;;  %vm5276_vm11 = vcmask 261125  }
0x1bb0   :  { %6644 = vmatpush.msra.mxu3 %v8524_v14  ;;  %v5146_v14 = vrot.slane %v10790_v36, 7 }
0x1bb2   :  { %6645 = vmatpush.msra.mxu3 %v8525_v23  ;;  %v5147_v23 = vrot.slane %v10793_v6, 7  ;;  %v5149_v6 = vrot.slane %v10810_v54, 7 }
0x1bb4   :  { %6646 = vmatpush.msra.mxu3 %v8526_v45 }
0x1bb6   :  { %v5188_v50 = vpop.permute.xlu1 %5187  ;;  %6647 = vmatpush.msra.mxu3 %v8527_v34  ;;  %v5163_v34 = vmul.f32 %v5147_v23, %v10979_v0 }
0x1bb7   :  { %v5206_v29 = vmul.f32 %v5188_v50, %v11029_v7  ;;  %v5162_v50 = vmul.f32 %v5146_v14, %v11061_v9  ;;  %v5151_v14 = vrot.slane %v10813_v15, 7 }
0x1bb9   :  { %5227 = vrot.lane.b32.xlu2 %v5206_v29, %s8646_s2 }
0x1bbe   :  { %v5184_v24 = vpop.permute.xlu1 %5183 }
0x1bbf   :  { %v5204_v61 = vmul.f32 %v5184_v24, %v11044_v25  ;;  %v5145_v24 = vrot.slane %v10785_v8, 7  ;;  %v5148_v8 = vrot.slane %v10804_v55, 7  ;;  %v5150_v55 = vrot.slane %v10823_v32, 7 }
0x1bc1   :  { %5223 = vrot.lane.b32.xlu2 %v5204_v61, %s8646_s2 }
0x1bc6   :  { %v5186_v49 = vpop.permute.xlu1 %5185 }
0x1bc7   :  { %v5205_v13 = vmul.f32 %v5186_v49, %v11053_v41  ;;  %v5161_v49 = vmul.f32 %v5145_v24, %v11075_v62  ;;  %v5166_v24 = vmul.f32 %v5150_v55, %v11029_v7 }
0x1bc9   :  { %5225 = vrot.lane.b32.xlu2 %v5205_v13, %s8646_s2 }
0x1bce   :  { %v5180_v48 = vpop.permute.xlu1 %5179 }
0x1bcf   :  { %v5202_v19 = vmul.f32 %v5180_v48, %v11061_v9 }
0x1bd1   :  { %5219 = vrot.lane.b32.xlu2 %v5202_v19, %s8646_s2 }
0x1bd6   :  { %v5192_v51 = vpop.permute.xlu1 %5191 }
0x1bd7   :  { %v5208_v33 = vmul.f32 %v5192_v51, %v11068_v20 }
0x1bd9   :  { %5229 = vrot.lane.b32.xlu2 %v5207_v63, %s8646_s2  ;;  %5231 = vrot.lane.b32.xlu1 %v5208_v33, %s8646_s2  ;;  %v5165_v63 = vmul.f32 %v5149_v6, %v11053_v41  ;;  %v5152_v6 = vrot.slane %v10826_v52, 7 }
0x1bdb   :  { %v5222_v45 = vpop.permute.xlu0 %5221 }
0x1bdc   :  { %v11108_v61 = vadd.f32 %v5222_v45, %v5163_v34  ;;  %v5167_v34 = vmul.f32 %v5151_v14, %v10982_v35 }
0x1bde   :  { %v5178_v10 = vpop.permute.xlu1 %5177  ;;  %v5259_v36 = vrot.slane %v11108_v61, 6  ;;  %v5288_v54 = vmul.f32 %v11108_v61, %v11108_v61 }
0x1bdf   :  { %v5201_v38 = vmul.f32 %v5178_v10, %v11075_v62 }
0x1be1   :  { %5217 = vrot.lane.b32.xlu2 %v5201_v38, %s8646_s2  ;;  %v5164_v38 = vmul.f32 %v5148_v8, %v11044_v25  ;;  %v5168_v8 = vmul.f32 %v5152_v6, %v11068_v20 }
0x1c09   :  { %v4773_v45 = vpop.xlane.xlu1 %4772 }
0x1c13   :  { %v5228_v1 = vpop.permute.xlu2 %5227 }
0x1c1b   :  { %v5224_v42 = vpop.permute.xlu2 %5223 }
0x1c23   :  { %v5226_v39 = vpop.permute.xlu2 %5225 }
0x1c2b   :  { %v5220_v44 = vpop.permute.xlu2 %5219 }
0x1c2c   :  { %v11105_v29 = vadd.f32 %v5220_v44, %v5162_v50  ;;  %v11129_v44 = vadd.f32 %v5226_v39, %v5165_v63  ;;  %v11133_v50 = vadd.f32 %v5224_v42, %v5164_v38 }
0x1c2e   :  { %v5257_v48 = vrot.slane %v11105_v29, 7  ;;  %v5287_v43 = vmul.f32 %v11105_v29, %v11105_v29  ;;  %v5289_v15 = vmul.f32 %v11133_v50, %v11133_v50  ;;  %v5262_v32 = vrot.slane %v11129_v44, 4 }
0x1c30   :  { %v5302_v23 = vrot.slane %v5287_v43, 7  ;;  %v5261_v43 = vrot.slane %v11133_v50, 5  ;;  %v5306_v63 = vrot.slane %v5289_v15, 5 }
0x1c33   :  { %v5230_v26 = vpop.permute.xlu2 %5229 }
0x1c34   :  { %v11140_v39 = vadd.f32 %v5230_v26, %v5167_v34 }
0x1c36   :  { %v5292_v26 = vmul.f32 %v11140_v39, %v11140_v39 }
0x1c38   :  { %v5311_v14 = vrot.slane %v5292_v26, 2 }
0x1c3b   :  { %v5218_v13 = vpop.permute.xlu2 %5217 }
0x1c3c   :  { %v11112_v19 = vadd.f32 %v5218_v13, %v5161_v49  ;;  %v5304_v13 = vrot.slane %v5288_v54, 6  ;;  %v5263_v54 = vsel %vm12484_vm7, %v5262_v32, %v5261_v43  ;;  %v4770_v43 = vmul.f32 %v11099_v59, %v8731_v47 }
0x1c3e   :  { %v5258_v51 = vsel %vm12480_vm3, %v5257_v48, %v11112_v19  ;;  %v5286_v10 = vmul.f32 %v11112_v19, %v11112_v19  ;;  %v5290_v48 = vmul.f32 %v11129_v44, %v11129_v44  ;;  %v4775_v26 = vmul.f32 %v4770_v43, %v4770_v43 }
0x1c3f   :  { %v5260_v33 = vsel %vm12481_vm4, %v5259_v36, %v5258_v51  ;;  %v11142_v36 = vadd.f32 %v5228_v1, %v5166_v24  ;;  %vm5280_vm3 = vcmask 258048  }
0x1c40   :  { %5270 = vrot.lane.b32.xlu2 %v5260_v33, %s8647_s28  ;;  %v5303_v49 = vsel %vm12482_vm8, %v5302_v23, %v5286_v10  ;;  %v5307_v51 = vrot.slane %v5290_v48, 4  ;;  %v5266_v33 = vrot.slane %v11140_v39, 2 }
0x1c41   :  { %v5305_v42 = vsel %vm12483_vm15, %v5304_v13, %v5303_v49  ;;  %v5291_v1 = vmul.f32 %v11142_v36, %v11142_v36  ;;  %v5264_v38 = vrot.slane %v11142_v36, 3 }
0x1c42   :  { %v5308_v55 = vsel %vm12485_vm9, %v5307_v51, %v5306_v63  ;;  %v4774_v51 = vmul.f32 %v4773_v45, %v8731_v47 }
0x1c43   :  { %v5309_v23 = vrot.slane %v5291_v1, 3  ;;  %v5265_v49 = vsel %vm12486_vm10, %v5264_v38, %v5263_v54 }
0x1c44   :  { %v5267_v13 = vsel %vm12487_vm13, %v5266_v33, %v5265_v49  ;;  %v4776_v1 = vsub.f32 %v4774_v51, %v4775_v26 }
0x1c45   :  { %v5310_v32 = vsel %vm12489_vm1, %v5309_v23, %v5308_v55  ;;  %v4777_v23 = vsub.f32 %v11024_v22, %v4770_v43 }
0x1c48   :  { %5315 = vrot.lane.b32.xlu2 %v5305_v42, %s8647_s28  ;;  %v5312_v42 = vsel %vm12490_vm5, %v5311_v14, %v5310_v32 }
0x1c4b   :  { %v5232_v10 = vpop.permute.xlu1 %5231 }
0x1c4c   :  { %v11159_v52 = vadd.f32 %v5232_v10, %v5168_v8  ;;  %v4778_v8 = vadd.f32 1e-05, %v4776_v1 }
0x1c4e   :  { %v5268_v34 = vrot.slane %v11159_v52, 1  ;;  %v5293_v24 = vmul.f32 %v11159_v52, %v11159_v52  ;;  %8291 = vrsqrt.f32 %v4778_v8  ;;  %vm4785_vm0 = vweird.f32 %v4778_v8 }
0x1c50   :  { %v5313_v48 = vrot.slane %v5293_v24, 1  ;;  %v5269_v15 = vsel %vm12488_vm2, %v5268_v34, %v5267_v13  ;;  %v4815_v13 = vpop.f32.mrf.mxu3 }
0x1c51   :  { %5272 = vrot.lane.b32.xlu0 %v5269_v15, %s8647_s28 }
0x1c52   :  { %v5314_v6 = vsel %vm12491_vm12, %v5313_v48, %v5312_v42  ;;  %vm12492_vm12 = vcmask 1041409  }
0x1c53   :  { %5317 = vrot.lane.b32.xlu1 %v5314_v6, %s8647_s28 }
0x1c54   :  { %v8292_v63 = vpop.eup %8291 }
0x1c55   :  { %v4780_v33 = vmul.f32 %v8292_v63, %v4778_v8  ;;  %vm4786_vm14 = vweird.f32 %v8292_v63 }
0x1c56   :  { %vm4787_vm6 = vmor %vm4785_vm0, %vm4786_vm14  ;;  %vm12493_vm14 = vcmask 1042434   ;;  %vm12494_vm0 = vcmask 1043459  }
0x1c57   :  { %v4781_v10 = vmul.f32 %v8292_v63, %v4780_v33 }
0x1c59   :  { %v4782_v54 = vmul.f32 0.5, %v4781_v10 }
0x1c5b   :  { %v4783_v38 = vsub.f32 1.5, %v4782_v54 }
0x1c5d   :  { %v4784_v55 = vmul.f32 %v8292_v63, %v4783_v38 }
0x1c5f   :  { %v4788_v14 = vsel %vm4787_vm6, %v8292_v63, %v4784_v55  ;;  %vm12495_vm6 = vcmask 1044484  }
0x1c60   :  { %v4789_v34 = vmul.f32 %v4788_v14, %v4777_v23 }
0x1c62   :  { %v4790_v59 = vmul.f32 %v4789_v34, %v12411_v16 }
0x1c64   :  { %v4791_v49 = vadd.f32 %v4790_v59, %v12412_v21 }
0x1c66   :  { %v4792_v48 = vadd.f32 %v4791_v49, %v12452_v5 }
0x1c68   :  { %v4818_v32 = vadd.f32 %v4815_v13, %v4792_v48 }
0x1c6a   :  { %v7836_v6 = vmul.f32 -1.442695, %v4818_v32 }
0x1c6c   :  { %8293 = vpow2.f32 %v7836_v6 }
0x1c72   :  { %v8294_v22 = vpop.eup %8293 }
0x1c73   :  { %v4822_v43 = vadd.f32 1.0, %v8294_v22 }
0x1c75   :  { %8295 = vrcp.f32 %v4822_v43  ;;  %v4834_v55 = vand.u32 2147483648, %v4822_v43  ;;  %vm4828_vm8 = vweird.f32 %v4822_v43  ;;  %v4832_v14 = vand.u32 2147483647, %v4822_v43 }
0x1c77   :  { %v4835_v34 = vor.u32 1.1754944e-38, %v4834_v55  ;;  %vm4833_vm7 = vcmp.eq.f32.partialorder %v4832_v14, 8.507059e+37 }
0x1c7b   :  { %v8296_v51 = vpop.eup %8295 }
0x1c7c   :  { %v4824_v26 = vmul.f32 %v8296_v51, %v4822_v43  ;;  %vm4829_vm4 = vweird.f32 %v8296_v51 }
0x1c7d   :  { %vm4830_vm15 = vmor %vm4828_vm8, %vm4829_vm4  ;;  %vm12496_vm4 = vcmask 1046534  }
0x1c7e   :  { %v4825_v63 = vsub.f32 1.0, %v4824_v26  ;;  %vm12497_vm8 = vmmov %vm12492_vm12 }
0x1c80   :  { %v4826_v54 = vmul.f32 %v8296_v51, %v4825_v63 }
0x1c82   :  { %v4827_v38 = vadd.f32 %v8296_v51, %v4826_v54 }
0x1c84   :  { %v4831_v23 = vsel %vm4830_vm15, %v8296_v51, %v4827_v38  ;;  %vm12498_vm15 = vcmask 1047559  }
0x1c85   :  { %v11184_v59 = vsel %vm4833_vm7, %v4835_v34, %v4831_v23  ;;  %vm12499_vm7 = vmmov %vm12496_vm4 }
0x1c9a   :  { %v5271_v45 = vpop.permute.xlu2 %5270 }
0x1c9b   :  { %v5277_v24 = vsel %vm5276_vm11, %v5271_v45, 0.0  ;;  %v4838_v45 = vmul.f32 2.0, %v11184_v59 }
0x1c9c   :  { %5278 = vadd.xlane.f32.xlu0 %v5277_v24 }
0x1c9d   :  { %v7837_v24 = vadd.f32 -1.0, %v4838_v45 }
0x1ca2   :  { %v5316_v15 = vpop.permute.xlu2 %5315 }
0x1ca3   :  { %v5321_v42 = vsel %vm5276_vm11, %v5316_v15, 0.0 }
0x1ca4   :  { %5322 = vadd.xlane.f32.xlu1 %v5321_v42 }
0x1cc3   :  { %v5273_v1 = vpop.permute.xlu0 %5272 }
0x1cc4   :  { %v5281_v8 = vsel %vm5280_vm3, %v5273_v1, 0.0 }
0x1cc5   :  { %v5318_v33 = vpop.permute.xlu1 %5317  ;;  %5282 = vadd.xlane.f32.xlu2 %v5281_v8 }
0x1cc6   :  { %v5324_v10 = vsel %vm5280_vm3, %v5318_v33, 0.0 }
0x1cc7   :  { %5325 = vadd.xlane.f32.xlu0 %v5324_v10 }
0x1cdd   :  { %4842 = vrot.lane.b32.xlu2 %v7837_v24, %s8645_s0 }
0x1d0f   :  { %v5279_v49 = vpop.xlane.xlu0 %5278 }
0x1d10   :  { %v11189_v13 = vmul.f32 %v5279_v49, %v9050_v40 }
0x1d12   :  { %v5329_v15 = vmul.f32 %v11189_v13, %v11189_v13  ;;  %v5335_v8 = vrot.slane %v11189_v13, 1  ;;  %v5336_v38 = vrot.slane %v11189_v13, 2 }
0x1d14   :  { %v5351_v10 = vsub.f32 %v11105_v29, %v5335_v8  ;;  %v5352_v34 = vsub.f32 %v11108_v61, %v5336_v38 }
0x1d17   :  { %v5323_v48 = vpop.xlane.xlu1 %5322 }
0x1d18   :  { %v5327_v32 = vmul.f32 %v5323_v48, %v9050_v40 }
0x1d1a   :  { %v5331_v42 = vsub.f32 %v5327_v32, %v5329_v15 }
0x1d1c   :  { %v5358_v6 = vadd.f32 1e-05, %v5331_v42 }
0x1d1e   :  { %8297 = vrsqrt.f32 %v5358_v6  ;;  %vm5366_vm10 = vweird.f32 %v5358_v6 }
0x1d24   :  { %v8298_v22 = vpop.eup %8297 }
0x1d25   :  { %v5361_v43 = vmul.f32 %v8298_v22, %v5358_v6  ;;  %vm5367_vm9 = vweird.f32 %v8298_v22 }
0x1d26   :  { %vm5368_vm13 = vmor %vm5366_vm10, %vm5367_vm9 }
0x1d27   :  { %v5362_v51 = vmul.f32 %v8298_v22, %v5361_v43  ;;  %vm12500_vm9 = vmmov %vm12498_vm15 }
0x1d28   :  { %vm12501_vm10 = vmmov %vm12493_vm14 }
0x1d29   :  { %v5363_v26 = vmul.f32 0.5, %v5362_v51 }
0x1d2b   :  { %v5364_v1 = vsub.f32 1.5, %v5363_v26 }
0x1d2d   :  { %v5365_v63 = vmul.f32 %v8298_v22, %v5364_v1 }
0x1d2f   :  { %v5369_v33 = vsel %vm5368_vm13, %v8298_v22, %v5365_v63  ;;  %vm12502_vm13 = vmmov %vm12494_vm0 }
0x1d30   :  { %v5382_v54 = vrot.slane %v5369_v33, 1  ;;  %v5383_v14 = vrot.slane %v5369_v33, 2 }
0x1d32   :  { %v5398_v55 = vmul.f32 %v5382_v54, %v5351_v10  ;;  %v5399_v24 = vmul.f32 %v5383_v14, %v5352_v34 }
0x1d34   :  { %v5406_v23 = vmul.f32 %v5398_v55, %v12453_v30  ;;  %v5407_v29 = vmul.f32 %v5399_v24, %v12453_v30 }
0x1d36   :  { %v11200_v45 = vadd.f32 %v5406_v23, %v12454_v17  ;;  %v11208_v61 = vadd.f32 %v5407_v29, %v12454_v17 }
0x1d38   :  { %8299 = vtanh.f32 %v11200_v45  ;;  %v5283_v49 = vpop.xlane.xlu2 %5282 }
0x1d39   :  { %v5285_v48 = vmul.f32 %v5283_v49, %v9050_v40 }
0x1d3a   :  { %v5326_v15 = vpop.xlane.xlu0 %5325 }
0x1d3b   :  { %v5328_v32 = vmul.f32 %v5326_v15, %v9050_v40  ;;  %v5330_v42 = vmul.f32 %v5285_v48, %v5285_v48  ;;  %v5337_v38 = vrot.slane %v5285_v48, 3  ;;  %v5338_v55 = vrot.slane %v5285_v48, 4 }
0x1d3c   :  { %v5340_v14 = vrot.slane %v5285_v48, 6  ;;  %v5339_v24 = vrot.slane %v5285_v48, 5 }
0x1d3d   :  { %v5332_v22 = vsub.f32 %v5328_v32, %v5330_v42  ;;  %v5353_v49 = vsub.f32 %v11133_v50, %v5337_v38  ;;  %v5354_v15 = vsub.f32 %v11129_v44, %v5338_v55  ;;  %v5341_v38 = vrot.slane %v5285_v48, 7 }
0x1d3e   :  { %v8300_v6 = vpop.eup %8299  ;;  %v5356_v29 = vsub.f32 %v11140_v39, %v5340_v14 }
0x1d3f   :  { %5439 = vrot.lane.b32.xlu0 %v8300_v6, %s8645_s0  ;;  %v5359_v43 = vadd.f32 1e-05, %v5332_v22 }
0x1d40   :  { %v4843_v51 = vpop.permute.xlu2 %4842 }
0x1d41   :  { %v4845_v26 = vmul.f32 %v4843_v51, %v11184_v59  ;;  %8301 = vrsqrt.f32 %v5359_v43  ;;  %vm5376_vm1 = vweird.f32 %v5359_v43 }
0x1d42   :  { %8303 = vtanh.f32 %v11208_v61 }
0x1d43   :  { %4847 = vrot.lane.b32.xlu1 %v4845_v26, %s8646_s2  ;;  %v5355_v26 = vsub.f32 %v11142_v36, %v5339_v24 }
0x1d47   :  { %v8302_v1 = vpop.eup %8301 }
0x1d48   :  { %v5371_v8 = vmul.f32 %v8302_v1, %v5359_v43  ;;  %v8304_v63 = vpop.eup %8303  ;;  %vm5377_vm2 = vweird.f32 %v8302_v1  ;;  %v5350_v43 = vsub.f32 %v11112_v19, %v11189_v13 }
0x1d49   :  { %vm5378_vm5 = vmor %vm5376_vm1, %vm5377_vm2  ;;  %vm12504_vm1 = vcmask 261120  }
0x1d4a   :  { %v5372_v10 = vmul.f32 %v8302_v1, %v5371_v8  ;;  %vm12503_vm2 = vmmov %vm12495_vm6 }
0x1d4b   :  { %5441 = vrot.lane.b32.xlu1 %v8304_v63, %s8645_s0 }
0x1d4c   :  { %v5373_v54 = vmul.f32 0.5, %v5372_v10 }
0x1d4e   :  { %v5374_v23 = vsub.f32 1.5, %v5373_v54 }
0x1d50   :  { %v5375_v34 = vmul.f32 %v8302_v1, %v5374_v23 }
0x1d52   :  { %v5379_v32 = vsel %vm5378_vm5, %v8302_v1, %v5375_v34  ;;  %v5397_v1 = vmul.f32 %v5369_v33, %v5350_v43  ;;  %v5357_v33 = vsub.f32 %v11159_v52, %v5341_v38  ;;  %vm12505_vm5 = vmmov %vm12504_vm1 }
0x1d53   :  { %v5384_v42 = vrot.slane %v5379_v32, 3  ;;  %v5385_v6 = vrot.slane %v5379_v32, 4  ;;  %v5386_v22 = vrot.slane %v5379_v32, 5  ;;  %v5387_v51 = vrot.slane %v5379_v32, 6 }
0x1d54   :  { %v5388_v23 = vrot.slane %v5379_v32, 7  ;;  %v5405_v13 = vmul.f32 %v5397_v1, %v12453_v30 }
0x1d55   :  { %v5400_v8 = vmul.f32 %v5384_v42, %v5353_v49  ;;  %v5401_v63 = vmul.f32 %v5385_v6, %v5354_v15  ;;  %v5403_v10 = vmul.f32 %v5387_v51, %v5356_v29  ;;  %v5402_v54 = vmul.f32 %v5386_v22, %v5355_v26 }
0x1d56   :  { %v5404_v48 = vmul.f32 %v5388_v23, %v5357_v33  ;;  %v11242_v24 = vadd.f32 %v5405_v13, %v12454_v17  ;;  %v4840_v51 = vmul.f32 %v11184_v59, %v10919_v58 }
0x1d57   :  { %v5408_v50 = vmul.f32 %v5400_v8, %v12453_v30  ;;  %v5409_v44 = vmul.f32 %v5401_v63, %v12453_v30  ;;  %v5411_v39 = vmul.f32 %v5403_v10, %v12453_v30  ;;  %v5410_v19 = vmul.f32 %v5402_v54, %v12453_v30 }
0x1d58   :  { %v5412_v29 = vmul.f32 %v5404_v48, %v12453_v30 }
0x1d59   :  { %v11224_v55 = vadd.f32 %v5408_v50, %v12454_v17  ;;  %v11227_v36 = vadd.f32 %v5409_v44, %v12454_v17  ;;  %v11230_v14 = vadd.f32 %v5411_v39, %v12454_v17  ;;  %v11239_v34 = vadd.f32 %v5410_v19, %v12454_v17 }
0x1d5a   :  { %v11251_v32 = vadd.f32 %v5412_v29, %v12454_v17 }
0x1d5b   :  { %8305 = vtanh.f32 %v11224_v55 }
0x1d5c   :  { %8307 = vtanh.f32 %v11227_v36 }
0x1d5d   :  { %8309 = vtanh.f32 %v11230_v14 }
0x1d5e   :  { %8311 = vtanh.f32 %v11239_v34 }
0x1d5f   :  { %8313 = vtanh.f32 %v11242_v24 }
0x1d60   :  { %8315 = vtanh.f32 %v11251_v32 }
0x1d61   :  { %v8306_v49 = vpop.eup %8305 }
0x1d62   :  { %v8308_v15 = vpop.eup %8307  ;;  %5443 = vrot.lane.b32.xlu2 %v8306_v49, %s8645_s0 }
0x1d63   :  { %5445 = vrot.lane.b32.xlu0 %v8308_v15, %s8645_s0  ;;  %v8310_v52 = vpop.eup %8309 }
0x1d64   :  { %5449 = vrot.lane.b32.xlu1 %v8310_v52, %s8645_s0  ;;  %v8312_v42 = vpop.eup %8311 }
0x1d65   :  { %v8314_v6 = vpop.eup %8313 }
0x1d66   :  { %v8316_v22 = vpop.eup %8315 }
0x1d6a   :  { %5447 = vrot.lane.b32.xlu2 %v8312_v42, %s8645_s0 }
0x1d6b   :  { %5437 = vrot.lane.b32.xlu0 %v8314_v6, %s8645_s0 }
0x1d72   :  { %5451 = vrot.lane.b32.xlu2 %v8316_v22, %s8645_s0 }
0x1db1   :  { %v5440_v54 = vpop.permute.xlu0 %5439 }
0x1db2   :  { %v11276_v23 = vmul.f32 %v5440_v54, %v11061_v9 }
0x1db4   :  { %v5505_v29 = vmul.f32 %v11276_v23, %v11276_v23 }
0x1db5   :  { %v4848_v26 = vpop.permute.xlu1 %4847 }
0x1db6   :  { %v11259_v8 = vadd.f32 %v4848_v26, %v4840_v51  ;;  %v5520_v54 = vrot.slane %v5505_v29, 7 }
0x1db8   :  { %v4859_v63 = vmul.f32 %v11259_v8, %v11259_v8  ;;  %4852 = vrot.lane.b32.xlu0 %v11259_v8, %s8647_s28 }
0x1dba   :  { %4861 = vrot.lane.b32.xlu1 %v4859_v63, %s8647_s28  ;;  %v5477_v63 = vrot.slane %v11276_v23, 7 }
0x1dbc   :  { %v5444_v10 = vpop.permute.xlu2 %5443 }
0x1dbd   :  { %v5442_v50 = vpop.permute.xlu1 %5441  ;;  %v11267_v44 = vmul.f32 %v5444_v10, %v11044_v25 }
0x1dbf   :  { %v5481_v33 = vrot.slane %v11267_v44, 5 }
0x1dc4   :  { %v5448_v43 = vpop.permute.xlu2 %5447 }
0x1dc5   :  { %v11270_v58 = vmul.f32 %v5448_v43, %v11029_v7 }
0x1dc7   :  { %v5484_v9 = vrot.slane %v11270_v58, 3  ;;  %v5509_v22 = vmul.f32 %v11270_v58, %v11270_v58 }
0x1dcc   :  { %v5452_v39 = vpop.permute.xlu2 %5451 }
0x1dcd   :  { %v11279_v19 = vmul.f32 %v5452_v39, %v11068_v20  ;;  %v5507_v20 = vmul.f32 %v11267_v44, %v11267_v44 }
0x1dcf   :  { %v5488_v52 = vrot.slane %v11279_v19, 1  ;;  %v5524_v10 = vrot.slane %v5507_v20, 5  ;;  %v5511_v20 = vmul.f32 %v11279_v19, %v11279_v19 }
0x1dd5   :  { %v5446_v1 = vpop.permute.xlu0 %5445 }
0x1dd6   :  { %v11273_v38 = vmul.f32 %v5446_v1, %v11053_v41  ;;  %v5450_v13 = vpop.permute.xlu1 %5449  ;;  %v11289_v41 = vmul.f32 %v5442_v50, %v10979_v0 }
0x1dd7   :  { %v11286_v7 = vmul.f32 %v5450_v13, %v10982_v35 }
0x1dd8   :  { %v5482_v25 = vrot.slane %v11273_v38, 4  ;;  %v5508_v48 = vmul.f32 %v11273_v38, %v11273_v38  ;;  %v5506_v6 = vmul.f32 %v11289_v41, %v11289_v41  ;;  %v5479_v50 = vrot.slane %v11289_v41, 6 }
0x1dd9   :  { %v5486_v49 = vrot.slane %v11286_v7, 2  ;;  %v5510_v39 = vmul.f32 %v11286_v7, %v11286_v7 }
0x1dda   :  { %v5483_v15 = vsel %vm12492_vm12, %v5482_v25, %v5481_v33  ;;  %v5525_v42 = vrot.slane %v5508_v48, 4  ;;  %v5522_v25 = vrot.slane %v5506_v6, 6  ;;  %v5527_v48 = vrot.slane %v5509_v22, 3 }
0x1ddb   :  { %v5485_v35 = vsel %vm12493_vm14, %v5484_v9, %v5483_v15  ;;  %v5529_v29 = vrot.slane %v5510_v39, 2 }
0x1ddc   :  { %v5487_v0 = vsel %vm12494_vm0, %v5486_v49, %v5485_v35  ;;  %v5526_v33 = vsel %vm12497_vm8, %v5525_v42, %v5524_v10  ;;  %v5531_v35 = vrot.slane %v5511_v20, 1 }
0x1ddd   :  { %v5438_v51 = vpop.permute.xlu0 %5437  ;;  %v5489_v26 = vsel %vm12495_vm6, %v5488_v52, %v5487_v0  ;;  %v5528_v15 = vsel %vm12501_vm10, %v5527_v48, %v5526_v33 }
0x1dde   :  { %v11308_v43 = vmul.f32 %v5438_v51, %v11075_v62  ;;  %5492 = vrot.lane.b32.xlu0 %v5489_v26, %s8646_s2  ;;  %v5530_v52 = vsel %vm12502_vm13, %v5529_v29, %v5528_v15 }
0x1ddf   :  { %v5532_v42 = vsel %vm12503_vm2, %v5531_v35, %v5530_v52 }
0x1de0   :  { %v5504_v1 = vmul.f32 %v11308_v43, %v11308_v43  ;;  %v5478_v13 = vsel %vm12496_vm4, %v5477_v63, %v11308_v43 }
0x1de1   :  { %v5480_v62 = vsel %vm12498_vm15, %v5479_v50, %v5478_v13 }
0x1de2   :  { %5490 = vrot.lane.b32.xlu2 %v5480_v62, %s8646_s2  ;;  %v5521_v9 = vsel %vm12499_vm7, %v5520_v54, %v5504_v1  ;;  %vm12506_vm7 = vcmask 1041409  }
0x1de3   :  { %v5523_v49 = vsel %vm12500_vm9, %v5522_v25, %v5521_v9  ;;  %vm12507_vm9 = vmmov %vm12501_vm10 }
0x1de4   :  { %5533 = vrot.lane.b32.xlu1 %v5523_v49, %s8646_s2  ;;  %vm12508_vm10 = vmmov %vm12502_vm13 }
0x1de5   :  { %vm12509_vm13 = vmmov %vm12503_vm2  ;;  %vm12510_vm2 = vcmask 1045509  }
0x1dea   :  { %5535 = vrot.lane.b32.xlu2 %v5532_v42, %s8646_s2 }
0x1e2a   :  { %v4853_v0 = vpop.permute.xlu0 %4852 }
0x1e2b   :  { %v4855_v6 = vsel %vm12504_vm1, %v4853_v0, 0.0  ;;  %vm12511_vm1 = vcmask 1046534  }
0x1e2c   :  { %v4862_v22 = vpop.permute.xlu1 %4861  ;;  %4856 = vadd.xlane.f32.xlu0 %v4855_v6 }
0x1e2d   :  { %v4864_v51 = vsel %vm12505_vm5, %v4862_v22, 0.0  ;;  %vm12512_vm5 = vcmask 1047559  }
0x1e2e   :  { %4865 = vadd.xlane.f32.xlu1 %v4864_v51 }
0x1e3c   :  { %v5491_v26 = vpop.permute.xlu2 %5490 }
0x1e3d   :  { %v5496_v63 = vsel %vm5276_vm11, %v5491_v26, 0.0 }
0x1e3e   :  { %5497 = vadd.xlane.f32.xlu2 %v5496_v63 }
0x1e44   :  { %v5536_v10 = vpop.permute.xlu2 %5535 }
0x1e45   :  { %v5542_v54 = vsel %vm5280_vm3, %v5536_v10, 0.0 }
0x1e46   :  { %5543 = vadd.xlane.f32.xlu2 %v5542_v54 }
0x1e50   :  { %v5493_v50 = vpop.permute.xlu0 %5492 }
0x1e51   :  { %v5499_v39 = vsel %vm5280_vm3, %v5493_v50, 0.0 }
0x1e52   :  { %5500 = vadd.xlane.f32.xlu0 %v5499_v39 }
0x1e56   :  { %v5534_v1 = vpop.permute.xlu1 %5533 }
0x1e57   :  { %v5539_v13 = vsel %vm5276_vm11, %v5534_v1, 0.0 }
0x1e58   :  { %5540 = vadd.xlane.f32.xlu1 %v5539_v13 }
0x1e9f   :  { %v4857_v33 = vpop.xlane.xlu0 %4856 }
0x1ea0   :  { %v4858_v25 = vmul.f32 %v4857_v33, %v9050_v40 }
0x1ea1   :  { %v4866_v48 = vpop.xlane.xlu1 %4865 }
0x1ea2   :  { %v4868_v62 = vmul.f32 %v4858_v25, %v4858_v25  ;;  %v4867_v9 = vmul.f32 %v4866_v48, %v9050_v40  ;;  %v4870_v6 = vsub.f32 %v11259_v8, %v4858_v25 }
0x1ea4   :  { %v4869_v20 = vsub.f32 %v4867_v9, %v4868_v62 }
0x1ea6   :  { %v4871_v49 = vadd.f32 1e-05, %v4869_v20 }
0x1ea8   :  { %8317 = vrsqrt.f32 %v4871_v49  ;;  %vm4878_vm12 = vweird.f32 %v4871_v49 }
0x1eae   :  { %v8318_v15 = vpop.eup %8317 }
0x1eaf   :  { %v4873_v29 = vmul.f32 %v8318_v15, %v4871_v49  ;;  %vm4879_vm3 = vweird.f32 %v8318_v15 }
0x1eb0   :  { %vm4880_vm11 = vmor %vm4878_vm12, %vm4879_vm3  ;;  %vm12513_vm3 = vcmask 261120  }
0x1eb1   :  { %v4874_v52 = vmul.f32 %v8318_v15, %v4873_v29  ;;  %v5498_v63 = vpop.xlane.xlu2 %5497  ;;  %vm12514_vm12 = vmmov %vm12513_vm3 }
0x1eb2   :  { %v5502_v8 = vmul.f32 %v5498_v63, %v9050_v40 }
0x1eb3   :  { %v4875_v35 = vmul.f32 0.5, %v4874_v52 }
0x1eb4   :  { %v5547_v20 = vmul.f32 %v5502_v8, %v5502_v8 }
0x1eb5   :  { %v4876_v42 = vsub.f32 1.5, %v4875_v35 }
0x1eb7   :  { %v4877_v0 = vmul.f32 %v8318_v15, %v4876_v42 }
0x1eb9   :  { %v4881_v22 = vsel %vm4880_vm11, %v8318_v15, %v4877_v0  ;;  %v5544_v50 = vpop.xlane.xlu2 %5543  ;;  %vm12515_vm11 = vmmov %vm12513_vm3 }
0x1eba   :  { %v4882_v51 = vmul.f32 %v4881_v22, %v4870_v6  ;;  %v5546_v13 = vmul.f32 %v5544_v50, %v9050_v40 }
0x1ebc   :  { %v4883_v26 = vmul.f32 %v4882_v51, %v9721_v4 }
0x1ebe   :  { %v11341_v10 = vadd.f32 %v4883_v26, %v9723_v27 }
0x1ec0   :  { %8319 = vtanh.f32 %v11341_v10 }
0x1ec5   :  { %v5501_v39 = vpop.xlane.xlu0 %5500 }
0x1ec6   :  { %v8320_v54 = vpop.eup %8319  ;;  %v5503_v1 = vmul.f32 %v5501_v39, %v9050_v40  ;;  %v5553_v39 = vrot.slane %v5502_v8, 1 }
0x1ec7   :  { %4887 = vrot.lane.b32.xlu0 %v8320_v54, %s8645_s0 }
0x1ec8   :  { %v5548_v33 = vmul.f32 %v5503_v1, %v5503_v1  ;;  %v5555_v26 = vrot.slane %v5503_v1, 3  ;;  %v5556_v63 = vrot.slane %v5503_v1, 4  ;;  %v5569_v27 = vsub.f32 %v11276_v23, %v5553_v39 }
0x1eca   :  { %v5550_v25 = vsub.f32 %v5546_v13, %v5548_v33  ;;  %v5554_v13 = vrot.slane %v5502_v8, 2  ;;  %v5557_v33 = vrot.slane %v5503_v1, 5 }
0x1ecb   :  { %v5541_v48 = vpop.xlane.xlu1 %5540 }
0x1ecc   :  { %v5577_v62 = vadd.f32 1e-05, %v5550_v25  ;;  %v5545_v9 = vmul.f32 %v5541_v48, %v9050_v40  ;;  %v5558_v25 = vrot.slane %v5503_v1, 6  ;;  %v5570_v4 = vsub.f32 %v11289_v41, %v5554_v13 }
0x1ece   :  { %8321 = vrsqrt.f32 %v5577_v62  ;;  %v5549_v49 = vsub.f32 %v5545_v9, %v5547_v20  ;;  %vm5594_vm0 = vweird.f32 %v5577_v62  ;;  %v5559_v9 = vrot.slane %v5503_v1, 7 }
0x1ed0   :  { %v5576_v15 = vadd.f32 1e-05, %v5549_v49  ;;  %v5571_v49 = vsub.f32 %v11267_v44, %v5555_v26  ;;  %v5575_v44 = vsub.f32 %v11279_v19, %v5559_v9 }
0x1ed2   :  { %8323 = vrsqrt.f32 %v5576_v15  ;;  %vm5584_vm8 = vweird.f32 %v5576_v15 }
0x1ed4   :  { %v8322_v29 = vpop.eup %8321 }
0x1ed5   :  { %v5589_v52 = vmul.f32 %v8322_v29, %v5577_v62  ;;  %vm5595_vm14 = vweird.f32 %v8322_v29  ;;  %v5568_v62 = vsub.f32 %v11308_v43, %v5502_v8 }
0x1ed6   :  { %vm5596_vm6 = vmor %vm5594_vm0, %vm5595_vm14 }
0x1ed7   :  { %v5590_v35 = vmul.f32 %v8322_v29, %v5589_v52  ;;  %v5572_v52 = vsub.f32 %v11273_v38, %v5556_v63  ;;  %vm12516_vm14 = vmmov %vm12513_vm3 }
0x1ed8   :  { %v8324_v42 = vpop.eup %8323 }
0x1ed9   :  { %v5579_v0 = vmul.f32 %v8324_v42, %v5576_v15  ;;  %v5591_v6 = vmul.f32 0.5, %v5590_v35  ;;  %vm5585_vm4 = vweird.f32 %v8324_v42 }
0x1eda   :  { %vm5586_vm15 = vmor %vm5584_vm8, %vm5585_vm4 }
0x1edb   :  { %v5580_v22 = vmul.f32 %v8324_v42, %v5579_v0  ;;  %v5592_v51 = vsub.f32 1.5, %v5591_v6 }
0x1edd   :  { %v5581_v54 = vmul.f32 0.5, %v5580_v22  ;;  %v5593_v50 = vmul.f32 %v8322_v29, %v5592_v51 }
0x1edf   :  { %v5582_v48 = vsub.f32 1.5, %v5581_v54  ;;  %v5597_v20 = vsel %vm5596_vm6, %v8322_v29, %v5593_v50  ;;  %v5574_v29 = vsub.f32 %v11286_v7, %v5558_v25 }
0x1ee0   :  { %v5602_v35 = vrot.slane %v5597_v20, 3  ;;  %v5603_v0 = vrot.slane %v5597_v20, 4  ;;  %v5605_v22 = vrot.slane %v5597_v20, 6  ;;  %v5606_v51 = vrot.slane %v5597_v20, 7 }
0x1ee1   :  { %v5583_v6 = vmul.f32 %v8324_v42, %v5582_v48  ;;  %v5604_v15 = vrot.slane %v5597_v20, 5  ;;  %v5573_v48 = vsub.f32 %v11270_v58, %v5557_v33 }
0x1ee2   :  { %v5618_v54 = vmul.f32 %v5602_v35, %v5571_v49  ;;  %v5619_v38 = vmul.f32 %v5603_v0, %v5572_v52  ;;  %v5621_v17 = vmul.f32 %v5605_v22, %v5574_v29  ;;  %v5622_v43 = vmul.f32 %v5606_v51, %v5575_v44 }
0x1ee3   :  { %v5587_v1 = vsel %vm5586_vm15, %v8324_v42, %v5583_v6  ;;  %v5620_v25 = vmul.f32 %v5604_v15, %v5573_v48 }
0x1ee4   :  { %v5600_v26 = vrot.slane %v5587_v1, 1  ;;  %v5601_v63 = vrot.slane %v5587_v1, 2  ;;  %v5615_v50 = vmul.f32 %v5587_v1, %v5568_v62  ;;  %v5626_v39 = vmul.f32 %v5618_v54, %v9211_v46 }
0x1ee5   :  { %v5627_v42 = vmul.f32 %v5619_v38, %v9211_v46  ;;  %v5629_v9 = vmul.f32 %v5621_v17, %v9211_v46  ;;  %v5628_v35 = vmul.f32 %v5620_v25, %v9211_v46 }
0x1ee6   :  { %v5616_v8 = vmul.f32 %v5600_v26, %v5569_v27  ;;  %v5617_v23 = vmul.f32 %v5601_v63, %v5570_v4  ;;  %v5623_v41 = vmul.f32 %v5615_v50, %v9211_v46  ;;  %v5630_v4 = vmul.f32 %v5622_v43, %v9211_v46 }
0x1ee7   :  { %v5634_v33 = vadd.f32 %v5626_v39, %v9229_v18  ;;  %v5635_v20 = vadd.f32 %v5627_v42, %v9229_v18  ;;  %v5637_v6 = vadd.f32 %v5629_v9, %v9229_v18  ;;  %v5636_v1 = vadd.f32 %v5628_v35, %v9229_v18  ;;  %v8529_v39 = vld [vmem:[#allocation5 + $0x40] sm:$0xff]  ;;  %v8530_v42 = vld [vmem:[#allocation5 + $0x38] sm:$0xff] }
0x1ee8   :  { %v5624_v7 = vmul.f32 %v5616_v8, %v9211_v46  ;;  %v5625_v19 = vmul.f32 %v5617_v23, %v9211_v46  ;;  %v5631_v13 = vadd.f32 %v5623_v41, %v9229_v18  ;;  %v5638_v22 = vadd.f32 %v5630_v4, %v9229_v18  ;;  %v8528_v41 = vld [vmem:[#allocation5 + $0x48] sm:$0xff] }
0x1ee9   :  { %v5652_v51 = vrot.slane %v5634_v33, 2  ;;  %v5654_v54 = vrot.slane %v5635_v20, 1  ;;  %v5657_v38 = vrot.slane %v5637_v6, 7 }
0x1eea   :  { %v5632_v58 = vadd.f32 %v5624_v7, %v9229_v18  ;;  %v5633_v27 = vadd.f32 %v5625_v19, %v9229_v18  ;;  %v5647_v49 = vrot.slane %v5631_v13, 5  ;;  %v5659_v63 = vrot.slane %v5638_v22, 6 }
0x1eec   :  { %v5648_v52 = vrot.slane %v5632_v58, 4  ;;  %v5650_v0 = vrot.slane %v5633_v27, 3 }
0x1eee   :  { %v5649_v17 = vsel %vm12506_vm7, %v5648_v52, %v5647_v49 }
0x1eef   :  { %v5651_v62 = vsel %vm12507_vm9, %v5650_v0, %v5649_v17 }
0x1ef0   :  { %v5653_v29 = vsel %vm12508_vm10, %v5652_v51, %v5651_v62 }
0x1ef1   :  { %v5655_v44 = vsel %vm12509_vm13, %v5654_v54, %v5653_v29 }
0x1ef2   :  { %v5656_v26 = vsel %vm12510_vm2, %v5636_v1, %v5655_v44 }
0x1ef3   :  { %v5658_v50 = vsel %vm12511_vm1, %v5657_v38, %v5656_v26 }
0x1ef4   :  { %v5660_v15 = vsel %vm12512_vm5, %v5659_v63, %v5658_v50 }
0x1ef5   :  { %5661 = vrot.lane.b32.xlu1 %v5660_v15, %s8646_s2 }
0x1f39   :  { %v4888_v48 = vpop.permute.xlu0 %4887 }
0x1f3a   :  { %v11382_v43 = vmul.f32 %v4888_v48, %v11184_v59  ;;  %v8531_v59 = vld [vmem:[#allocation5 + $0x30] sm:$0xff] }
0x1f3c   :  { %v4899_v8 = vmul.f32 %v11382_v43, %v11382_v43  ;;  %4892 = vrot.lane.b32.xlu2 %v11382_v43, %s8646_s2 }
0x1f3e   :  { %4901 = vrot.lane.b32.xlu0 %v4899_v8, %s8646_s2 }
0x1f67   :  { %v5662_v23 = vpop.permute.xlu1 %5661 }
0x1f68   :  { %7855 = vmatmul.msk.f32.vlgmr.msrb.gmra.mxu2 %vm12513_vm3, %v5662_v23  ;;  %7859 = vmatmul.msk.f32.vlgmr.msra.gmra.mxu1 %vm12514_vm12, %v5662_v23 }
0x1f69   :  { %7511 = vmatpush.msrb.mxu2 %v8528_v41 }
0x1f6b   :  { %7512 = vmatpush.msrb.mxu2 %v8529_v39 }
0x1f6d   :  { %7513 = vmatpush.msrb.mxu2 %v8530_v42 }
0x1f6f   :  { %7514 = vmatpush.msrb.mxu2 %v8531_v59 }
0x1f96   :  { %v4893_v7 = vpop.permute.xlu2 %4892 }
0x1f97   :  { %v4895_v19 = vsel %vm12515_vm11, %v4893_v7, 0.0 }
0x1f98   :  { %4896 = vadd.xlane.f32.xlu0 %v4895_v19 }
0x1fb0   :  { %v4902_v13 = vpop.permute.xlu0 %4901 }
0x1fb1   :  { %v4904_v25 = vsel %vm12516_vm14, %v4902_v13, 0.0 }
0x1fb2   :  { %4905 = vadd.xlane.f32.xlu1 %v4904_v25 }
0x1fe5   :  { %v11393_v9 = vpop.f32.mrf.mxu1 }
0x1fe6   :  { %v5864_v58 = vrot.slane %v11393_v9, 3  ;;  %v5869_v27 = vrot.slane %v11393_v9, 1 }
0x1fe8   :  { %v5879_v4 = vadd.f32 %v5864_v58, %v8776_v57  ;;  %v5885_v33 = vadd.f32 %v5869_v27, %v8941_v3  ;;  %v5884_v58 = vadd.f32 %v11393_v9, %v8903_v31  ;;  %v5865_v27 = vrot.slane %v11393_v9, 4 }
0x1fea   :  { %v7861_v20 = vmul.f32 -1.442695, %v5879_v4  ;;  %v7867_v49 = vmul.f32 -1.442695, %v5885_v33  ;;  %v7866_v4 = vmul.f32 -1.442695, %v5884_v58  ;;  %v5880_v33 = vadd.f32 %v5865_v27, %v8811_v28 }
0x1fec   :  { %8325 = vpow2.f32 %v7861_v20  ;;  %v5866_v20 = vrot.slane %v11393_v9, 5 }
0x1fed   :  { %8327 = vpow2.f32 %v7867_v49  ;;  %v7862_v49 = vmul.f32 -1.442695, %v5880_v33  ;;  %v5863_v33 = vrot.slane %v11393_v9, 2 }
0x1ff2   :  { %v8326_v52 = vpop.eup %8325 }
0x1ff3   :  { %v5911_v35 = vadd.f32 1.0, %v8326_v52  ;;  %v8328_v0 = vpop.eup %8327 }
0x1ff4   :  { %v5917_v6 = vadd.f32 1.0, %v8328_v0  ;;  %v5881_v0 = vadd.f32 %v5866_v20, %v8839_v12 }
0x1ff5   :  { %8329 = vrcp.f32 %v5911_v35  ;;  %v5944_v62 = vand.u32 2147483648, %v5911_v35  ;;  %v5942_v29 = vand.u32 2147483647, %v5911_v35  ;;  %vm5938_vm6 = vweird.f32 %v5911_v35 }
0x1ff6   :  { %8331 = vrcp.f32 %v5917_v6  ;;  %v6034_v15 = vand.u32 2147483648, %v5917_v6  ;;  %v6032_v23 = vand.u32 2147483647, %v5917_v6  ;;  %vm6028_vm7 = vweird.f32 %v5917_v6 }
0x1ff7   :  { %v5945_v26 = vor.u32 1.1754944e-38, %v5944_v62  ;;  %vm5943_vm8 = vcmp.eq.f32.partialorder %v5942_v29, 8.507059e+37  ;;  %8333 = vpow2.f32 %v7866_v4  ;;  %v7863_v62 = vmul.f32 -1.442695, %v5881_v0 }
0x1ff8   :  { %v6035_v59 = vor.u32 1.1754944e-38, %v6034_v15  ;;  %vm6033_vm10 = vcmp.eq.f32.partialorder %v6032_v23, 8.507059e+37  ;;  %8335 = vpow2.f32 %v7862_v49  ;;  %v5868_v15 = vrot.slane %v11393_v9, 7 }
0x1ffb   :  { %v8330_v22 = vpop.eup %8329 }
0x1ffc   :  { %v5934_v17 = vmul.f32 %v8330_v22, %v5911_v35  ;;  %v8332_v54 = vpop.eup %8331  ;;  %vm5939_vm0 = vweird.f32 %v8330_v22 }
0x1ffd   :  { %v6024_v44 = vmul.f32 %v8332_v54, %v5917_v6  ;;  %vm5940_vm4 = vmor %vm5938_vm6, %vm5939_vm0  ;;  %vm6029_vm15 = vweird.f32 %v8332_v54  ;;  %v8334_v35 = vpop.eup %8333 }
0x1ffe   :  { %v5935_v51 = vsub.f32 1.0, %v5934_v17  ;;  %vm6030_vm9 = vmor %vm6028_vm7, %vm6029_vm15  ;;  %v8336_v29 = vpop.eup %8335 }
0x1fff   :  { %v6025_v63 = vsub.f32 1.0, %v6024_v44 }
0x2000   :  { %v5936_v1 = vmul.f32 %v8330_v22, %v5935_v51  ;;  %v5867_v51 = vrot.slane %v11393_v9, 6 }
0x2001   :  { %v6026_v8 = vmul.f32 %v8332_v54, %v6025_v63  ;;  %v11420_v63 = vadd.f32 1.0, %v8336_v29 }
0x2002   :  { %v5937_v38 = vadd.f32 %v8330_v22, %v5936_v1 }
0x2003   :  { %v6027_v39 = vadd.f32 %v8332_v54, %v6026_v8  ;;  %vm5953_vm0 = vweird.f32 %v11420_v63 }
0x2004   :  { %v5941_v50 = vsel %vm5940_vm4, %v8330_v22, %v5937_v38  ;;  %v11414_v22 = vadd.f32 1.0, %v8334_v35  ;;  %v5882_v38 = vadd.f32 %v5867_v51, %v8875_v56 }
0x2005   :  { %v11399_v48 = vsel %vm5943_vm8, %v5945_v26, %v5941_v50  ;;  %v6031_v7 = vsel %vm6030_vm9, %v8332_v54, %v6027_v39 }
0x2006   :  { %v6039_v41 = vmul.f32 2.0, %v11399_v48  ;;  %v11403_v19 = vsel %vm6033_vm10, %v6035_v59, %v6031_v7  ;;  %8337 = vrcp.f32 %v11414_v22  ;;  %v7864_v8 = vmul.f32 -1.442695, %v5882_v38  ;;  %v5682_v59 = vpop.f32.mrf.mxu2 }
0x2007   :  { %v6045_v13 = vmul.f32 2.0, %v11403_v19  ;;  %8339 = vpow2.f32 %v7863_v62  ;;  %v11431_v27 = vadd.f32 %v5682_v59, %v9475_v11  ;;  %v5878_v62 = vadd.f32 %v5863_v33, %v8759_v37 }
0x2008   :  { %v7869_v42 = vadd.f32 -1.0, %v6039_v41  ;;  %vm6013_vm3 = vweird.f32 %v11414_v22 }
0x2009   :  { %v7875_v25 = vadd.f32 -1.0, %v6045_v13  ;;  %v5688_v51 = vmul.f32 %v11431_v27, %v11431_v27 }
0x200a   :  { %6096 = vrot.lane.b32.xlu1 %v7869_v42, %s8645_s0  ;;  %v5883_v42 = vadd.f32 %v5868_v15, %v8925_v60 }
0x200b   :  { %6108 = vrot.lane.b32.xlu0 %v7875_v25, %s8645_s0  ;;  %v4897_v52 = vpop.xlane.xlu0 %4896 }
0x200c   :  { %v4898_v6 = vmul.f32 %v4897_v52, %v9050_v40  ;;  %v8338_v50 = vpop.eup %8337  ;;  %v7865_v20 = vmul.f32 -1.442695, %v5883_v42  ;;  %v6017_v42 = vand.u32 2147483647, %v11414_v22 }
0x200d   :  { %v8340_v23 = vpop.eup %8339  ;;  %v6009_v41 = vmul.f32 %v8338_v50, %v11414_v22  ;;  %vm6014_vm5 = vweird.f32 %v8338_v50 }
0x200e   :  { %v4908_v54 = vmul.f32 %v4898_v6, %v4898_v6  ;;  %v11426_v7 = vadd.f32 1.0, %v8340_v23  ;;  %v7860_v23 = vmul.f32 -1.442695, %v5878_v62  ;;  %vm6015_vm12 = vmor %vm6013_vm3, %vm6014_vm5  ;;  %vm6018_vm11 = vcmp.eq.f32.partialorder %v6017_v42, 8.507059e+37 }
0x200f   :  { %v6010_v25 = vsub.f32 1.0, %v6009_v41 }
0x2010   :  { %vm5968_vm15 = vweird.f32 %v11426_v7 }
0x2011   :  { %v6011_v35 = vmul.f32 %v8338_v50, %v6010_v25 }
0x2013   :  { %v6012_v29 = vadd.f32 %v8338_v50, %v6011_v35  ;;  %v5957_v35 = vand.u32 2147483647, %v11420_v63 }
0x2015   :  { %vm5958_vm4 = vcmp.eq.f32.partialorder %v5957_v35, 8.507059e+37 }
0x2025   :  { %v4906_v17 = vpop.xlane.xlu1 %4905 }
0x2026   :  { %v4907_v1 = vmul.f32 %v4906_v17, %v9050_v40 }
0x2028   :  { %v4909_v44 = vsub.f32 %v4907_v1, %v4908_v54  ;;  %v4910_v1 = vsub.f32 %v11382_v43, %v4898_v6  ;;  %v6016_v6 = vsel %vm6015_vm12, %v8338_v50, %v6012_v29 }
0x202a   :  { %v4911_v26 = vadd.f32 1e-05, %v4909_v44 }
0x202c   :  { %8341 = vrsqrt.f32 %v4911_v26  ;;  %vm4918_vm2 = vweird.f32 %v4911_v26 }
0x202d   :  { %8343 = vrcp.f32 %v11420_v63 }
0x202e   :  { %8345 = vpow2.f32 %v7864_v8  ;;  %v6019_v8 = vand.u32 2147483648, %v11414_v22 }
0x202f   :  { %8347 = vrcp.f32 %v11426_v7 }
0x2030   :  { %8349 = vpow2.f32 %v7865_v20 }
0x2032   :  { %v8342_v39 = vpop.eup %8341 }
0x2033   :  { %v4913_v13 = vmul.f32 %v8342_v39, %v4911_v26  ;;  %v11428_v58 = vpop.eup %8343  ;;  %vm4919_vm13 = vweird.f32 %v8342_v39 }
0x2034   :  { %v8346_v52 = vpop.eup %8345  ;;  %v5949_v0 = vmul.f32 %v11428_v58, %v11420_v63  ;;  %vm4920_vm1 = vmor %vm4918_vm2, %vm4919_vm13  ;;  %vm5954_vm14 = vweird.f32 %v11428_v58 }
0x2035   :  { %v4914_v4 = vmul.f32 %v8342_v39, %v4913_v13  ;;  %v11440_v54 = vadd.f32 1.0, %v8346_v52  ;;  %5689 = vadd.xlane.f32.xlu0 %v5688_v51  ;;  %v8348_v38 = vpop.eup %8347  ;;  %vm5955_vm6 = vmor %vm5953_vm0, %vm5954_vm14 }
0x2036   :  { %v5950_v44 = vsub.f32 1.0, %v5949_v0  ;;  %v8350_v26 = vpop.eup %8349  ;;  %v5964_v13 = vmul.f32 %v8348_v38, %v11426_v7  ;;  %vm5969_vm8 = vweird.f32 %v8348_v38 }
0x2037   :  { %v4915_v49 = vmul.f32 0.5, %v4914_v4  ;;  %8351 = vrcp.f32 %v11440_v54  ;;  %v11451_v4 = vadd.f32 1.0, %v8350_v26  ;;  %vm5970_vm7 = vmor %vm5968_vm15, %vm5969_vm8  ;;  %vm5983_vm13 = vweird.f32 %v11440_v54 }
0x2038   :  { %v5951_v59 = vmul.f32 %v11428_v58, %v5950_v44  ;;  %8353 = vpow2.f32 %v7860_v23  ;;  %v5965_v50 = vsub.f32 1.0, %v5964_v13  ;;  %v5974_v23 = vand.u32 2147483648, %v11426_v7 }
0x2039   :  { %v4916_v17 = vsub.f32 1.5, %v4915_v49  ;;  %v5959_v49 = vand.u32 2147483648, %v11420_v63  ;;  %8355 = vrcp.f32 %v11451_v4  ;;  %vm5998_vm3 = vweird.f32 %v11451_v4 }
0x203a   :  { %v5952_v22 = vadd.f32 %v11428_v58, %v5951_v59  ;;  %v5966_v51 = vmul.f32 %v8348_v38, %v5965_v50  ;;  %vm12517_vm8 = vcmask 261120  }
0x203b   :  { %v4917_v9 = vmul.f32 %v8342_v39, %v4916_v17 }
0x203c   :  { %v5956_v17 = vsel %vm5955_vm6, %v11428_v58, %v5952_v22 }
0x203d   :  { %v4921_v15 = vsel %vm4920_vm1, %v8342_v39, %v4917_v9  ;;  %v6020_v39 = vor.u32 1.1754944e-38, %v6019_v8  ;;  %v8352_v20 = vpop.eup %8351  ;;  %v5960_v9 = vor.u32 1.1754944e-38, %v5959_v49 }
0x203e   :  { %v4922_v41 = vmul.f32 %v4921_v15, %v4910_v1  ;;  %v8354_v0 = vpop.eup %8353  ;;  %v5979_v62 = vmul.f32 %v8352_v20, %v11440_v54  ;;  %v5967_v15 = vadd.f32 %v8348_v38, %v5966_v51  ;;  %vm5984_vm10 = vweird.f32 %v8352_v20 }
0x203f   :  { %v11453_v33 = vsel %vm6018_vm11, %v6020_v39, %v6016_v6  ;;  %v11465_v29 = vadd.f32 1.0, %v8354_v0  ;;  %v11467_v44 = vsel %vm5958_vm4, %v5960_v9, %v5956_v17  ;;  %v8356_v8 = vpop.eup %8355  ;;  %v5975_v6 = vor.u32 1.1754944e-38, %v5974_v23  ;;  %vm5985_vm2 = vmor %vm5983_vm13, %vm5984_vm10 }
0x2040   :  { %v4923_v43 = vmul.f32 %v4922_v41, %v9779_v53  ;;  %v6044_v52 = vmul.f32 2.0, %v11453_v33  ;;  %v5980_v63 = vsub.f32 1.0, %v5979_v62  ;;  %v6040_v58 = vmul.f32 2.0, %v11467_v44 }
0x2041   :  { %v5972_v41 = vand.u32 2147483647, %v11426_v7  ;;  %8357 = vrcp.f32 %v11465_v29  ;;  %v5971_v42 = vsel %vm5970_vm7, %v8348_v38, %v5967_v15  ;;  %v5989_v7 = vand.u32 2147483648, %v11440_v54 }
0x2042   :  { %v4924_v25 = vadd.f32 %v4923_v43, %v9781_v2  ;;  %v7874_v1 = vadd.f32 -1.0, %v6044_v52  ;;  %v5981_v26 = vmul.f32 %v8352_v20, %v5980_v63  ;;  %v5994_v43 = vmul.f32 %v8356_v8, %v11451_v4 }
0x2043   :  { %v7870_v59 = vadd.f32 -1.0, %v6040_v58  ;;  %vm5973_vm9 = vcmp.eq.f32.partialorder %v5972_v41, 8.507059e+37  ;;  %v5987_v38 = vand.u32 2147483647, %v11440_v54  ;;  %v5990_v0 = vor.u32 1.1754944e-38, %v5989_v7 }
0x2044   :  { %5711 = vrot.lane.b32.xlu2 %v4924_v25, %s8646_s2  ;;  %v11476_v13 = vsel %vm5973_vm9, %v5975_v6, %v5971_v42  ;;  %v5982_v39 = vadd.f32 %v8352_v20, %v5981_v26  ;;  %v5995_v25 = vsub.f32 1.0, %v5994_v43  ;;  %vm5999_vm5 = vweird.f32 %v8356_v8 }
0x2045   :  { %v6041_v50 = vmul.f32 2.0, %v11476_v13  ;;  %vm5988_vm1 = vcmp.eq.f32.partialorder %v5987_v38, 8.507059e+37  ;;  %v6002_v54 = vand.u32 2147483647, %v11451_v4  ;;  %vm6000_vm12 = vmor %vm5998_vm3, %vm5999_vm5  ;;  %v5929_v26 = vand.u32 2147483648, %v11465_v29 }
0x2046   :  { %v5986_v49 = vsel %vm5985_vm2, %v8352_v20, %v5982_v39  ;;  %v5996_v52 = vmul.f32 %v8356_v8, %v5995_v25  ;;  %vm5923_vm0 = vweird.f32 %v11465_v29  ;;  %vm12518_vm10 = vcmask 1041409  }
0x2047   :  { %v8358_v22 = vpop.eup %8357  ;;  %v7871_v17 = vadd.f32 -1.0, %v6041_v50  ;;  %v11484_v51 = vsel %vm5988_vm1, %v5990_v0, %v5986_v49  ;;  %vm6003_vm11 = vcmp.eq.f32.partialorder %v6002_v54, 8.507059e+37  ;;  %v5930_v6 = vor.u32 1.1754944e-38, %v5929_v26  ;;  %v8533_v49 = vld [vmem:[#allocation5 + $0x60] sm:$0xff]  ;;  %v8535_v0 = vld [vmem:[#allocation5 + $0x50] sm:$0xff]  ;;  %vm12520_vm2 = vmmov %vm12518_vm10 }
0x2048   :  { %v5919_v35 = vmul.f32 %v8358_v22, %v11465_v29  ;;  %v5997_v62 = vadd.f32 %v8356_v8, %v5996_v52  ;;  %v6042_v15 = vmul.f32 2.0, %v11484_v51  ;;  %vm5924_vm14 = vweird.f32 %v8358_v22  ;;  %v8534_v52 = vld [vmem:[#allocation5 + $0x58] sm:$0xff] }
0x2049   :  { %vm5925_vm6 = vmor %vm5923_vm0, %vm5924_vm14  ;;  %vm12519_vm13 = vcmask 1042434   ;;  %vm12521_vm1 = vcmask 1043459  }
0x204a   :  { %v5920_v9 = vsub.f32 1.0, %v5919_v35  ;;  %v6001_v20 = vsel %vm6000_vm12, %v8356_v8, %v5997_v62  ;;  %v7872_v58 = vadd.f32 -1.0, %v6042_v15  ;;  %vm12522_vm5 = vmmov %vm12519_vm13  ;;  %vm12524_vm12 = vcmask 1044484  }
0x204b   :  { %vm12523_vm3 = vmmov %vm12521_vm1 }
0x204c   :  { %6106 = vrot.lane.b32.xlu2 %v7874_v1, %s8645_s0  ;;  %v6004_v1 = vand.u32 2147483648, %v11451_v4  ;;  %v5921_v63 = vmul.f32 %v8358_v22, %v5920_v9  ;;  %v5927_v4 = vand.u32 2147483647, %v11465_v29  ;;  %vm12526_vm14 = vmmov %vm12524_vm12 }
0x204e   :  { %v6005_v23 = vor.u32 1.1754944e-38, %v6004_v1  ;;  %v5922_v42 = vadd.f32 %v8358_v22, %v5921_v63  ;;  %vm5928_vm4 = vcmp.eq.f32.partialorder %v5927_v4, 8.507059e+37 }
0x2050   :  { %v11491_v41 = vsel %vm6003_vm11, %v6005_v23, %v6001_v20  ;;  %v5926_v8 = vsel %vm5925_vm6, %v8358_v22, %v5922_v42  ;;  %v8532_v22 = vld [vmem:[#allocation5 + $0x68] sm:$0xff]  ;;  %vm12525_vm11 = vcmask 1045509  }
0x2051   :  { %v6043_v43 = vmul.f32 2.0, %v11491_v41  ;;  %v11498_v39 = vsel %vm5928_vm4, %v5930_v6, %v5926_v8  ;;  %vm12527_vm0 = vmmov %vm12525_vm11 }
0x2052   :  { %v6038_v25 = vmul.f32 2.0, %v11498_v39 }
0x2054   :  { %6098 = vrot.lane.b32.xlu2 %v7870_v59, %s8645_s0  ;;  %v7873_v59 = vadd.f32 -1.0, %v6043_v43  ;;  %v7868_v7 = vadd.f32 -1.0, %v6038_v25 }
0x205c   :  { %6100 = vrot.lane.b32.xlu2 %v7871_v17, %s8645_s0 }
0x2064   :  { %6102 = vrot.lane.b32.xlu2 %v7872_v58, %s8645_s0 }
0x206c   :  { %6104 = vrot.lane.b32.xlu2 %v7873_v59, %s8645_s0 }
0x2074   :  { %6094 = vrot.lane.b32.xlu2 %v7868_v7, %s8645_s0 }
0x207c   :  { %v6097_v50 = vpop.permute.xlu1 %6096 }
0x207d   :  { %v6119_v38 = vmul.f32 %v6097_v50, %v11399_v48  ;;  %v6109_v58 = vpop.permute.xlu0 %6108 }
0x207e   :  { %v6125_v42 = vmul.f32 %v6109_v58, %v11403_v19 }
0x207f   :  { %6136 = vrot.lane.b32.xlu0 %v6119_v38, %s8646_s2 }
0x209d   :  { %5685 = vadd.xlane.f32.xlu2 %v11431_v27 }
0x209e   :  { %v5712_v29 = vpop.permute.xlu2 %5711 }
0x209f   :  { %7856 = vmatmul.msk.f32.vlgmr.msrb.gmra.mxu3 %vm12517_vm8, %v5712_v29 }
0x20a0   :  { %7561 = vmatpush.msrb.mxu3 %v8532_v22 }
0x20a2   :  { %7562 = vmatpush.msrb.mxu3 %v8533_v49 }
0x20a4   :  { %7563 = vmatpush.msrb.mxu3 %v8534_v52 }
0x20a6   :  { %v6107_v35 = vpop.permute.xlu2 %6106  ;;  %7564 = vmatpush.msrb.mxu3 %v8535_v0 }
0x20a7   :  { %v6124_v9 = vmul.f32 %v6107_v35, %v11453_v33 }
0x20a8   :  { %v5690_v4 = vpop.xlane.xlu0 %5689 }
0x20a9   :  { %v5691_v59 = vmul.f32 %v5690_v4, %v8731_v47 }
0x20ae   :  { %v6099_v17 = vpop.permute.xlu2 %6098 }
0x20af   :  { %v6120_v62 = vmul.f32 %v6099_v17, %v11467_v44 }
0x20b1   :  { %6138 = vrot.lane.b32.xlu1 %v6120_v62, %s8646_s2 }
0x20b5   :  { %6146 = vrot.lane.b32.xlu2 %v6124_v9, %s8646_s2 }
0x20b6   :  { %v6101_v1 = vpop.permute.xlu2 %6100 }
0x20b7   :  { %v6121_v15 = vmul.f32 %v6101_v1, %v11476_v13 }
0x20b9   :  { %6140 = vrot.lane.b32.xlu1 %v6121_v15, %s8646_s2 }
0x20be   :  { %v6103_v54 = vpop.permute.xlu2 %6102 }
0x20bf   :  { %v6122_v20 = vmul.f32 %v6103_v54, %v11484_v51 }
0x20c1   :  { %6142 = vrot.lane.b32.xlu1 %v6122_v20, %s8646_s2 }
0x20c6   :  { %v6105_v63 = vpop.permute.xlu2 %6104 }
0x20c7   :  { %v6123_v23 = vmul.f32 %v6105_v63, %v11491_v41 }
0x20c9   :  { %6144 = vrot.lane.b32.xlu1 %v6123_v23, %s8646_s2 }
0x20ce   :  { %v6095_v26 = vpop.permute.xlu2 %6094 }
0x20cf   :  { %v6118_v43 = vmul.f32 %v6095_v26, %v11498_v39 }
0x20d1   :  { %6148 = vrot.lane.b32.xlu1 %v6125_v42, %s8646_s2  ;;  %v6065_v42 = vrot.slane %v11224_v55, 7 }
0x20d3   :  { %v6081_v4 = vmul.f32 %v6065_v42, %v11476_v13 }
0x20d9   :  { %6134 = vrot.lane.b32.xlu1 %v6118_v43, %s8646_s2  ;;  %v6066_v43 = vrot.slane %v11227_v36, 7  ;;  %v6068_v36 = vrot.slane %v11230_v14, 7 }
0x2110   :  { %v5686_v8 = vpop.xlane.xlu2 %5685 }
0x2111   :  { %v5687_v6 = vmul.f32 %v5686_v8, %v8731_v47  ;;  %v6082_v8 = vmul.f32 %v6066_v43, %v11484_v51 }
0x2113   :  { %v5692_v25 = vmul.f32 %v5687_v6, %v5687_v6  ;;  %v5694_v17 = vsub.f32 %v11431_v27, %v5687_v6  ;;  %v6064_v27 = vrot.slane %v11208_v61, 7 }
0x2115   :  { %v5693_v7 = vsub.f32 %v5691_v59, %v5692_v25  ;;  %v6080_v6 = vmul.f32 %v6064_v27, %v11467_v44  ;;  %v6067_v25 = vrot.slane %v11239_v34, 7  ;;  %v6137_v27 = vpop.permute.xlu0 %6136 }
0x2117   :  { %v5695_v50 = vadd.f32 1e-05, %v5693_v7  ;;  %v6083_v55 = vmul.f32 %v6067_v25, %v11491_v41 }
0x2119   :  { %8359 = vrsqrt.f32 %v5695_v50  ;;  %vm5702_vm7 = vweird.f32 %v5695_v50 }
0x211f   :  { %v8360_v38 = vpop.eup %8359 }
0x2120   :  { %v5697_v29 = vmul.f32 %v8360_v38, %v5695_v50  ;;  %vm5703_vm15 = vweird.f32 %v8360_v38 }
0x2121   :  { %vm5704_vm9 = vmor %vm5702_vm7, %vm5703_vm15  ;;  %vm12528_vm7 = vcmask 1047559  }
0x2122   :  { %v5698_v22 = vmul.f32 %v8360_v38, %v5697_v29  ;;  %v5732_v63 = vpop.f32.mrf.mxu3 }
0x2123   :  { %v6139_v49 = vpop.permute.xlu1 %6138 }
0x2124   :  { %v5699_v52 = vmul.f32 0.5, %v5698_v22  ;;  %v11538_v50 = vadd.f32 %v6139_v49, %v6080_v6 }
0x2126   :  { %v5700_v35 = vsub.f32 1.5, %v5699_v52  ;;  %v6205_v49 = vmul.f32 %v11538_v50, %v11538_v50 }
0x2128   :  { %v5701_v0 = vmul.f32 %v8360_v38, %v5700_v35  ;;  %v6084_v35 = vmul.f32 %v6068_v36, %v11453_v33 }
0x212a   :  { %v5705_v62 = vsel %vm5704_vm9, %v8360_v38, %v5701_v0  ;;  %v6147_v38 = vpop.permute.xlu2 %6146  ;;  %vm12529_vm9 = vmmov %vm12528_vm7 }
0x212b   :  { %v5706_v9 = vmul.f32 %v5705_v62, %v5694_v17  ;;  %v6141_v1 = vpop.permute.xlu1 %6140  ;;  %v11554_v62 = vadd.f32 %v6147_v38, %v6084_v35 }
0x212c   :  { %v11533_v59 = vadd.f32 %v6141_v1, %v6081_v4  ;;  %v6069_v1 = vrot.slane %v11251_v32, 7 }
0x212d   :  { %v5707_v15 = vmul.f32 %v5706_v9, %v12411_v16  ;;  %v6209_v4 = vmul.f32 %v11554_v62, %v11554_v62  ;;  %v6183_v36 = vrot.slane %v11554_v62, 2 }
0x212e   :  { %v6206_v29 = vmul.f32 %v11533_v59, %v11533_v59  ;;  %v6177_v17 = vrot.slane %v11533_v59, 5  ;;  %v6085_v43 = vmul.f32 %v6069_v1, %v11403_v19 }
0x212f   :  { %v5708_v54 = vadd.f32 %v5707_v15, %v12412_v21  ;;  %v6176_v15 = vrot.slane %v11538_v50, 6 }
0x2131   :  { %v5709_v20 = vadd.f32 %v5708_v54, %v12452_v5  ;;  %v6222_v54 = vrot.slane %v6206_v29, 5  ;;  %v6178_v42 = vsel %vm12518_vm10, %v6177_v17, %v6176_v15  ;;  %v6062_v15 = vrot.slane %v11242_v24, 7 }
0x2132   :  { %vm6197_vm10 = vcmask 259072  }
0x2133   :  { %v5735_v23 = vadd.f32 %v5732_v63, %v5709_v20  ;;  %v6143_v58 = vpop.permute.xlu1 %6142  ;;  %v6063_v63 = vrot.slane %v11200_v45, 7 }
0x2134   :  { %v11536_v7 = vadd.f32 %v6143_v58, %v6082_v8  ;;  %v6221_v58 = vrot.slane %v6205_v49, 6  ;;  %v6228_v49 = vrot.slane %v6209_v4, 2 }
0x2135   :  { %v7857_v26 = vmul.f32 -1.442695, %v5735_v23  ;;  %v6079_v6 = vmul.f32 %v6063_v63, %v11399_v48 }
0x2136   :  { %v6207_v34 = vmul.f32 %v11536_v7, %v11536_v7  ;;  %v6179_v9 = vrot.slane %v11536_v7, 4  ;;  %v6223_v25 = vsel %vm12520_vm2, %v6222_v54, %v6221_v58 }
0x2137   :  { %8361 = vpow2.f32 %v7857_v26  ;;  %v11573_v29 = vadd.f32 %v6137_v27, %v6079_v6 }
0x2138   :  { %v6224_v23 = vrot.slane %v6207_v34, 4  ;;  %v6180_v32 = vsel %vm12519_vm13, %v6179_v9, %v6178_v42  ;;  %v6078_v42 = vmul.f32 %v6062_v15, %v11498_v39  ;;  %vm6193_vm13 = vcmask 261126  }
0x2139   :  { %v6204_v63 = vmul.f32 %v11573_v29, %v11573_v29 }
0x213b   :  { %v6145_v61 = vpop.permute.xlu1 %6144 }
0x213c   :  { %v11544_v22 = vadd.f32 %v6145_v61, %v6083_v55  ;;  %v6225_v61 = vsel %vm12522_vm5, %v6224_v23, %v6223_v25 }
0x213d   :  { %v8362_v52 = vpop.eup %8361 }
0x213e   :  { %v5739_v0 = vadd.f32 1.0, %v8362_v52  ;;  %v6208_v14 = vmul.f32 %v11544_v22, %v11544_v22  ;;  %v6181_v20 = vrot.slane %v11544_v22, 3 }
0x2140   :  { %8363 = vrcp.f32 %v5739_v0  ;;  %v6226_v26 = vrot.slane %v6208_v14, 3  ;;  %v6182_v45 = vsel %vm12521_vm1, %v6181_v20, %v6180_v32  ;;  %v5751_v23 = vand.u32 2147483648, %v5739_v0 }
0x2141   :  { %v6184_v14 = vsel %vm12524_vm12, %v6183_v36, %v6182_v45  ;;  %v5749_v27 = vand.u32 2147483647, %v5739_v0  ;;  %vm5745_vm4 = vweird.f32 %v5739_v0  ;;  %v6174_v32 = vrot.slane %v11573_v29, 7 }
0x2142   :  { %v6227_v34 = vsel %vm12523_vm3, %v6226_v26, %v6225_v61  ;;  %v5752_v6 = vor.u32 1.1754944e-38, %v5751_v23 }
0x2143   :  { %v6149_v8 = vpop.permute.xlu1 %6148  ;;  %v6229_v20 = vsel %vm12526_vm14, %v6228_v49, %v6227_v34  ;;  %vm5750_vm15 = vcmp.eq.f32.partialorder %v5749_v27, 8.507059e+37  ;;  %vm12531_vm14 = vcmask 261120  }
0x2144   :  { %v11568_v55 = vadd.f32 %v6149_v8, %v6085_v43  ;;  %v6219_v8 = vrot.slane %v6204_v63, 7 }
0x2146   :  { %v8364_v38 = vpop.eup %8363  ;;  %v6185_v52 = vrot.slane %v11568_v55, 1  ;;  %v6210_v35 = vmul.f32 %v11568_v55, %v11568_v55 }
0x2147   :  { %v5741_v17 = vmul.f32 %v8364_v38, %v5739_v0  ;;  %vm5746_vm6 = vweird.f32 %v8364_v38 }
0x2148   :  { %v6230_v9 = vrot.slane %v6210_v35, 1  ;;  %v6186_v1 = vsel %vm12525_vm11, %v6185_v52, %v6184_v14  ;;  %vm5747_vm8 = vmor %vm5745_vm4, %vm5746_vm6  ;;  %vm12534_vm4 = vcmask 1041409  }
0x2149   :  { %v5742_v54 = vsub.f32 1.0, %v5741_v17  ;;  %6189 = vrot.lane.b32.xlu1 %v6186_v1, %s8647_s28  ;;  %vm12533_vm6 = vmmov %vm12528_vm7 }
0x214a   :  { %v6231_v58 = vsel %vm12527_vm0, %v6230_v9, %v6229_v20  ;;  %vm12532_vm0 = vmmov %vm12531_vm14 }
0x214b   :  { %v5743_v26 = vmul.f32 %v8364_v38, %v5742_v54  ;;  %6234 = vrot.lane.b32.xlu2 %v6231_v58, %s8647_s28  ;;  %v6135_v43 = vpop.permute.xlu1 %6134 }
0x214c   :  { %v11589_v24 = vadd.f32 %v6135_v43, %v6078_v42 }
0x214d   :  { %v5744_v4 = vadd.f32 %v8364_v38, %v5743_v26 }
0x214e   :  { %v6203_v25 = vmul.f32 %v11589_v24, %v11589_v24  ;;  %v6175_v61 = vsel %vm12529_vm9, %v6174_v32, %v11589_v24  ;;  %vm12538_vm9 = vmmov %vm12534_vm4 }
0x214f   :  { %v5748_v45 = vsel %vm5747_vm8, %v8364_v38, %v5744_v4  ;;  %vm12535_vm8 = vcmask 1042434  }
0x2150   :  { %v6220_v36 = vsel %vm12528_vm7, %v6219_v8, %v6203_v25  ;;  %v11597_v52 = vsel %vm5750_vm15, %v5752_v6, %v5748_v45  ;;  %vm12536_vm15 = vmmov %vm12533_vm6  ;;  %vm12537_vm7 = vcmask 1043459  }
0x2151   :  { %6232 = vrot.lane.b32.xlu0 %v6220_v36, %s8647_s28  ;;  %6187 = vrot.lane.b32.xlu1 %v6175_v61, %s8647_s28  ;;  %v5755_v0 = vmul.f32 2.0, %v11597_v52  ;;  %v5757_v23 = vmul.f32 %v11597_v52, %v11341_v10 }
0x2153   :  { %v7858_v35 = vadd.f32 -1.0, %v5755_v0 }
0x2155   :  { %5759 = vrot.lane.b32.xlu2 %v7858_v35, %s8645_s0 }
0x21a5   :  { %v6235_v34 = vpop.permute.xlu2 %6234 }
0x21a6   :  { %v6241_v38 = vsel %vm6197_vm10, %v6235_v34, 0.0 }
0x21a7   :  { %6242 = vadd.xlane.f32.xlu0 %v6241_v38 }
0x21af   :  { %v5760_v49 = vpop.permute.xlu2 %5759 }
0x21b0   :  { %v5762_v17 = vmul.f32 %v5760_v49, %v11597_v52 }
0x21bb   :  { %v6190_v14 = vpop.permute.xlu1 %6189  ;;  %5764 = vrot.lane.b32.xlu0 %v5762_v17, %s8646_s2 }
0x21bc   :  { %v6198_v9 = vsel %vm6197_vm10, %v6190_v14, 0.0 }
0x21bd   :  { %6199 = vadd.xlane.f32.xlu1 %v6198_v9 }
0x21c3   :  { %v6233_v1 = vpop.permute.xlu0 %6232  ;;  %v6188_v15 = vpop.permute.xlu1 %6187 }
0x21c4   :  { %v6238_v54 = vsel %vm6193_vm13, %v6233_v1, 0.0  ;;  %v6194_v20 = vsel %vm6193_vm13, %v6188_v15, 0.0 }
0x21c5   :  { %6239 = vadd.xlane.f32.xlu1 %v6238_v54  ;;  %6195 = vadd.xlane.f32.xlu2 %v6194_v20 }
0x221a   :  { %v6243_v63 = vpop.xlane.xlu0 %6242 }
0x221b   :  { %v6245_v4 = vmul.f32 %v6243_v63, %v9050_v40 }
0x222d   :  { %v5765_v58 = vpop.permute.xlu0 %5764 }
0x222e   :  { %v11611_v42 = vadd.f32 %v5765_v58, %v5757_v23 }
0x2230   :  { %v5776_v26 = vmul.f32 %v11611_v42, %v11611_v42  ;;  %5769 = vrot.lane.b32.xlu2 %v11611_v42, %s8647_s28  ;;  %v6200_v43 = vpop.xlane.xlu1 %6199 }
0x2231   :  { %v11618_v27 = vmul.f32 %v6200_v43, %v9050_v40 }
0x2232   :  { %5778 = vrot.lane.b32.xlu0 %v5776_v26, %s8647_s28 }
0x2233   :  { %v6247_v10 = vmul.f32 %v11618_v27, %v11618_v27  ;;  %v6253_v1 = vrot.slane %v11618_v27, 2  ;;  %v6255_v15 = vrot.slane %v11618_v27, 4  ;;  %v6257_v54 = vrot.slane %v11618_v27, 6 }
0x2234   :  { %v6256_v23 = vrot.slane %v11618_v27, 5 }
0x2235   :  { %v6249_v32 = vsub.f32 %v6245_v4, %v6247_v10  ;;  %v6269_v43 = vsub.f32 %v11538_v50, %v6253_v1  ;;  %v6271_v4 = vsub.f32 %v11536_v7, %v6255_v15  ;;  %v12530_v15 = vld [vmem:[#allocation13_spill] sm:$0xff] }
0x2237   :  { %v6276_v8 = vadd.f32 1e-05, %v6249_v32 }
0x2238   :  { %v6196_v6 = vpop.xlane.xlu2 %6195  ;;  %v6240_v25 = vpop.xlane.xlu1 %6239 }
0x2239   :  { %8365 = vrsqrt.f32 %v6276_v8  ;;  %v11625_v45 = vmul.f32 %v6196_v6, %v9050_v40  ;;  %v6244_v61 = vmul.f32 %v6240_v25, %v9050_v40  ;;  %vm6293_vm1 = vweird.f32 %v6276_v8 }
0x223a   :  { %v6273_v6 = vsub.f32 %v11554_v62, %v6257_v54  ;;  %v6254_v62 = vrot.slane %v11618_v27, 3 }
0x223b   :  { %v6246_v36 = vmul.f32 %v11625_v45, %v11625_v45  ;;  %v6252_v7 = vrot.slane %v11625_v45, 1 }
0x223d   :  { %v6248_v0 = vsub.f32 %v6244_v61, %v6246_v36 }
0x223f   :  { %v8366_v35 = vpop.eup %8365  ;;  %v6275_v34 = vadd.f32 1e-05, %v6248_v0 }
0x2240   :  { %v6288_v38 = vmul.f32 %v8366_v35, %v6276_v8  ;;  %vm6294_vm2 = vweird.f32 %v8366_v35  ;;  %v6272_v8 = vsub.f32 %v11544_v22, %v6256_v23 }
0x2241   :  { %8367 = vrsqrt.f32 %v6275_v34  ;;  %vm6295_vm5 = vmor %vm6293_vm1, %vm6294_vm2  ;;  %vm6283_vm12 = vweird.f32 %v6275_v34  ;;  %vm12539_vm2 = vcmask 1044484  }
0x2242   :  { %v6289_v49 = vmul.f32 %v8366_v35, %v6288_v38  ;;  %vm12540_vm1 = vmmov %vm12535_vm8 }
0x2244   :  { %v6290_v17 = vmul.f32 0.5, %v6289_v49 }
0x2246   :  { %v6291_v14 = vsub.f32 1.5, %v6290_v17 }
0x2247   :  { %v8368_v9 = vpop.eup %8367 }
0x2248   :  { %v6292_v20 = vmul.f32 %v8366_v35, %v6291_v14  ;;  %v6278_v63 = vmul.f32 %v8368_v9, %v6275_v34  ;;  %vm6284_vm3 = vweird.f32 %v8368_v9 }
0x2249   :  { %vm6285_vm11 = vmor %vm6283_vm12, %vm6284_vm3 }
0x224a   :  { %v6296_v58 = vsel %vm6295_vm5, %v8366_v35, %v6292_v20  ;;  %v6279_v26 = vmul.f32 %v8368_v9, %v6278_v63  ;;  %v6258_v20 = vrot.slane %v11618_v27, 7  ;;  %vm12541_vm5 = vcmask 1045509   ;;  %vm12542_vm3 = vmmov %vm12537_vm7 }
0x224b   :  { %v6300_v10 = vrot.slane %v6296_v58, 2  ;;  %v6302_v32 = vrot.slane %v6296_v58, 4  ;;  %v6303_v25 = vrot.slane %v6296_v58, 5  ;;  %v6304_v36 = vrot.slane %v6296_v58, 6  ;;  %vm12543_vm12 = vmmov %vm12539_vm2 }
0x224c   :  { %v6280_v61 = vmul.f32 0.5, %v6279_v26  ;;  %v6301_v26 = vrot.slane %v6296_v58, 3  ;;  %v6305_v34 = vrot.slane %v6296_v58, 7 }
0x224d   :  { %v6316_v0 = vmul.f32 %v6300_v10, %v6269_v43  ;;  %v6318_v38 = vmul.f32 %v6302_v32, %v6271_v4  ;;  %v6320_v49 = vmul.f32 %v6304_v36, %v6273_v6  ;;  %v6319_v14 = vmul.f32 %v6303_v25, %v6272_v8 }
0x224e   :  { %v6281_v17 = vsub.f32 1.5, %v6280_v61  ;;  %v6268_v43 = vsub.f32 %v11573_v29, %v6252_v7  ;;  %v6270_v32 = vsub.f32 %v11533_v59, %v6254_v62  ;;  %v6274_v25 = vsub.f32 %v11568_v55, %v6258_v20 }
0x224f   :  { %v6324_v35 = vmul.f32 %v6316_v0, %v12453_v30  ;;  %v6326_v50 = vmul.f32 %v6318_v38, %v12453_v30  ;;  %v6328_v63 = vmul.f32 %v6320_v49, %v12453_v30  ;;  %v6327_v10 = vmul.f32 %v6319_v14, %v12453_v30 }
0x2250   :  { %v6282_v1 = vmul.f32 %v8368_v9, %v6281_v17  ;;  %v6321_v29 = vmul.f32 %v6305_v34, %v6274_v25  ;;  %v6267_v8 = vsub.f32 %v11589_v24, %v11625_v45 }
0x2251   :  { %v11643_v54 = vadd.f32 %v6326_v50, %v12530_v15  ;;  %v11646_v22 = vadd.f32 %v6324_v35, %v12530_v15  ;;  %v11657_v27 = vadd.f32 %v6328_v63, %v12530_v15  ;;  %v11661_v61 = vadd.f32 %v6327_v10, %v12530_v15 }
0x2252   :  { %v6286_v23 = vsel %vm6285_vm11, %v8368_v9, %v6282_v1  ;;  %v6317_v9 = vmul.f32 %v6301_v26, %v6270_v32  ;;  %v6329_v55 = vmul.f32 %v6321_v29, %v12453_v30  ;;  %vm12544_vm11 = vmmov %vm12541_vm5 }
0x2253   :  { %v6299_v4 = vrot.slane %v6286_v23, 1  ;;  %8369 = vtanh.f32 %v11643_v54  ;;  %v6314_v49 = vmul.f32 %v6286_v23, %v6267_v8 }
0x2254   :  { %8371 = vtanh.f32 %v11646_v22  ;;  %v6325_v59 = vmul.f32 %v6317_v9, %v12453_v30  ;;  %v11679_v50 = vadd.f32 %v6329_v55, %v12530_v15 }
0x2255   :  { %v6315_v6 = vmul.f32 %v6299_v4, %v6268_v43  ;;  %8373 = vtanh.f32 %v11657_v27  ;;  %v6322_v1 = vmul.f32 %v6314_v49, %v12453_v30 }
0x2256   :  { %v11676_v17 = vadd.f32 %v6325_v59, %v12530_v15 }
0x2257   :  { %v6323_v36 = vmul.f32 %v6315_v6, %v12453_v30  ;;  %v11688_v24 = vadd.f32 %v6322_v1, %v12530_v15 }
0x2259   :  { %v8370_v58 = vpop.eup %8369  ;;  %v11664_v0 = vadd.f32 %v6323_v36, %v12530_v15 }
0x225a   :  { %v8372_v38 = vpop.eup %8371  ;;  %6362 = vrot.lane.b32.xlu2 %v8370_v58, %s8645_s0 }
0x225b   :  { %8375 = vtanh.f32 %v11664_v0  ;;  %6358 = vrot.lane.b32.xlu1 %v8372_v38, %s8645_s0  ;;  %v8374_v35 = vpop.eup %8373 }
0x225c   :  { %8377 = vtanh.f32 %v11661_v61 }
0x225d   :  { %8379 = vtanh.f32 %v11676_v17 }
0x225e   :  { %8381 = vtanh.f32 %v11679_v50 }
0x225f   :  { %8383 = vtanh.f32 %v11688_v24 }
0x2261   :  { %v8376_v7 = vpop.eup %8375 }
0x2262   :  { %v8378_v14 = vpop.eup %8377  ;;  %6366 = vrot.lane.b32.xlu2 %v8374_v35, %s8645_s0  ;;  %6356 = vrot.lane.b32.xlu0 %v8376_v7, %s8645_s0 }
0x2263   :  { %6364 = vrot.lane.b32.xlu1 %v8378_v14, %s8645_s0  ;;  %v8380_v45 = vpop.eup %8379 }
0x2264   :  { %v8382_v62 = vpop.eup %8381 }
0x2265   :  { %v8384_v20 = vpop.eup %8383 }
0x226a   :  { %6360 = vrot.lane.b32.xlu0 %v8380_v45, %s8645_s0 }
0x226b   :  { %6368 = vrot.lane.b32.xlu1 %v8382_v62, %s8645_s0 }
0x2272   :  { %6354 = vrot.lane.b32.xlu0 %v8384_v20, %s8645_s0 }
0x228a   :  { %v5770_v63 = vpop.permute.xlu2 %5769 }
0x228b   :  { %v5772_v23 = vsel %vm12531_vm14, %v5770_v63, 0.0 }
0x228c   :  { %5773 = vadd.xlane.f32.xlu2 %v5772_v23 }
0x22a4   :  { %v5779_v26 = vpop.permute.xlu0 %5778 }
0x22a5   :  { %v5781_v43 = vsel %vm12532_vm0, %v5779_v26, 0.0 }
0x22a6   :  { %5782 = vadd.xlane.f32.xlu1 %v5781_v43 }
0x22b4   :  { %v6363_v32 = vpop.permute.xlu2 %6362 }
0x22bc   :  { %v6367_v8 = vpop.permute.xlu2 %6366 }
0x22bd   :  { %v11731_v45 = vmul.f32 %v6367_v8, %v11453_v33 }
0x22cd   :  { %v6359_v34 = vpop.permute.xlu1 %6358 }
0x22ce   :  { %v11703_v29 = vmul.f32 %v6359_v34, %v11467_v44  ;;  %v6403_v34 = vrot.slane %v11731_v45, 2 }
0x22d0   :  { %v6423_v14 = vmul.f32 %v11703_v29, %v11703_v29 }
0x22d2   :  { %v6439_v43 = vrot.slane %v6423_v14, 6 }
0x22d4   :  { %v6357_v4 = vpop.permute.xlu0 %6356 }
0x22d5   :  { %v11697_v6 = vmul.f32 %v6357_v4, %v11399_v48  ;;  %v6365_v9 = vpop.permute.xlu1 %6364  ;;  %v11713_v48 = vmul.f32 %v6363_v32, %v11484_v51 }
0x22d6   :  { %v11720_v49 = vmul.f32 %v6365_v9, %v11491_v41 }
0x22d7   :  { %v6394_v58 = vrot.slane %v11697_v6, 7  ;;  %v6422_v44 = vmul.f32 %v11697_v6, %v11697_v6  ;;  %v6399_v7 = vrot.slane %v11713_v48, 4  ;;  %v6425_v26 = vmul.f32 %v11713_v48, %v11713_v48 }
0x22d8   :  { %v6401_v20 = vrot.slane %v11720_v49, 3 }
0x22d9   :  { %v6437_v1 = vrot.slane %v6422_v44, 7  ;;  %v6442_v9 = vrot.slane %v6425_v26, 4 }
0x22dc   :  { %v6361_v10 = vpop.permute.xlu0 %6360 }
0x22dd   :  { %v11700_v25 = vmul.f32 %v6361_v10, %v11476_v13  ;;  %v6396_v13 = vrot.slane %v11703_v29, 6  ;;  %v6369_v62 = vpop.permute.xlu1 %6368  ;;  %v6426_v10 = vmul.f32 %v11720_v49, %v11720_v49 }
0x22de   :  { %v11740_v4 = vmul.f32 %v6369_v62, %v11403_v19 }
0x22df   :  { %v6397_v59 = vrot.slane %v11700_v25, 5  ;;  %v6424_v35 = vmul.f32 %v11700_v25, %v11700_v25 }
0x22e0   :  { %v6428_v44 = vmul.f32 %v11740_v4, %v11740_v4 }
0x22e1   :  { %v6440_v63 = vrot.slane %v6424_v35, 5 }
0x22e3   :  { %v6441_v32 = vsel %vm12538_vm9, %v6440_v63, %v6439_v43 }
0x22e4   :  { %v6355_v36 = vpop.permute.xlu0 %6354  ;;  %v6443_v19 = vsel %vm12540_vm1, %v6442_v9, %v6441_v32 }
0x22e5   :  { %v11707_v38 = vmul.f32 %v6355_v36, %v11498_v39  ;;  %v6398_v39 = vsel %vm12534_vm4, %v6397_v59, %v6396_v13  ;;  %v6427_v59 = vmul.f32 %v11731_v45, %v11731_v45 }
0x22e6   :  { %v6400_v41 = vsel %vm12535_vm8, %v6399_v7, %v6398_v39 }
0x22e7   :  { %v6395_v55 = vsel %vm12533_vm6, %v6394_v58, %v11707_v38  ;;  %v6421_v51 = vmul.f32 %v11707_v38, %v11707_v38  ;;  %v6402_v33 = vsel %vm12537_vm7, %v6401_v20, %v6400_v41  ;;  %v6405_v58 = vrot.slane %v11740_v4, 1 }
0x22e8   :  { %6407 = vrot.lane.b32.xlu0 %v6395_v55, %s8646_s2  ;;  %v6404_v36 = vsel %vm12539_vm2, %v6403_v34, %v6402_v33  ;;  %v6444_v55 = vrot.slane %v6426_v10, 3  ;;  %v6446_v39 = vrot.slane %v6427_v59, 2  ;;  %vm12547_vm2 = vmmov %vm12540_vm1 }
0x22e9   :  { %v6438_v23 = vsel %vm12536_vm15, %v6437_v1, %v6421_v51  ;;  %v6406_v13 = vsel %vm12541_vm5, %v6405_v58, %v6404_v36  ;;  %v6448_v51 = vrot.slane %v6428_v44, 1  ;;  %vm12548_vm1 = vmmov %vm12542_vm3 }
0x22ea   :  { %v6445_v8 = vsel %vm12542_vm3, %v6444_v55, %v6443_v19  ;;  %vm12549_vm5 = vmmov %vm12543_vm12 }
0x22eb   :  { %v6447_v35 = vsel %vm12543_vm12, %v6446_v39, %v6445_v8  ;;  %v12545_v39 = vld [vmem:[#allocation17_spill] sm:$0xff]  ;;  %vm12550_vm3 = vmmov %vm12544_vm11  ;;  %vm12551_vm12 = vcmask 1046534  }
0x22ec   :  { %v6449_v7 = vsel %vm12544_vm11, %v6448_v51, %v6447_v35  ;;  %v12546_v51 = vld [vmem:[#allocation18_spill] sm:$0xff]  ;;  %vm12552_vm11 = vcmask 1047559  }
0x22f0   :  { %6450 = vrot.lane.b32.xlu0 %v6438_v23, %s8646_s2 }
0x22f8   :  { %6409 = vrot.lane.b32.xlu0 %v6406_v13, %s8646_s2 }
0x22ff   :  { %v5774_v14 = vpop.xlane.xlu2 %5773 }
0x2300   :  { %6452 = vrot.lane.b32.xlu0 %v6449_v7, %s8646_s2  ;;  %v5775_v62 = vmul.f32 %v5774_v14, %v9050_v40 }
0x2302   :  { %v5785_v20 = vmul.f32 %v5775_v62, %v5775_v62  ;;  %v5787_v55 = vsub.f32 %v11611_v42, %v5775_v62 }
0x2319   :  { %v5783_v1 = vpop.xlane.xlu1 %5782 }
0x231a   :  { %v5784_v41 = vmul.f32 %v5783_v1, %v9050_v40 }
0x231c   :  { %v5786_v63 = vsub.f32 %v5784_v41, %v5785_v20 }
0x231e   :  { %v5788_v23 = vadd.f32 1e-05, %v5786_v63 }
0x2320   :  { %8385 = vrsqrt.f32 %v5788_v23  ;;  %vm5795_vm0 = vweird.f32 %v5788_v23 }
0x2326   :  { %v8386_v26 = vpop.eup %8385 }
0x2327   :  { %v5790_v43 = vmul.f32 %v8386_v26, %v5788_v23  ;;  %vm5796_vm14 = vweird.f32 %v8386_v26 }
0x2328   :  { %vm5797_vm6 = vmor %vm5795_vm0, %vm5796_vm14  ;;  %vm12553_vm14 = vcmask 261120  }
0x2329   :  { %v5791_v33 = vmul.f32 %v8386_v26, %v5790_v43  ;;  %vm12554_vm0 = vmmov %vm12553_vm14 }
0x232b   :  { %v5792_v10 = vmul.f32 0.5, %v5791_v33 }
0x232d   :  { %v5793_v9 = vsub.f32 1.5, %v5792_v10 }
0x232f   :  { %v5794_v58 = vmul.f32 %v8386_v26, %v5793_v9 }
0x2331   :  { %v5798_v19 = vsel %vm5797_vm6, %v8386_v26, %v5794_v58  ;;  %vm12555_vm6 = vmmov %vm12554_vm0 }
0x2332   :  { %v5799_v13 = vmul.f32 %v5798_v19, %v5787_v55 }
0x2334   :  { %v5800_v35 = vmul.f32 %v5799_v13, %v12545_v39 }
0x2336   :  { %v11768_v7 = vadd.f32 %v5800_v35, %v12546_v51 }
0x2338   :  { %8387 = vtanh.f32 %v11768_v7 }
0x233e   :  { %v8388_v41 = vpop.eup %8387 }
0x235a   :  { %v6408_v34 = vpop.permute.xlu0 %6407 }
0x235b   :  { %v6413_v32 = vsel %vm6193_vm13, %v6408_v34, 0.0 }
0x235c   :  { %6414 = vadd.xlane.f32.xlu0 %v6413_v32 }
0x2362   :  { %v6451_v36 = vpop.permute.xlu0 %6450 }
0x2363   :  { %v6456_v59 = vsel %vm6193_vm13, %v6451_v36, 0.0 }
0x2364   :  { %6457 = vadd.xlane.f32.xlu1 %v6456_v59 }
0x236a   :  { %v6410_v44 = vpop.permute.xlu0 %6409 }
0x236b   :  { %v6416_v8 = vsel %vm6197_vm10, %v6410_v44, 0.0 }
0x236c   :  { %6417 = vadd.xlane.f32.xlu2 %v6416_v8 }
0x2372   :  { %v6453_v14 = vpop.permute.xlu0 %6452 }
0x2373   :  { %v6459_v1 = vsel %vm6197_vm10, %v6453_v14, 0.0 }
0x2374   :  { %6460 = vadd.xlane.f32.xlu2 %v6459_v1 }
0x237d   :  { %5804 = vrot.lane.b32.xlu1 %v8388_v41, %s8645_s0 }
0x23cf   :  { %v6415_v42 = vpop.xlane.xlu0 %6414 }
0x23d0   :  { %v6419_v62 = vmul.f32 %v6415_v42, %v9050_v40 }
0x23d2   :  { %v6464_v63 = vmul.f32 %v6419_v62, %v6419_v62  ;;  %v6470_v42 = vrot.slane %v6419_v62, 1 }
0x23d7   :  { %v6458_v20 = vpop.xlane.xlu1 %6457 }
0x23d8   :  { %v6462_v23 = vmul.f32 %v6458_v20, %v9050_v40 }
0x23da   :  { %v6466_v26 = vsub.f32 %v6462_v23, %v6464_v63 }
0x23dc   :  { %v6493_v43 = vadd.f32 1e-05, %v6466_v26  ;;  %v6486_v26 = vsub.f32 %v11697_v6, %v6470_v42 }
0x23de   :  { %8389 = vrsqrt.f32 %v6493_v43  ;;  %vm6501_vm13 = vweird.f32 %v6493_v43 }
0x23df   :  { %v6418_v33 = vpop.xlane.xlu2 %6417 }
0x23e0   :  { %v6420_v10 = vmul.f32 %v6418_v33, %v9050_v40 }
0x23e2   :  { %v6465_v58 = vmul.f32 %v6420_v10, %v6420_v10 }
0x23e4   :  { %v8390_v34 = vpop.eup %8389 }
0x23e5   :  { %v6496_v32 = vmul.f32 %v8390_v34, %v6493_v43  ;;  %vm6502_vm10 = vweird.f32 %v8390_v34 }
0x23e6   :  { %vm6503_vm4 = vmor %vm6501_vm13, %vm6502_vm10 }
0x23e7   :  { %v6497_v9 = vmul.f32 %v8390_v34, %v6496_v32  ;;  %v6461_v36 = vpop.xlane.xlu2 %6460  ;;  %vm12556_vm10 = vmmov %vm12554_vm0 }
0x23e8   :  { %v6463_v59 = vmul.f32 %v6461_v36, %v9050_v40  ;;  %v6473_v36 = vrot.slane %v6420_v10, 4 }
0x23e9   :  { %v6498_v19 = vmul.f32 0.5, %v6497_v9  ;;  %v6472_v9 = vrot.slane %v6420_v10, 3 }
0x23ea   :  { %v6467_v55 = vsub.f32 %v6463_v59, %v6465_v58  ;;  %v6474_v58 = vrot.slane %v6420_v10, 5 }
0x23eb   :  { %v6499_v13 = vsub.f32 1.5, %v6498_v19 }
0x23ec   :  { %v6494_v44 = vadd.f32 1e-05, %v6467_v55  ;;  %v6475_v55 = vrot.slane %v6420_v10, 6 }
0x23ed   :  { %v6500_v8 = vmul.f32 %v8390_v34, %v6499_v13 }
0x23ee   :  { %8391 = vrsqrt.f32 %v6494_v44  ;;  %vm6511_vm15 = vweird.f32 %v6494_v44 }
0x23ef   :  { %v5805_v35 = vpop.permute.xlu1 %5804  ;;  %v6504_v1 = vsel %vm6503_vm4, %v8390_v34, %v6500_v8  ;;  %v6471_v34 = vrot.slane %v6420_v10, 2 }
0x23f0   :  { %v11778_v14 = vmul.f32 %v5805_v35, %v11597_v52  ;;  %v6517_v63 = vrot.slane %v6504_v1, 1  ;;  %v6485_v52 = vsub.f32 %v11707_v38, %v6419_v62  ;;  %v6476_v35 = vrot.slane %v6420_v10, 7 }
0x23f1   :  { %v6487_v6 = vsub.f32 %v11703_v29, %v6471_v34  ;;  %v6488_v38 = vsub.f32 %v11700_v25, %v6472_v9  ;;  %v6489_v62 = vsub.f32 %v11713_v48, %v6473_v36 }
0x23f2   :  { %v5816_v41 = vmul.f32 %v11778_v14, %v11778_v14  ;;  %5809 = vrot.lane.b32.xlu2 %v11778_v14, %s8646_s2  ;;  %v6533_v33 = vmul.f32 %v6517_v63, %v6486_v26  ;;  %v6532_v59 = vmul.f32 %v6504_v1, %v6485_v52  ;;  %v6490_v1 = vsub.f32 %v11720_v49, %v6474_v58 }
0x23f3   :  { %v6491_v63 = vsub.f32 %v11731_v45, %v6475_v55  ;;  %v6492_v29 = vsub.f32 %v11740_v4, %v6476_v35 }
0x23f4   :  { %v8392_v20 = vpop.eup %8391  ;;  %5818 = vrot.lane.b32.xlu1 %v5816_v41, %s8646_s2  ;;  %v6541_v13 = vmul.f32 %v6533_v33, %v9211_v46  ;;  %v6540_v41 = vmul.f32 %v6532_v59, %v9211_v46 }
0x23f5   :  { %v6506_v23 = vmul.f32 %v8392_v20, %v6494_v44  ;;  %vm6512_vm8 = vweird.f32 %v8392_v20 }
0x23f6   :  { %vm6513_vm7 = vmor %vm6511_vm15, %vm6512_vm8  ;;  %v6549_v10 = vadd.f32 %v6541_v13, %v9229_v18 }
0x23f7   :  { %v6507_v43 = vmul.f32 %v8392_v20, %v6506_v23 }
0x23f9   :  { %v6508_v32 = vmul.f32 0.5, %v6507_v43 }
0x23fb   :  { %v6509_v19 = vsub.f32 1.5, %v6508_v32 }
0x23fd   :  { %v6510_v8 = vmul.f32 %v8392_v20, %v6509_v19  ;;  %v6565_v19 = vrot.slane %v6549_v10, 5 }
0x23ff   :  { %v6514_v42 = vsel %vm6513_vm7, %v8392_v20, %v6510_v8  ;;  %v6548_v20 = vadd.f32 %v6540_v41, %v9229_v18 }
0x2400   :  { %v6518_v23 = vrot.slane %v6514_v42, 2  ;;  %v6519_v26 = vrot.slane %v6514_v42, 3  ;;  %v6520_v43 = vrot.slane %v6514_v42, 4  ;;  %v6521_v52 = vrot.slane %v6514_v42, 5 }
0x2401   :  { %v6522_v44 = vrot.slane %v6514_v42, 6  ;;  %v6523_v33 = vrot.slane %v6514_v42, 7  ;;  %v6564_v35 = vrot.slane %v6548_v20, 6 }
0x2402   :  { %v6534_v25 = vmul.f32 %v6518_v23, %v6487_v6  ;;  %v6535_v32 = vmul.f32 %v6519_v26, %v6488_v38  ;;  %v6536_v48 = vmul.f32 %v6520_v43, %v6489_v62  ;;  %v6537_v34 = vmul.f32 %v6521_v52, %v6490_v1 }
0x2403   :  { %v6538_v9 = vmul.f32 %v6522_v44, %v6491_v63  ;;  %v6539_v49 = vmul.f32 %v6523_v33, %v6492_v29  ;;  %v6566_v1 = vsel %vm12538_vm9, %v6565_v19, %v6564_v35 }
0x2404   :  { %v6542_v45 = vmul.f32 %v6534_v25, %v9211_v46  ;;  %v6543_v36 = vmul.f32 %v6535_v32, %v9211_v46  ;;  %v6544_v58 = vmul.f32 %v6536_v48, %v9211_v46  ;;  %v6545_v59 = vmul.f32 %v6537_v34, %v9211_v46 }
0x2405   :  { %v6547_v4 = vmul.f32 %v6539_v49, %v9211_v46  ;;  %v6546_v38 = vmul.f32 %v6538_v9, %v9211_v46 }
0x2406   :  { %v6550_v55 = vadd.f32 %v6542_v45, %v9229_v18  ;;  %v6551_v13 = vadd.f32 %v6543_v36, %v9229_v18  ;;  %v6552_v8 = vadd.f32 %v6544_v58, %v9229_v18  ;;  %v6553_v6 = vadd.f32 %v6545_v59, %v9229_v18 }
0x2407   :  { %v6555_v42 = vadd.f32 %v6547_v4, %v9229_v18  ;;  %v6554_v52 = vadd.f32 %v6546_v38, %v9229_v18 }
0x2408   :  { %v6567_v62 = vrot.slane %v6550_v55, 4  ;;  %v6569_v41 = vrot.slane %v6551_v13, 3  ;;  %v6571_v23 = vrot.slane %v6552_v8, 2  ;;  %v6573_v43 = vrot.slane %v6553_v6, 1 }
0x2409   :  { %v6576_v44 = vrot.slane %v6555_v42, 7 }
0x240a   :  { %v6568_v63 = vsel %vm12547_vm2, %v6567_v62, %v6566_v1 }
0x240b   :  { %v6570_v26 = vsel %vm12548_vm1, %v6569_v41, %v6568_v63 }
0x240c   :  { %v6572_v10 = vsel %vm12549_vm5, %v6571_v23, %v6570_v26 }
0x240d   :  { %v6574_v29 = vsel %vm12550_vm3, %v6573_v43, %v6572_v10 }
0x240e   :  { %v6575_v33 = vsel %vm12551_vm12, %v6554_v52, %v6574_v29 }
0x240f   :  { %v6577_v25 = vsel %vm12552_vm11, %v6576_v44, %v6575_v33 }
0x2410   :  { %6578 = vrot.lane.b32.xlu2 %v6577_v25, %s8646_s2 }
0x244c   :  { %v5810_v32 = vpop.permute.xlu2 %5809 }
0x244d   :  { %v5812_v48 = vsel %vm12553_vm14, %v5810_v32, 0.0 }
0x244e   :  { %5813 = vadd.xlane.f32.xlu0 %v5812_v48 }
0x2466   :  { %v5819_v34 = vpop.permute.xlu1 %5818 }
0x2467   :  { %v5821_v20 = vsel %vm12554_vm0, %v5819_v34, 0.0 }
0x2468   :  { %5822 = vadd.xlane.f32.xlu1 %v5821_v20 }
0x246a   :  { %v6579_v9 = vpop.permute.xlu2 %6578 }
0x246b   :  { %7876 = vmatmul.msk.f32.vlgmr.msra.gmra.mxu2 %vm12555_vm6, %v6579_v9  ;;  %7880 = vmatmul.msk.f32.vlgmr.msrb.gmra.mxu1 %vm12556_vm10, %v6579_v9 }
0x24c1   :  { %v5814_v49 = vpop.xlane.xlu0 %5813 }
0x24c2   :  { %v5815_v45 = vmul.f32 %v5814_v49, %v9050_v40 }
0x24c4   :  { %v5825_v58 = vmul.f32 %v5815_v45, %v5815_v45 }
0x24db   :  { %v5823_v36 = vpop.xlane.xlu1 %5822 }
0x24dc   :  { %v5824_v59 = vmul.f32 %v5823_v36, %v9050_v40 }
0x24de   :  { %v5826_v19 = vsub.f32 %v5824_v59, %v5825_v58 }
0x24e0   :  { %v5828_v4 = vadd.f32 1e-05, %v5826_v19 }
0x24e2   :  { %8393 = vrsqrt.f32 %v5828_v4  ;;  %vm5835_vm4 = vweird.f32 %v5828_v4 }
0x24e8   :  { %v8394_v55 = vpop.eup %8393  ;;  %v6776_v13 = vpop.f32.mrf.mxu1 }
0x24e9   :  { %v5830_v8 = vmul.f32 %v8394_v55, %v5828_v4  ;;  %v6781_v35 = vrot.slane %v6776_v13, 2  ;;  %v6782_v6 = vrot.slane %v6776_v13, 3  ;;  %v6783_v38 = vrot.slane %v6776_v13, 4 }
0x24ea   :  { %v6784_v62 = vrot.slane %v6776_v13, 5  ;;  %v6785_v41 = vrot.slane %v6776_v13, 6  ;;  %vm5836_vm13 = vweird.f32 %v8394_v55  ;;  %v6802_v48 = vadd.f32 %v6776_v13, %v8941_v3 }
0x24eb   :  { %v5831_v42 = vmul.f32 %v8394_v55, %v5830_v8  ;;  %v6796_v1 = vadd.f32 %v6781_v35, %v8776_v57  ;;  %v6797_v63 = vadd.f32 %v6782_v6, %v8811_v28  ;;  %v6798_v23 = vadd.f32 %v6783_v38, %v8839_v12  ;;  %vm5837_vm8 = vmor %vm5835_vm4, %vm5836_vm13 }
0x24ec   :  { %v6799_v26 = vadd.f32 %v6784_v62, %v8875_v56  ;;  %v6800_v43 = vadd.f32 %v6785_v41, %v8925_v60  ;;  %v5827_v56 = vsub.f32 %v11778_v14, %v5815_v45  ;;  %v6780_v34 = vrot.slane %v6776_v13, 1 }
0x24ed   :  { %v5832_v52 = vmul.f32 0.5, %v5831_v42  ;;  %v7882_v10 = vmul.f32 -1.442695, %v6796_v1  ;;  %v7883_v29 = vmul.f32 -1.442695, %v6797_v63  ;;  %v6786_v49 = vrot.slane %v6776_v13, 7 }
0x24ee   :  { %v7884_v44 = vmul.f32 -1.442695, %v6798_v23  ;;  %v6599_v33 = vpop.f32.mrf.mxu2  ;;  %v7885_v32 = vmul.f32 -1.442695, %v6799_v26  ;;  %v7886_v57 = vmul.f32 -1.442695, %v6800_v43  ;;  %v6795_v4 = vadd.f32 %v6780_v34, %v8759_v37 }
0x24ef   :  { %v5833_v25 = vsub.f32 1.5, %v5832_v52  ;;  %8395 = vpow2.f32 %v7882_v10  ;;  %v11830_v28 = vadd.f32 %v6599_v33, %v9475_v11  ;;  %v7888_v20 = vmul.f32 -1.442695, %v6802_v48 }
0x24f0   :  { %8397 = vpow2.f32 %v7883_v29  ;;  %v6801_v6 = vadd.f32 %v6786_v49, %v8903_v31  ;;  %v7881_v37 = vmul.f32 -1.442695, %v6795_v4 }
0x24f1   :  { %v5834_v12 = vmul.f32 %v8394_v55, %v5833_v25  ;;  %8399 = vpow2.f32 %v7884_v44  ;;  %6602 = vadd.xlane.f32.xlu0 %v11830_v28 }
0x24f2   :  { %8401 = vpow2.f32 %v7885_v32  ;;  %v7887_v41 = vmul.f32 -1.442695, %v6801_v6 }
0x24f3   :  { %v5838_v60 = vsel %vm5837_vm8, %v8394_v55, %v5834_v12  ;;  %8403 = vpow2.f32 %v7886_v57 }
0x24f4   :  { %v5839_v3 = vmul.f32 %v5838_v60, %v5827_v56  ;;  %8405 = vpow2.f32 %v7888_v20 }
0x24f5   :  { %v8396_v9 = vpop.eup %8395 }
0x24f6   :  { %v5840_v36 = vmul.f32 %v5839_v3, %v9779_v53  ;;  %v8398_v58 = vpop.eup %8397  ;;  %v6828_v59 = vadd.f32 1.0, %v8396_v9 }
0x24f7   :  { %v8400_v19 = vpop.eup %8399  ;;  %v11836_v14 = vadd.f32 1.0, %v8398_v58 }
0x24f8   :  { %v5841_v45 = vadd.f32 %v5840_v36, %v9781_v2  ;;  %v8402_v55 = vpop.eup %8401  ;;  %v11839_v8 = vadd.f32 1.0, %v8400_v19  ;;  %8407 = vrcp.f32 %v6828_v59  ;;  %v6861_v23 = vand.u32 2147483648, %v6828_v59 }
0x24f9   :  { %v8404_v35 = vpop.eup %8403  ;;  %v6831_v13 = vadd.f32 1.0, %v8402_v55  ;;  %8409 = vrcp.f32 %v11836_v14  ;;  %vm6855_vm15 = vweird.f32 %v6828_v59  ;;  %v6859_v29 = vand.u32 2147483647, %v6828_v59 }
0x24fa   :  { %6628 = vrot.lane.b32.xlu2 %v5841_v45, %s8646_s2  ;;  %8411 = vrcp.f32 %v11839_v8  ;;  %v11845_v38 = vadd.f32 1.0, %v8404_v35  ;;  %v8406_v62 = vpop.eup %8405  ;;  %v6862_v32 = vor.u32 1.1754944e-38, %v6861_v23  ;;  %vm6870_vm9 = vweird.f32 %v11836_v14 }
0x24fb   :  { %8413 = vrcp.f32 %v6831_v13  ;;  %v11854_v48 = vadd.f32 1.0, %v8406_v62  ;;  %v6906_v12 = vand.u32 2147483648, %v6831_v13  ;;  %v6904_v20 = vand.u32 2147483647, %v6831_v13 }
0x24fc   :  { %8415 = vpow2.f32 %v7881_v37  ;;  %v6876_v58 = vand.u32 2147483648, %v11836_v14  ;;  %vm6860_vm3 = vcmp.eq.f32.partialorder %v6859_v29, 8.507059e+37  ;;  %vm6900_vm12 = vweird.f32 %v6831_v13 }
0x24fd   :  { %8417 = vrcp.f32 %v11845_v38  ;;  %v6874_v45 = vand.u32 2147483647, %v11836_v14  ;;  %v6907_v6 = vor.u32 1.1754944e-38, %v6906_v12  ;;  %vm6905_vm0 = vcmp.eq.f32.partialorder %v6904_v20, 8.507059e+37 }
0x24fe   :  { %v8408_v42 = vpop.eup %8407  ;;  %8419 = vpow2.f32 %v7887_v41  ;;  %vm6885_vm13 = vweird.f32 %v11839_v8 }
0x24ff   :  { %v8410_v1 = vpop.eup %8409  ;;  %v6851_v63 = vmul.f32 %v8408_v42, %v6828_v59  ;;  %vm6856_vm7 = vweird.f32 %v8408_v42  ;;  %8421 = vrcp.f32 %v11854_v48  ;;  %vm6875_vm6 = vcmp.eq.f32.partialorder %v6874_v45, 8.507059e+37 }
0x2500   :  { %v11847_v26 = vpop.eup %8411  ;;  %v6866_v31 = vmul.f32 %v8410_v1, %v11836_v14  ;;  %vm6871_vm2 = vweird.f32 %v8410_v1  ;;  %vm6857_vm1 = vmor %vm6855_vm15, %vm6856_vm7  ;;  %vm6915_vm7 = vweird.f32 %v11845_v38 }
0x2501   :  { %v8414_v43 = vpop.eup %8413  ;;  %v6852_v52 = vsub.f32 1.0, %v6851_v63  ;;  %v6881_v10 = vmul.f32 %v11847_v26, %v11839_v8  ;;  %vm6872_vm11 = vmor %vm6870_vm9, %vm6871_vm2  ;;  %vm6886_vm10 = vweird.f32 %v11847_v26 }
0x2502   :  { %v6896_v44 = vmul.f32 %v8414_v43, %v6831_v13  ;;  %v6867_v33 = vsub.f32 1.0, %v6866_v31  ;;  %v8416_v60 = vpop.eup %8415  ;;  %vm6901_vm5 = vweird.f32 %v8414_v43  ;;  %vm6887_vm4 = vmor %vm6885_vm13, %vm6886_vm10 }
0x2503   :  { %v6853_v25 = vmul.f32 %v8408_v42, %v6852_v52  ;;  %v6882_v3 = vsub.f32 1.0, %v6881_v10  ;;  %v11856_v9 = vpop.eup %8417  ;;  %vm6902_vm14 = vmor %vm6900_vm12, %vm6901_vm5  ;;  %v11873_v31 = vadd.f32 1.0, %v8416_v60  ;;  %vm6945_vm5 = vweird.f32 %v11854_v48 }
0x2504   :  { %v6897_v57 = vsub.f32 1.0, %v6896_v44  ;;  %v6868_v56 = vmul.f32 %v8410_v1, %v6867_v33  ;;  %v8420_v19 = vpop.eup %8419  ;;  %v6911_v13 = vmul.f32 %v11856_v9, %v11845_v38  ;;  %v6891_v44 = vand.u32 2147483648, %v11839_v8 }
0x2505   :  { %v6854_v34 = vadd.f32 %v8408_v42, %v6853_v25  ;;  %v6883_v62 = vmul.f32 %v11847_v26, %v6882_v3  ;;  %v6889_v25 = vand.u32 2147483647, %v11839_v8  ;;  %8423 = vrcp.f32 %v11873_v31 }
0x2506   :  { %v6898_v49 = vmul.f32 %v8414_v43, %v6897_v57  ;;  %v6869_v36 = vadd.f32 %v8410_v1, %v6868_v56  ;;  %v6912_v10 = vsub.f32 1.0, %v6911_v13  ;;  %v6892_v60 = vor.u32 1.1754944e-38, %v6891_v44 }
0x2507   :  { %v6858_v4 = vsel %vm6857_vm1, %v8408_v42, %v6854_v34  ;;  %v6877_v42 = vor.u32 1.1754944e-38, %v6876_v58  ;;  %vm6890_vm8 = vcmp.eq.f32.partialorder %v6889_v25, 8.507059e+37  ;;  %vm6916_vm15 = vweird.f32 %v11856_v9 }
0x2508   :  { %v11862_v55 = vsel %vm6860_vm3, %v6862_v32, %v6858_v4  ;;  %v6899_v35 = vadd.f32 %v8414_v43, %v6898_v49  ;;  %v6873_v37 = vsel %vm6872_vm11, %v8410_v1, %v6869_v36  ;;  %v6884_v1 = vadd.f32 %v11847_v26, %v6883_v62  ;;  %vm6917_vm9 = vmor %vm6915_vm7, %vm6916_vm15 }
0x2509   :  { %v6956_v59 = vmul.f32 2.0, %v11862_v55  ;;  %v11876_v52 = vsel %vm6875_vm6, %v6877_v42, %v6873_v37  ;;  %v11887_v32 = vadd.f32 1.0, %v8420_v19  ;;  %v6913_v12 = vmul.f32 %v11856_v9, %v6912_v10 }
0x250a   :  { %v6903_v41 = vsel %vm6902_vm14, %v8414_v43, %v6899_v35  ;;  %v8422_v43 = vpop.eup %8421  ;;  %v6957_v33 = vmul.f32 2.0, %v11876_v52  ;;  %v6888_v57 = vsel %vm6887_vm4, %v11847_v26, %v6884_v1  ;;  %v6921_v26 = vand.u32 2147483648, %v11845_v38 }
0x250b   :  { %v7890_v63 = vadd.f32 -1.0, %v6956_v59  ;;  %v11871_v23 = vsel %vm6905_vm0, %v6907_v6, %v6903_v41  ;;  %v6941_v56 = vmul.f32 %v8422_v43, %v11854_v48  ;;  %v11892_v20 = vsel %vm6890_vm8, %v6892_v60, %v6888_v57  ;;  %v8424_v49 = vpop.eup %8423 }
0x250c   :  { %v6959_v14 = vmul.f32 2.0, %v11871_v23  ;;  %v7891_v34 = vadd.f32 -1.0, %v6957_v33  ;;  %8425 = vrcp.f32 %v11887_v32  ;;  %v6914_v8 = vadd.f32 %v11856_v9, %v6913_v12 }
0x250d   :  { %7013 = vrot.lane.b32.xlu0 %v7890_v63, %s8645_s0  ;;  %v6942_v3 = vsub.f32 1.0, %v6941_v56  ;;  %v6958_v36 = vmul.f32 2.0, %v11892_v20  ;;  %v6919_v58 = vand.u32 2147483647, %v11845_v38  ;;  %v6836_v45 = vmul.f32 %v8424_v49, %v11873_v31 }
0x250e   :  { %v7893_v29 = vadd.f32 -1.0, %v6959_v14  ;;  %v6918_v19 = vsel %vm6917_vm9, %v11856_v9, %v6914_v8  ;;  %v6922_v35 = vor.u32 1.1754944e-38, %v6921_v26  ;;  %vm6946_vm1 = vweird.f32 %v8422_v43 }
0x250f   :  { %v6943_v4 = vmul.f32 %v8422_v43, %v6942_v3  ;;  %v7892_v59 = vadd.f32 -1.0, %v6958_v36  ;;  %vm6920_vm2 = vcmp.eq.f32.partialorder %v6919_v58, 8.507059e+37  ;;  %v6837_v13 = vsub.f32 1.0, %v6836_v45  ;;  %vm6947_vm3 = vmor %vm6945_vm5, %vm6946_vm1 }
0x2510   :  { %7019 = vrot.lane.b32.xlu1 %v7893_v29, %s8645_s0  ;;  %v11904_v37 = vsel %vm6920_vm2, %v6922_v35, %v6918_v19  ;;  %v6951_v41 = vand.u32 2147483648, %v11854_v48  ;;  %v6949_v42 = vand.u32 2147483647, %v11854_v48  ;;  %v6605_v63 = vmul.f32 %v11830_v28, %v11830_v28 }
0x2511   :  { %v6944_v62 = vadd.f32 %v8422_v43, %v6943_v4  ;;  %v6960_v9 = vmul.f32 2.0, %v11904_v37  ;;  %v6838_v1 = vmul.f32 %v8424_v49, %v6837_v13  ;;  %vm6841_vm11 = vweird.f32 %v8424_v49 }
0x2512   :  { %v8426_v6 = vpop.eup %8425  ;;  %v6952_v10 = vor.u32 1.1754944e-38, %v6951_v41  ;;  %vm6950_vm12 = vcmp.eq.f32.partialorder %v6949_v42, 8.507059e+37  ;;  %v6846_v57 = vand.u32 2147483648, %v11873_v31  ;;  %vm6840_vm14 = vweird.f32 %v11873_v31 }
0x2513   :  { %v6926_v38 = vmul.f32 %v8426_v6, %v11887_v32  ;;  %v6948_v14 = vsel %vm6947_vm3, %v8422_v43, %v6944_v62  ;;  %v7894_v44 = vadd.f32 -1.0, %v6960_v9  ;;  %v6839_v25 = vadd.f32 %v8424_v49, %v6838_v1  ;;  %vm6842_vm0 = vmor %vm6840_vm14, %vm6841_vm11 }
0x2514   :  { %v11914_v33 = vsel %vm6950_vm12, %v6952_v10, %v6948_v14  ;;  %v6844_v43 = vand.u32 2147483647, %v11873_v31  ;;  %v6847_v60 = vor.u32 1.1754944e-38, %v6846_v57  ;;  %vm6931_vm6 = vweird.f32 %v8426_v6 }
0x2515   :  { %7015 = vrot.lane.b32.xlu0 %v7891_v34, %s8645_s0  ;;  %v6927_v29 = vsub.f32 1.0, %v6926_v38  ;;  %v6962_v12 = vmul.f32 2.0, %v11914_v33  ;;  %v6843_v56 = vsel %vm6842_vm0, %v8424_v49, %v6839_v25  ;;  %v6936_v3 = vand.u32 2147483648, %v11887_v32 }
0x2516   :  { %vm6845_vm10 = vcmp.eq.f32.partialorder %v6844_v43, 8.507059e+37  ;;  %vm6930_vm13 = vweird.f32 %v11887_v32  ;;  %v6934_v36 = vand.u32 2147483647, %v11887_v32  ;;  %vm12557_vm15 = vcmask 261120  }
0x2517   :  { %v6928_v48 = vmul.f32 %v8426_v6, %v6927_v29  ;;  %v7896_v8 = vadd.f32 -1.0, %v6962_v12  ;;  %v11922_v26 = vsel %vm6845_vm10, %v6847_v60, %v6843_v56  ;;  %vm6932_vm4 = vmor %vm6930_vm13, %vm6931_vm6  ;;  %v6937_v49 = vor.u32 1.1754944e-38, %v6936_v3 }
0x2518   :  { %v6955_v31 = vmul.f32 2.0, %v11922_v26  ;;  %vm6935_vm8 = vcmp.eq.f32.partialorder %v6934_v36, 8.507059e+37  ;;  %vm12558_vm11 = vcmask 1041409   ;;  %vm12559_vm14 = vcmask 1042434  }
0x2519   :  { %v6929_v34 = vadd.f32 %v8426_v6, %v6928_v48  ;;  %vm12560_vm0 = vmmov %vm12558_vm11  ;;  %vm12562_vm10 = vcmask 1043459   ;;  %vm12563_vm13 = vcmask 1044484  }
0x251a   :  { %v7889_v4 = vadd.f32 -1.0, %v6955_v31  ;;  %vm12561_vm6 = vmmov %vm12559_vm14 }
0x251b   :  { %v6933_v58 = vsel %vm6932_vm4, %v8426_v6, %v6929_v34  ;;  %vm12564_vm4 = vcmask 1045509  }
0x251c   :  { %v11928_v19 = vsel %vm6935_vm8, %v6937_v49, %v6933_v58  ;;  %vm12565_vm8 = vmmov %vm12562_vm10 }
0x251d   :  { %7017 = vrot.lane.b32.xlu0 %v7892_v59, %s8645_s0  ;;  %v6961_v45 = vmul.f32 2.0, %v11928_v19 }
0x251f   :  { %v7895_v35 = vadd.f32 -1.0, %v6961_v45 }
0x2523   :  { %6606 = vadd.xlane.f32.xlu2 %v6605_v63 }
0x2525   :  { %7021 = vrot.lane.b32.xlu0 %v7894_v44, %s8645_s0 }
0x252d   :  { %7025 = vrot.lane.b32.xlu0 %v7896_v8, %s8645_s0 }
0x2535   :  { %7011 = vrot.lane.b32.xlu0 %v7889_v4, %s8645_s0 }
0x253b   :  { %7023 = vrot.lane.b32.xlu2 %v7895_v35, %s8645_s0 }
0x2554   :  { %v6629_v59 = vpop.permute.xlu2 %6628 }
0x2555   :  { %7877 = vmatmul.msk.f32.vlgmr.msra.gmra.mxu3 %vm12557_vm15, %v6629_v59  ;;  %vm12566_vm15 = vcmask 1046534  }
0x2564   :  { %v6603_v32 = vpop.xlane.xlu0 %6602 }
0x2565   :  { %v6604_v29 = vmul.f32 %v6603_v32, %v8731_v47 }
0x2567   :  { %v6609_v12 = vmul.f32 %v6604_v29, %v6604_v29  ;;  %v6611_v35 = vsub.f32 %v11830_v28, %v6604_v29 }
0x257f   :  { %v7014_v62 = vpop.permute.xlu0 %7013 }
0x2580   :  { %v7036_v6 = vmul.f32 %v7014_v62, %v11862_v55 }
0x2582   :  { %v7020_v13 = vpop.permute.xlu1 %7019  ;;  %7053 = vrot.lane.b32.xlu1 %v7036_v6, %s8646_s2 }
0x2583   :  { %v7039_v41 = vmul.f32 %v7020_v13, %v11871_v23 }
0x2585   :  { %7059 = vrot.lane.b32.xlu2 %v7039_v41, %s8646_s2 }
0x2587   :  { %v7016_v38 = vpop.permute.xlu0 %7015 }
0x2588   :  { %v7037_v9 = vmul.f32 %v7016_v38, %v11876_v52 }
0x258a   :  { %7055 = vrot.lane.b32.xlu0 %v7037_v9, %s8646_s2 }
0x258f   :  { %v7018_v42 = vpop.permute.xlu0 %7017 }
0x2590   :  { %v7038_v63 = vmul.f32 %v7018_v42, %v11892_v20 }
0x2592   :  { %7057 = vrot.lane.b32.xlu1 %v7038_v63, %s8646_s2 }
0x2596   :  { %v6607_v14 = vpop.xlane.xlu2 %6606 }
0x2597   :  { %v7022_v1 = vpop.permute.xlu0 %7021  ;;  %v6608_v25 = vmul.f32 %v6607_v14, %v8731_v47 }
0x2598   :  { %v7040_v10 = vmul.f32 %v7022_v1, %v11904_v37 }
0x2599   :  { %v6610_v56 = vsub.f32 %v6608_v25, %v6609_v12 }
0x259a   :  { %7061 = vrot.lane.b32.xlu0 %v7040_v10, %s8646_s2 }
0x259b   :  { %v6612_v60 = vadd.f32 1e-05, %v6610_v56 }
0x259d   :  { %8427 = vrsqrt.f32 %v6612_v60  ;;  %vm6619_vm9 = vweird.f32 %v6612_v60 }
0x259e   :  { %v7024_v44 = vpop.permute.xlu2 %7023 }
0x259f   :  { %v7041_v57 = vmul.f32 %v7024_v44, %v11928_v19  ;;  %v7026_v48 = vpop.permute.xlu0 %7025 }
0x25a0   :  { %v7042_v43 = vmul.f32 %v7026_v48, %v11914_v33 }
0x25a1   :  { %7063 = vrot.lane.b32.xlu1 %v7041_v57, %s8646_s2 }
0x25a2   :  { %7065 = vrot.lane.b32.xlu2 %v7042_v43, %s8646_s2 }
0x25a3   :  { %v8428_v3 = vpop.eup %8427 }
0x25a4   :  { %v6614_v36 = vmul.f32 %v8428_v3, %v6612_v60  ;;  %vm6620_vm7 = vweird.f32 %v8428_v3  ;;  %v6981_v60 = vrot.slane %v11646_v22, 7 }
0x25a5   :  { %vm6621_vm2 = vmor %vm6619_vm9, %vm6620_vm7 }
0x25a6   :  { %v6615_v58 = vmul.f32 %v8428_v3, %v6614_v36  ;;  %v6980_v36 = vrot.slane %v11664_v0, 7  ;;  %vm12567_vm7 = vmmov %vm12563_vm13 }
0x25a7   :  { %v7012_v34 = vpop.permute.xlu0 %7011  ;;  %vm12568_vm9 = vmmov %vm12564_vm4 }
0x25a8   :  { %v7035_v8 = vmul.f32 %v7012_v34, %v11922_v26  ;;  %v6616_v31 = vmul.f32 0.5, %v6615_v58  ;;  %v6997_v58 = vmul.f32 %v6981_v60, %v11876_v52 }
0x25aa   :  { %7051 = vrot.lane.b32.xlu0 %v7035_v8, %s8646_s2  ;;  %v6617_v49 = vsub.f32 1.5, %v6616_v31  ;;  %v6982_v8 = vrot.slane %v11676_v17, 7  ;;  %v6984_v17 = vrot.slane %v11661_v61, 7 }
0x25ac   :  { %v6618_v4 = vmul.f32 %v8428_v3, %v6617_v49  ;;  %v6998_v49 = vmul.f32 %v6982_v8, %v11892_v20 }
0x25ae   :  { %v6622_v45 = vsel %vm6621_vm2, %v8428_v3, %v6618_v4  ;;  %v6996_v4 = vmul.f32 %v6980_v36, %v11862_v55  ;;  %vm12569_vm2 = vmmov %vm12566_vm15 }
0x25af   :  { %v6623_v59 = vmul.f32 %v6622_v45, %v6611_v35 }
0x25b1   :  { %v6624_v32 = vmul.f32 %v6623_v59, %v12411_v16  ;;  %v6983_v59 = vrot.slane %v11643_v54, 7 }
0x25b3   :  { %v6625_v62 = vadd.f32 %v6624_v32, %v12412_v21  ;;  %v6999_v32 = vmul.f32 %v6983_v59, %v11871_v23 }
0x25b5   :  { %v6626_v6 = vadd.f32 %v6625_v62, %v12452_v5  ;;  %v7000_v62 = vmul.f32 %v6984_v17, %v11904_v37 }
0x25d8   :  { %v6649_v13 = vpop.f32.mrf.mxu3 }
0x25d9   :  { %v6652_v41 = vadd.f32 %v6649_v13, %v6626_v6  ;;  %v6986_v6 = vrot.slane %v11679_v50, 7 }
0x25db   :  { %v7878_v38 = vmul.f32 -1.442695, %v6652_v41 }
0x25dd   :  { %8429 = vpow2.f32 %v7878_v38 }
0x25df   :  { %v7060_v3 = vpop.permute.xlu2 %7059 }
0x25e0   :  { %v11981_v38 = vadd.f32 %v7060_v3, %v6999_v32 }
0x25e3   :  { %v8430_v9 = vpop.eup %8429 }
0x25e4   :  { %v6656_v42 = vadd.f32 1.0, %v8430_v9 }
0x25e6   :  { %8431 = vrcp.f32 %v6656_v42  ;;  %v6668_v10 = vand.u32 2147483648, %v6656_v42  ;;  %v6666_v28 = vand.u32 2147483647, %v6656_v42  ;;  %vm6662_vm5 = vweird.f32 %v6656_v42 }
0x25e8   :  { %v6669_v25 = vor.u32 1.1754944e-38, %v6668_v10  ;;  %vm6667_vm12 = vcmp.eq.f32.partialorder %v6666_v28, 8.507059e+37  ;;  %v6985_v10 = vrot.slane %v11657_v27, 7  ;;  %v7096_v27 = vrot.slane %v11981_v38, 4 }
0x25ec   :  { %v8432_v63 = vpop.eup %8431 }
0x25ed   :  { %v6658_v14 = vmul.f32 %v8432_v63, %v6656_v42  ;;  %vm6663_vm1 = vweird.f32 %v8432_v63 }
0x25ee   :  { %vm6664_vm3 = vmor %vm6662_vm5, %vm6663_vm1  ;;  %vm7114_vm1 = vcmask 260096   ;;  %vm7110_vm5 = vcmask 261127  }
0x25ef   :  { %v6659_v1 = vsub.f32 1.0, %v6658_v14 }
0x25f1   :  { %v6660_v44 = vmul.f32 %v8432_v63, %v6659_v1 }
0x25f3   :  { %v6661_v29 = vadd.f32 %v8432_v63, %v6660_v44 }
0x25f4   :  { %v7054_v56 = vpop.permute.xlu1 %7053 }
0x25f5   :  { %v6665_v57 = vsel %vm6664_vm3, %v8432_v63, %v6661_v29  ;;  %v11971_v22 = vadd.f32 %v7054_v56, %v6996_v4  ;;  %v7002_v63 = vmul.f32 %v6986_v6, %v11914_v33 }
0x25f6   :  { %v11956_v48 = vsel %vm6667_vm12, %v6669_v25, %v6665_v57  ;;  %v7124_v25 = vmul.f32 %v11981_v38, %v11981_v38 }
0x25f7   :  { %v6672_v12 = vmul.f32 2.0, %v11956_v48  ;;  %v7121_v54 = vmul.f32 %v11971_v22, %v11971_v22  ;;  %v7091_v50 = vrot.slane %v11971_v22, 7 }
0x25f9   :  { %v7879_v43 = vadd.f32 -1.0, %v6672_v12  ;;  %v7136_v57 = vrot.slane %v7121_v54, 7 }
0x25fb   :  { %6676 = vrot.lane.b32.xlu2 %v7879_v43, %s8645_s0  ;;  %v7001_v43 = vmul.f32 %v6985_v10, %v11928_v19 }
0x25fc   :  { %v7056_v34 = vpop.permute.xlu0 %7055  ;;  %v7066_v9 = vpop.permute.xlu2 %7065 }
0x25fd   :  { %v11966_v45 = vadd.f32 %v7056_v34, %v6997_v58  ;;  %v11992_v44 = vadd.f32 %v7066_v9, %v7002_v63  ;;  %v6979_v9 = vrot.slane %v11688_v24, 7 }
0x25ff   :  { %v7122_v0 = vmul.f32 %v11966_v45, %v11966_v45  ;;  %v7092_v61 = vrot.slane %v11966_v45, 6  ;;  %v7127_v36 = vmul.f32 %v11992_v44, %v11992_v44  ;;  %v7102_v32 = vrot.slane %v11992_v44, 1 }
0x2601   :  { %v7137_v1 = vrot.slane %v7122_v0, 6  ;;  %v7093_v12 = vsel %vm12558_vm11, %v7092_v61, %v7091_v50  ;;  %v6995_v50 = vmul.f32 %v6979_v9, %v11922_v26 }
0x2603   :  { %v7138_v8 = vsel %vm12560_vm0, %v7137_v1, %v7136_v57 }
0x2604   :  { %v7058_v31 = vpop.permute.xlu1 %7057 }
0x2605   :  { %v11968_v35 = vadd.f32 %v7058_v31, %v6998_v49  ;;  %v7141_v49 = vrot.slane %v7124_v25, 4 }
0x2607   :  { %v7123_v13 = vmul.f32 %v11968_v35, %v11968_v35  ;;  %v7094_v14 = vrot.slane %v11968_v35, 5 }
0x2609   :  { %v7139_v28 = vrot.slane %v7123_v13, 5  ;;  %v7095_v56 = vsel %vm12559_vm14, %v7094_v14, %v7093_v12 }
0x260a   :  { %v7097_v17 = vsel %vm12562_vm10, %v7096_v27, %v7095_v56  ;;  %vm12570_vm10 = vcmask 261120  }
0x260b   :  { %v7140_v58 = vsel %vm12561_vm6, %v7139_v28, %v7138_v8 }
0x260c   :  { %v7062_v41 = vpop.permute.xlu0 %7061  ;;  %v7142_v13 = vsel %vm12565_vm8, %v7141_v49, %v7140_v58  ;;  %vm12573_vm8 = vcmask 1042434  }
0x260d   :  { %v11986_v42 = vadd.f32 %v7062_v41, %v7000_v62  ;;  %v7147_v41 = vrot.slane %v7127_v36, 1 }
0x260f   :  { %v7125_v29 = vmul.f32 %v11986_v42, %v11986_v42  ;;  %v7098_v60 = vrot.slane %v11986_v42, 3 }
0x2611   :  { %v7143_v31 = vrot.slane %v7125_v29, 3  ;;  %v7099_v0 = vsel %vm12563_vm13, %v7098_v60, %v7097_v17  ;;  %vm12571_vm13 = vmmov %vm12570_vm10 }
0x2613   :  { %v7064_v34 = vpop.permute.xlu1 %7063  ;;  %v7144_v61 = vsel %vm12567_vm7, %v7143_v31, %v7142_v13 }
0x2614   :  { %v12004_v3 = vadd.f32 %v7064_v34, %v7001_v43 }
0x2616   :  { %v7100_v4 = vrot.slane %v12004_v3, 2  ;;  %v7126_v59 = vmul.f32 %v12004_v3, %v12004_v3 }
0x2618   :  { %v7145_v62 = vrot.slane %v7126_v59, 2  ;;  %v7101_v6 = vsel %vm12564_vm4, %v7100_v4, %v7099_v0  ;;  %vm12572_vm4 = vcmask 1041409  }
0x2619   :  { %v7103_v54 = vsel %vm12566_vm15, %v7102_v32, %v7101_v6  ;;  %vm12574_vm15 = vcmask 1043459  }
0x261a   :  { %7106 = vrot.lane.b32.xlu1 %v7103_v54, %s8647_s28  ;;  %v7146_v63 = vsel %vm12568_vm9, %v7145_v62, %v7144_v61  ;;  %vm12575_vm9 = vmmov %vm12572_vm4 }
0x261b   :  { %v7148_v14 = vsel %vm12569_vm2, %v7147_v41, %v7146_v63  ;;  %v6674_v41 = vmul.f32 %v11956_v48, %v11768_v7  ;;  %vm12576_vm2 = vcmask 1045509  }
0x261c   :  { %7151 = vrot.lane.b32.xlu2 %v7148_v14, %s8647_s28  ;;  %v7052_v1 = vpop.permute.xlu0 %7051 }
0x261d   :  { %v12025_v10 = vadd.f32 %v7052_v1, %v6995_v50 }
0x261f   :  { %v7120_v28 = vmul.f32 %v12025_v10, %v12025_v10  ;;  %7104 = vrot.lane.b32.xlu0 %v12025_v10, %s8647_s28 }
0x2622   :  { %7149 = vrot.lane.b32.xlu1 %v7120_v28, %s8647_s28 }
0x2655   :  { %v6677_v24 = vpop.permute.xlu2 %6676 }
0x2656   :  { %v6679_v27 = vmul.f32 %v6677_v24, %v11956_v48 }
0x2676   :  { %v7152_v29 = vpop.permute.xlu2 %7151 }
0x2677   :  { %v7158_v25 = vsel %vm7114_vm1, %v7152_v29, 0.0 }
0x2678   :  { %7159 = vadd.xlane.f32.xlu1 %v7158_v25 }
0x268c   :  { %v7107_v57 = vpop.permute.xlu1 %7106 }
0x268d   :  { %v7115_v12 = vsel %vm7114_vm1, %v7107_v57, 0.0 }
0x268e   :  { %7116 = vadd.xlane.f32.xlu0 %v7115_v12 }
0x2691   :  { %v7105_v43 = vpop.permute.xlu0 %7104 }
0x2692   :  { %v7111_v56 = vsel %vm7110_vm5, %v7105_v43, 0.0 }
0x2693   :  { %7112 = vadd.xlane.f32.xlu2 %v7111_v56 }
0x2694   :  { %v7150_v60 = vpop.permute.xlu1 %7149 }
0x2695   :  { %v7155_v34 = vsel %vm7110_vm5, %v7150_v60, 0.0 }
0x2696   :  { %7156 = vadd.xlane.f32.xlu0 %v7155_v34 }
0x26ab   :  { %6681 = vrot.lane.b32.xlu2 %v6679_v27, %s8646_s2 }
0x26eb   :  { %v7160_v8 = vpop.xlane.xlu1 %7159 }
0x26ec   :  { %v7162_v31 = vmul.f32 %v7160_v8, %v9050_v40 }
0x2701   :  { %v7117_v36 = vpop.xlane.xlu0 %7116 }
0x2702   :  { %v12039_v58 = vmul.f32 %v7117_v36, %v9050_v40 }
0x2704   :  { %v7164_v49 = vmul.f32 %v12039_v58, %v12039_v58  ;;  %v7169_v24 = vrot.slane %v12039_v58, 1  ;;  %v7170_v29 = vrot.slane %v12039_v58, 2  ;;  %v7171_v25 = vrot.slane %v12039_v58, 3 }
0x2705   :  { %v7174_v43 = vrot.slane %v12039_v58, 6  ;;  %v7172_v60 = vrot.slane %v12039_v58, 4  ;;  %v7173_v34 = vrot.slane %v12039_v58, 5 }
0x2706   :  { %v7166_v4 = vsub.f32 %v7162_v31, %v7164_v49  ;;  %v7113_v59 = vpop.xlane.xlu2 %7112  ;;  %v7187_v36 = vsub.f32 %v11968_v35, %v7171_v25  ;;  %v7186_v31 = vsub.f32 %v11966_v45, %v7170_v29  ;;  %v7185_v49 = vsub.f32 %v11971_v22, %v7169_v24 }
0x2707   :  { %v12045_v32 = vmul.f32 %v7113_v59, %v9050_v40  ;;  %v7188_v35 = vsub.f32 %v11981_v38, %v7172_v60 }
0x2708   :  { %v7193_v17 = vadd.f32 1e-05, %v7166_v4 }
0x2709   :  { %v7157_v0 = vpop.xlane.xlu0 %7156  ;;  %v7163_v62 = vmul.f32 %v12045_v32, %v12045_v32 }
0x270a   :  { %8433 = vrsqrt.f32 %v7193_v17  ;;  %v7161_v6 = vmul.f32 %v7157_v0, %v9050_v40  ;;  %vm7210_vm12 = vweird.f32 %v7193_v17 }
0x270c   :  { %v7165_v13 = vsub.f32 %v7161_v6, %v7163_v62  ;;  %v7190_v6 = vsub.f32 %v12004_v3, %v7174_v43 }
0x270e   :  { %v7192_v54 = vadd.f32 1e-05, %v7165_v13  ;;  %v6682_v61 = vpop.permute.xlu2 %6681 }
0x270f   :  { %v12052_v63 = vadd.f32 %v6682_v61, %v6674_v41 }
0x2710   :  { %v8434_v9 = vpop.eup %8433  ;;  %8435 = vrsqrt.f32 %v7192_v54  ;;  %vm7200_vm0 = vweird.f32 %v7192_v54 }
0x2711   :  { %v7205_v14 = vmul.f32 %v8434_v9, %v7193_v17  ;;  %v6693_v50 = vmul.f32 %v12052_v63, %v12052_v63  ;;  %6686 = vrot.lane.b32.xlu1 %v12052_v63, %s8647_s28  ;;  %vm7211_vm3 = vweird.f32 %v8434_v9 }
0x2712   :  { %vm7212_vm11 = vmor %vm7210_vm12, %vm7211_vm3  ;;  %vm12578_vm12 = vcmask 1046534  }
0x2713   :  { %v7206_v1 = vmul.f32 %v8434_v9, %v7205_v14  ;;  %6695 = vrot.lane.b32.xlu0 %v6693_v50, %s8647_s28  ;;  %vm12577_vm3 = vmmov %vm12573_vm8 }
0x2715   :  { %v7207_v28 = vmul.f32 0.5, %v7206_v1 }
0x2716   :  { %v8436_v7 = vpop.eup %8435 }
0x2717   :  { %v7208_v57 = vsub.f32 1.5, %v7207_v28  ;;  %v7195_v12 = vmul.f32 %v8436_v7, %v7192_v54  ;;  %vm7201_vm14 = vweird.f32 %v8436_v7 }
0x2718   :  { %vm7202_vm6 = vmor %vm7200_vm0, %vm7201_vm14 }
0x2719   :  { %v7209_v56 = vmul.f32 %v8434_v9, %v7208_v57  ;;  %v7196_v27 = vmul.f32 %v8436_v7, %v7195_v12  ;;  %vm12580_vm14 = vmmov %vm12567_vm7 }
0x271a   :  { %vm12581_vm0 = vmmov %vm12576_vm2 }
0x271b   :  { %v7213_v8 = vsel %vm7212_vm11, %v8434_v9, %v7209_v56  ;;  %v7197_v4 = vmul.f32 0.5, %v7196_v27  ;;  %v7189_v9 = vsub.f32 %v11986_v42, %v7173_v34  ;;  %v7175_v42 = vrot.slane %v12039_v58, 7  ;;  %vm12579_vm11 = vmmov %vm12574_vm15 }
0x271c   :  { %v7218_v59 = vrot.slane %v7213_v8, 3  ;;  %v7217_v0 = vrot.slane %v7213_v8, 2  ;;  %v7216_v62 = vrot.slane %v7213_v8, 1  ;;  %v7221_v17 = vrot.slane %v7213_v8, 6 }
0x271d   :  { %v7220_v13 = vrot.slane %v7213_v8, 5  ;;  %v7219_v41 = vrot.slane %v7213_v8, 4  ;;  %v7198_v61 = vsub.f32 1.5, %v7197_v4  ;;  %v7222_v27 = vrot.slane %v7213_v8, 7 }
0x271e   :  { %v7234_v14 = vmul.f32 %v7218_v59, %v7187_v36  ;;  %v7233_v50 = vmul.f32 %v7217_v0, %v7186_v31  ;;  %v7232_v1 = vmul.f32 %v7216_v62, %v7185_v49  ;;  %v7237_v24 = vmul.f32 %v7221_v17, %v7190_v6 }
0x271f   :  { %v7236_v3 = vmul.f32 %v7220_v13, %v7189_v9  ;;  %v7235_v29 = vmul.f32 %v7219_v41, %v7188_v35  ;;  %v7199_v25 = vmul.f32 %v8436_v7, %v7198_v61  ;;  %v7184_v36 = vsub.f32 %v12025_v10, %v12045_v32 }
0x2720   :  { %v7242_v45 = vmul.f32 %v7234_v14, %v12453_v30  ;;  %v7241_v22 = vmul.f32 %v7233_v50, %v12453_v30  ;;  %v7240_v28 = vmul.f32 %v7232_v1, %v12453_v30  ;;  %v7245_v38 = vmul.f32 %v7237_v24, %v12453_v30 }
0x2721   :  { %v7244_v56 = vmul.f32 %v7236_v3, %v12453_v30  ;;  %v7203_v60 = vsel %vm7202_vm6, %v8436_v7, %v7199_v25  ;;  %v7243_v34 = vmul.f32 %v7235_v29, %v12453_v30  ;;  %v7191_v58 = vsub.f32 %v11992_v44, %v7175_v42  ;;  %vm12582_vm6 = vmmov %vm12578_vm12 }
0x2722   :  { %v7250_v57 = vadd.f32 %v7242_v45, %v12530_v15  ;;  %v7249_v12 = vadd.f32 %v7241_v22, %v12530_v15  ;;  %v7248_v43 = vadd.f32 %v7240_v28, %v12530_v15  ;;  %v7253_v31 = vadd.f32 %v7245_v38, %v12530_v15 }
0x2723   :  { %v7231_v54 = vmul.f32 %v7203_v60, %v7184_v36  ;;  %v7252_v49 = vadd.f32 %v7244_v56, %v12530_v15  ;;  %v7251_v59 = vadd.f32 %v7243_v34, %v12530_v15  ;;  %v7238_v0 = vmul.f32 %v7222_v27, %v7191_v58 }
0x2724   :  { %8437 = vtanh.f32 %v7250_v57 }
0x2725   :  { %8439 = vtanh.f32 %v7249_v12  ;;  %v7239_v10 = vmul.f32 %v7231_v54, %v12453_v30  ;;  %v7246_v44 = vmul.f32 %v7238_v0, %v12453_v30 }
0x2726   :  { %8441 = vtanh.f32 %v7248_v43 }
0x2727   :  { %8443 = vtanh.f32 %v7253_v31  ;;  %v7247_v32 = vadd.f32 %v7239_v10, %v12530_v15  ;;  %v7254_v6 = vadd.f32 %v7246_v44, %v12530_v15 }
0x2728   :  { %8445 = vtanh.f32 %v7252_v49 }
0x2729   :  { %8447 = vtanh.f32 %v7251_v59 }
0x272a   :  { %v8438_v4 = vpop.eup %8437  ;;  %8449 = vtanh.f32 %v7247_v32 }
0x272b   :  { %v8440_v62 = vpop.eup %8439  ;;  %7277 = vrot.lane.b32.xlu1 %v8438_v4, %s8645_s0  ;;  %8451 = vtanh.f32 %v7254_v6 }
0x272c   :  { %v8442_v7 = vpop.eup %8441  ;;  %7275 = vrot.lane.b32.xlu0 %v8440_v62, %s8645_s0 }
0x272d   :  { %7273 = vrot.lane.b32.xlu2 %v8442_v7, %s8645_s0  ;;  %v8444_v8 = vpop.eup %8443 }
0x272e   :  { %v8446_v17 = vpop.eup %8445 }
0x272f   :  { %v8448_v13 = vpop.eup %8447 }
0x2730   :  { %v8450_v41 = vpop.eup %8449 }
0x2731   :  { %v8452_v61 = vpop.eup %8451 }
0x2733   :  { %7283 = vrot.lane.b32.xlu1 %v8444_v8, %s8645_s0 }
0x2734   :  { %7281 = vrot.lane.b32.xlu0 %v8446_v17, %s8645_s0 }
0x2735   :  { %7279 = vrot.lane.b32.xlu2 %v8448_v13, %s8645_s0 }
0x273c   :  { %7271 = vrot.lane.b32.xlu0 %v8450_v41, %s8645_s0 }
0x273d   :  { %7285 = vrot.lane.b32.xlu2 %v8452_v61, %s8645_s0 }
0x2783   :  { %v6687_v30 = vpop.permute.xlu1 %6686 }
0x2784   :  { %v6689_v14 = vsel %vm12570_vm10, %v6687_v30, 0.0 }
0x2785   :  { %v6696_v15 = vpop.permute.xlu0 %6695  ;;  %6690 = vadd.xlane.f32.xlu1 %v6689_v14 }
0x2786   :  { %v6698_v50 = vsel %vm12571_vm13, %v6696_v15, 0.0 }
0x2787   :  { %6699 = vadd.xlane.f32.xlu2 %v6698_v50  ;;  %v7274_v1 = vpop.permute.xlu2 %7273 }
0x2788   :  { %v12105_v22 = vmul.f32 %v7274_v1, %v11862_v55 }
0x278a   :  { %v7311_v25 = vrot.slane %v12105_v22, 7  ;;  %v7339_v42 = vmul.f32 %v12105_v22, %v12105_v22 }
0x278c   :  { %v7354_v58 = vrot.slane %v7339_v42, 7 }
0x278f   :  { %v7280_v28 = vpop.permute.xlu2 %7279 }
0x2797   :  { %v7286_v27 = vpop.permute.xlu2 %7285 }
0x2798   :  { %v12140_v49 = vmul.f32 %v7286_v27, %v11914_v33 }
0x279a   :  { %v7322_v44 = vrot.slane %v12140_v49, 1  ;;  %v7345_v41 = vmul.f32 %v12140_v49, %v12140_v49 }
0x279c   :  { %v7365_v14 = vrot.slane %v7345_v41, 1 }
0x279d   :  { %v7278_v35 = vpop.permute.xlu1 %7277 }
0x279e   :  { %v7276_v9 = vpop.permute.xlu0 %7275  ;;  %v12108_v24 = vmul.f32 %v7278_v35, %v11892_v20 }
0x279f   :  { %v12102_v45 = vmul.f32 %v7276_v9, %v11876_v52  ;;  %v12117_v52 = vmul.f32 %v7280_v28, %v11871_v23 }
0x27a0   :  { %v7314_v57 = vrot.slane %v12108_v24, 5 }
0x27a1   :  { %v7312_v29 = vrot.slane %v12102_v45, 6  ;;  %v7340_v20 = vmul.f32 %v12102_v45, %v12102_v45  ;;  %v7316_v34 = vrot.slane %v12117_v52, 4 }
0x27a3   :  { %v7313_v55 = vsel %vm12572_vm4, %v7312_v29, %v7311_v25  ;;  %v7355_v36 = vrot.slane %v7340_v20, 6 }
0x27a4   :  { %v7315_v56 = vsel %vm12573_vm8, %v7314_v57, %v7313_v55 }
0x27a5   :  { %v7284_v43 = vpop.permute.xlu1 %7283  ;;  %v7356_v62 = vsel %vm12575_vm9, %v7355_v36, %v7354_v58 }
0x27a6   :  { %v7282_v3 = vpop.permute.xlu0 %7281  ;;  %v12125_v38 = vmul.f32 %v7284_v43, %v11928_v19  ;;  %v7317_v19 = vsel %vm12574_vm15, %v7316_v34, %v7315_v56 }
0x27a7   :  { %v12114_v12 = vmul.f32 %v7282_v3, %v11904_v37  ;;  %v7341_v37 = vmul.f32 %v12108_v24, %v12108_v24 }
0x27a8   :  { %v7320_v54 = vrot.slane %v12125_v38, 2  ;;  %v7344_v7 = vmul.f32 %v12125_v38, %v12125_v38 }
0x27a9   :  { %v7318_v60 = vrot.slane %v12114_v12, 3  ;;  %v7357_v4 = vrot.slane %v7341_v37, 5  ;;  %v7343_v59 = vmul.f32 %v12114_v12, %v12114_v12 }
0x27aa   :  { %v7363_v17 = vrot.slane %v7344_v7, 2 }
0x27ab   :  { %v7319_v0 = vsel %vm12567_vm7, %v7318_v60, %v7317_v19  ;;  %v7358_v33 = vsel %vm12577_vm3, %v7357_v4, %v7356_v62  ;;  %v7361_v32 = vrot.slane %v7343_v59, 3 }
0x27ac   :  { %v7321_v10 = vsel %vm12576_vm2, %v7320_v54, %v7319_v0  ;;  %vm12583_vm2 = vcmask 1041409  }
0x27ad   :  { %v7323_v6 = vsel %vm12578_vm12, %v7322_v44, %v7321_v10  ;;  %vm12584_vm12 = vmmov %vm12579_vm11 }
0x27ae   :  { %v7272_v23 = vpop.permute.xlu0 %7271 }
0x27af   :  { %v12133_v31 = vmul.f32 %v7272_v23, %v11922_v26  ;;  %v7342_v26 = vmul.f32 %v12117_v52, %v12117_v52 }
0x27b1   :  { %7324 = vrot.lane.b32.xlu0 %v12133_v31, %s8646_s2  ;;  %v7359_v8 = vrot.slane %v7342_v26, 4  ;;  %v7338_v50 = vmul.f32 %v12133_v31, %v12133_v31 }
0x27b3   :  { %v7360_v13 = vsel %vm12579_vm11, %v7359_v8, %v7358_v33  ;;  %vm12585_vm11 = vmmov %vm12580_vm14 }
0x27b4   :  { %v7362_v61 = vsel %vm12580_vm14, %v7361_v32, %v7360_v13  ;;  %vm12586_vm14 = vmmov %vm12581_vm0 }
0x27b5   :  { %v7364_v30 = vsel %vm12581_vm0, %v7363_v17, %v7362_v61  ;;  %vm12587_vm0 = vmmov %vm12582_vm6 }
0x27b6   :  { %v7366_v15 = vsel %vm12582_vm6, %v7365_v14, %v7364_v30  ;;  %vm12588_vm6 = vcmask 1047559  }
0x27b9   :  { %7326 = vrot.lane.b32.xlu0 %v7323_v6, %s8646_s2 }
0x27c1   :  { %7369 = vrot.lane.b32.xlu0 %v7366_v15, %s8646_s2 }
0x27c9   :  { %7367 = vrot.lane.b32.xlu0 %v7338_v50, %s8646_s2 }
0x27f8   :  { %v6691_v1 = vpop.xlane.xlu1 %6690 }
0x27f9   :  { %v6692_v9 = vmul.f32 %v6691_v1, %v9050_v40 }
0x27fa   :  { %v6700_v35 = vpop.xlane.xlu2 %6699 }
0x27fb   :  { %v6702_v28 = vmul.f32 %v6692_v9, %v6692_v9  ;;  %v6701_v3 = vmul.f32 %v6700_v35, %v9050_v40  ;;  %v6704_v54 = vsub.f32 %v12052_v63, %v6692_v9 }
0x27fd   :  { %v6703_v29 = vsub.f32 %v6701_v3, %v6702_v28 }
0x27ff   :  { %v6705_v25 = vadd.f32 1e-05, %v6703_v29 }
0x2801   :  { %8453 = vrsqrt.f32 %v6705_v25  ;;  %vm6712_vm13 = vweird.f32 %v6705_v25 }
0x2807   :  { %v8454_v57 = vpop.eup %8453 }
0x2808   :  { %v6707_v43 = vmul.f32 %v8454_v57, %v6705_v25  ;;  %vm6713_vm10 = vweird.f32 %v8454_v57 }
0x2809   :  { %vm6714_vm4 = vmor %vm6712_vm13, %vm6713_vm10  ;;  %vm12589_vm10 = vcmask 261120  }
0x280a   :  { %v6708_v42 = vmul.f32 %v8454_v57, %v6707_v43  ;;  %vm12590_vm13 = vmmov %vm12589_vm10 }
0x280c   :  { %v6709_v56 = vmul.f32 0.5, %v6708_v42 }
0x280e   :  { %v6710_v23 = vsub.f32 1.5, %v6709_v56 }
0x2810   :  { %v6711_v34 = vmul.f32 %v8454_v57, %v6710_v23 }
0x2812   :  { %v6715_v58 = vsel %vm6714_vm4, %v8454_v57, %v6711_v34  ;;  %vm12591_vm4 = vmmov %vm12589_vm10 }
0x2813   :  { %v6716_v19 = vmul.f32 %v6715_v58, %v6704_v54 }
0x2815   :  { %v6717_v0 = vmul.f32 %v6716_v19, %v12545_v39 }
0x2817   :  { %v12174_v26 = vadd.f32 %v6717_v0, %v12546_v51 }
0x2819   :  { %8455 = vtanh.f32 %v12174_v26 }
0x281f   :  { %v8456_v62 = vpop.eup %8455 }
0x2823   :  { %v7325_v55 = vpop.permute.xlu0 %7324 }
0x2824   :  { %v7330_v20 = vsel %vm7110_vm5, %v7325_v55, 0.0 }
0x2825   :  { %7331 = vadd.xlane.f32.xlu1 %v7330_v20 }
0x282b   :  { %v7327_v37 = vpop.permute.xlu0 %7326 }
0x282c   :  { %v7333_v60 = vsel %vm7114_vm1, %v7327_v37, 0.0 }
0x282d   :  { %7334 = vadd.xlane.f32.xlu0 %v7333_v60 }
0x2833   :  { %v7370_v27 = vpop.permute.xlu0 %7369 }
0x2834   :  { %v7376_v36 = vsel %vm7114_vm1, %v7370_v27, 0.0 }
0x2835   :  { %7377 = vadd.xlane.f32.xlu2 %v7376_v36 }
0x283b   :  { %v7368_v4 = vpop.permute.xlu0 %7367 }
0x283c   :  { %v7373_v59 = vsel %vm7110_vm5, %v7368_v4, 0.0 }
0x283d   :  { %7374 = vadd.xlane.f32.xlu1 %v7373_v59 }
0x284d   :  { %6721 = vrot.lane.b32.xlu2 %v8456_v62, %s8645_s0 }
0x2898   :  { %v7332_v63 = vpop.xlane.xlu1 %7331 }
0x2899   :  { %v12185_v6 = vmul.f32 %v7332_v63, %v9050_v40 }
0x289b   :  { %v7381_v61 = vmul.f32 %v12185_v6, %v12185_v6 }
0x28a0   :  { %v7335_v7 = vpop.xlane.xlu0 %7334 }
0x28a1   :  { %v12179_v10 = vmul.f32 %v7335_v7, %v9050_v40 }
0x28a3   :  { %v7382_v32 = vmul.f32 %v12179_v10, %v12179_v10  ;;  %v7387_v25 = vrot.slane %v12179_v10, 1  ;;  %v7388_v55 = vrot.slane %v12179_v10, 2  ;;  %v7389_v20 = vrot.slane %v12179_v10, 3 }
0x28a4   :  { %v7390_v42 = vrot.slane %v12179_v10, 4  ;;  %v7391_v60 = vrot.slane %v12179_v10, 5  ;;  %v7392_v54 = vrot.slane %v12179_v10, 6 }
0x28a5   :  { %v7403_v23 = vsub.f32 %v12105_v22, %v7387_v25  ;;  %v7404_v19 = vsub.f32 %v12102_v45, %v7388_v55  ;;  %v7405_v0 = vsub.f32 %v12108_v24, %v7389_v20  ;;  %v7402_v45 = vsub.f32 %v12133_v31, %v12185_v6 }
0x28a6   :  { %v7406_v62 = vsub.f32 %v12117_v52, %v7390_v42  ;;  %v7407_v22 = vsub.f32 %v12114_v12, %v7391_v60  ;;  %v7393_v24 = vrot.slane %v12179_v10, 7 }
0x28a8   :  { %v7378_v44 = vpop.xlane.xlu2 %7377  ;;  %v7409_v31 = vsub.f32 %v12140_v49, %v7393_v24 }
0x28a9   :  { %v7380_v33 = vmul.f32 %v7378_v44, %v9050_v40 }
0x28ab   :  { %v7384_v8 = vsub.f32 %v7380_v33, %v7382_v32 }
0x28ad   :  { %v7411_v17 = vadd.f32 1e-05, %v7384_v8 }
0x28af   :  { %8457 = vrsqrt.f32 %v7411_v17  ;;  %vm7428_vm5 = vweird.f32 %v7411_v17 }
0x28b0   :  { %v6722_v13 = vpop.permute.xlu2 %6721  ;;  %v7375_v41 = vpop.xlane.xlu1 %7374 }
0x28b1   :  { %v12190_v30 = vmul.f32 %v6722_v13, %v11956_v48  ;;  %v7379_v14 = vmul.f32 %v7375_v41, %v9050_v40 }
0x28b3   :  { %v6733_v15 = vmul.f32 %v12190_v30, %v12190_v30  ;;  %v7383_v50 = vsub.f32 %v7379_v14, %v7381_v61  ;;  %6726 = vrot.lane.b32.xlu1 %v12190_v30, %s8646_s2 }
0x28b5   :  { %v8458_v1 = vpop.eup %8457  ;;  %v7410_v9 = vadd.f32 1e-05, %v7383_v50  ;;  %6735 = vrot.lane.b32.xlu2 %v6733_v15, %s8646_s2 }
0x28b6   :  { %v7423_v35 = vmul.f32 %v8458_v1, %v7411_v17  ;;  %vm7429_vm1 = vweird.f32 %v8458_v1  ;;  %v7408_v17 = vsub.f32 %v12125_v38, %v7392_v54 }
0x28b7   :  { %8459 = vrsqrt.f32 %v7410_v9  ;;  %vm7430_vm8 = vmor %vm7428_vm5, %vm7429_vm1  ;;  %vm7418_vm7 = vweird.f32 %v7410_v9 }
0x28b8   :  { %v7424_v28 = vmul.f32 %v8458_v1, %v7423_v35 }
0x28ba   :  { %v7425_v3 = vmul.f32 0.5, %v7424_v28 }
0x28bc   :  { %v7426_v29 = vsub.f32 1.5, %v7425_v3 }
0x28bd   :  { %v8460_v48 = vpop.eup %8459 }
0x28be   :  { %v7427_v57 = vmul.f32 %v8458_v1, %v7426_v29  ;;  %v7413_v43 = vmul.f32 %v8460_v48, %v7410_v9  ;;  %vm7419_vm15 = vweird.f32 %v8460_v48 }
0x28bf   :  { %vm7420_vm9 = vmor %vm7418_vm7, %vm7419_vm15 }
0x28c0   :  { %v7431_v56 = vsel %vm7430_vm8, %v8458_v1, %v7427_v57  ;;  %v7414_v37 = vmul.f32 %v8460_v48, %v7413_v43  ;;  %vm12592_vm15 = vmmov %vm12591_vm4 }
0x28c1   :  { %v7434_v34 = vrot.slane %v7431_v56, 1  ;;  %v7435_v27 = vrot.slane %v7431_v56, 2  ;;  %v7436_v36 = vrot.slane %v7431_v56, 3  ;;  %v7437_v4 = vrot.slane %v7431_v56, 4 }
0x28c2   :  { %v7415_v58 = vmul.f32 0.5, %v7414_v37  ;;  %v7438_v7 = vrot.slane %v7431_v56, 5  ;;  %v7439_v44 = vrot.slane %v7431_v56, 6  ;;  %v7440_v50 = vrot.slane %v7431_v56, 7 }
0x28c3   :  { %v7450_v59 = vmul.f32 %v7434_v34, %v7403_v23  ;;  %v7451_v33 = vmul.f32 %v7435_v27, %v7404_v19  ;;  %v7452_v32 = vmul.f32 %v7436_v36, %v7405_v0  ;;  %v7453_v13 = vmul.f32 %v7437_v4, %v7406_v62 }
0x28c4   :  { %v7416_v63 = vsub.f32 1.5, %v7415_v58  ;;  %v7454_v52 = vmul.f32 %v7438_v7, %v7407_v22  ;;  %v7455_v14 = vmul.f32 %v7439_v44, %v7408_v17  ;;  %v7456_v29 = vmul.f32 %v7440_v50, %v7409_v31 }
0x28c5   :  { %v7458_v41 = vmul.f32 %v7450_v59, %v9211_v46  ;;  %v7459_v15 = vmul.f32 %v7451_v33, %v9211_v46  ;;  %v7460_v1 = vmul.f32 %v7452_v32, %v9211_v46  ;;  %v7461_v38 = vmul.f32 %v7453_v13, %v9211_v46 }
0x28c6   :  { %v7417_v8 = vmul.f32 %v8460_v48, %v7416_v63  ;;  %v7462_v6 = vmul.f32 %v7454_v52, %v9211_v46  ;;  %v7463_v35 = vmul.f32 %v7455_v14, %v9211_v46  ;;  %v7464_v42 = vmul.f32 %v7456_v29, %v9211_v46 }
0x28c7   :  { %v7466_v10 = vadd.f32 %v7458_v41, %v9229_v18  ;;  %v7467_v28 = vadd.f32 %v7459_v15, %v9229_v18  ;;  %v7469_v25 = vadd.f32 %v7461_v38, %v9229_v18 }
0x28c8   :  { %v7421_v61 = vsel %vm7420_vm9, %v8460_v48, %v7417_v8  ;;  %v7468_v48 = vadd.f32 %v7460_v1, %v9229_v18  ;;  %v7470_v43 = vadd.f32 %v7462_v6, %v9229_v18  ;;  %v7471_v49 = vadd.f32 %v7463_v35, %v9229_v18 }
0x28c9   :  { %v7449_v12 = vmul.f32 %v7421_v61, %v7402_v45  ;;  %v7482_v55 = vrot.slane %v7466_v10, 6  ;;  %v7484_v20 = vrot.slane %v7467_v28, 5  ;;  %v7488_v23 = vrot.slane %v7469_v25, 3 }
0x28ca   :  { %v7486_v37 = vrot.slane %v7468_v48, 4  ;;  %v7490_v27 = vrot.slane %v7470_v43, 2  ;;  %v7492_v58 = vrot.slane %v7471_v49, 1  ;;  %v7472_v54 = vadd.f32 %v7464_v42, %v9229_v18 }
0x28cb   :  { %v7457_v9 = vmul.f32 %v7449_v12, %v9211_v46 }
0x28cd   :  { %v7465_v3 = vadd.f32 %v7457_v9, %v9229_v18 }
0x28cf   :  { %v7481_v57 = vrot.slane %v7465_v3, 7 }
0x28d1   :  { %v7483_v56 = vsel %vm12583_vm2, %v7482_v55, %v7481_v57 }
0x28d2   :  { %v7485_v60 = vsel %vm12577_vm3, %v7484_v20, %v7483_v56 }
0x28d3   :  { %v7487_v34 = vsel %vm12584_vm12, %v7486_v37, %v7485_v60 }
0x28d4   :  { %v7489_v36 = vsel %vm12585_vm11, %v7488_v23, %v7487_v34 }
0x28d5   :  { %v7491_v19 = vsel %vm12586_vm14, %v7490_v27, %v7489_v36 }
0x28d6   :  { %v7493_v4 = vsel %vm12587_vm0, %v7492_v58, %v7491_v19  ;;  %vm12593_vm0 = vmmov %vm12591_vm4 }
0x28d7   :  { %v7494_v46 = vsel %vm12588_vm6, %v7472_v54, %v7493_v4  ;;  %vm12594_vm6 = vmmov %vm12593_vm0 }
0x28d8   :  { %7495 = vrot.lane.b32.xlu0 %v7494_v46, %s8646_s2 }
0x290f   :  { %v6736_v59 = vpop.permute.xlu2 %6735 }
0x2910   :  { %v6738_v0 = vsel %vm12589_vm10, %v6736_v59, 0.0 }
0x2911   :  { %6739 = vadd.xlane.f32.xlu2 %v6738_v0 }
0x2925   :  { %v6727_v62 = vpop.permute.xlu1 %6726 }
0x2926   :  { %v6729_v7 = vsel %vm12590_vm13, %v6727_v62, 0.0 }
0x2927   :  { %6730 = vadd.xlane.f32.xlu1 %v6729_v7 }
0x294a   :  { %v7496_v63 = vpop.permute.xlu0 %7495 }
0x294b   :  { %7897 = vmatmul.msk.f32.vlgmr.msrb.gmra.mxu2 %vm12591_vm4, %v7496_v63 }
0x2984   :  { %v6740_v18 = vpop.xlane.xlu2 %6739 }
0x2985   :  { %v6741_v22 = vmul.f32 %v6740_v18, %v9050_v40 }
0x299a   :  { %v6731_v44 = vpop.xlane.xlu1 %6730 }
0x299b   :  { %v6732_v33 = vmul.f32 %v6731_v44, %v9050_v40 }
0x299d   :  { %v6742_v32 = vmul.f32 %v6732_v33, %v6732_v33  ;;  %v6744_v14 = vsub.f32 %v12190_v30, %v6732_v33 }
0x299f   :  { %v6743_v8 = vsub.f32 %v6741_v22, %v6742_v32 }
0x29a1   :  { %v6745_v17 = vadd.f32 1e-05, %v6743_v8 }
0x29a3   :  { %8461 = vrsqrt.f32 %v6745_v17  ;;  %vm6752_vm5 = vweird.f32 %v6745_v17 }
0x29a9   :  { %v8462_v13 = vpop.eup %8461 }
0x29aa   :  { %v6747_v45 = vmul.f32 %v8462_v13, %v6745_v17  ;;  %vm6753_vm1 = vweird.f32 %v8462_v13 }
0x29ab   :  { %vm6754_vm8 = vmor %vm6752_vm5, %vm6753_vm1 }
0x29ac   :  { %v6748_v24 = vmul.f32 %v8462_v13, %v6747_v45  ;;  %vm12595_vm1 = vmmov %vm12593_vm0 }
0x29ad   :  { %vm12596_vm5 = vmmov %vm12593_vm0 }
0x29ae   :  { %v6749_v52 = vmul.f32 0.5, %v6748_v24 }
0x29b0   :  { %v6750_v41 = vsub.f32 1.5, %v6749_v52 }
0x29b2   :  { %v6751_v61 = vmul.f32 %v8462_v13, %v6750_v41 }
0x29b4   :  { %v6755_v15 = vsel %vm6754_vm8, %v8462_v13, %v6751_v61 }
0x29b5   :  { %v6756_v12 = vmul.f32 %v6755_v15, %v6744_v14 }
0x29b7   :  { %v6757_v50 = vmul.f32 %v6756_v12, %v9779_v53 }
0x29b9   :  { %v6758_v1 = vadd.f32 %v6757_v50, %v9781_v2 }
0x29bb   :  { %7545 = vrot.lane.b32.xlu0 %v6758_v1, %s8646_s2 }
0x29ce   :  { %v7516_v38 = vpop.f32.mrf.mxu2 }
0x29cf   :  { %v7517_v9 = vadd.f32 %v7516_v38, %v9475_v11 }
0x29d1   :  { %v7522_v31 = vmul.f32 %v7517_v9, %v7517_v9 }
0x29d3   :  { %7523 = vadd.xlane.f32.xlu1 %v7522_v31 }
0x29e5   :  { %7519 = vadd.xlane.f32.xlu0 %v7517_v9 }
0x2a2d   :  { %v7546_v6 = vpop.permute.xlu0 %7545 }
0x2a2e   :  { %7898 = vmatmul.msk.f32.vlgmr.msrb.gmra.mxu3 %vm12592_vm15, %v7546_v6 }
0x2a46   :  { %v7524_v35 = vpop.xlane.xlu1 %7523 }
0x2a47   :  { %v7525_v3 = vmul.f32 %v7524_v35, %v8731_v47 }
0x2a58   :  { %v7520_v10 = vpop.xlane.xlu0 %7519 }
0x2a59   :  { %v7521_v30 = vmul.f32 %v7520_v10, %v8731_v47 }
0x2a5b   :  { %v7526_v28 = vmul.f32 %v7521_v30, %v7521_v30  ;;  %v7528_v42 = vsub.f32 %v7517_v9, %v7521_v30 }
0x2a5d   :  { %v7527_v29 = vsub.f32 %v7525_v3, %v7526_v28 }
0x2a5f   :  { %v7529_v48 = vadd.f32 1e-05, %v7527_v29 }
0x2a61   :  { %8463 = vrsqrt.f32 %v7529_v48  ;;  %vm7536_vm9 = vweird.f32 %v7529_v48 }
0x2a67   :  { %v8464_v25 = vpop.eup %8463 }
0x2a68   :  { %v7531_v57 = vmul.f32 %v8464_v25, %v7529_v48  ;;  %vm7537_vm7 = vweird.f32 %v8464_v25 }
0x2a69   :  { %vm7538_vm2 = vmor %vm7536_vm9, %vm7537_vm7 }
0x2a6a   :  { %v7532_v43 = vmul.f32 %v8464_v25, %v7531_v57  ;;  %vm12597_vm9 = vmmov %vm12593_vm0 }
0x2a6c   :  { %v7533_v11 = vmul.f32 0.5, %v7532_v43 }
0x2a6e   :  { %v7534_v55 = vsub.f32 1.5, %v7533_v11 }
0x2a70   :  { %v7535_v49 = vmul.f32 %v8464_v25, %v7534_v55 }
0x2a72   :  { %v7539_v20 = vsel %vm7538_vm2, %v8464_v25, %v7535_v49  ;;  %vm7707_vm2 = vcmask 64512  }
0x2a73   :  { %v7540_v56 = vmul.f32 %v7539_v20, %v7528_v42  ;;  %v7679_v42 = vld [vmem:[#allocation5 + $0x88] sm:$0xff] }
0x2a74   :  { %7699 = vmatpush.msrb.mxu0 %v7679_v42 }
0x2a75   :  { %v7541_v37 = vmul.f32 %v7540_v56, %v12411_v16  ;;  %v7678_v56 = vld [vmem:[#allocation5 + $0x80] sm:$0xff] }
0x2a76   :  { %7700 = vmatpush.msrb.mxu0 %v7678_v56 }
0x2a77   :  { %v7542_v60 = vadd.f32 %v7541_v37, %v12412_v21 }
0x2a79   :  { %v7543_v47 = vadd.f32 %v7542_v60, %v12452_v5 }
0x2ab1   :  { %v7566_v23 = vpop.f32.mrf.mxu3 }
0x2ab2   :  { %v7569_v34 = vadd.f32 %v7566_v23, %v7543_v47  ;;  %v7677_v47 = vld [vmem:[#allocation5 + $0x78] sm:$0xff] }
0x2ab3   :  { %7701 = vmatpush.msrb.mxu0 %v7677_v47 }
0x2ab4   :  { %v7899_v27 = vmul.f32 -1.442695, %v7569_v34  ;;  %v7676_v34 = vld [vmem:[#allocation5 + $0x70] sm:$0xff] }
0x2ab5   :  { %7702 = vmatpush.msrb.mxu0 %v7676_v34 }
0x2ab6   :  { %8465 = vpow2.f32 %v7899_v27 }
0x2abc   :  { %v8466_v36 = vpop.eup %8465 }
0x2abd   :  { %v7573_v58 = vadd.f32 1.0, %v8466_v36 }
0x2abf   :  { %8467 = vrcp.f32 %v7573_v58  ;;  %v7585_v46 = vand.u32 2147483648, %v7573_v58  ;;  %v7583_v0 = vand.u32 2147483647, %v7573_v58  ;;  %vm7579_vm12 = vweird.f32 %v7573_v58 }
0x2ac1   :  { %v7586_v62 = vor.u32 1.1754944e-38, %v7585_v46  ;;  %vm7584_vm14 = vcmp.eq.f32.partialorder %v7583_v0, 8.507059e+37 }
0x2ac5   :  { %v8468_v54 = vpop.eup %8467 }
0x2ac6   :  { %v7575_v19 = vmul.f32 %v8468_v54, %v7573_v58  ;;  %vm7580_vm3 = vweird.f32 %v8468_v54 }
0x2ac7   :  { %vm7581_vm11 = vmor %vm7579_vm12, %vm7580_vm3 }
0x2ac8   :  { %v7576_v4 = vsub.f32 1.0, %v7575_v19 }
0x2aca   :  { %v7577_v59 = vmul.f32 %v8468_v54, %v7576_v4 }
0x2acc   :  { %v7578_v16 = vadd.f32 %v8468_v54, %v7577_v59 }
0x2ace   :  { %v7582_v21 = vsel %vm7581_vm11, %v8468_v54, %v7578_v16 }
0x2acf   :  { %v7587_v5 = vsel %vm7584_vm14, %v7586_v62, %v7582_v21 }
0x2ad0   :  { %v7589_v7 = vmul.f32 2.0, %v7587_v5  ;;  %v7591_v33 = vmul.f32 %v7587_v5, %v12174_v26 }
0x2ad2   :  { %v7900_v63 = vadd.f32 -1.0, %v7589_v7 }
0x2ad4   :  { %7593 = vrot.lane.b32.xlu2 %v7900_v63, %s8645_s0 }
0x2b2e   :  { %v7594_v18 = vpop.permute.xlu2 %7593 }
0x2b2f   :  { %v7596_v44 = vmul.f32 %v7594_v18, %v7587_v5 }
0x2b31   :  { %7598 = vrot.lane.b32.xlu1 %v7596_v44, %s8646_s2 }
0x2ba3   :  { %v7599_v22 = vpop.permute.xlu1 %7598 }
0x2ba4   :  { %v7601_v32 = vadd.f32 %v7599_v22, %v7591_v33 }
0x2ba6   :  { %v7610_v8 = vmul.f32 %v7601_v32, %v7601_v32  ;;  %7603 = vrot.lane.b32.xlu0 %v7601_v32, %s8647_s28 }
0x2ba8   :  { %7612 = vrot.lane.b32.xlu1 %v7610_v8, %s8647_s28 }
0x2c18   :  { %v7604_v17 = vpop.permute.xlu0 %7603 }
0x2c19   :  { %v7606_v13 = vsel %vm12593_vm0, %v7604_v17, 0.0 }
0x2c1a   :  { %7607 = vadd.xlane.f32.xlu2 %v7606_v13  ;;  %v7613_v45 = vpop.permute.xlu1 %7612 }
0x2c1b   :  { %v7615_v24 = vsel %vm12594_vm6, %v7613_v45, 0.0 }
0x2c1c   :  { %7616 = vadd.xlane.f32.xlu1 %v7615_v24 }
0x2c8d   :  { %v7608_v52 = vpop.xlane.xlu2 %7607 }
0x2c8e   :  { %v7609_v41 = vmul.f32 %v7608_v52, %v9050_v40 }
0x2c8f   :  { %v7617_v61 = vpop.xlane.xlu1 %7616 }
0x2c90   :  { %v7619_v26 = vmul.f32 %v7609_v41, %v7609_v41  ;;  %v7618_v14 = vmul.f32 %v7617_v61, %v9050_v40  ;;  %v7621_v10 = vsub.f32 %v7601_v32, %v7609_v41 }
0x2c92   :  { %v7620_v15 = vsub.f32 %v7618_v14, %v7619_v26 }
0x2c94   :  { %v7622_v12 = vadd.f32 1e-05, %v7620_v15 }
0x2c96   :  { %8469 = vrsqrt.f32 %v7622_v12  ;;  %vm7629_vm13 = vweird.f32 %v7622_v12 }
0x2c9c   :  { %v8470_v50 = vpop.eup %8469 }
0x2c9d   :  { %v7624_v1 = vmul.f32 %v8470_v50, %v7622_v12  ;;  %vm7630_vm10 = vweird.f32 %v8470_v50 }
0x2c9e   :  { %vm7631_vm4 = vmor %vm7629_vm13, %vm7630_vm10 }
0x2c9f   :  { %v7625_v38 = vmul.f32 %v8470_v50, %v7624_v1 }
0x2ca1   :  { %v7626_v9 = vmul.f32 0.5, %v7625_v38 }
0x2ca3   :  { %v7627_v31 = vsub.f32 1.5, %v7626_v9 }
0x2ca5   :  { %v7628_v6 = vmul.f32 %v8470_v50, %v7627_v31 }
0x2ca7   :  { %v7632_v30 = vsel %vm7631_vm4, %v8470_v50, %v7628_v6 }
0x2ca8   :  { %v7633_v35 = vmul.f32 %v7632_v30, %v7621_v10 }
0x2caa   :  { %v7634_v28 = vmul.f32 %v7633_v35, %v12545_v39 }
0x2cac   :  { %v7635_v3 = vadd.f32 %v7634_v28, %v12546_v51 }
0x2cae   :  { %8471 = vtanh.f32 %v7635_v3 }
0x2cb4   :  { %v8472_v29 = vpop.eup %8471 }
0x2cb5   :  { %7638 = vrot.lane.b32.xlu0 %v8472_v29, %s8645_s0 }
0x2d27   :  { %v7639_v48 = vpop.permute.xlu0 %7638 }
0x2d28   :  { %v7641_v25 = vmul.f32 %v7639_v48, %v7587_v5  ;;  %v7914_v5 = vld [vmem:[#allocation7 + $0x10] ss:$0 sm:$0xff] }
0x2d2a   :  { %v7650_v57 = vmul.f32 %v7641_v25, %v7641_v25  ;;  %7643 = vrot.lane.b32.xlu0 %v7641_v25, %s8646_s2 }
0x2d2c   :  { %7652 = vrot.lane.b32.xlu2 %v7650_v57, %s8646_s2 }
0x2d86   :  { %v7653_v43 = vpop.permute.xlu2 %7652 }
0x2d87   :  { %v7655_v11 = vsel %vm12595_vm1, %v7653_v43, 0.0 }
0x2d88   :  { %7656 = vadd.xlane.f32.xlu1 %v7655_v11 }
0x2d9c   :  { %v7644_v55 = vpop.permute.xlu0 %7643 }
0x2d9d   :  { %v7646_v39 = vsel %vm12596_vm5, %v7644_v55, 0.0 }
0x2d9e   :  { %7647 = vadd.xlane.f32.xlu0 %v7646_v39 }
0x2dfb   :  { %v7657_v51 = vpop.xlane.xlu1 %7656 }
0x2dfc   :  { %v7658_v37 = vmul.f32 %v7657_v51, %v9050_v40 }
0x2e11   :  { %v7648_v49 = vpop.xlane.xlu0 %7647 }
0x2e12   :  { %v7649_v20 = vmul.f32 %v7648_v49, %v9050_v40 }
0x2e14   :  { %v7659_v60 = vmul.f32 %v7649_v20, %v7649_v20  ;;  %v7661_v59 = vsub.f32 %v7641_v25, %v7649_v20 }
0x2e16   :  { %v7660_v23 = vsub.f32 %v7658_v37, %v7659_v60 }
0x2e18   :  { %v7662_v27 = vadd.f32 1e-05, %v7660_v23 }
0x2e1a   :  { %8473 = vrsqrt.f32 %v7662_v27  ;;  %vm7669_vm15 = vweird.f32 %v7662_v27 }
0x2e20   :  { %v8474_v36 = vpop.eup %8473 }
0x2e21   :  { %v7664_v58 = vmul.f32 %v8474_v36, %v7662_v27  ;;  %vm7670_vm8 = vweird.f32 %v8474_v36 }
0x2e22   :  { %vm7671_vm7 = vmor %vm7669_vm15, %vm7670_vm8 }
0x2e23   :  { %v7665_v54 = vmul.f32 %v8474_v36, %v7664_v58 }
0x2e25   :  { %v7666_v19 = vmul.f32 0.5, %v7665_v54 }
0x2e27   :  { %v7667_v4 = vsub.f32 1.5, %v7666_v19 }
0x2e29   :  { %v7668_v46 = vmul.f32 %v8474_v36, %v7667_v4 }
0x2e2b   :  { %v7672_v40 = vsel %vm7671_vm7, %v8474_v36, %v7668_v46 }
0x2e2c   :  { %v7673_v0 = vmul.f32 %v7672_v40, %v7661_v59 }
0x2e2e   :  { %v7674_v16 = vmul.f32 %v7673_v0, %v9779_v53 }
0x2e30   :  { %v7675_v62 = vadd.f32 %v7674_v16, %v9781_v2 }
0x2e32   :  { %7683 = vrot.lane.b32.xlu1 %v7675_v62, %s8646_s2 }
0x2ea4   :  { %v7684_v21 = vpop.permute.xlu1 %7683 }
0x2ea5   :  { %7901 = vmatmul.msk.f32.vlgmr.msrb.gmra.mxu0 %vm12597_vm9, %v7684_v21 }
0x2f22   :  { %v7704_v7 = vpop.f32.mrf.mxu0 }
0x2f23   :  { %v7705_v63 = vadd.f32 %v7914_v5, %v7704_v7 }
0x2f25   :  { %7708 = vst.msk [vmem:[#allocation8] sm:$0xff] %vm7707_vm2, %v7705_v63 }
0x2f26   :  { %7719 = dma.vmem_to_hbm [thread:$0]  %s7715_s30, 128, %s7717_s6, [#allocation4]  }
0x2f27   :  { %8636 = dma.done.wait [#allocation4], 128  }
0x2f28   :  { %8637 = vsyncadd [#allocation4], 4294967168 }
0x2f29   :  { %7724 = vsyncpa [#allocation3], 1 }
0x2f2a   :  { %7725 = vsyncpa [#allocation6], 1 }
0x2f2b   :  { %7726 = vsyncpa [#allocation4], 1 }

</bundles_post_ra>
